<compile_context>
chip_gen: v7x
topology: tpu7x:2x2x1
jax: 0.10.0
libtpu: 0.0.40
codegen_flags: <defaults>
</compile_context>

<pallas_src>
import functools

import jax
import jax.numpy as jnp
from jax.experimental import pallas as pl
from jax.experimental.pallas import tpu as pltpu


# ----------------------------------------------------------------------------
# Exact (erf-based) GELU, as in torch.nn.GELU(default).  erf via the
# Abramowitz & Stegun 7.1.26 polynomial (|err| < 1.5e-7): only exp / mul / add /
# where / reciprocal, all guaranteed Mosaic-lowerable.  The 1/(1+p|x|) goes to
# the EUP with an approximate reciprocal (error far below the f32->bf16 noise).
# ----------------------------------------------------------------------------
def _erf_approx(x):
    a1, a2, a3, a4, a5 = (0.254829592, -0.284496736, 1.421413741,
                          -1.453152027, 1.061405429)
    p = 0.3275911
    sgn = jnp.where(x >= 0.0, 1.0, -1.0)
    ax = jnp.abs(x)
    t = pl.reciprocal(1.0 + p * ax, approx=True)          # EUP, frees VALU slots
    poly = ((((a5 * t + a4) * t + a3) * t + a2) * t + a1) * t
    return sgn * (1.0 - poly * jnp.exp(-ax * ax))


def _gelu_exact(x):
    return 0.5 * x * (1.0 + _erf_approx(x * 0.7071067811865475))


# ----------------------------------------------------------------------------
# Fused Block kernel: one grid step == one batch element.
# ----------------------------------------------------------------------------
def block_kernel(x_ref, ln1g_ref, ln1b_ref, wqkv_ref, wproj_ref, bproj_ref,
                 ln2g_ref, ln2b_ref, wfc1_ref, bfc1_ref, wfc2_ref, bfc2_ref,
                 out_ref, attn_ref, qkv_scr, ctx_scr, *, num_heads):
    N, C = x_ref.shape
    hd = C // num_heads
    scale = float(hd) ** -0.5
    eps = 1e-5

    # ---- norm1 (LayerNorm, eps=1e-5, biased variance), rsqrt on the EUP ----
    x = x_ref[...]                                         # (N, C) f32
    mu = jnp.mean(x, axis=-1, keepdims=True)
    xc = x - mu
    var = jnp.mean(xc * xc, axis=-1, keepdims=True)
    h = xc * jax.lax.rsqrt(var + eps) * ln1g_ref[...] + ln1b_ref[...]

    # ---- Attention: qkv (qkv_bias=False default); bf16 operands, f32 accum ----
    qkv_scr[...] = jnp.dot(h.astype(jnp.bfloat16), wqkv_ref[...],
                           preferred_element_type=jnp.float32)     # (N, 3C)

    for hh in range(num_heads):                            # static unrolled loop
        lo = hh * hd
        qh = qkv_scr[:, lo:lo + hd].astype(jnp.bfloat16)           # (N, hd)
        kh = qkv_scr[:, C + lo:C + lo + hd].astype(jnp.bfloat16)   # (N, hd)
        vh = qkv_scr[:, 2 * C + lo:2 * C + lo + hd].astype(jnp.bfloat16)

        # q @ k^T without an explicit transpose (contract last dims)
        s = jax.lax.dot_general(qh, kh, (((1,), (1,)), ((), ())),
                                preferred_element_type=jnp.float32) * scale
        s = s - jnp.max(s, axis=-1, keepdims=True)
        p = jnp.exp(s)
        p = p * (1.0 / jnp.sum(p, axis=-1, keepdims=True))  # softmax, f32 (N, N)

        # mean-over-heads attention accumulates directly into the output ref
        if hh == 0:
            attn_ref[...] = p
        else:
            attn_ref[...] += p

        # P @ V with bf16 p (attn output above stays f32-exact)
        ctx = jnp.dot(p.astype(jnp.bfloat16), vh,
                      preferred_element_type=jnp.float32)            # (N, hd)
        ctx_scr[:, lo:lo + hd] = ctx                      # slab for one big proj

    attn_ref[...] *= (1.0 / num_heads)

    # ---- single full-depth output projection (K = C, not K = hd) ----
    x_attn = jnp.dot(ctx_scr[...].astype(jnp.bfloat16), wproj_ref[...],
                     preferred_element_type=jnp.float32) + bproj_ref[...]

    # ---- residual 1 (re-read x from VMEM; not kept live across the head loop) ----
    x1 = x_ref[...] + x_attn

    # ---- norm2 ----
    mu2 = jnp.mean(x1, axis=-1, keepdims=True)
    xc2 = x1 - mu2
    var2 = jnp.mean(xc2 * xc2, axis=-1, keepdims=True)
    h2 = xc2 * jax.lax.rsqrt(var2 + eps) * ln2g_ref[...] + ln2b_ref[...]

    # ---- MLP: fc1 -> GELU(exact) -> fc2, bf16 MXU operands ----
    a = jnp.dot(h2.astype(jnp.bfloat16), wfc1_ref[...],
                preferred_element_type=jnp.float32) + bfc1_ref[...]
    a = _gelu_exact(a)
    m = jnp.dot(a.astype(jnp.bfloat16), wfc2_ref[...],
                preferred_element_type=jnp.float32) + bfc2_ref[...]

    # ---- residual 2 ----
    out_ref[...] = (x1 + m).astype(out_ref.dtype)


# ----------------------------------------------------------------------------
# Wrapper: PyTorch-convention parameters -> fused Pallas call.
# ----------------------------------------------------------------------------
def vit_block(x, params, *, num_heads):
    """x: (B, N, C).  params hold PyTorch-convention weights:
       qkv_w (3C, C), proj_w (C, C), fc1_w (Hd, C), fc2_w (C, Hd), LN gamma/beta (C,).
       Returns (out (B,N,C), attn_mean (B,N,N))."""
    B, N, C = x.shape
    assert C % num_heads == 0
    Hd = params["fc1_w"].shape[0]

    # One-time weight layout plumbing (tiny): (out,in) -> (in,out), cast to bf16
    # so the kernel feeds the MXU native bf16 operands and VMEM residency halves.
    wqkv = params["qkv_w"].T.astype(jnp.bfloat16)        # (C, 3C)
    wproj = params["proj_w"].T.astype(jnp.bfloat16)      # (C, C)
    wfc1 = params["fc1_w"].T.astype(jnp.bfloat16)        # (C, Hd)
    wfc2 = params["fc2_w"].T.astype(jnp.bfloat16)        # (Hd, C)
    # LN params and biases stay f32 (added to f32 accumulations on the VPU).
    ln1g = params["ln1_g"].reshape(1, C).astype(jnp.float32)
    ln1b = params["ln1_b"].reshape(1, C).astype(jnp.float32)
    ln2g = params["ln2_g"].reshape(1, C).astype(jnp.float32)
    ln2b = params["ln2_b"].reshape(1, C).astype(jnp.float32)
    bproj = params["proj_b"].reshape(1, C).astype(jnp.float32)
    bfc1 = params["fc1_b"].reshape(1, Hd).astype(jnp.float32)
    bfc2 = params["fc2_b"].reshape(1, C).astype(jnp.float32)

    # Grid-invariant operands: whole-array VMEM residency, single-buffered.
    wspec = pl.BlockSpec(memory_space=pltpu.MemorySpace.VMEM)

    out, attn = pl.pallas_call(
        functools.partial(block_kernel, num_heads=num_heads),
        out_shape=(
            jax.ShapeDtypeStruct((B, N, C), x.dtype),
            jax.ShapeDtypeStruct((B, N, N), jnp.float32),
        ),
        grid_spec=pltpu.PrefetchScalarGridSpec(
            num_scalar_prefetch=0,
            grid=(B,),
            in_specs=[
                pl.BlockSpec((None, N, C), lambda b: (b, 0, 0)),  # x: one batch/step
                wspec, wspec,                                     # ln1 gamma/beta
                wspec,                                            # wqkv (bf16)
                wspec, wspec,                                     # wproj (bf16), bproj
                wspec, wspec,                                     # ln2 gamma/beta
                wspec, wspec,                                     # wfc1 (bf16), bfc1
                wspec, wspec,                                     # wfc2 (bf16), bfc2
            ],
            out_specs=[
                pl.BlockSpec((None, N, C), lambda b: (b, 0, 0)),  # block output
                pl.BlockSpec((None, N, N), lambda b: (b, 0, 0)),  # attn.mean(heads)
            ],
            scratch_shapes=[
                pltpu.VMEM((N, 3 * C), jnp.float32),   # qkv result (sliced per head)
                pltpu.VMEM((N, C), jnp.float32),       # per-head context slab
            ],
        ),
        compiler_params=pltpu.CompilerParams(
            dimension_semantics=("parallel",),        # batch axis shards across v7x TCs
            vmem_limit_bytes=32 * 1024 * 1024,        # ample headroom on all gens
        ),
    )(x, ln1g, ln1b, wqkv, wproj, bproj, ln2g, ln2b, wfc1, bfc1, wfc2, bfc2)

    return out, attn


# ----------------------------------------------------------------------------
# Plain-JAX reference replicating the PyTorch Block.forward (eval mode, f32).
# ----------------------------------------------------------------------------
def reference(x, params, *, num_heads):
    eps = 1e-5
    B, N, C = x.shape
    hd = C // num_heads

    def layer_norm(v, g, b):
        mu = jnp.mean(v, axis=-1, keepdims=True)
        var = jnp.mean((v - mu) ** 2, axis=-1, keepdims=True)
        return (v - mu) / jnp.sqrt(var + eps) * g + b

    h = layer_norm(x, params["ln1_g"], params["ln1_b"])
    qkv = h @ params["qkv_w"].T                                     # (B, N, 3C)
    qkv = qkv.reshape(B, N, 3, num_heads, hd).transpose(2, 0, 3, 1, 4)
    q, k, v = qkv[0], qkv[1], qkv[2]                                # (B, H, N, hd)
    attn = (q @ jnp.swapaxes(k, -2, -1)) * (hd ** -0.5)
    attn = jax.nn.softmax(attn, axis=-1)
    ctx = jnp.swapaxes(attn @ v, 1, 2).reshape(B, N, C)
    x_attn = ctx @ params["proj_w"].T + params["proj_b"]
    x1 = x + x_attn
    h2 = layer_norm(x1, params["ln2_g"], params["ln2_b"])
    a = h2 @ params["fc1_w"].T + params["fc1_b"]
    a = 0.5 * a * (1.0 + jax.lax.erf(a * 0.7071067811865475))       # exact GELU
    m = a @ params["fc2_w"].T + params["fc2_b"]
    return x1 + m, attn.mean(axis=1)


if __name__ == "__main__":
    # Small but lane-aligned shapes (every dim a multiple of the 128-lane vreg
    # width so all loads/stores are unmasked).
    B, N, C = 2, 128, 128
    num_heads = 4
    hidden = int(4.0 * C)          # mlp_ratio = 4.0

    key = jax.random.PRNGKey(0)
    ks = jax.random.split(key, 12)
    x = jax.random.normal(ks[0], (B, N, C), dtype=jnp.float32)
    params = {
        "ln1_g": 1.0 + 0.1 * jax.random.normal(ks[1], (C,), jnp.float32),
        "ln1_b": 0.1 * jax.random.normal(ks[2], (C,), jnp.float32),
        "qkv_w": 0.05 * jax.random.normal(ks[3], (3 * C, C), jnp.float32),
        "proj_w": 0.05 * jax.random.normal(ks[4], (C, C), jnp.float32),
        "proj_b": 0.01 * jax.random.normal(ks[5], (C,), jnp.float32),
        "ln2_g": 1.0 + 0.1 * jax.random.normal(ks[6], (C,), jnp.float32),
        "ln2_b": 0.1 * jax.random.normal(ks[7], (C,), jnp.float32),
        "fc1_w": 0.05 * jax.random.normal(ks[8], (hidden, C), jnp.float32),
        "fc1_b": 0.01 * jax.random.normal(ks[9], (hidden,), jnp.float32),
        "fc2_w": 0.05 * jax.random.normal(ks[10], (C, hidden), jnp.float32),
        "fc2_b": 0.01 * jax.random.normal(ks[11], (C,), jnp.float32),
    }

    out, attn = vit_block(x, params, num_heads=num_heads)
    out = jax.block_until_ready(out)
    attn = jax.block_until_ready(attn)

    ref_out, ref_attn = reference(x, params, num_heads=num_heads)

    assert out.shape == (B, N, C), out.shape
    assert attn.shape == (B, N, N), attn.shape
    max_out_err = float(jnp.max(jnp.abs(out - ref_out)))
    max_attn_err = float(jnp.max(jnp.abs(attn - ref_attn)))
    # out tolerance loosened for bf16 MXU operands over K=128/512 contractions;
    # attention path keeps p / attn_sum in f32, only the bf16 q/k rounding
    # perturbs the probabilities (~1e-4 absolute at most).
    assert jnp.allclose(out, ref_out, atol=2e-2, rtol=2e-2), max_out_err
    assert jnp.allclose(attn, ref_attn, atol=5e-4, rtol=5e-4), max_attn_err

    # TODO(synk): Dropout / DropPath are identity here (drop probs = 0.0, eval mode).
    print("KERNEL_OK")
</pallas_src>

<mosaic_0001>
module attributes {stable_mosaic.version = 11 : i64} {
  func.func @block_kernel(%arg0: i32, %arg1: memref<1x128x128xf32, #tpu.memory_space<vmem>>, %arg2: memref<1x128xf32, #tpu.memory_space<vmem>>, %arg3: memref<1x128xf32, #tpu.memory_space<vmem>>, %arg4: memref<128x384xbf16, #tpu.memory_space<vmem>>, %arg5: memref<128x128xbf16, #tpu.memory_space<vmem>>, %arg6: memref<1x128xf32, #tpu.memory_space<vmem>>, %arg7: memref<1x128xf32, #tpu.memory_space<vmem>>, %arg8: memref<1x128xf32, #tpu.memory_space<vmem>>, %arg9: memref<128x512xbf16, #tpu.memory_space<vmem>>, %arg10: memref<1x512xf32, #tpu.memory_space<vmem>>, %arg11: memref<512x128xbf16, #tpu.memory_space<vmem>>, %arg12: memref<1x128xf32, #tpu.memory_space<vmem>>, %arg13: memref<1x128x128xf32, #tpu.memory_space<vmem>>, %arg14: memref<1x128x128xf32, #tpu.memory_space<vmem>>, %arg15: memref<128x384xf32, #tpu.memory_space<vmem>>, %arg16: memref<128x128xf32, #tpu.memory_space<vmem>>) attributes {dimension_semantics = [#tpu.dimension_semantics<parallel>], iteration_bounds = array<i64: 2>, scalar_prefetch = 0 : i64, scratch_operands = 2 : i64, tpu.core_type = #tpu.core_type<tc>, window_params = [{transform_indices = @transform_0, window_bounds = array<i64: 1, 128, 128>}, {pipeline_mode = #tpu.pipeline_mode<synchronous>, transform_indices = @transform_1, window_bounds = array<i64: 1, 128>}, {pipeline_mode = #tpu.pipeline_mode<synchronous>, transform_indices = @transform_2, window_bounds = array<i64: 1, 128>}, {pipeline_mode = #tpu.pipeline_mode<synchronous>, transform_indices = @transform_3, window_bounds = array<i64: 128, 384>}, {pipeline_mode = #tpu.pipeline_mode<synchronous>, transform_indices = @transform_4, window_bounds = array<i64: 128, 128>}, {pipeline_mode = #tpu.pipeline_mode<synchronous>, transform_indices = @transform_5, window_bounds = array<i64: 1, 128>}, {pipeline_mode = #tpu.pipeline_mode<synchronous>, transform_indices = @transform_6, window_bounds = array<i64: 1, 128>}, {pipeline_mode = #tpu.pipeline_mode<synchronous>, transform_indices = @transform_7, window_bounds = array<i64: 1, 128>}, {pipeline_mode = #tpu.pipeline_mode<synchronous>, transform_indices = @transform_8, window_bounds = array<i64: 128, 512>}, {pipeline_mode = #tpu.pipeline_mode<synchronous>, transform_indices = @transform_9, window_bounds = array<i64: 1, 512>}, {pipeline_mode = #tpu.pipeline_mode<synchronous>, transform_indices = @transform_10, window_bounds = array<i64: 512, 128>}, {pipeline_mode = #tpu.pipeline_mode<synchronous>, transform_indices = @transform_11, window_bounds = array<i64: 1, 128>}, {transform_indices = @transform_12, window_bounds = array<i64: 1, 128, 128>}, {transform_indices = @transform_13, window_bounds = array<i64: 1, 128, 128>}]} {
    %c0 = arith.constant 0 : index
    %c0_0 = arith.constant 0 : index
    %c0_1 = arith.constant 0 : index
    %0 = vector.load %arg1[%c0, %c0_0, %c0_1] : memref<1x128x128xf32, #tpu.memory_space<vmem>>, vector<1x128x128xf32>
    %1 = vector.shape_cast %0 : vector<1x128x128xf32> to vector<128x128xf32>
    %cst = arith.constant dense<0.000000e+00> : vector<128xf32>
    %2 = vector.multi_reduction <add>, %1, %cst [1] : vector<128x128xf32> to vector<128xf32>
    %3 = vector.shape_cast %2 : vector<128xf32> to vector<128x1xf32>
    %cst_2 = arith.constant 1.280000e+02 : f32
    %4 = vector.broadcast %cst_2 : f32 to vector<128x1xf32>
    %5 = arith.divf %3, %4 : vector<128x1xf32>
    %6 = vector.broadcast %5 : vector<128x1xf32> to vector<128x128xf32>
    %7 = arith.subf %1, %6 : vector<128x128xf32>
    %8 = arith.mulf %7, %7 : vector<128x128xf32>
    %cst_3 = arith.constant dense<0.000000e+00> : vector<128xf32>
    %9 = vector.multi_reduction <add>, %8, %cst_3 [1] : vector<128x128xf32> to vector<128xf32>
    %10 = vector.shape_cast %9 : vector<128xf32> to vector<128x1xf32>
    %cst_4 = arith.constant 1.280000e+02 : f32
    %11 = vector.broadcast %cst_4 : f32 to vector<128x1xf32>
    %12 = arith.divf %10, %11 : vector<128x1xf32>
    %cst_5 = arith.constant 9.99999974E-6 : f32
    %13 = vector.broadcast %cst_5 : f32 to vector<128x1xf32>
    %14 = arith.addf %12, %13 : vector<128x1xf32>
    %15 = math.rsqrt %14 : vector<128x1xf32>
    %16 = vector.broadcast %15 : vector<128x1xf32> to vector<128x128xf32>
    %17 = arith.mulf %7, %16 : vector<128x128xf32>
    %c0_6 = arith.constant 0 : index
    %c0_7 = arith.constant 0 : index
    %18 = vector.load %arg2[%c0_6, %c0_7] : memref<1x128xf32, #tpu.memory_space<vmem>>, vector<1x128xf32>
    %19 = vector.broadcast %18 : vector<1x128xf32> to vector<128x128xf32>
    %20 = arith.mulf %17, %19 : vector<128x128xf32>
    %c0_8 = arith.constant 0 : index
    %c0_9 = arith.constant 0 : index
    %21 = vector.load %arg3[%c0_8, %c0_9] : memref<1x128xf32, #tpu.memory_space<vmem>>, vector<1x128xf32>
    %22 = vector.broadcast %21 : vector<1x128xf32> to vector<128x128xf32>
    %23 = arith.addf %20, %22 : vector<128x128xf32>
    %24 = arith.truncf %23 : vector<128x128xf32> to vector<128x128xbf16>
    %c0_10 = arith.constant 0 : index
    %c0_11 = arith.constant 0 : index
    %25 = vector.load %arg4[%c0_10, %c0_11] : memref<128x384xbf16, #tpu.memory_space<vmem>>, vector<128x384xbf16>
    %cst_12 = arith.constant dense<0.000000e+00> : vector<128x384xf32>
    %26 = tpu.matmul %24, %25, %cst_12 {dimension_numbers = #tpu.dot_dimension_numbers<[1], [0], [0], [1], [0, 0, 1, 1], [], []>} : vector<128x128xbf16>, vector<128x384xbf16>, vector<128x384xf32> -> vector<128x384xf32>
    %c0_13 = arith.constant 0 : index
    %c0_14 = arith.constant 0 : index
    %27 = vector.load %arg15[%c0_13, %c0_14] : memref<128x384xf32, #tpu.memory_space<vmem>>, vector<128x384xf32>
    tpu.vector_store %arg15[%c0_13, %c0_14], %26 {strides = array<i32>} : memref<128x384xf32, #tpu.memory_space<vmem>>, vector<128x384xf32>,
    %c0_15 = arith.constant 0 : index
    %c0_16 = arith.constant 0 : index
    %28 = vector.load %arg15[%c0_15, %c0_16] : memref<128x384xf32, #tpu.memory_space<vmem>>, vector<128x32xf32>
    %29 = arith.truncf %28 : vector<128x32xf32> to vector<128x32xbf16>
    %c0_17 = arith.constant 0 : index
    %c128 = arith.constant 128 : index
    %30 = vector.load %arg15[%c0_17, %c128] : memref<128x384xf32, #tpu.memory_space<vmem>>, vector<128x32xf32>
    %31 = arith.truncf %30 : vector<128x32xf32> to vector<128x32xbf16>
    %c0_18 = arith.constant 0 : index
    %c256 = arith.constant 256 : index
    %32 = vector.load %arg15[%c0_18, %c256] : memref<128x384xf32, #tpu.memory_space<vmem>>, vector<128x32xf32>
    %33 = arith.truncf %32 : vector<128x32xf32> to vector<128x32xbf16>
    %cst_19 = arith.constant dense<0.000000e+00> : vector<128x128xf32>
    %34 = tpu.matmul %29, %31, %cst_19 {dimension_numbers = #tpu.dot_dimension_numbers<[1], [1], [0], [0], [0, 0, 1, 0], [], []>} : vector<128x32xbf16>, vector<128x32xbf16>, vector<128x128xf32> -> vector<128x128xf32>
    %cst_20 = arith.constant 0.176776692 : f32
    %35 = vector.broadcast %cst_20 : f32 to vector<128x128xf32>
    %36 = arith.mulf %34, %35 : vector<128x128xf32>
    %cst_21 = arith.constant dense<0xFF800000> : vector<128xf32>
    %37 = vector.multi_reduction <maximumf>, %36, %cst_21 [1] : vector<128x128xf32> to vector<128xf32>
    %38 = vector.shape_cast %37 : vector<128xf32> to vector<128x1xf32>
    %39 = vector.broadcast %38 : vector<128x1xf32> to vector<128x128xf32>
    %40 = arith.subf %36, %39 : vector<128x128xf32>
    %41 = math.exp %40 : vector<128x128xf32>
    %cst_22 = arith.constant dense<0.000000e+00> : vector<128xf32>
    %42 = vector.multi_reduction <add>, %41, %cst_22 [1] : vector<128x128xf32> to vector<128xf32>
    %43 = vector.shape_cast %42 : vector<128xf32> to vector<128x1xf32>
    %cst_23 = arith.constant 1.000000e+00 : f32
    %44 = vector.broadcast %cst_23 : f32 to vector<128x1xf32>
    %45 = arith.divf %44, %43 : vector<128x1xf32>
    %46 = vector.broadcast %45 : vector<128x1xf32> to vector<128x128xf32>
    %47 = arith.mulf %41, %46 : vector<128x128xf32>
    %c0_24 = arith.constant 0 : index
    %c0_25 = arith.constant 0 : index
    %c0_26 = arith.constant 0 : index
    %48 = vector.load %arg14[%c0_24, %c0_25, %c0_26] : memref<1x128x128xf32, #tpu.memory_space<vmem>>, vector<1x128x128xf32>
    %49 = vector.shape_cast %48 : vector<1x128x128xf32> to vector<128x128xf32>
    %50 = vector.shape_cast %47 : vector<128x128xf32> to vector<1x128x128xf32>
    tpu.vector_store %arg14[%c0_24, %c0_25, %c0_26], %50 {strides = array<i32>} : memref<1x128x128xf32, #tpu.memory_space<vmem>>, vector<1x128x128xf32>,
    %51 = arith.truncf %47 : vector<128x128xf32> to vector<128x128xbf16>
    %cst_27 = arith.constant dense<0.000000e+00> : vector<128x32xf32>
    %52 = tpu.matmul %51, %33, %cst_27 {dimension_numbers = #tpu.dot_dimension_numbers<[1], [0], [0], [1], [0, 0, 1, 1], [], []>} : vector<128x128xbf16>, vector<128x32xbf16>, vector<128x32xf32> -> vector<128x32xf32>
    %c0_28 = arith.constant 0 : index
    %c0_29 = arith.constant 0 : index
    %53 = vector.load %arg16[%c0_28, %c0_29] : memref<128x128xf32, #tpu.memory_space<vmem>>, vector<128x32xf32>
    tpu.vector_store %arg16[%c0_28, %c0_29], %52 {strides = array<i32>} : memref<128x128xf32, #tpu.memory_space<vmem>>, vector<128x32xf32>,
    %c0_30 = arith.constant 0 : index
    %c32 = arith.constant 32 : index
    %54 = vector.load %arg15[%c0_30, %c32] : memref<128x384xf32, #tpu.memory_space<vmem>>, vector<128x32xf32>
    %55 = arith.truncf %54 : vector<128x32xf32> to vector<128x32xbf16>
    %c0_31 = arith.constant 0 : index
    %c160 = arith.constant 160 : index
    %56 = vector.load %arg15[%c0_31, %c160] : memref<128x384xf32, #tpu.memory_space<vmem>>, vector<128x32xf32>
    %57 = arith.truncf %56 : vector<128x32xf32> to vector<128x32xbf16>
    %c0_32 = arith.constant 0 : index
    %c288 = arith.constant 288 : index
    %58 = vector.load %arg15[%c0_32, %c288] : memref<128x384xf32, #tpu.memory_space<vmem>>, vector<128x32xf32>
    %59 = arith.truncf %58 : vector<128x32xf32> to vector<128x32xbf16>
    %cst_33 = arith.constant dense<0.000000e+00> : vector<128x128xf32>
    %60 = tpu.matmul %55, %57, %cst_33 {dimension_numbers = #tpu.dot_dimension_numbers<[1], [1], [0], [0], [0, 0, 1, 0], [], []>} : vector<128x32xbf16>, vector<128x32xbf16>, vector<128x128xf32> -> vector<128x128xf32>
    %cst_34 = arith.constant 0.176776692 : f32
    %61 = vector.broadcast %cst_34 : f32 to vector<128x128xf32>
    %62 = arith.mulf %60, %61 : vector<128x128xf32>
    %cst_35 = arith.constant dense<0xFF800000> : vector<128xf32>
    %63 = vector.multi_reduction <maximumf>, %62, %cst_35 [1] : vector<128x128xf32> to vector<128xf32>
    %64 = vector.shape_cast %63 : vector<128xf32> to vector<128x1xf32>
    %65 = vector.broadcast %64 : vector<128x1xf32> to vector<128x128xf32>
    %66 = arith.subf %62, %65 : vector<128x128xf32>
    %67 = math.exp %66 : vector<128x128xf32>
    %cst_36 = arith.constant dense<0.000000e+00> : vector<128xf32>
    %68 = vector.multi_reduction <add>, %67, %cst_36 [1] : vector<128x128xf32> to vector<128xf32>
    %69 = vector.shape_cast %68 : vector<128xf32> to vector<128x1xf32>
    %cst_37 = arith.constant 1.000000e+00 : f32
    %70 = vector.broadcast %cst_37 : f32 to vector<128x1xf32>
    %71 = arith.divf %70, %69 : vector<128x1xf32>
    %72 = vector.broadcast %71 : vector<128x1xf32> to vector<128x128xf32>
    %73 = arith.mulf %67, %72 : vector<128x128xf32>
    %c0_38 = arith.constant 0 : index
    %c0_39 = arith.constant 0 : index
    %c0_40 = arith.constant 0 : index
    %74 = vector.load %arg14[%c0_38, %c0_39, %c0_40] : memref<1x128x128xf32, #tpu.memory_space<vmem>>, vector<1x128x128xf32>
    %75 = vector.shape_cast %74 : vector<1x128x128xf32> to vector<128x128xf32>
    %76 = arith.addf %75, %73 : vector<128x128xf32>
    %c0_41 = arith.constant 0 : index
    %c0_42 = arith.constant 0 : index
    %c0_43 = arith.constant 0 : index
    %77 = vector.load %arg14[%c0_41, %c0_42, %c0_43] : memref<1x128x128xf32, #tpu.memory_space<vmem>>, vector<1x128x128xf32>
    %78 = vector.shape_cast %77 : vector<1x128x128xf32> to vector<128x128xf32>
    %79 = vector.shape_cast %76 : vector<128x128xf32> to vector<1x128x128xf32>
    tpu.vector_store %arg14[%c0_41, %c0_42, %c0_43], %79 {strides = array<i32>} : memref<1x128x128xf32, #tpu.memory_space<vmem>>, vector<1x128x128xf32>,
    %80 = arith.truncf %73 : vector<128x128xf32> to vector<128x128xbf16>
    %cst_44 = arith.constant dense<0.000000e+00> : vector<128x32xf32>
    %81 = tpu.matmul %80, %59, %cst_44 {dimension_numbers = #tpu.dot_dimension_numbers<[1], [0], [0], [1], [0, 0, 1, 1], [], []>} : vector<128x128xbf16>, vector<128x32xbf16>, vector<128x32xf32> -> vector<128x32xf32>
    %c0_45 = arith.constant 0 : index
    %c32_46 = arith.constant 32 : index
    %82 = vector.load %arg16[%c0_45, %c32_46] : memref<128x128xf32, #tpu.memory_space<vmem>>, vector<128x32xf32>
    tpu.vector_store %arg16[%c0_45, %c32_46], %81 {strides = array<i32>} : memref<128x128xf32, #tpu.memory_space<vmem>>, vector<128x32xf32>,
    %c0_47 = arith.constant 0 : index
    %c64 = arith.constant 64 : index
    %83 = vector.load %arg15[%c0_47, %c64] : memref<128x384xf32, #tpu.memory_space<vmem>>, vector<128x32xf32>
    %84 = arith.truncf %83 : vector<128x32xf32> to vector<128x32xbf16>
    %c0_48 = arith.constant 0 : index
    %c192 = arith.constant 192 : index
    %85 = vector.load %arg15[%c0_48, %c192] : memref<128x384xf32, #tpu.memory_space<vmem>>, vector<128x32xf32>
    %86 = arith.truncf %85 : vector<128x32xf32> to vector<128x32xbf16>
    %c0_49 = arith.constant 0 : index
    %c320 = arith.constant 320 : index
    %87 = vector.load %arg15[%c0_49, %c320] : memref<128x384xf32, #tpu.memory_space<vmem>>, vector<128x32xf32>
    %88 = arith.truncf %87 : vector<128x32xf32> to vector<128x32xbf16>
    %cst_50 = arith.constant dense<0.000000e+00> : vector<128x128xf32>
    %89 = tpu.matmul %84, %86, %cst_50 {dimension_numbers = #tpu.dot_dimension_numbers<[1], [1], [0], [0], [0, 0, 1, 0], [], []>} : vector<128x32xbf16>, vector<128x32xbf16>, vector<128x128xf32> -> vector<128x128xf32>
    %cst_51 = arith.constant 0.176776692 : f32
    %90 = vector.broadcast %cst_51 : f32 to vector<128x128xf32>
    %91 = arith.mulf %89, %90 : vector<128x128xf32>
    %cst_52 = arith.constant dense<0xFF800000> : vector<128xf32>
    %92 = vector.multi_reduction <maximumf>, %91, %cst_52 [1] : vector<128x128xf32> to vector<128xf32>
    %93 = vector.shape_cast %92 : vector<128xf32> to vector<128x1xf32>
    %94 = vector.broadcast %93 : vector<128x1xf32> to vector<128x128xf32>
    %95 = arith.subf %91, %94 : vector<128x128xf32>
    %96 = math.exp %95 : vector<128x128xf32>
    %cst_53 = arith.constant dense<0.000000e+00> : vector<128xf32>
    %97 = vector.multi_reduction <add>, %96, %cst_53 [1] : vector<128x128xf32> to vector<128xf32>
    %98 = vector.shape_cast %97 : vector<128xf32> to vector<128x1xf32>
    %cst_54 = arith.constant 1.000000e+00 : f32
    %99 = vector.broadcast %cst_54 : f32 to vector<128x1xf32>
    %100 = arith.divf %99, %98 : vector<128x1xf32>
    %101 = vector.broadcast %100 : vector<128x1xf32> to vector<128x128xf32>
    %102 = arith.mulf %96, %101 : vector<128x128xf32>
    %c0_55 = arith.constant 0 : index
    %c0_56 = arith.constant 0 : index
    %c0_57 = arith.constant 0 : index
    %103 = vector.load %arg14[%c0_55, %c0_56, %c0_57] : memref<1x128x128xf32, #tpu.memory_space<vmem>>, vector<1x128x128xf32>
    %104 = vector.shape_cast %103 : vector<1x128x128xf32> to vector<128x128xf32>
    %105 = arith.addf %104, %102 : vector<128x128xf32>
    %c0_58 = arith.constant 0 : index
    %c0_59 = arith.constant 0 : index
    %c0_60 = arith.constant 0 : index
    %106 = vector.load %arg14[%c0_58, %c0_59, %c0_60] : memref<1x128x128xf32, #tpu.memory_space<vmem>>, vector<1x128x128xf32>
    %107 = vector.shape_cast %106 : vector<1x128x128xf32> to vector<128x128xf32>
    %108 = vector.shape_cast %105 : vector<128x128xf32> to vector<1x128x128xf32>
    tpu.vector_store %arg14[%c0_58, %c0_59, %c0_60], %108 {strides = array<i32>} : memref<1x128x128xf32, #tpu.memory_space<vmem>>, vector<1x128x128xf32>,
    %109 = arith.truncf %102 : vector<128x128xf32> to vector<128x128xbf16>
    %cst_61 = arith.constant dense<0.000000e+00> : vector<128x32xf32>
    %110 = tpu.matmul %109, %88, %cst_61 {dimension_numbers = #tpu.dot_dimension_numbers<[1], [0], [0], [1], [0, 0, 1, 1], [], []>} : vector<128x128xbf16>, vector<128x32xbf16>, vector<128x32xf32> -> vector<128x32xf32>
    %c0_62 = arith.constant 0 : index
    %c64_63 = arith.constant 64 : index
    %111 = vector.load %arg16[%c0_62, %c64_63] : memref<128x128xf32, #tpu.memory_space<vmem>>, vector<128x32xf32>
    tpu.vector_store %arg16[%c0_62, %c64_63], %110 {strides = array<i32>} : memref<128x128xf32, #tpu.memory_space<vmem>>, vector<128x32xf32>,
    %c0_64 = arith.constant 0 : index
    %c96 = arith.constant 96 : index
    %112 = vector.load %arg15[%c0_64, %c96] : memref<128x384xf32, #tpu.memory_space<vmem>>, vector<128x32xf32>
    %113 = arith.truncf %112 : vector<128x32xf32> to vector<128x32xbf16>
    %c0_65 = arith.constant 0 : index
    %c224 = arith.constant 224 : index
    %114 = vector.load %arg15[%c0_65, %c224] : memref<128x384xf32, #tpu.memory_space<vmem>>, vector<128x32xf32>
    %115 = arith.truncf %114 : vector<128x32xf32> to vector<128x32xbf16>
    %c0_66 = arith.constant 0 : index
    %c352 = arith.constant 352 : index
    %116 = vector.load %arg15[%c0_66, %c352] : memref<128x384xf32, #tpu.memory_space<vmem>>, vector<128x32xf32>
    %117 = arith.truncf %116 : vector<128x32xf32> to vector<128x32xbf16>
    %cst_67 = arith.constant dense<0.000000e+00> : vector<128x128xf32>
    %118 = tpu.matmul %113, %115, %cst_67 {dimension_numbers = #tpu.dot_dimension_numbers<[1], [1], [0], [0], [0, 0, 1, 0], [], []>} : vector<128x32xbf16>, vector<128x32xbf16>, vector<128x128xf32> -> vector<128x128xf32>
    %cst_68 = arith.constant 0.176776692 : f32
    %119 = vector.broadcast %cst_68 : f32 to vector<128x128xf32>
    %120 = arith.mulf %118, %119 : vector<128x128xf32>
    %cst_69 = arith.constant dense<0xFF800000> : vector<128xf32>
    %121 = vector.multi_reduction <maximumf>, %120, %cst_69 [1] : vector<128x128xf32> to vector<128xf32>
    %122 = vector.shape_cast %121 : vector<128xf32> to vector<128x1xf32>
    %123 = vector.broadcast %122 : vector<128x1xf32> to vector<128x128xf32>
    %124 = arith.subf %120, %123 : vector<128x128xf32>
    %125 = math.exp %124 : vector<128x128xf32>
    %cst_70 = arith.constant dense<0.000000e+00> : vector<128xf32>
    %126 = vector.multi_reduction <add>, %125, %cst_70 [1] : vector<128x128xf32> to vector<128xf32>
    %127 = vector.shape_cast %126 : vector<128xf32> to vector<128x1xf32>
    %cst_71 = arith.constant 1.000000e+00 : f32
    %128 = vector.broadcast %cst_71 : f32 to vector<128x1xf32>
    %129 = arith.divf %128, %127 : vector<128x1xf32>
    %130 = vector.broadcast %129 : vector<128x1xf32> to vector<128x128xf32>
    %131 = arith.mulf %125, %130 : vector<128x128xf32>
    %c0_72 = arith.constant 0 : index
    %c0_73 = arith.constant 0 : index
    %c0_74 = arith.constant 0 : index
    %132 = vector.load %arg14[%c0_72, %c0_73, %c0_74] : memref<1x128x128xf32, #tpu.memory_space<vmem>>, vector<1x128x128xf32>
    %133 = vector.shape_cast %132 : vector<1x128x128xf32> to vector<128x128xf32>
    %134 = arith.addf %133, %131 : vector<128x128xf32>
    %c0_75 = arith.constant 0 : index
    %c0_76 = arith.constant 0 : index
    %c0_77 = arith.constant 0 : index
    %135 = vector.load %arg14[%c0_75, %c0_76, %c0_77] : memref<1x128x128xf32, #tpu.memory_space<vmem>>, vector<1x128x128xf32>
    %136 = vector.shape_cast %135 : vector<1x128x128xf32> to vector<128x128xf32>
    %137 = vector.shape_cast %134 : vector<128x128xf32> to vector<1x128x128xf32>
    tpu.vector_store %arg14[%c0_75, %c0_76, %c0_77], %137 {strides = array<i32>} : memref<1x128x128xf32, #tpu.memory_space<vmem>>, vector<1x128x128xf32>,
    %138 = arith.truncf %131 : vector<128x128xf32> to vector<128x128xbf16>
    %cst_78 = arith.constant dense<0.000000e+00> : vector<128x32xf32>
    %139 = tpu.matmul %138, %117, %cst_78 {dimension_numbers = #tpu.dot_dimension_numbers<[1], [0], [0], [1], [0, 0, 1, 1], [], []>} : vector<128x128xbf16>, vector<128x32xbf16>, vector<128x32xf32> -> vector<128x32xf32>
    %c0_79 = arith.constant 0 : index
    %c96_80 = arith.constant 96 : index
    %140 = vector.load %arg16[%c0_79, %c96_80] : memref<128x128xf32, #tpu.memory_space<vmem>>, vector<128x32xf32>
    tpu.vector_store %arg16[%c0_79, %c96_80], %139 {strides = array<i32>} : memref<128x128xf32, #tpu.memory_space<vmem>>, vector<128x32xf32>,
    %c0_81 = arith.constant 0 : index
    %c0_82 = arith.constant 0 : index
    %c0_83 = arith.constant 0 : index
    %141 = vector.load %arg14[%c0_81, %c0_82, %c0_83] : memref<1x128x128xf32, #tpu.memory_space<vmem>>, vector<1x128x128xf32>
    %142 = vector.shape_cast %141 : vector<1x128x128xf32> to vector<128x128xf32>
    %cst_84 = arith.constant 2.500000e-01 : f32
    %143 = vector.broadcast %cst_84 : f32 to vector<128x128xf32>
    %144 = arith.mulf %142, %143 : vector<128x128xf32>
    %c0_85 = arith.constant 0 : index
    %c0_86 = arith.constant 0 : index
    %c0_87 = arith.constant 0 : index
    %145 = vector.load %arg14[%c0_85, %c0_86, %c0_87] : memref<1x128x128xf32, #tpu.memory_space<vmem>>, vector<1x128x128xf32>
    %146 = vector.shape_cast %145 : vector<1x128x128xf32> to vector<128x128xf32>
    %147 = vector.shape_cast %144 : vector<128x128xf32> to vector<1x128x128xf32>
    tpu.vector_store %arg14[%c0_85, %c0_86, %c0_87], %147 {strides = array<i32>} : memref<1x128x128xf32, #tpu.memory_space<vmem>>, vector<1x128x128xf32>,
    %c0_88 = arith.constant 0 : index
    %c0_89 = arith.constant 0 : index
    %148 = vector.load %arg16[%c0_88, %c0_89] : memref<128x128xf32, #tpu.memory_space<vmem>>, vector<128x128xf32>
    %149 = arith.truncf %148 : vector<128x128xf32> to vector<128x128xbf16>
    %c0_90 = arith.constant 0 : index
    %c0_91 = arith.constant 0 : index
    %150 = vector.load %arg5[%c0_90, %c0_91] : memref<128x128xbf16, #tpu.memory_space<vmem>>, vector<128x128xbf16>
    %cst_92 = arith.constant dense<0.000000e+00> : vector<128x128xf32>
    %151 = tpu.matmul %149, %150, %cst_92 {dimension_numbers = #tpu.dot_dimension_numbers<[1], [0], [0], [1], [0, 0, 1, 1], [], []>} : vector<128x128xbf16>, vector<128x128xbf16>, vector<128x128xf32> -> vector<128x128xf32>
    %c0_93 = arith.constant 0 : index
    %c0_94 = arith.constant 0 : index
    %152 = vector.load %arg6[%c0_93, %c0_94] : memref<1x128xf32, #tpu.memory_space<vmem>>, vector<1x128xf32>
    %153 = vector.broadcast %152 : vector<1x128xf32> to vector<128x128xf32>
    %154 = arith.addf %151, %153 : vector<128x128xf32>
    %c0_95 = arith.constant 0 : index
    %c0_96 = arith.constant 0 : index
    %c0_97 = arith.constant 0 : index
    %155 = vector.load %arg1[%c0_95, %c0_96, %c0_97] : memref<1x128x128xf32, #tpu.memory_space<vmem>>, vector<1x128x128xf32>
    %156 = vector.shape_cast %155 : vector<1x128x128xf32> to vector<128x128xf32>
    %157 = arith.addf %156, %154 : vector<128x128xf32>
    %cst_98 = arith.constant dense<0.000000e+00> : vector<128xf32>
    %158 = vector.multi_reduction <add>, %157, %cst_98 [1] : vector<128x128xf32> to vector<128xf32>
    %159 = vector.shape_cast %158 : vector<128xf32> to vector<128x1xf32>
    %cst_99 = arith.constant 1.280000e+02 : f32
    %160 = vector.broadcast %cst_99 : f32 to vector<128x1xf32>
    %161 = arith.divf %159, %160 : vector<128x1xf32>
    %162 = vector.broadcast %161 : vector<128x1xf32> to vector<128x128xf32>
    %163 = arith.subf %157, %162 : vector<128x128xf32>
    %164 = arith.mulf %163, %163 : vector<128x128xf32>
    %cst_100 = arith.constant dense<0.000000e+00> : vector<128xf32>
    %165 = vector.multi_reduction <add>, %164, %cst_100 [1] : vector<128x128xf32> to vector<128xf32>
    %166 = vector.shape_cast %165 : vector<128xf32> to vector<128x1xf32>
    %cst_101 = arith.constant 1.280000e+02 : f32
    %167 = vector.broadcast %cst_101 : f32 to vector<128x1xf32>
    %168 = arith.divf %166, %167 : vector<128x1xf32>
    %cst_102 = arith.constant 9.99999974E-6 : f32
    %169 = vector.broadcast %cst_102 : f32 to vector<128x1xf32>
    %170 = arith.addf %168, %169 : vector<128x1xf32>
    %171 = math.rsqrt %170 : vector<128x1xf32>
    %172 = vector.broadcast %171 : vector<128x1xf32> to vector<128x128xf32>
    %173 = arith.mulf %163, %172 : vector<128x128xf32>
    %c0_103 = arith.constant 0 : index
    %c0_104 = arith.constant 0 : index
    %174 = vector.load %arg7[%c0_103, %c0_104] : memref<1x128xf32, #tpu.memory_space<vmem>>, vector<1x128xf32>
    %175 = vector.broadcast %174 : vector<1x128xf32> to vector<128x128xf32>
    %176 = arith.mulf %173, %175 : vector<128x128xf32>
    %c0_105 = arith.constant 0 : index
    %c0_106 = arith.constant 0 : index
    %177 = vector.load %arg8[%c0_105, %c0_106] : memref<1x128xf32, #tpu.memory_space<vmem>>, vector<1x128xf32>
    %178 = vector.broadcast %177 : vector<1x128xf32> to vector<128x128xf32>
    %179 = arith.addf %176, %178 : vector<128x128xf32>
    %180 = arith.truncf %179 : vector<128x128xf32> to vector<128x128xbf16>
    %c0_107 = arith.constant 0 : index
    %c0_108 = arith.constant 0 : index
    %181 = vector.load %arg9[%c0_107, %c0_108] : memref<128x512xbf16, #tpu.memory_space<vmem>>, vector<128x512xbf16>
    %cst_109 = arith.constant dense<0.000000e+00> : vector<128x512xf32>
    %182 = tpu.matmul %180, %181, %cst_109 {dimension_numbers = #tpu.dot_dimension_numbers<[1], [0], [0], [1], [0, 0, 1, 1], [], []>} : vector<128x128xbf16>, vector<128x512xbf16>, vector<128x512xf32> -> vector<128x512xf32>
    %c0_110 = arith.constant 0 : index
    %c0_111 = arith.constant 0 : index
    %183 = vector.load %arg10[%c0_110, %c0_111] : memref<1x512xf32, #tpu.memory_space<vmem>>, vector<1x512xf32>
    %184 = vector.broadcast %183 : vector<1x512xf32> to vector<128x512xf32>
    %185 = arith.addf %182, %184 : vector<128x512xf32>
    %cst_112 = arith.constant 5.000000e-01 : f32
    %186 = vector.broadcast %cst_112 : f32 to vector<128x512xf32>
    %187 = arith.mulf %186, %185 : vector<128x512xf32>
    %cst_113 = arith.constant 0.707106769 : f32
    %188 = vector.broadcast %cst_113 : f32 to vector<128x512xf32>
    %189 = arith.mulf %185, %188 : vector<128x512xf32>
    %cst_114 = arith.constant 0.000000e+00 : f32
    %190 = vector.broadcast %cst_114 : f32 to vector<128x512xf32>
    %191 = arith.cmpf oge, %189, %190 : vector<128x512xf32>
    %cst_115 = arith.constant 1.000000e+00 : f32
    %cst_116 = arith.constant -1.000000e+00 : f32
    %192 = vector.broadcast %cst_115 : f32 to vector<128x512xf32>
    %193 = vector.broadcast %cst_116 : f32 to vector<128x512xf32>
    %194 = arith.select %191, %192, %193 : vector<128x512xi1>, vector<128x512xf32>
    %195 = math.absf %189 : vector<128x512xf32>
    %cst_117 = arith.constant 0.327591091 : f32
    %196 = vector.broadcast %cst_117 : f32 to vector<128x512xf32>
    %197 = arith.mulf %196, %195 : vector<128x512xf32>
    %cst_118 = arith.constant 1.000000e+00 : f32
    %198 = vector.broadcast %cst_118 : f32 to vector<128x512xf32>
    %199 = arith.addf %198, %197 : vector<128x512xf32>
    %200 = tpu.reciprocal %199 {approx = true} : vector<128x512xf32> -> vector<128x512xf32>
    %cst_119 = arith.constant 1.06140542 : f32
    %201 = vector.broadcast %cst_119 : f32 to vector<128x512xf32>
    %202 = arith.mulf %201, %200 : vector<128x512xf32>
    %cst_120 = arith.constant -1.45315206 : f32
    %203 = vector.broadcast %cst_120 : f32 to vector<128x512xf32>
    %204 = arith.addf %202, %203 : vector<128x512xf32>
    %205 = arith.mulf %204, %200 : vector<128x512xf32>
    %cst_121 = arith.constant 1.42141378 : f32
    %206 = vector.broadcast %cst_121 : f32 to vector<128x512xf32>
    %207 = arith.addf %205, %206 : vector<128x512xf32>
    %208 = arith.mulf %207, %200 : vector<128x512xf32>
    %cst_122 = arith.constant -0.284496725 : f32
    %209 = vector.broadcast %cst_122 : f32 to vector<128x512xf32>
    %210 = arith.addf %208, %209 : vector<128x512xf32>
    %211 = arith.mulf %210, %200 : vector<128x512xf32>
    %cst_123 = arith.constant 0.254829586 : f32
    %212 = vector.broadcast %cst_123 : f32 to vector<128x512xf32>
    %213 = arith.addf %211, %212 : vector<128x512xf32>
    %214 = arith.mulf %213, %200 : vector<128x512xf32>
    %cst_124 = arith.constant 0.000000e+00 : f32
    %215 = vector.broadcast %cst_124 : f32 to vector<128x512xf32>
    %216 = arith.subf %215, %195 : vector<128x512xf32>
    %217 = arith.mulf %216, %195 : vector<128x512xf32>
    %218 = math.exp %217 : vector<128x512xf32>
    %219 = arith.mulf %214, %218 : vector<128x512xf32>
    %cst_125 = arith.constant 1.000000e+00 : f32
    %220 = vector.broadcast %cst_125 : f32 to vector<128x512xf32>
    %221 = arith.subf %220, %219 : vector<128x512xf32>
    %222 = arith.mulf %194, %221 : vector<128x512xf32>
    %cst_126 = arith.constant 1.000000e+00 : f32
    %223 = vector.broadcast %cst_126 : f32 to vector<128x512xf32>
    %224 = arith.addf %223, %222 : vector<128x512xf32>
    %225 = arith.mulf %187, %224 : vector<128x512xf32>
    %226 = arith.truncf %225 : vector<128x512xf32> to vector<128x512xbf16>
    %c0_127 = arith.constant 0 : index
    %c0_128 = arith.constant 0 : index
    %227 = vector.load %arg11[%c0_127, %c0_128] : memref<512x128xbf16, #tpu.memory_space<vmem>>, vector<512x128xbf16>
    %cst_129 = arith.constant dense<0.000000e+00> : vector<128x128xf32>
    %228 = tpu.matmul %226, %227, %cst_129 {dimension_numbers = #tpu.dot_dimension_numbers<[1], [0], [0], [1], [0, 0, 1, 1], [], []>} : vector<128x512xbf16>, vector<512x128xbf16>, vector<128x128xf32> -> vector<128x128xf32>
    %c0_130 = arith.constant 0 : index
    %c0_131 = arith.constant 0 : index
    %229 = vector.load %arg12[%c0_130, %c0_131] : memref<1x128xf32, #tpu.memory_space<vmem>>, vector<1x128xf32>
    %230 = vector.broadcast %229 : vector<1x128xf32> to vector<128x128xf32>
    %231 = arith.addf %228, %230 : vector<128x128xf32>
    %232 = arith.addf %157, %231 : vector<128x128xf32>
    %c0_132 = arith.constant 0 : index
    %c0_133 = arith.constant 0 : index
    %c0_134 = arith.constant 0 : index
    %233 = vector.load %arg13[%c0_132, %c0_133, %c0_134] : memref<1x128x128xf32, #tpu.memory_space<vmem>>, vector<1x128x128xf32>
    %234 = vector.shape_cast %233 : vector<1x128x128xf32> to vector<128x128xf32>
    %235 = vector.shape_cast %232 : vector<128x128xf32> to vector<1x128x128xf32>
    tpu.vector_store %arg13[%c0_132, %c0_133, %c0_134], %235 {strides = array<i32>} : memref<1x128x128xf32, #tpu.memory_space<vmem>>, vector<1x128x128xf32>,
    return
  }
  func.func @transform_0(%arg0: i32) -> (i32, i32, i32) {
    %c0_i32 = arith.constant 0 : i32
    %c0_i32_0 = arith.constant 0 : i32
    %c0_i32_1 = arith.constant 0 : i32
    return %arg0, %c0_i32, %c0_i32_0 : i32, i32, i32
  }
  func.func @transform_1(%arg0: i32) -> (i32, i32) {
    %c0_i32 = arith.constant 0 : i32
    %c0_i32_0 = arith.constant 0 : i32
    %c0_i32_1 = arith.constant 0 : i32
    return %c0_i32, %c0_i32_0 : i32, i32
  }
  func.func @transform_2(%arg0: i32) -> (i32, i32) {
    %c0_i32 = arith.constant 0 : i32
    %c0_i32_0 = arith.constant 0 : i32
    %c0_i32_1 = arith.constant 0 : i32
    return %c0_i32, %c0_i32_0 : i32, i32
  }
  func.func @transform_3(%arg0: i32) -> (i32, i32) {
    %c0_i32 = arith.constant 0 : i32
    %c0_i32_0 = arith.constant 0 : i32
    %c0_i32_1 = arith.constant 0 : i32
    return %c0_i32, %c0_i32_0 : i32, i32
  }
  func.func @transform_4(%arg0: i32) -> (i32, i32) {
    %c0_i32 = arith.constant 0 : i32
    %c0_i32_0 = arith.constant 0 : i32
    %c0_i32_1 = arith.constant 0 : i32
    return %c0_i32, %c0_i32_0 : i32, i32
  }
  func.func @transform_5(%arg0: i32) -> (i32, i32) {
    %c0_i32 = arith.constant 0 : i32
    %c0_i32_0 = arith.constant 0 : i32
    %c0_i32_1 = arith.constant 0 : i32
    return %c0_i32, %c0_i32_0 : i32, i32
  }
  func.func @transform_6(%arg0: i32) -> (i32, i32) {
    %c0_i32 = arith.constant 0 : i32
    %c0_i32_0 = arith.constant 0 : i32
    %c0_i32_1 = arith.constant 0 : i32
    return %c0_i32, %c0_i32_0 : i32, i32
  }
  func.func @transform_7(%arg0: i32) -> (i32, i32) {
    %c0_i32 = arith.constant 0 : i32
    %c0_i32_0 = arith.constant 0 : i32
    %c0_i32_1 = arith.constant 0 : i32
    return %c0_i32, %c0_i32_0 : i32, i32
  }
  func.func @transform_8(%arg0: i32) -> (i32, i32) {
    %c0_i32 = arith.constant 0 : i32
    %c0_i32_0 = arith.constant 0 : i32
    %c0_i32_1 = arith.constant 0 : i32
    return %c0_i32, %c0_i32_0 : i32, i32
  }
  func.func @transform_9(%arg0: i32) -> (i32, i32) {
    %c0_i32 = arith.constant 0 : i32
    %c0_i32_0 = arith.constant 0 : i32
    %c0_i32_1 = arith.constant 0 : i32
    return %c0_i32, %c0_i32_0 : i32, i32
  }
  func.func @transform_10(%arg0: i32) -> (i32, i32) {
    %c0_i32 = arith.constant 0 : i32
    %c0_i32_0 = arith.constant 0 : i32
    %c0_i32_1 = arith.constant 0 : i32
    return %c0_i32, %c0_i32_0 : i32, i32
  }
  func.func @transform_11(%arg0: i32) -> (i32, i32) {
    %c0_i32 = arith.constant 0 : i32
    %c0_i32_0 = arith.constant 0 : i32
    %c0_i32_1 = arith.constant 0 : i32
    return %c0_i32, %c0_i32_0 : i32, i32
  }
  func.func @transform_12(%arg0: i32) -> (i32, i32, i32) {
    %c0_i32 = arith.constant 0 : i32
    %c0_i32_0 = arith.constant 0 : i32
    %c0_i32_1 = arith.constant 0 : i32
    return %arg0, %c0_i32, %c0_i32_0 : i32, i32, i32
  }
  func.func @transform_13(%arg0: i32) -> (i32, i32, i32) {
    %c0_i32 = arith.constant 0 : i32
    %c0_i32_0 = arith.constant 0 : i32
    %c0_i32_1 = arith.constant 0 : i32
    return %arg0, %c0_i32, %c0_i32_0 : i32, i32, i32
  }
}

</mosaic_0001>

<bundles_post_ra>
// kernel: tpu_custom_call.1
= control target key start
LH: loop header
LB: loop body
LE: loop exit
PB: predicated region body
PF: predicated region fallthrough
CT: control target
= control target key end

     0   :  { %s13361_s0 = inlined_call_operand.hbm [shape: f32[2,128,128], index: 0, kind: input, shape index: {}]   ;;  %s13362_s1 = inlined_call_operand.vmem [shape: f32[1,128], index: 1, kind: input, shape index: {}]   ;;  %s13363_s2 = inlined_call_operand.vmem [shape: f32[1,128], index: 2, kind: input, shape index: {}]   ;;  %s13364_s3 = inlined_call_operand.hbm [shape: bf16[128,384], index: 3, kind: input, shape index: {}]   ;;  %s13365_s4 = inlined_call_operand.hbm [shape: bf16[128,128], index: 4, kind: input, shape index: {}]   ;;  %s13366_s5 = inlined_call_operand.vmem [shape: f32[1,128], index: 5, kind: input, shape index: {}]   ;;  %s13367_s6 = inlined_call_operand.vmem [shape: f32[1,128], index: 6, kind: input, shape index: {}]   ;;  %s13368_s7 = inlined_call_operand.vmem [shape: f32[1,128], index: 7, kind: input, shape index: {}]   ;;  %s13369_s8 = inlined_call_operand.hbm [shape: bf16[128,512], index: 8, kind: input, shape index: {}]   ;;  %s13370_s9 = inlined_call_operand.vmem [shape: f32[1,512], index: 9, kind: input, shape index: {}]   ;;  %s13371_s10 = inlined_call_operand.hbm [shape: bf16[512,128], index: 10, kind: input, shape index: {}]   ;;  %s13372_s11 = inlined_call_operand.vmem [shape: f32[1,128], index: 11, kind: input, shape index: {}]   ;;  %s13373_s12 = inlined_call_operand.hbm [shape: f32[2,128,128], index: 12, kind: output, shape index: {0}]   ;;  %s13374_s13 = inlined_call_operand.hbm [shape: f32[2,128,128], index: 13, kind: output, shape index: {1}]  }
   0x1   :  { %13431 = sst [smem:[#allocation76_spill]] %s13364_s3 }
   0x2   :  { %13432 = sst [smem:[#allocation77_spill]] %s13370_s9 }
   0x3   :  { %13433 = sst [smem:[#allocation78_spill]] %s13372_s11 }
   0x4   :  { %13434 = sst [smem:[#allocation79_spill]] %s13373_s12 }
   0x5   :  { %13435 = sst [smem:[#allocation80_spill]] %s13374_s13 }
   0x6   :  { %19 = vsyncpa [#allocation5], 0 }
   0x7   :  { %21 = vsyncpa [#allocation5 + $0x1], 0 }
   0x8   :  { %22 = vsyncpa [#allocation8], 0 }
   0x9   :  { %23 = vsyncpa [#allocation11], 0 }
   0xa   :  { %24 = vsyncpa [#allocation6], 0 }
   0xb   :  { %26 = vsyncpa [#allocation6 + $0x1], 0 }
   0xc   :  { %27 = vsyncpa [#allocation15], 0 }
   0xd   :  { %29 = vsyncpa [#allocation15 + $0x1], 0  ;;  %s9130_s25 = smov 0   ;;  %s9132_s26 = smov 0  }
   0xe   :  { %s9134_s27 = smov 0   ;;  %s9136_s28 = smov 0  }
   0xf LB: > { %13436 = sst [smem:[#allocation21_spill]] %s9024_s25  ;;  %s9151_s29 = sadd.s32 4294967295, %s9036_s28   ;;  %s9036_s28 = sphi %s9136_s28, %s13750_s28   ;;  %s9032_s27 = sphi %s9134_s27, %s13749_s27   ;;  %s9028_s26 = sphi %s9132_s26, %s13748_s26   ;;  %s9024_s25 = sphi %s9130_s25, %s13747_s25  }
  0x10   : > { %s7151_s30 = sadd.s32 4294967294, %s9036_s28   ;;  %p55_p0 = scmp.ne.s32.totalorder %s9028_s26, %s9024_s25 }
  0x11   : > { %p13377_p1 = scmp.eq.s32.totalorder %s9151_s29, 0  ;;  %p316_p3 = scmp.eq.s32.totalorder %s7151_s30, 1 }
  0x12   : > { %p7152_p5 = scmp.ge.s32.totalorder %s9036_s28, 1  ;;  %p349_p7 = scmp.lt.s32.totalorder %s9036_s28, 3 }
  0x13   : > { %p9160_p4 = por %p13377_p1, %p55_p0  ;;  %p9165_p6 = por %p316_p3, %p55_p0 }
  0x14   : > { %p9170_p8 = pnand %p7152_p5, %p349_p7  ;;  %s9038_s17 = smov [#allocation7]  }
  0x15   : > { %s13437_s14 = scalar_select %p9160_p4, 1, 0 }
  0x16   : > { %s13438_s15 = scalar_select %p9165_p6, 1, 0 }
  0x17   : > { %s13440_s16 = scalar_select %p9170_p8, 1, 0 }
  0x18   : > { %13439 = sst [smem:[#allocation22_spill]] %s13438_s15  ;;  %s367_s18 = sshll.u32 %s9038_s17, 4  ;;  %s9174_s18 = int_to_ptr.vmem [resolvable:$true] %s367_s18 }
  0x19   : > { %p7992_p9 = pneg %p9170_p8  ;;  %s9039_s20 = smov [#allocation10]  }
  0x1a   : > { %s402_s21 = sshll.u32 %s9039_s20, 4  ;;  %s13442_s3 = sld [smem:[#allocation76_spill]]  ;;  %s9185_s21 = int_to_ptr.vmem [resolvable:$true] %s402_s21 }
  0x1b   : > { %p9181_p11 = pnand %p7992_p9, %p13377_p1 }
  0x1d   : > { %p9195_p13 = pneg %p9181_p11 }
  0x20   : > { %s8788_s24 = scalar_lea.hbm %s13442_s3, 3072 }
  0x21   : > { %p8789_p12 = scmp.ne.s32.totalorder %s13442_s3, %s8788_s24  ;;  %p8795_p5 = scmp.lt.u32.totalorder %s8788_s24, %s13442_s3 }
  0x23   : > { %p8791_p0 = pnand %p9195_p13, %p8789_p12 }
  0x25   : > { %p8792_p3 = pneg %p8791_p0 }
  0x27   : > { %p8797_p7 = pnand %p8795_p5, %p8792_p3 }
  0x29   : > { %8800 = shalt.err (!%p8797_p7)
}
  0x2a   : > { %s8801_s22 = scalar_lea.vmem %s9174_s18, 3072  ;;  %p8809_p2 = scmp.lt.s32.totalorder %s9174_s18, %s9174_s18 }
  0x2b   : > { %p8802_p9 = scmp.ne.s32.totalorder %s9174_s18, %s8801_s22  ;;  %p8810_p6 = scmp.lt.s32.totalorder %s8801_s22, %s8801_s22 }
  0x2d   : > { %p8804_p10 = pnand %p8802_p9, %p9195_p13  ;;  %p8811_p12 = por %p8810_p6, %p8809_p2 }
  0x2f   : > { %p8805_p1 = pneg %p8804_p10 }
  0x31   : > { %p8812_p0 = pnand %p8811_p12, %p8805_p1 }
  0x33   : > { %8815 = shalt.err (!%p8812_p0)
}
  0x34   : > { %s9040_s23 = smov 192   ;;  %s9041_s25 = smov 12  }
  0x35   : > { %7995 = dma.hbm_to_vmem [thread:$0]  (!%p9181_p11), %s13442_s3, 3072, %s9174_s18, [#allocation8], %s9040_s23, %s9040_s23, %s9041_s25  }
  0x36   : > { %s8816_s12 = scalar_lea.hbm %s13369_s8, 4096 }
  0x37   : > { %p8817_p2 = scmp.ne.s32.totalorder %s13369_s8, %s8816_s12  ;;  %p8823_p10 = scmp.lt.u32.totalorder %s8816_s12, %s13369_s8 }
  0x39   : > { %p8819_p1 = pnand %p8817_p2, %p9195_p13 }
  0x3b   : > { %p8820_p6 = pneg %p8819_p1 }
  0x3d   : > { %p8825_p3 = pnand %p8823_p10, %p8820_p6 }
  0x3f   : > { %8828 = shalt.err (!%p8825_p3)
}
  0x40   : > { %s8829_s18 = scalar_lea.vmem %s9185_s21, 4096  ;;  %p8837_p12 = scmp.lt.s32.totalorder %s9185_s21, %s9185_s21 }
  0x41   : > { %p8830_p5 = scmp.ne.s32.totalorder %s9185_s21, %s8829_s18  ;;  %p8838_p0 = scmp.lt.s32.totalorder %s8829_s18, %s8829_s18 }
  0x43   : > { %p8832_p7 = pnand %p8830_p5, %p9195_p13  ;;  %p8839_p2 = por %p8838_p0, %p8837_p12 }
  0x45   : > { %p8833_p9 = pneg %p8832_p7 }
  0x47   : > { %p8840_p1 = pnand %p8839_p2, %p8833_p9 }
  0x49   : > { %8843 = shalt.err (!%p8840_p1)
}
  0x4a   : > { %s9042_s11 = smov 256   ;;  %s9043_s9 = smov 16  }
  0x4b   : > { %8001 = dma.hbm_to_vmem [thread:$0]  (!%p9181_p11), %s13369_s8, 4096, %s9185_s21, [#allocation11], %s9042_s11, %s9042_s11, %s9043_s9  }
  0x4c   : > { %s9044_s23 = smov [#allocation9]   ;;  %s8844_s17 = scalar_lea.hbm %s13365_s4, 1024 }
  0x4d   : > { %s380_s25 = sshll.u32 %s9044_s23, 4  ;;  %p8845_p6 = scmp.ne.s32.totalorder %s13365_s4, %s8844_s17  ;;  %s381_s25 = int_to_ptr.vmem [resolvable:$true] %s380_s25 }
  0x4e   : > { %p8851_p5 = scmp.lt.u32.totalorder %s8844_s17, %s13365_s4 }
  0x4f   : > { %p8847_p10 = pnand %p8845_p6, %p9195_p13 }
  0x51   : > { %p8848_p3 = pneg %p8847_p10 }
  0x53   : > { %p8853_p7 = pnand %p8851_p5, %p8848_p3 }
  0x55   : > { %8856 = shalt.err (!%p8853_p7)
}
  0x56   : > { %s8857_s21 = scalar_lea.vmem %s381_s25, 1024  ;;  %p8865_p2 = scmp.lt.s32.totalorder %s381_s25, %s381_s25 }
  0x57   : > { %p8858_p9 = scmp.ne.s32.totalorder %s381_s25, %s8857_s21  ;;  %p8866_p1 = scmp.lt.s32.totalorder %s8857_s21, %s8857_s21 }
  0x59   : > { %p8860_p12 = pnand %p8858_p9, %p9195_p13  ;;  %p8867_p4 = por %p8866_p1, %p8865_p2 }
  0x5b   : > { %p8861_p0 = pneg %p8860_p12 }
  0x5d   : > { %p8868_p8 = pnand %p8867_p4, %p8861_p0 }
  0x5f   : > { %8871 = shalt.err (!%p8868_p8)
}
  0x60   : > { %s9045_s11 = smov 64   ;;  %s9046_s9 = smov 4  }
  0x61   : > { %7998 = dma.hbm_to_vmem [thread:$0]  (!%p9181_p11), %s13365_s4, 1024, %s381_s25, [#allocation8], %s9045_s11, %s9045_s11, %s9046_s9  }
  0x62   : > { %s9047_s13 = smov [#allocation12]   ;;  %s8872_s17 = scalar_lea.hbm %s13371_s10, 4096 }
  0x63   : > { %s418_s23 = sshll.u32 %s9047_s13, 4  ;;  %p8873_p4 = scmp.ne.s32.totalorder %s13371_s10, %s8872_s17  ;;  %s419_s23 = int_to_ptr.vmem [resolvable:$true] %s418_s23 }
  0x64   : > { %p8879_p10 = scmp.lt.u32.totalorder %s8872_s17, %s13371_s10 }
  0x65   : > { %p8875_p8 = pnand %p8873_p4, %p9195_p13 }
  0x67   : > { %p8876_p6 = pneg %p8875_p8 }
  0x69   : > { %p8881_p3 = pnand %p8879_p10, %p8876_p6 }
  0x6b   : > { %8884 = shalt.err (!%p8881_p3)
}
  0x6c   : > { %s8885_s25 = scalar_lea.vmem %s419_s23, 4096  ;;  %p8893_p12 = scmp.lt.s32.totalorder %s419_s23, %s419_s23 }
  0x6d   : > { %p8886_p5 = scmp.ne.s32.totalorder %s419_s23, %s8885_s25  ;;  %p8894_p0 = scmp.lt.s32.totalorder %s8885_s25, %s8885_s25 }
  0x6f   : > { %p8888_p7 = pnand %p8886_p5, %p9195_p13  ;;  %p8895_p2 = por %p8894_p0, %p8893_p12 }
  0x71   : > { %p8889_p9 = pneg %p8888_p7 }
  0x73   : > { %p8896_p1 = pnand %p8895_p2, %p8889_p9 }
  0x75   : > { %8899 = shalt.err (!%p8896_p1)
}
  0x76   : > { %8004 = dma.hbm_to_vmem [thread:$0]  (!%p9181_p11), %s13371_s10, 4096, %s419_s23, [#allocation11], %s9045_s11, %s9045_s11, %s9046_s9  }
  0x77   : > { %s9276_s15 = sadd.s32 1, %s9036_s28   ;;  %s42_s13 = sadd.s32 1, %s9032_s27 }
  0x78   : > { %s39_s19 = ssub.s32 %s9036_s28, %s9276_s15  ;;  %p49_p13 = scmp.ne.s32.totalorder %s9032_s27, %s9028_s26 }
  0x79   : > { %p40_p4 = scmp.eq.s32.totalorder %s39_s19, 0  ;;  %p50_p8 = scmp.eq.s32.totalorder %s9036_s28, 0 }
  0x7a   : > { %p13444_p6 = scmp.eq.s32.totalorder %s9151_s29, 1  ;;  %p8020_p3 = scmp.lt.s32.totalorder %s9036_s28, 2 }
  0x7b   : > { %s9292_s30 = scalar_select %p40_p4, %s9032_s27, %s42_s13  }
  0x7c   : > { %p9286_p10 = por %p13444_p6, %p49_p13  ;;  %p51_p5 = por %p50_p8, %p49_p13 }
  0x7d   : > { %s435_s17 = sand.u32 1, %s9032_s27   ;;  %s7311_s11 = sshll.u32 %s9036_s28, 11 }
  0x7e   : > { %s7158_s20 = sshll.u32 %s435_s17, 7  ;;  %s9299_s22 = scalar_lea.hbm %s13361_s0, %s7311_s11 }
  0x7f   : > { %s439_s18 = scalar_lea.vmem [#allocation4], %s7158_s20  ;;  %p9303_p11 = pnand %p8020_p3, %p51_p5 }
  0x80   : > { %s446_s21 = sshll.u32 %s439_s18, 4  ;;  %s9307_s3 = scalar_lea.sflag [#allocation5], %s435_s17  ;;  %s9301_s21 = int_to_ptr.vmem [resolvable:$true] %s446_s21 }
  0x81   : > { %s8900_s12 = scalar_lea.hbm %s9299_s22, 2048  ;;  %p8902_p9 = pneg %p9303_p11 }
  0x82   : > { %p8901_p7 = scmp.ne.s32.totalorder %s9299_s22, %s8900_s12  ;;  %s8905_s20 = scalar_lea.hbm %s13361_s0, 4096 }
  0x83   : > { %p8906_p2 = scmp.lt.u32.totalorder %s9299_s22, %s13361_s0  ;;  %p8907_p1 = scmp.lt.u32.totalorder %s8905_s20, %s8900_s12 }
  0x84   : > { %p8903_p12 = pnand %p8902_p9, %p8901_p7  ;;  %p8909_p4 = scmp.lt.u32.totalorder %s8900_s12, %s9299_s22 }
  0x85   : > { %p8908_p13 = por %p8907_p1, %p8906_p2 }
  0x86   : > { %p8904_p0 = pneg %p8903_p12 }
  0x87   : > { %p8910_p8 = por %p8909_p4, %p8908_p13 }
  0x89   : > { %p8911_p6 = pnand %p8910_p8, %p8904_p0 }
  0x8b   : > { %8914 = shalt.err (!%p8911_p6)
}
  0x8c   : > { %s8915_s17 = scalar_lea.vmem %s9301_s21, 2048  ;;  %s9048_s23 = smov [#allocation4]  }
  0x8d   : > { %p8916_p3 = scmp.ne.s32.totalorder %s9301_s21, %s8915_s17  ;;  %s8920_s18 = sshll.u32 %s9048_s23, 4  ;;  %s8921_s18 = int_to_ptr.vmem [resolvable:$false] %s8920_s18 }
  0x8e   : > { %s8922_s13 = scalar_lea.vmem %s8921_s18, 4096  ;;  %p8923_p12 = scmp.lt.s32.totalorder %s9301_s21, %s8921_s18 }
  0x8f   : > { %p8918_p5 = pnand %p8916_p3, %p8902_p9  ;;  %p8924_p2 = scmp.lt.s32.totalorder %s8922_s13, %s8915_s17 }
  0x91   : > { %p8919_p7 = pneg %p8918_p5  ;;  %p8925_p1 = por %p8924_p2, %p8923_p12 }
  0x93   : > { %p8926_p13 = pnand %p8925_p1, %p8919_p7 }
  0x95   : > { %8929 = shalt.err (!%p8926_p13)
}
  0x96   : > { %s9049_s12 = smov 128   ;;  %s9050_s19 = smov 8  }
  0x97   : > { %8008 = dma.hbm_to_vmem [thread:$0]  (!%p9303_p11), %s9299_s22, 2048, %s9301_s21, %s9307_s3, %s9049_s12, %s9049_s12, %s9050_s19  }
  0x98   : > { %p13447_p9 = scmp.ne.s32.totalorder %s13440_s16, 0 }
  0x9a   : > { %458 = sbr.rel (%p13447_p9) target bundleno = 4976 (0x1370), region = 68 }
  0xa1   : > { %s9338_s20 = sand.u32 1, %s9028_s26   ;;  %p13448_p0 = scmp.ne.s32.totalorder %s13437_s14, 0 }
  0xa2   : > { %s9341_s11 = sshll.u32 %s9338_s20, 7  ;;  %s461_s9 = scalar_lea.sflag [#allocation5], %s9338_s20 }
  0xa3   : > { %s9345_s17 = scalar_lea.vmem [#allocation4], %s9341_s11 }
  0xa4   : > { %9003 = dma.done.wait (%p13448_p0), %s461_s9, 2048  }
  0xa5   : > { %9005 = vsyncadd (%p13448_p0), %s461_s9, 4294965248  ;;  %p13449_p11 = scmp.eq.s32.totalorder %s9151_s29, 0 }
  0xa7   : > { %9007 = dma.done.wait (%p13449_p11), [#allocation8], 4096   ;;  %p13450_p4 = pmov %p13449_p11 }
  0xa9   : > { %9009 = vsyncadd (%p13450_p4), [#allocation8], 4294963200  ;;  %p13451_p8 = pmov %p13450_p4 }
  0xaa   : > { %p13452_p6 = pmov %p13450_p4 }
  0xab   : > { %9011 = dma.done.wait (%p13451_p8), [#allocation11], 8192  }
  0xac   : > { %9013 = vsyncadd (%p13452_p6), [#allocation11], 4294959104  ;;  %v529_v0 = vld [vmem:[%s9345_s17] sm:$0xff]  ;;  %v531_v1 = vld [vmem:[%s9345_s17 + $0x10] sm:$0xff]  ;;  %vm1266_vm0 = vcmask 261120   ;;  %s9052_s25 = smov 96  }
  0xad   : > { %545 = vadd.xlane.f32.xlu0 %v529_v0  ;;  %549 = vadd.xlane.f32.xlu1 %v531_v1  ;;  %v530_v2 = vld [vmem:[%s9345_s17 + $0x8] sm:$0xff]  ;;  %v532_v3 = vld [vmem:[%s9345_s17 + $0x18] sm:$0xff]  ;;  %v533_v4 = vld [vmem:[%s9345_s17 + $0x20] sm:$0xff]  ;;  %s9053_s3 = smov 64   ;;  %s9054_s23 = smov 32   ;;  %vm2415_vm1 = vcmask 523520  }
  0xae   : > { %v534_v5 = vld [vmem:[%s9345_s17 + $0x28] sm:$0xff]  ;;  %v9366_v6 = vld [vmem:[%s9345_s17 + $0x30] sm:$0xff]  ;;  %v9369_v7 = vld [vmem:[%s9345_s17 + $0x38] sm:$0xff]  ;;  %s10610_s18 = scalar_lea.vmem [#allocation14], %s9341_s11  ;;  %vm3122_vm2 = vcmask 785920   ;;  %vm3829_vm3 = vcmask 1048320  }
  0xaf   : > { %v9372_v8 = vld [vmem:[%s9345_s17 + $0x40] sm:$0xff]  ;;  %v9375_v9 = vld [vmem:[%s9345_s17 + $0x48] sm:$0xff]  ;;  %v9380_v10 = vld [vmem:[%s9345_s17 + $0x50] sm:$0xff]  ;;  %s13551_s21 = sld [smem:[#allocation77_spill]]  ;;  %s13185_s13 = scalar_lea.vmem [#allocation13], %s9341_s11 }
  0xb0   : > { %v9383_v11 = vld [vmem:[%s9345_s17 + $0x58] sm:$0xff]  ;;  %v9388_v12 = vld [vmem:[%s9345_s17 + $0x60] sm:$0xff]  ;;  %v9391_v13 = vld [vmem:[%s9345_s17 + $0x68] sm:$0xff]  ;;  %s7312_s11 = sshll.u32 %s9151_s29, 11  ;;  %s13733_s9 = sld [smem:[#allocation80_spill]] }
  0xb1   : > { %547 = vadd.xlane.f32.xlu0 %v530_v2  ;;  %551 = vadd.xlane.f32.xlu1 %v532_v3  ;;  %v9396_v14 = vld [vmem:[%s9345_s17 + $0x70] sm:$0xff]  ;;  %v9399_v15 = vld [vmem:[%s9345_s17 + $0x78] sm:$0xff]  ;;  %v8079_v17 = vld [vmem:[#allocation7] ss:$12 sps:$4 sm:$0xff]   ;;  %s7008_s14 = sshll.u32 %s10610_s18, 4  ;;  %s6979_s16 = scalar_lea.sflag [#allocation15], %s9338_s20  ;;  %s13253_s14 = int_to_ptr.vmem [resolvable:$true] %s7008_s14 }
  0xb2   : > { %v8077_v16 = vld [vmem:[#allocation7 + $0x4] ss:$12 sps:$4 sm:$0xff]   ;;  %v8080_v18 = vld [vmem:[#allocation7 + $0x1c] ss:$12 sps:$4 sm:$0xff]   ;;  %s8930_s22 = scalar_lea.vmem %s13253_s14, 2048 }
  0xb3   : > { %v8082_v19 = vld [vmem:[#allocation7 + $0x8] ss:$12 sps:$4 sm:$0xff]   ;;  %936 = vmatprep.subr.bf16.mxu0 %v8077_v16  ;;  %v8083_v58 = vld [vmem:[#allocation7 + $0x18] ss:$12 sps:$4 sm:$0xff]   ;;  %p8931_p3 = scmp.ne.s32.totalorder %s13253_s14, %s8930_s22 }
  0xb4   : > { %937 = vmatpush1.bf16.msra.mxu0 %v8079_v17  ;;  %7602 = vmatprep.subr.bf16.mxu1 %v8082_v19 }
  0xb5   : > { %553 = vadd.xlane.f32.xlu0 %v533_v4  ;;  %555 = vadd.xlane.f32.xlu1 %v534_v5  ;;  %p8932_p5 = pnand %p8931_p3, %p9286_p10 }
  0xb6   : > { %938 = vmatprep.subr.bf16.mxu0 %v8080_v18  ;;  %7603 = vmatpush3.bf16.msra.mxu1 %v8082_v19  ;;  %v8088_v18 = vld [vmem:[#allocation7 + $0x4c] ss:$12 sps:$4 sm:$0xff]  }
  0xb7   : > { %v8090_v19 = vld [vmem:[#allocation7 + $0x38] ss:$12 sps:$4 sm:$0xff]   ;;  %p8933_p7 = pneg %p8932_p5 }
  0xb8   : > { %939 = vmatpush1.bf16.msra.mxu0 %v8083_v58 }
  0xb9   : > { %557 = vadd.xlane.f32.xlu0 %v9366_v6  ;;  %559 = vadd.xlane.f32.xlu1 %v9369_v7 }
  0xbd   : > { %561 = vadd.xlane.f32.xlu0 %v9372_v8  ;;  %563 = vadd.xlane.f32.xlu1 %v9375_v9 }
  0xc1   : > { %565 = vadd.xlane.f32.xlu0 %v9380_v10  ;;  %567 = vadd.xlane.f32.xlu1 %v9383_v11 }
  0xc5   : > { %569 = vadd.xlane.f32.xlu0 %v9388_v12  ;;  %571 = vadd.xlane.f32.xlu1 %v9391_v13 }
  0xc9   : > { %573 = vadd.xlane.f32.xlu0 %v9396_v14  ;;  %575 = vadd.xlane.f32.xlu1 %v9399_v15 }
 0x13a   : > { %v546_v20 = vpop.xlane.xlu0 %545  ;;  %v550_v21 = vpop.xlane.xlu1 %549 }
 0x13b   : > { %v578_v22 = vmul.f32 0.0078125, %v546_v20  ;;  %v580_v23 = vmul.f32 0.0078125, %v550_v21 }
 0x13d   : > { %v9405_v24 = vsub.f32 %v529_v0, %v578_v22  ;;  %v9407_v25 = vsub.f32 %v531_v1, %v580_v23  ;;  %v8084_v0 = vld [vmem:[#allocation7 + $0x34] ss:$12 sps:$4 sm:$0xff]  }
 0x13e   : > { %v548_v26 = vpop.xlane.xlu0 %547  ;;  %v552_v27 = vpop.xlane.xlu1 %551  ;;  %v8086_v1 = vld [vmem:[#allocation7 + $0x20] ss:$12 sps:$4 sm:$0xff]   ;;  %940 = vmatprep.subr.bf16.mxu0 %v8084_v0  ;;  %v8091_v22 = vld [vmem:[#allocation7 + $0x48] ss:$12 sps:$4 sm:$0xff]  }
 0x13f   : > { %v579_v28 = vmul.f32 0.0078125, %v548_v26  ;;  %v610_v29 = vmul.f32 %v9405_v24, %v9405_v24  ;;  %v581_v30 = vmul.f32 0.0078125, %v552_v27  ;;  %v612_v31 = vmul.f32 %v9407_v25, %v9407_v25  ;;  %7604 = vmatprep.subr.bf16.mxu1 %v8086_v1 }
 0x140   : > { %7605 = vmatpush3.bf16.msra.mxu1 %v8086_v1 }
 0x141   : > { %626 = vadd.xlane.f32.xlu0 %v610_v29  ;;  %v9413_v32 = vsub.f32 %v530_v2, %v579_v28  ;;  %v9415_v33 = vsub.f32 %v532_v3, %v581_v30  ;;  %7606 = vmatprep.subr.bf16.mxu1 %v8090_v19  ;;  %v8092_v29 = vld [vmem:[#allocation7 + $0x64] ss:$12 sps:$4 sm:$0xff]  }
 0x142   : > { %v554_v34 = vpop.xlane.xlu0 %553  ;;  %v556_v35 = vpop.xlane.xlu1 %555  ;;  %v8094_v30 = vld [vmem:[#allocation7 + $0x50] ss:$12 sps:$4 sm:$0xff]  }
 0x143   : > { %v582_v36 = vmul.f32 0.0078125, %v554_v34  ;;  %v611_v37 = vmul.f32 %v9413_v32, %v9413_v32  ;;  %v583_v38 = vmul.f32 0.0078125, %v556_v35  ;;  %v613_v39 = vmul.f32 %v9415_v33, %v9415_v33 }
 0x144   : > { %7607 = vmatpush3.bf16.msra.mxu1 %v8090_v19 }
 0x145   : > { %630 = vadd.xlane.f32.xlu0 %v612_v31  ;;  %628 = vadd.xlane.f32.xlu1 %v611_v37  ;;  %v9421_v40 = vsub.f32 %v533_v4, %v582_v36  ;;  %v9423_v41 = vsub.f32 %v534_v5, %v583_v38  ;;  %v8095_v31 = vld [vmem:[#allocation7 + $0x60] ss:$12 sps:$4 sm:$0xff]   ;;  %v8098_v36 = vld [vmem:[#allocation7 + $0x68] ss:$12 sps:$4 sm:$0xff]   ;;  %v8099_v37 = vld [vmem:[#allocation7 + $0x78] ss:$12 sps:$4 sm:$0xff]  }
 0x146   : > { %v558_v42 = vpop.xlane.xlu0 %557  ;;  %v560_v43 = vpop.xlane.xlu1 %559  ;;  %7608 = vmatprep.subr.bf16.mxu1 %v8094_v30  ;;  %v8102_v38 = vld [vmem:[#allocation7 + $0x80] ss:$12 sps:$4 sm:$0xff]  }
 0x147   : > { %v584_v44 = vmul.f32 0.0078125, %v558_v42  ;;  %v614_v45 = vmul.f32 %v9421_v40, %v9421_v40  ;;  %v585_v46 = vmul.f32 0.0078125, %v560_v43  ;;  %v615_v47 = vmul.f32 %v9423_v41, %v9423_v41  ;;  %v8104_v42 = vld [vmem:[#allocation7 + $0xac] ss:$12 sps:$4 sm:$0xff]  }
 0x148   : > { %7609 = vmatpush3.bf16.msra.mxu1 %v8094_v30  ;;  %v8106_v43 = vld [vmem:[#allocation7 + $0x98] ss:$12 sps:$4 sm:$0xff]  }
 0x149   : > { %632 = vadd.xlane.f32.xlu1 %v613_v39  ;;  %634 = vadd.xlane.f32.xlu0 %v614_v45  ;;  %v9430_v48 = vsub.f32 %v9366_v6, %v584_v44  ;;  %v9433_v49 = vsub.f32 %v9369_v7, %v585_v46  ;;  %v8087_v7 = vld [vmem:[#allocation7 + $0x30] ss:$12 sps:$4 sm:$0xff]   ;;  %v8107_v44 = vld [vmem:[#allocation7 + $0xa8] ss:$12 sps:$4 sm:$0xff]   ;;  %v13382_v46 = vmov 0  }
 0x14a   : > { %v562_v50 = vpop.xlane.xlu0 %561  ;;  %v564_v51 = vpop.xlane.xlu1 %563  ;;  %941 = vmatpush1.bf16.msra.mxu0 %v8087_v7  ;;  %7610 = vmatprep.subr.bf16.mxu1 %v8098_v36  ;;  %v8103_v39 = vld [vmem:[#allocation7 + $0x90] ss:$12 sps:$4 sm:$0xff]  }
 0x14b   : > { %v586_v52 = vmul.f32 0.0078125, %v562_v50  ;;  %v616_v53 = vmul.f32 %v9430_v48, %v9430_v48  ;;  %v587_v54 = vmul.f32 0.0078125, %v564_v51  ;;  %v617_v55 = vmul.f32 %v9433_v49, %v9433_v49  ;;  %942 = vmatprep.subr.bf16.mxu0 %v8088_v18  ;;  %v8108_v45 = vld [vmem:[#allocation7 + $0xb0] ss:$12 sps:$4 sm:$0xff]   ;;  %968 = vmatprep.mubr.bf16.mxu0 %v13382_v46 }
 0x14c   : > { %7611 = vmatpush3.bf16.msra.mxu1 %v8098_v36 }
 0x14d   : > { %636 = vadd.xlane.f32.xlu1 %v615_v47  ;;  %638 = vadd.xlane.f32.xlu0 %v616_v53  ;;  %v9440_v56 = vsub.f32 %v9372_v8, %v586_v52  ;;  %v9443_v57 = vsub.f32 %v9375_v9, %v587_v54 }
 0x14e   : > { %v566_v59 = vpop.xlane.xlu0 %565  ;;  %v568_v60 = vpop.xlane.xlu1 %567  ;;  %943 = vmatpush1.bf16.msra.mxu0 %v8091_v22  ;;  %7612 = vmatprep.subr.bf16.mxu1 %v8102_v38  ;;  %v9484_v22 = vld [vmem:[%s13362_s1] ss:$0 sm:$0xff] }
 0x14f   : > { %v588_v61 = vmul.f32 0.0078125, %v566_v59  ;;  %v618_v62 = vmul.f32 %v9440_v56, %v9440_v56  ;;  %v589_v63 = vmul.f32 0.0078125, %v568_v60  ;;  %v619_v2 = vmul.f32 %v9443_v57, %v9443_v57  ;;  %944 = vmatprep.subr.bf16.mxu0 %v8092_v29 }
 0x150   : > { %7613 = vmatpush3.bf16.msra.mxu1 %v8102_v38 }
 0x151   : > { %640 = vadd.xlane.f32.xlu1 %v617_v55  ;;  %642 = vadd.xlane.f32.xlu0 %v618_v62  ;;  %v9450_v3 = vsub.f32 %v9380_v10, %v588_v61  ;;  %v9453_v4 = vsub.f32 %v9383_v11, %v589_v63 }
 0x152   : > { %v570_v5 = vpop.xlane.xlu0 %569  ;;  %v572_v6 = vpop.xlane.xlu1 %571  ;;  %945 = vmatpush1.bf16.msra.mxu0 %v8095_v31  ;;  %7614 = vmatprep.subr.bf16.mxu1 %v8106_v43 }
 0x153   : > { %v590_v8 = vmul.f32 0.0078125, %v570_v5  ;;  %v620_v9 = vmul.f32 %v9450_v3, %v9450_v3  ;;  %v591_v16 = vmul.f32 0.0078125, %v572_v6  ;;  %v621_v10 = vmul.f32 %v9453_v4, %v9453_v4 }
 0x154   : > { %7615 = vmatpush3.bf16.msra.mxu1 %v8106_v43 }
 0x155   : > { %644 = vadd.xlane.f32.xlu1 %v619_v2  ;;  %646 = vadd.xlane.f32.xlu0 %v620_v9  ;;  %v9460_v11 = vsub.f32 %v9388_v12, %v590_v8  ;;  %v9463_v17 = vsub.f32 %v9391_v13, %v591_v16 }
 0x156   : > { %v574_v20 = vpop.xlane.xlu0 %573  ;;  %v576_v21 = vpop.xlane.xlu1 %575  ;;  %7616 = vmatprep.subr.bf16.mxu1 %v8108_v45 }
 0x157   : > { %v592_v23 = vmul.f32 0.0078125, %v574_v20  ;;  %v622_v26 = vmul.f32 %v9460_v11, %v9460_v11  ;;  %v593_v27 = vmul.f32 0.0078125, %v576_v21  ;;  %v623_v12 = vmul.f32 %v9463_v17, %v9463_v17 }
 0x158   : > { %7617 = vmatpush3.bf16.msra.mxu1 %v8108_v45 }
 0x159   : > { %648 = vadd.xlane.f32.xlu1 %v621_v10  ;;  %650 = vadd.xlane.f32.xlu0 %v622_v26  ;;  %v9470_v13 = vsub.f32 %v9396_v14, %v592_v23  ;;  %v9473_v28 = vsub.f32 %v9399_v15, %v593_v27  ;;  %v8096_v14 = vld [vmem:[#allocation7 + $0x7c] ss:$12 sps:$4 sm:$0xff]   ;;  %v8100_v15 = vld [vmem:[#allocation7 + $0x94] ss:$12 sps:$4 sm:$0xff]  }
 0x15a   : > { %946 = vmatprep.subr.bf16.mxu0 %v8096_v14  ;;  %v9491_v14 = vld [vmem:[%s13363_s2] ss:$0 sm:$0xff] }
 0x15b   : > { %v624_v34 = vmul.f32 %v9470_v13, %v9470_v13  ;;  %v625_v35 = vmul.f32 %v9473_v28, %v9473_v28  ;;  %947 = vmatpush1.bf16.msra.mxu0 %v8099_v37 }
 0x15c   : > { %948 = vmatprep.subr.bf16.mxu0 %v8100_v15 }
 0x15d   : > { %652 = vadd.xlane.f32.xlu1 %v623_v12  ;;  %654 = vadd.xlane.f32.xlu0 %v624_v34 }
 0x15f   : > { %949 = vmatpush1.bf16.msra.mxu0 %v8103_v39 }
 0x160   : > { %950 = vmatprep.subr.bf16.mxu0 %v8104_v42 }
 0x161   : > { %656 = vadd.xlane.f32.xlu1 %v625_v35 }
 0x163   : > { %951 = vmatpush1.bf16.msra.mxu0 %v8107_v44 }
 0x1ce   : > { %v627_v47 = vpop.xlane.xlu0 %626 }
 0x1cf   : > { %v658_v50 = vmul.f32 0.0078125, %v627_v47 }
 0x1d1   : > { %v674_v51 = vadd.f32 1e-05, %v658_v50 }
 0x1d2   : > { %v629_v52 = vpop.xlane.xlu1 %628  ;;  %v631_v53 = vpop.xlane.xlu0 %630 }
 0x1d3   : > { %8197 = vrsqrt.f32 %v674_v51  ;;  %v659_v54 = vmul.f32 0.0078125, %v629_v52  ;;  %v660_v55 = vmul.f32 0.0078125, %v631_v53 }
 0x1d5   : > { %v675_v58 = vadd.f32 1e-05, %v659_v54  ;;  %v676_v59 = vadd.f32 1e-05, %v660_v55 }
 0x1d6   : > { %v633_v60 = vpop.xlane.xlu1 %632  ;;  %v635_v61 = vpop.xlane.xlu0 %634 }
 0x1d7   : > { %8199 = vrsqrt.f32 %v675_v58  ;;  %v661_v62 = vmul.f32 0.0078125, %v633_v60  ;;  %v662_v63 = vmul.f32 0.0078125, %v635_v61 }
 0x1d8   : > { %8201 = vrsqrt.f32 %v676_v59 }
 0x1d9   : > { %v677_v0 = vadd.f32 1e-05, %v661_v62  ;;  %v678_v1 = vadd.f32 1e-05, %v662_v63 }
 0x1da   : > { %v637_v2 = vpop.xlane.xlu1 %636  ;;  %v639_v5 = vpop.xlane.xlu0 %638 }
 0x1db   : > { %8203 = vrsqrt.f32 %v677_v0  ;;  %v663_v6 = vmul.f32 0.0078125, %v637_v2  ;;  %v664_v7 = vmul.f32 0.0078125, %v639_v5 }
 0x1dc   : > { %8205 = vrsqrt.f32 %v678_v1 }
 0x1dd   : > { %v8198_v8 = vpop.eup %8197  ;;  %v679_v9 = vadd.f32 1e-05, %v663_v6  ;;  %v680_v16 = vadd.f32 1e-05, %v664_v7 }
 0x1de   : > { %v641_v10 = vpop.xlane.xlu1 %640  ;;  %v643_v18 = vpop.xlane.xlu0 %642  ;;  %v706_v19 = vmul.f32 %v8198_v8, %v9405_v24 }
 0x1df   : > { %8207 = vrsqrt.f32 %v679_v9  ;;  %v665_v20 = vmul.f32 0.0078125, %v641_v10  ;;  %v666_v21 = vmul.f32 0.0078125, %v643_v18 }
 0x1e0   : > { %8209 = vrsqrt.f32 %v680_v16  ;;  %v729_v34 = vmul.f32 %v9484_v22, %v706_v19 }
 0x1e1   : > { %v8200_v23 = vpop.eup %8199  ;;  %v681_v26 = vadd.f32 1e-05, %v665_v20  ;;  %v682_v27 = vadd.f32 1e-05, %v666_v21 }
 0x1e2   : > { %v8202_v12 = vpop.eup %8201  ;;  %v645_v29 = vpop.xlane.xlu1 %644  ;;  %v707_v31 = vmul.f32 %v8200_v23, %v9413_v32  ;;  %v752_v45 = vadd.f32 %v9491_v14, %v729_v34 }
 0x1e3   : > { %v647_v30 = vpop.xlane.xlu0 %646  ;;  %8211 = vrsqrt.f32 %v681_v26  ;;  %v667_v24 = vmul.f32 0.0078125, %v645_v29  ;;  %v708_v36 = vmul.f32 %v8202_v12, %v9407_v25 }
 0x1e4   : > { %v668_v35 = vmul.f32 0.0078125, %v647_v30  ;;  %8213 = vrsqrt.f32 %v682_v27  ;;  %v730_v37 = vmul.f32 %v9484_v22, %v707_v31 }
 0x1e5   : > { %v8204_v15 = vpop.eup %8203  ;;  %v683_v38 = vadd.f32 1e-05, %v667_v24  ;;  %v731_v32 = vmul.f32 %v9484_v22, %v708_v36 }
 0x1e6   : > { %v684_v39 = vadd.f32 1e-05, %v668_v35  ;;  %v8206_v42 = vpop.eup %8205  ;;  %v649_v43 = vpop.xlane.xlu1 %648  ;;  %v753_v47 = vadd.f32 %v9491_v14, %v730_v37  ;;  %v709_v50 = vmul.f32 %v8204_v15, %v9415_v33 }
 0x1e7   : > { %v651_v44 = vpop.xlane.xlu0 %650  ;;  %8215 = vrsqrt.f32 %v683_v38  ;;  %v669_v51 = vmul.f32 0.0078125, %v649_v43  ;;  %v710_v54 = vmul.f32 %v8206_v42, %v9421_v40  ;;  %v754_v60 = vadd.f32 %v9491_v14, %v731_v32 }
 0x1e8   : > { %v670_v25 = vmul.f32 0.0078125, %v651_v44  ;;  %8217 = vrsqrt.f32 %v684_v39  ;;  %v768_v52 = vpack.c.bf16 %v753_v47, %v752_v45  ;;  %v732_v53 = vmul.f32 %v9484_v22, %v709_v50 }
 0x1e9   : > { %v8208_v55 = vpop.eup %8207  ;;  %v685_v58 = vadd.f32 1e-05, %v669_v51  ;;  %v733_v1 = vmul.f32 %v9484_v22, %v710_v54 }
 0x1ea   : > { %v686_v59 = vadd.f32 1e-05, %v670_v25  ;;  %v8210_v61 = vpop.eup %8209  ;;  %v653_v62 = vpop.xlane.xlu1 %652  ;;  %969 = vmatmul.mubr.bf16.vlgmr.msra.gmra.mrb[0].mxu0 %v768_v52  ;;  %7618 = vmatprep.mubr.bf16.mxu1 %v768_v52  ;;  %v755_v33 = vadd.f32 %v9491_v14, %v732_v53  ;;  %v711_v0 = vmul.f32 %v8208_v55, %v9423_v41 }
 0x1eb   : > { %v655_v63 = vpop.xlane.xlu0 %654  ;;  %8219 = vrsqrt.f32 %v685_v58  ;;  %v671_v2 = vmul.f32 0.0078125, %v653_v62  ;;  %978 = vmatprep.mubr.bf16.mxu0 %v13382_v46  ;;  %v712_v40 = vmul.f32 %v8210_v61, %v9430_v48  ;;  %v756_v19 = vadd.f32 %v9491_v14, %v733_v1 }
 0x1ec   : > { %v672_v5 = vmul.f32 0.0078125, %v655_v63  ;;  %8221 = vrsqrt.f32 %v686_v59  ;;  %v769_v6 = vpack.c.bf16 %v755_v33, %v754_v60  ;;  %v734_v7 = vmul.f32 %v9484_v22, %v711_v0 }
 0x1ed   : > { %v8212_v8 = vpop.eup %8211  ;;  %v687_v9 = vadd.f32 1e-05, %v671_v2  ;;  %v735_v10 = vmul.f32 %v9484_v22, %v712_v40 }
 0x1ee   : > { %v688_v16 = vadd.f32 1e-05, %v672_v5  ;;  %v8214_v18 = vpop.eup %8213  ;;  %v657_v41 = vpop.xlane.xlu1 %656  ;;  %7619 = vmatmul.mubr.bf16.vlgmr.msra.gmra.mrb[0].mxu1 %v769_v6  ;;  %v757_v20 = vadd.f32 %v9491_v14, %v734_v7  ;;  %v713_v21 = vmul.f32 %v8212_v8, %v9433_v49 }
 0x1ef   : > { %8223 = vrsqrt.f32 %v687_v9  ;;  %v673_v48 = vmul.f32 0.0078125, %v657_v41  ;;  %v714_v23 = vmul.f32 %v8214_v18, %v9440_v56  ;;  %v758_v30 = vadd.f32 %v9491_v14, %v735_v10 }
 0x1f0   : > { %8225 = vrsqrt.f32 %v688_v16  ;;  %v770_v26 = vpack.c.bf16 %v757_v20, %v756_v19  ;;  %v736_v27 = vmul.f32 %v9484_v22, %v713_v21 }
 0x1f1   : > { %v8216_v12 = vpop.eup %8215  ;;  %v689_v29 = vadd.f32 1e-05, %v673_v48  ;;  %v737_v49 = vmul.f32 %v9484_v22, %v714_v23 }
 0x1f2   : > { %v8218_v31 = vpop.eup %8217  ;;  %979 = vmatmul.mubr.bf16.gmra.mrb[4].mxu0 %v769_v6  ;;  %7622 = vmatprep.mubr.bf16.mxu1 %v770_v26  ;;  %v759_v34 = vadd.f32 %v9491_v14, %v736_v27  ;;  %v715_v24 = vmul.f32 %v8216_v12, %v9443_v57 }
 0x1f3   : > { %8227 = vrsqrt.f32 %v689_v29  ;;  %988 = vmatprep.mubr.bf16.mxu0 %v13382_v46  ;;  %v716_v56 = vmul.f32 %v8218_v31, %v9450_v3  ;;  %v760_v39 = vadd.f32 %v9491_v14, %v737_v49 }
 0x1f4   : > { %v771_v35 = vpack.c.bf16 %v759_v34, %v758_v30  ;;  %v738_v36 = vmul.f32 %v9484_v22, %v715_v24 }
 0x1f5   : > { %v8220_v37 = vpop.eup %8219  ;;  %v739_v15 = vmul.f32 %v9484_v22, %v716_v56 }
 0x1f6   : > { %v8222_v38 = vpop.eup %8221  ;;  %7623 = vmatmul.mubr.bf16.gmra.mrb[4].mxu1 %v771_v35  ;;  %v761_v32 = vadd.f32 %v9491_v14, %v738_v36  ;;  %v717_v57 = vmul.f32 %v8220_v37, %v9453_v4 }
 0x1f7   : > { %v718_v42 = vmul.f32 %v8222_v38, %v9460_v11  ;;  %v762_v45 = vadd.f32 %v9491_v14, %v739_v15 }
 0x1f8   : > { %v772_v43 = vpack.c.bf16 %v761_v32, %v760_v39  ;;  %v740_v44 = vmul.f32 %v9484_v22, %v717_v57 }
 0x1f9   : > { %v8224_v3 = vpop.eup %8223  ;;  %v741_v25 = vmul.f32 %v9484_v22, %v718_v42 }
 0x1fa   : > { %v8226_v47 = vpop.eup %8225  ;;  %989 = vmatmul.mubr.bf16.gmra.mrb[8].mxu0 %v770_v26  ;;  %7626 = vmatprep.mubr.bf16.mxu1 %v772_v43  ;;  %v763_v50 = vadd.f32 %v9491_v14, %v740_v44  ;;  %v719_v51 = vmul.f32 %v8224_v3, %v9463_v17 }
 0x1fb   : > { %998 = vmatprep.mubr.bf16.mxu0 %v13382_v46  ;;  %v720_v4 = vmul.f32 %v8226_v47, %v9470_v13  ;;  %v764_v54 = vadd.f32 %v9491_v14, %v741_v25 }
 0x1fc   : > { %v773_v11 = vpack.c.bf16 %v763_v50, %v762_v45  ;;  %v742_v52 = vmul.f32 %v9484_v22, %v719_v51 }
 0x1fd   : > { %v8228_v53 = vpop.eup %8227  ;;  %v743_v59 = vmul.f32 %v9484_v22, %v720_v4 }
 0x1fe   : > { %7627 = vmatmul.mubr.bf16.gmra.mrb[8].mxu1 %v773_v11  ;;  %v765_v55 = vadd.f32 %v9491_v14, %v742_v52  ;;  %v721_v58 = vmul.f32 %v8228_v53, %v9473_v28 }
 0x1ff   : > { %v766_v13 = vadd.f32 %v9491_v14, %v743_v59 }
 0x200   : > { %v774_v17 = vpack.c.bf16 %v765_v55, %v764_v54  ;;  %v744_v60 = vmul.f32 %v9484_v22, %v721_v58 }
 0x202   : > { %999 = vmatmul.mubr.bf16.gmra.mrb[12].mxu0 %v771_v35  ;;  %7630 = vmatprep.mubr.bf16.mxu1 %v774_v17  ;;  %v767_v61 = vadd.f32 %v9491_v14, %v744_v60 }
 0x203   : > { %1008 = vmatprep.mubr.bf16.mxu0 %v13382_v46 }
 0x204   : > { %v775_v62 = vpack.c.bf16 %v767_v61, %v766_v13 }
 0x206   : > { %7631 = vmatmul.mubr.bf16.gmra.mrb[12].mxu1 %v775_v62 }
 0x20a   : > { %1009 = vmatmul.mubr.bf16.gmra.mrb[16].mxu0 %v772_v43 }
 0x20b   : > { %1018 = vmatprep.mubr.bf16.mxu0 %v13382_v46 }
 0x212   : > { %1019 = vmatmul.mubr.bf16.gmra.mrb[20].mxu0 %v773_v11 }
 0x213   : > { %1028 = vmatprep.mubr.bf16.mxu0 %v13382_v46 }
 0x21a   : > { %1029 = vmatmul.mubr.bf16.gmra.mrb[24].mxu0 %v774_v17 }
 0x21b   : > { %1038 = vmatprep.mubr.bf16.mxu0 %v13382_v46 }
 0x222   : > { %1039 = vmatmul.mubr.bf16.gmra.mrb[28].mxu0 %v775_v62 }
 0x2bd   : > { %v970_v28 = vpop.f32.mrb[0].mxu0 }
 0x2be   : > { %v972_v22 = vpop.f32.mrb[1].mxu0 }
 0x2bf   : > { %v974_v63 = vpop.f32.mrb[2].mxu0 }
 0x2c0   : > { %v9545_v33 = vpack.c.bf16 %v974_v63, %v970_v28  ;;  %v976_v14 = vpop.f32.mrb[3].mxu0 }
 0x2c1   : > { %v9547_v0 = vpack.c.bf16 %v976_v14, %v972_v22  ;;  %v7620_v1 = vpop.f32.mrb[0].mxu1 }
 0x2c2   : > { %v1083_v2 = vpop.f32.mrb[1].mxu1  ;;  %7650 = vmatprep.mubr.msk.bf16.mxu0 %vm1266_vm0, %v9545_v33 }
 0x2c3   : > { %1829 = vrot.lane.b32.xlu0 %v9547_v0, %s9052_s25  ;;  %v7621_v5 = vpop.f32.mrb[2].mxu1  ;;  %7938 = vmatprep.subr.msk.bf16.mxu0 %vm1266_vm0, %v9547_v0  ;;  %v1292_v40 = vsel %vm1266_vm0, %v9547_v0, 0 }
 0x2c4   : > { %v9557_v6 = vpack.c.bf16 %v7621_v5, %v7620_v1  ;;  %v1086_v7 = vpop.f32.mrb[3].mxu1  ;;  %7635 = vmatpush3.bf16.xpose.msra.mxu0 %v1292_v40 }
 0x2c5   : > { %v9559_v8 = vpack.c.bf16 %v1086_v7, %v1083_v2  ;;  %v980_v9 = vpop.f32.mrb[4].mxu0 }
 0x2c6   : > { %v982_v16 = vpop.f32.mrb[5].mxu0 }
 0x2c7   : > { %v984_v10 = vpop.f32.mrb[6].mxu0  ;;  %7666 = vmatprep.subr.bf16.mxu1 %v9559_v8 }
 0x2c8   : > { %v9562_v18 = vpack.c.bf16 %v984_v10, %v980_v9  ;;  %v986_v41 = vpop.f32.mrb[7].mxu0  ;;  %7667 = vmatpush3.bf16.msra.mxu1 %v9559_v8 }
 0x2c9   : > { %v9565_v19 = vpack.c.bf16 %v986_v41, %v982_v16  ;;  %v7624_v20 = vpop.f32.mrb[4].mxu1  ;;  %7668 = vmatprep.subr.bf16.mxu1 %v9557_v6 }
 0x2ca   : > { %v1099_v21 = vpop.f32.mrb[5].mxu1 }
 0x2cb   : > { %1831 = vrot.lane.b32.xlu1 %v9565_v19, %s9052_s25  ;;  %v7625_v48 = vpop.f32.mrb[6].mxu1  ;;  %7939 = vmatprep.subr.msk.bf16.mxu0 %vm1266_vm0, %v9565_v19  ;;  %v1295_v23 = vsel %vm1266_vm0, %v9565_v19, 0 }
 0x2cc   : > { %v9574_v26 = vpack.c.bf16 %v7625_v48, %v7624_v20  ;;  %v1102_v27 = vpop.f32.mrb[7].mxu1  ;;  %7637 = vmatpush3.bf16.xpose.msra.mxu0 %v1295_v23  ;;  %7669 = vmatpush3.bf16.msra.mxu1 %v9557_v6 }
 0x2cd   : > { %v9577_v12 = vpack.c.bf16 %v1102_v27, %v1099_v21  ;;  %v990_v29 = vpop.f32.mrb[8].mxu0 }
 0x2ce   : > { %v992_v30 = vpop.f32.mrb[9].mxu0 }
 0x2cf   : > { %v994_v31 = vpop.f32.mrb[10].mxu0  ;;  %7670 = vmatprep.subr.bf16.mxu1 %v9577_v12 }
 0x2d0   : > { %v9580_v34 = vpack.c.bf16 %v994_v31, %v990_v29  ;;  %v996_v24 = vpop.f32.mrb[11].mxu0  ;;  %7671 = vmatpush3.bf16.msra.mxu1 %v9577_v12 }
 0x2d1   : > { %v9583_v49 = vpack.c.bf16 %v996_v24, %v992_v30  ;;  %v7628_v56 = vpop.f32.mrb[8].mxu1  ;;  %7672 = vmatprep.subr.bf16.mxu1 %v9574_v26 }
 0x2d2   : > { %v1115_v35 = vpop.f32.mrb[9].mxu1 }
 0x2d3   : > { %v7629_v36 = vpop.f32.mrb[10].mxu1  ;;  %7940 = vmatprep.subr.msk.bf16.mxu0 %vm1266_vm0, %v9583_v49  ;;  %v1298_v37 = vsel %vm1266_vm0, %v9583_v49, 0 }
 0x2d4   : > { %v9590_v15 = vpack.c.bf16 %v7629_v36, %v7628_v56  ;;  %v1118_v38 = vpop.f32.mrb[11].mxu1  ;;  %7639 = vmatpush3.bf16.xpose.msra.mxu0 %v1298_v37  ;;  %7673 = vmatpush3.bf16.msra.mxu1 %v9574_v26 }
 0x2d5   : > { %v9593_v39 = vpack.c.bf16 %v1118_v38, %v1115_v35  ;;  %v1000_v32 = vpop.f32.mrb[12].mxu0 }
 0x2d6   : > { %13453 = vst [vmem:[#allocation23_spill] sm:$0xff] %v9590_v15  ;;  %v1002_v57 = vpop.f32.mrb[13].mxu0 }
 0x2d7   : > { %13454 = vst [vmem:[#allocation24_spill] sm:$0xff] %v9593_v39  ;;  %v1004_v42 = vpop.f32.mrb[14].mxu0  ;;  %7674 = vmatprep.subr.bf16.mxu1 %v9593_v39 }
 0x2d8   : > { %v9596_v43 = vpack.c.bf16 %v1004_v42, %v1000_v32  ;;  %v1006_v44 = vpop.f32.mrb[15].mxu0  ;;  %7675 = vmatpush3.bf16.msra.mxu1 %v9593_v39 }
 0x2d9   : > { %v9599_v3 = vpack.c.bf16 %v1006_v44, %v1002_v57  ;;  %v7632_v45 = vpop.f32.mrb[12].mxu1  ;;  %7676 = vmatprep.subr.bf16.mxu1 %v9590_v15 }
 0x2da   : > { %v1131_v47 = vpop.f32.mrb[13].mxu1 }
 0x2db   : > { %v7633_v50 = vpop.f32.mrb[14].mxu1  ;;  %7941 = vmatprep.subr.msk.bf16.mxu0 %vm1266_vm0, %v9599_v3  ;;  %v1301_v51 = vsel %vm1266_vm0, %v9599_v3, 0 }
 0x2dc   : > { %v9606_v25 = vpack.c.bf16 %v7633_v50, %v7632_v45  ;;  %v1134_v4 = vpop.f32.mrb[15].mxu1  ;;  %7641 = vmatpush3.bf16.xpose.msra.mxu0 %v1301_v51  ;;  %7677 = vmatpush3.bf16.msra.mxu1 %v9590_v15 }
 0x2dd   : > { %v9609_v11 = vpack.c.bf16 %v1134_v4, %v1131_v47  ;;  %v1010_v52 = vpop.f32.mrb[16].mxu0 }
 0x2de   : > { %13455 = vst [vmem:[#allocation25_spill] sm:$0xff] %v9606_v25  ;;  %v1012_v53 = vpop.f32.mrb[17].mxu0 }
 0x2df   : > { %13456 = vst [vmem:[#allocation26_spill] sm:$0xff] %v9609_v11  ;;  %v1014_v54 = vpop.f32.mrb[18].mxu0  ;;  %7678 = vmatprep.subr.bf16.mxu1 %v9609_v11 }
 0x2e0   : > { %v9612_v55 = vpack.c.bf16 %v1014_v54, %v1010_v52  ;;  %v1016_v58 = vpop.f32.mrb[19].mxu0  ;;  %7679 = vmatpush3.bf16.msra.mxu1 %v9609_v11 }
 0x2e1   : > { %v9615_v59 = vpack.c.bf16 %v1016_v58, %v1012_v53  ;;  %7680 = vmatprep.subr.bf16.mxu1 %v9606_v25 }
 0x2e3   : > { %7942 = vmatprep.subr.msk.bf16.mxu0 %vm1266_vm0, %v9615_v59  ;;  %v1304_v17 = vsel %vm1266_vm0, %v9615_v59, 0 }
 0x2e4   : > { %7643 = vmatpush3.bf16.xpose.msra.mxu0 %v1304_v17  ;;  %7681 = vmatpush3.bf16.msra.mxu1 %v9606_v25 }
 0x2e5   : > { %v1020_v60 = vpop.f32.mrb[20].mxu0 }
 0x2e6   : > { %v1022_v13 = vpop.f32.mrb[21].mxu0 }
 0x2e7   : > { %v1024_v61 = vpop.f32.mrb[22].mxu0 }
 0x2e8   : > { %v9623_v62 = vpack.c.bf16 %v1024_v61, %v1020_v60  ;;  %v1026_v28 = vpop.f32.mrb[23].mxu0 }
 0x2e9   : > { %v9625_v22 = vpack.c.bf16 %v1026_v28, %v1022_v13 }
 0x2eb   : > { %7943 = vmatprep.subr.msk.bf16.mxu0 %vm1266_vm0, %v9625_v22  ;;  %v1307_v63 = vsel %vm1266_vm0, %v9625_v22, 0 }
 0x2ec   : > { %7645 = vmatpush3.bf16.xpose.msra.mxu0 %v1307_v63 }
 0x2ed   : > { %v1030_v14 = vpop.f32.mrb[24].mxu0 }
 0x2ee   : > { %v1032_v1 = vpop.f32.mrb[25].mxu0 }
 0x2ef   : > { %v1034_v2 = vpop.f32.mrb[26].mxu0 }
 0x2f0   : > { %v9631_v5 = vpack.c.bf16 %v1034_v2, %v1030_v14  ;;  %v1036_v40 = vpop.f32.mrb[27].mxu0 }
 0x2f1   : > { %v9633_v7 = vpack.c.bf16 %v1036_v40, %v1032_v1 }
 0x2f3   : > { %7944 = vmatprep.subr.msk.bf16.mxu0 %vm1266_vm0, %v9633_v7  ;;  %v1310_v9 = vsel %vm1266_vm0, %v9633_v7, 0 }
 0x2f4   : > { %7647 = vmatpush3.bf16.xpose.msra.mxu0 %v1310_v9 }
 0x2f5   : > { %v1040_v16 = vpop.f32.mrb[28].mxu0 }
 0x2f6   : > { %v1042_v10 = vpop.f32.mrb[29].mxu0 }
 0x2f7   : > { %v1044_v41 = vpop.f32.mrb[30].mxu0 }
 0x2f8   : > { %v9639_v20 = vpack.c.bf16 %v1044_v41, %v1040_v16  ;;  %v1046_v21 = vpop.f32.mrb[31].mxu0 }
 0x2f9   : > { %v9641_v48 = vpack.c.bf16 %v1046_v21, %v1042_v10 }
 0x2fb   : > { %7945 = vmatprep.subr.msk.bf16.mxu0 %vm1266_vm0, %v9641_v48  ;;  %v1313_v23 = vsel %vm1266_vm0, %v9641_v48, 0 }
 0x2fc   : > { %7649 = vmatpush3.bf16.xpose.msra.mxu0 %v1313_v23 }
 0x303   : > { %7651 = vmatmul.mubr.msk.bf16.vlgmr.msra.gmra.mrb[32].mxu0 %vm1266_vm0, %v9562_v18 }
 0x304   : > { %7654 = vmatprep.mubr.msk.bf16.mxu0 %vm1266_vm0, %v9580_v34 }
 0x30b   : > { %7655 = vmatmul.mubr.msk.bf16.gmra.mrb[36].mxu0 %vm1266_vm0, %v9596_v43 }
 0x30c   : > { %7658 = vmatprep.mubr.msk.bf16.mxu0 %vm1266_vm0, %v9612_v55 }
 0x313   : > { %7659 = vmatmul.mubr.msk.bf16.gmra.mrb[40].mxu0 %vm1266_vm0, %v9623_v62 }
 0x314   : > { %7662 = vmatprep.mubr.msk.bf16.mxu0 %vm1266_vm0, %v9631_v5 }
 0x31b   : > { %7663 = vmatmul.mubr.msk.bf16.gmra.mrb[44].mxu0 %vm1266_vm0, %v9639_v20 }
 0x335   : > { %v9661_v27 = vpop.permute.xlu0 %1829 }
 0x336   : > { %7946 = vmatprep.subr.msk.bf16.mxu1 %vm1266_vm0, %v9661_v27 }
 0x33d   : > { %v9705_v9 = vpop.permute.xlu1 %1831 }
 0x3d6   : > { %v7652_v29 = vpop.f32.mrb[32].mxu0 }
 0x3d7   : > { %v1414_v30 = vmul.f32 0.17677669, %v7652_v29  ;;  %v1349_v31 = vpop.f32.mrb[33].mxu0 }
 0x3d8   : > { %v7653_v24 = vpop.f32.mrb[34].mxu0  ;;  %v1412_v36 = vmul.f32 0.17677669, %v1349_v31 }
 0x3d9   : > { %v1415_v56 = vmul.f32 0.17677669, %v7653_v24  ;;  %1432 = vmax.xlane.f32.xlu0 %v1414_v30  ;;  %v1352_v35 = vpop.f32.mrb[35].mxu0 }
 0x3da   : > { %v1413_v37 = vmul.f32 0.17677669, %v1352_v35 }
 0x3db   : > { %1434 = vmax.xlane.f32.xlu1 %v1415_v56 }
 0x3dd   : > { %1428 = vmax.xlane.f32.xlu0 %v1412_v36 }
 0x3de   : > { %v7656_v38 = vpop.f32.mrb[36].mxu0 }
 0x3df   : > { %v9665_v32 = vmul.f32 0.17677669, %v7656_v38  ;;  %1430 = vmax.xlane.f32.xlu1 %v1413_v37  ;;  %v1365_v57 = vpop.f32.mrb[37].mxu0 }
 0x3e0   : > { %v7657_v42 = vpop.f32.mrb[38].mxu0  ;;  %v9670_v47 = vmul.f32 0.17677669, %v1365_v57 }
 0x3e1   : > { %v9667_v44 = vmul.f32 0.17677669, %v7657_v42  ;;  %1440 = vmax.xlane.f32.xlu0 %v9665_v32  ;;  %v1368_v45 = vpop.f32.mrb[39].mxu0 }
 0x3e2   : > { %v9673_v50 = vmul.f32 0.17677669, %v1368_v45 }
 0x3e3   : > { %1442 = vmax.xlane.f32.xlu1 %v9667_v44 }
 0x3e5   : > { %1436 = vmax.xlane.f32.xlu0 %v9670_v47 }
 0x3e6   : > { %v7660_v51 = vpop.f32.mrb[40].mxu0 }
 0x3e7   : > { %v9676_v4 = vmul.f32 0.17677669, %v7660_v51  ;;  %1438 = vmax.xlane.f32.xlu1 %v9673_v50  ;;  %v1381_v52 = vpop.f32.mrb[41].mxu0 }
 0x3e8   : > { %v7661_v53 = vpop.f32.mrb[42].mxu0  ;;  %v9682_v17 = vmul.f32 0.17677669, %v1381_v52 }
 0x3e9   : > { %v9679_v54 = vmul.f32 0.17677669, %v7661_v53  ;;  %1448 = vmax.xlane.f32.xlu0 %v9676_v4  ;;  %v1384_v58 = vpop.f32.mrb[43].mxu0 }
 0x3ea   : > { %v9685_v60 = vmul.f32 0.17677669, %v1384_v58 }
 0x3eb   : > { %1450 = vmax.xlane.f32.xlu1 %v9679_v54 }
 0x3ed   : > { %1444 = vmax.xlane.f32.xlu0 %v9682_v17 }
 0x3ee   : > { %v7664_v13 = vpop.f32.mrb[44].mxu0 }
 0x3ef   : > { %v9688_v61 = vmul.f32 0.17677669, %v7664_v13  ;;  %1446 = vmax.xlane.f32.xlu1 %v9685_v60  ;;  %v1397_v28 = vpop.f32.mrb[45].mxu0 }
 0x3f0   : > { %v7665_v63 = vpop.f32.mrb[46].mxu0  ;;  %v9692_v1 = vmul.f32 0.17677669, %v1397_v28 }
 0x3f1   : > { %1456 = vmax.xlane.f32.xlu0 %v9688_v61  ;;  %v1400_v14 = vpop.f32.mrb[47].mxu0  ;;  %v9699_v2 = vmul.f32 0.17677669, %v7665_v63 }
 0x3f2   : > { %v9702_v40 = vmul.f32 0.17677669, %v1400_v14 }
 0x3f5   : > { %1452 = vmax.xlane.f32.xlu0 %v9692_v1 }
 0x400   : > { %1835 = vrot.lane.b32.xlu1 %v9599_v3, %s9052_s25 }
 0x40b   : > { %1833 = vrot.lane.b32.xlu0 %v9583_v49, %s9052_s25 }
 0x424   : > { %1458 = vmax.xlane.f32.xlu1 %v9699_v2 }
 0x428   : > { %1454 = vmax.xlane.f32.xlu1 %v9702_v40 }
 0x466   : > { %v1433_v16 = vpop.xlane.xlu0 %1432 }
 0x467   : > { %v1462_v10 = vsub.f32 %v1414_v30, %v1433_v16 }
 0x468   : > { %v1435_v41 = vpop.xlane.xlu1 %1434 }
 0x469   : > { %v1480_v21 = vmul.f32 1.442695, %v1462_v10  ;;  %v1463_v23 = vsub.f32 %v1415_v56, %v1435_v41 }
 0x46a   : > { %v1429_v29 = vpop.xlane.xlu0 %1428 }
 0x46b   : > { %8229 = vpow2.f32 %v1480_v21  ;;  %v1482_v31 = vmul.f32 1.442695, %v1463_v23  ;;  %v1460_v24 = vsub.f32 %v1412_v36, %v1429_v29 }
 0x46c   : > { %v1431_v35 = vpop.xlane.xlu1 %1430 }
 0x46d   : > { %8231 = vpow2.f32 %v1482_v31  ;;  %v1476_v38 = vmul.f32 1.442695, %v1460_v24  ;;  %v1461_v57 = vsub.f32 %v1413_v37, %v1431_v35 }
 0x46e   : > { %v1441_v36 = vpop.xlane.xlu0 %1440 }
 0x46f   : > { %8233 = vpow2.f32 %v1476_v38  ;;  %v1478_v42 = vmul.f32 1.442695, %v1461_v57  ;;  %v1466_v28 = vsub.f32 %v9665_v32, %v1441_v36 }
 0x470   : > { %v1443_v53 = vpop.xlane.xlu1 %1442 }
 0x471   : > { %8235 = vpow2.f32 %v1478_v42  ;;  %v1488_v16 = vmul.f32 1.442695, %v1466_v28  ;;  %v1467_v21 = vsub.f32 %v9667_v44, %v1443_v53 }
 0x472   : > { %v1437_v37 = vpop.xlane.xlu0 %1436 }
 0x473   : > { %v1464_v63 = vsub.f32 %v9670_v47, %v1437_v37  ;;  %8237 = vpow2.f32 %v1488_v16  ;;  %v1490_v35 = vmul.f32 1.442695, %v1467_v21 }
 0x474   : > { %v1439_v13 = vpop.xlane.xlu1 %1438 }
 0x475   : > { %v9707_v45 = vpop.eup %8229  ;;  %v1465_v10 = vsub.f32 %v9673_v50, %v1439_v13  ;;  %v1484_v23 = vmul.f32 1.442695, %v1464_v63 }
 0x476   : > { %1512 = vadd.xlane.f32.xlu0 %v9707_v45  ;;  %v1449_v52 = vpop.xlane.xlu0 %1448 }
 0x477   : > { %v9710_v51 = vpop.eup %8231  ;;  %v1486_v29 = vmul.f32 1.442695, %v1465_v10  ;;  %8239 = vpow2.f32 %v1484_v23  ;;  %v1470_v38 = vsub.f32 %v9676_v4, %v1449_v52 }
 0x478   : > { %1514 = vadd.xlane.f32.xlu1 %v9710_v51  ;;  %v1451_v41 = vpop.xlane.xlu1 %1450 }
 0x479   : > { %v9713_v30 = vpop.eup %8233  ;;  %8241 = vpow2.f32 %v1486_v29  ;;  %v1496_v50 = vmul.f32 1.442695, %v1470_v38  ;;  %v1471_v36 = vsub.f32 %v9679_v54, %v1451_v41 }
 0x47a   : > { %1508 = vadd.xlane.f32.xlu0 %v9713_v30  ;;  %v1445_v58 = vpop.xlane.xlu0 %1444  ;;  %8243 = vpow2.f32 %v1490_v35 }
 0x47b   : > { %v9716_v56 = vpop.eup %8235  ;;  %v1468_v42 = vsub.f32 %v9682_v17, %v1445_v58 }
 0x47c   : > { %1510 = vadd.xlane.f32.xlu1 %v9716_v56  ;;  %v1447_v32 = vpop.xlane.xlu1 %1446 }
 0x47d   : > { %v1492_v53 = vmul.f32 1.442695, %v1468_v42  ;;  %v1469_v54 = vsub.f32 %v9685_v60, %v1447_v32 }
 0x47e   : > { %v1457_v14 = vpop.xlane.xlu0 %1456 }
 0x47f   : > { %v1474_v31 = vsub.f32 %v9688_v61, %v1457_v14  ;;  %v9734_v61 = vpop.eup %8237  ;;  %v1494_v16 = vmul.f32 1.442695, %v1469_v54 }
 0x480   : > { %v9732_v37 = vpop.permute.xlu1 %1835 }
 0x481   : > { %v1504_v47 = vmul.f32 1.442695, %v1474_v31  ;;  %v9737_v4 = vpop.eup %8239 }
 0x482   : > { %v1453_v24 = vpop.xlane.xlu0 %1452 }
 0x483   : > { %v1472_v57 = vsub.f32 %v9692_v1, %v1453_v24  ;;  %8245 = vpow2.f32 %v1504_v47  ;;  %v1498_v1 = vmul.f32 1.442695, %v1471_v36  ;;  %v9740_v17 = vpop.eup %8241 }
 0x484   : > { %8247 = vpow2.f32 %v1496_v50  ;;  %v9745_v13 = vpop.eup %8243 }
 0x485   : > { %v1500_v44 = vmul.f32 1.442695, %v1472_v57 }
 0x486   : > { %v1834_v24 = vpop.permute.xlu0 %1833 }
 0x487   : > { %8249 = vpow2.f32 %v1500_v44 }
 0x488   : > { %8251 = vpow2.f32 %v1492_v53 }
 0x489   : > { %8253 = vpow2.f32 %v1498_v1 }
 0x48d   : > { %1839 = vrot.lane.b32.xlu1 %v9625_v22, %s9052_s25  ;;  %v9748_v14 = vpop.eup %8245 }
 0x48e   : > { %v9752_v60 = vpop.eup %8247 }
 0x490   : > { %1837 = vrot.lane.b32.xlu0 %v9615_v59, %s9052_s25 }
 0x4af   : > { %1520 = vadd.xlane.f32.xlu0 %v9734_v61 }
 0x4b1   : > { %v1459_v52 = vpop.xlane.xlu1 %1458  ;;  %1516 = vadd.xlane.f32.xlu1 %v9737_v4 }
 0x4b2   : > { %v1475_v58 = vsub.f32 %v9699_v2, %v1459_v52  ;;  %v9755_v2 = vpop.eup %8249 }
 0x4b3   : > { %1518 = vadd.xlane.f32.xlu0 %v9740_v17  ;;  %v9758_v21 = vpop.eup %8251 }
 0x4b4   : > { %v1506_v28 = vmul.f32 1.442695, %v1475_v58  ;;  %v9761_v23 = vpop.eup %8253 }
 0x4b5   : > { %v1455_v63 = vpop.xlane.xlu1 %1454  ;;  %1522 = vadd.xlane.f32.xlu1 %v9745_v13 }
 0x4b6   : > { %8255 = vpow2.f32 %v1506_v28  ;;  %v1473_v10 = vsub.f32 %v9702_v40, %v1455_v63 }
 0x4b7   : > { %1536 = vadd.xlane.f32.xlu0 %v9748_v14  ;;  %8257 = vpow2.f32 %v1494_v16 }
 0x4b8   : > { %v1502_v41 = vmul.f32 1.442695, %v1473_v10 }
 0x4b9   : > { %1528 = vadd.xlane.f32.xlu1 %v9752_v60 }
 0x4ba   : > { %8259 = vpow2.f32 %v1502_v41 }
 0x4bb   : > { %1532 = vadd.xlane.f32.xlu0 %v9755_v2 }
 0x4bd   : > { %1524 = vadd.xlane.f32.xlu1 %v9758_v21 }
 0x4c0   : > { %v9763_v40 = vpop.eup %8255 }
 0x4c1   : > { %1530 = vadd.xlane.f32.xlu1 %v9761_v23  ;;  %1538 = vadd.xlane.f32.xlu0 %v9763_v40  ;;  %v9767_v29 = vpop.eup %8257 }
 0x4c4   : > { %v9770_v31 = vpop.eup %8259 }
 0x4c5   : > { %1526 = vadd.xlane.f32.xlu1 %v9767_v29 }
 0x4c9   : > { %1534 = vadd.xlane.f32.xlu1 %v9770_v31 }
 0x4d7   : > { %1841 = vrot.lane.b32.xlu0 %v9633_v7, %s9052_s25 }
 0x4da   : > { %1843 = vrot.lane.b32.xlu1 %v9641_v48, %s9052_s25 }
 0x4db   : > { %1805 = vrot.lane.b32.xlu0 %v9545_v33, %s9052_s25 }
 0x4de   : > { %1807 = vrot.lane.b32.xlu1 %v9562_v18, %s9052_s25 }
 0x4df   : > { %1809 = vrot.lane.b32.xlu0 %v9580_v34, %s9052_s25 }
 0x4e2   : > { %1811 = vrot.lane.b32.xlu1 %v9596_v43, %s9052_s25 }
 0x4e3   : > { %1813 = vrot.lane.b32.xlu0 %v9612_v55, %s9052_s25 }
 0x4e6   : > { %1815 = vrot.lane.b32.xlu1 %v9623_v62, %s9052_s25 }
 0x4e7   : > { %1817 = vrot.lane.b32.xlu0 %v9631_v5, %s9052_s25 }
 0x4ea   : > { %1819 = vrot.lane.b32.xlu1 %v9639_v20, %s9052_s25 }
 0x4eb   : > { %2230 = vrot.lane.b32.xlu0 %v9559_v8, %s9052_s25 }
 0x4ee   : > { %2232 = vrot.lane.b32.xlu1 %v9557_v6, %s9052_s25 }
 0x4ef   : > { %2234 = vrot.lane.b32.xlu0 %v9577_v12, %s9052_s25 }
 0x4f2   : > { %2236 = vrot.lane.b32.xlu1 %v9574_v26, %s9052_s25 }
 0x4f3   : > { %2238 = vrot.lane.b32.xlu0 %v9593_v39, %s9052_s25 }
 0x4f6   : > { %2240 = vrot.lane.b32.xlu1 %v9590_v15, %s9052_s25 }
 0x4f7   : > { %2242 = vrot.lane.b32.xlu0 %v9609_v11, %s9052_s25 }
 0x4fa   : > { %2244 = vrot.lane.b32.xlu1 %v9606_v25, %s9052_s25 }
 0x4fb   : > { %2536 = vrot.lane.b32.xlu0 %v9547_v0, %s9053_s3 }
 0x4fe   : > { %2538 = vrot.lane.b32.xlu1 %v9565_v19, %s9053_s3 }
 0x503   : > { %v1513_v35 = vpop.xlane.xlu0 %1512 }
 0x505   : > { %v1515_v38 = vpop.xlane.xlu1 %1514 }
 0x506   : > { %8261 = vrcp.f32 %v1515_v38 }
 0x507   : > { %v1509_v32 = vpop.xlane.xlu0 %1508 }
 0x508   : > { %8263 = vrcp.f32 %v1509_v32 }
 0x509   : > { %8265 = vrcp.f32 %v1513_v35  ;;  %v1511_v47 = vpop.xlane.xlu1 %1510 }
 0x50a   : > { %8267 = vrcp.f32 %v1511_v47 }
 0x50d   : > { %v1840_v28 = vpop.permute.xlu1 %1839 }
 0x510   : > { %v8262_v57 = vpop.eup %8261 }
 0x511   : > { %v9814_v36 = vmul.f32 %v8262_v57, %v9710_v51  ;;  %v1870_v51 = vsel %vm1266_vm0, %v9661_v27, 0  ;;  %v1838_v27 = vpop.permute.xlu0 %1837 }
 0x512   : > { %v8264_v50 = vpop.eup %8263  ;;  %v1882_v63 = vsel %vm1266_vm0, %v1838_v27, 0 }
 0x513   : > { %v8266_v42 = vpop.eup %8265  ;;  %v9817_v53 = vmul.f32 %v8264_v50, %v9713_v30  ;;  %v1873_v30 = vsel %vm1266_vm0, %v9705_v9, 0 }
 0x514   : > { %v8268_v44 = vpop.eup %8267  ;;  %v9823_v52 = vmul.f32 %v8266_v42, %v9707_v45  ;;  %v1876_v45 = vsel %vm1266_vm0, %v1834_v24, 0 }
 0x515   : > { %v9820_v1 = vmul.f32 %v8268_v44, %v9716_v56  ;;  %v1879_v56 = vsel %vm1266_vm0, %v9732_v37, 0 }
 0x516   : > { %v1605_v58 = vpack.c.bf16 %v9814_v36, %v9823_v52 }
 0x517   : > { %v1604_v54 = vpack.c.bf16 %v9820_v1, %v9817_v53 }
 0x519   : > { %7682 = vmatprep.mubr.bf16.mxu1 %v1604_v54 }
 0x51a   : > { %7683 = vmatmul.mubr.bf16.vlgmr.msra.gmra.mrb[16].mxu1 %v1605_v58 }
 0x51b   : > { %7699 = vmatpush3.bf16.xpose.msra.mxu1 %v1870_v51 }
 0x51c   : > { %7947 = vmatprep.subr.msk.bf16.mxu1 %vm1266_vm0, %v9705_v9 }
 0x523   : > { %7701 = vmatpush3.bf16.xpose.msra.mxu1 %v1873_v30 }
 0x524   : > { %7948 = vmatprep.subr.msk.bf16.mxu1 %vm1266_vm0, %v1834_v24  ;;  %v1885_v24 = vsel %vm1266_vm0, %v1840_v28, 0 }
 0x52b   : > { %7703 = vmatpush3.bf16.xpose.msra.mxu1 %v1876_v45 }
 0x52c   : > { %7949 = vmatprep.subr.msk.bf16.mxu1 %vm1266_vm0, %v9732_v37 }
 0x533   : > { %7705 = vmatpush3.bf16.xpose.msra.mxu1 %v1879_v56 }
 0x534   : > { %7950 = vmatprep.subr.msk.bf16.mxu1 %vm1266_vm0, %v1838_v27 }
 0x53b   : > { %7707 = vmatpush3.bf16.xpose.msra.mxu1 %v1882_v63 }
 0x53c   : > { %7951 = vmatprep.subr.msk.bf16.mxu1 %vm1266_vm0, %v1840_v28  ;;  %v1521_v9 = vpop.xlane.xlu0 %1520 }
 0x53e   : > { %v1517_v16 = vpop.xlane.xlu1 %1516 }
 0x53f   : > { %8269 = vrcp.f32 %v1517_v16 }
 0x540   : > { %8271 = vrcp.f32 %v1521_v9  ;;  %v1519_v10 = vpop.xlane.xlu0 %1518 }
 0x541   : > { %8273 = vrcp.f32 %v1519_v10 }
 0x542   : > { %v1523_v41 = vpop.xlane.xlu1 %1522 }
 0x543   : > { %8275 = vrcp.f32 %v1523_v41  ;;  %7709 = vmatpush3.bf16.xpose.msra.mxu1 %v1885_v24 }
 0x544   : > { %v1537_v37 = vpop.xlane.xlu0 %1536 }
 0x546   : > { %v1529_v35 = vpop.xlane.xlu1 %1528 }
 0x548   : > { %v1533_v47 = vpop.xlane.xlu0 %1532 }
 0x549   : > { %v8270_v38 = vpop.eup %8269 }
 0x54a   : > { %v8272_v32 = vpop.eup %8271  ;;  %v1525_v57 = vpop.xlane.xlu1 %1524  ;;  %v9846_v42 = vmul.f32 %v8270_v38, %v9737_v4 }
 0x54b   : > { %v8274_v50 = vpop.eup %8273  ;;  %v9854_v45 = vmul.f32 %v8272_v32, %v9734_v61 }
 0x54c   : > { %13457 = vst [vmem:[#allocation27_spill] sm:$0xff] %v9846_v42  ;;  %v9849_v44 = vmul.f32 %v8274_v50, %v9740_v17 }
 0x54d   : > { %v8276_v54 = vpop.eup %8275  ;;  %13459 = vst [vmem:[#allocation29_spill] sm:$0xff] %v9854_v45 }
 0x54e   : > { %13458 = vst [vmem:[#allocation28_spill] sm:$0xff] %v9849_v44  ;;  %v1531_v58 = vpop.xlane.xlu1 %1530  ;;  %v1539_v51 = vpop.xlane.xlu0 %1538  ;;  %v1606_v30 = vpack.c.bf16 %v9849_v44, %v9846_v42  ;;  %v9857_v56 = vmul.f32 %v8276_v54, %v9745_v13 }
 0x54f   : > { %8277 = vrcp.f32 %v1531_v58 }
 0x550   : > { %13460 = vst [vmem:[#allocation30_spill] sm:$0xff] %v9857_v56  ;;  %7686 = vmatprep.mubr.bf16.mxu1 %v1606_v30  ;;  %v1607_v4 = vpack.c.bf16 %v9857_v56, %v9854_v45  ;;  %8279 = vrcp.f32 %v1525_v57 }
 0x551   : > { %8281 = vrcp.f32 %v1529_v35 }
 0x552   : > { %v1527_v17 = vpop.xlane.xlu1 %1526  ;;  %7687 = vmatmul.mubr.bf16.gmra.mrb[20].mxu1 %v1607_v4  ;;  %v1842_v27 = vpop.permute.xlu0 %1841 }
 0x553   : > { %8283 = vrcp.f32 %v1527_v17  ;;  %7952 = vmatprep.subr.msk.bf16.mxu1 %vm1266_vm0, %v1842_v27  ;;  %v1888_v28 = vsel %vm1266_vm0, %v1842_v27, 0 }
 0x554   : > { %7711 = vmatpush3.bf16.xpose.msra.mxu1 %v1888_v28  ;;  %8285 = vrcp.f32 %v1533_v47 }
 0x556   : > { %v1535_v61 = vpop.xlane.xlu1 %1534  ;;  %v1806_v13 = vpop.permute.xlu0 %1805 }
 0x557   : > { %8287 = vrcp.f32 %v1535_v61 }
 0x558   : > { %8289 = vrcp.f32 %v1539_v51 }
 0x559   : > { %v8278_v63 = vpop.eup %8277  ;;  %8291 = vrcp.f32 %v1537_v37 }
 0x55a   : > { %v1844_v9 = vpop.permute.xlu1 %1843  ;;  %v1810_v16 = vpop.permute.xlu0 %1809  ;;  %v9866_v38 = vmul.f32 %v8278_v63, %v9761_v23 }
 0x55b   : > { %v8280_v10 = vpop.eup %8279  ;;  %7953 = vmatprep.subr.msk.bf16.mxu1 %vm1266_vm0, %v1844_v9  ;;  %v1891_v41 = vsel %vm1266_vm0, %v1844_v9, 0 }
 0x55c   : > { %v8282_v24 = vpop.eup %8281  ;;  %7713 = vmatpush3.bf16.xpose.msra.mxu1 %v1891_v41  ;;  %13461 = vst [vmem:[#allocation31_spill] sm:$0xff] %v9866_v38  ;;  %v9869_v57 = vmul.f32 %v8280_v10, %v9758_v21 }
 0x55d   : > { %v8284_v35 = vpop.eup %8283  ;;  %v9875_v54 = vmul.f32 %v8282_v24, %v9752_v60 }
 0x55e   : > { %v1808_v32 = vpop.permute.xlu1 %1807  ;;  %v1814_v47 = vpop.permute.xlu0 %1813  ;;  %13462 = vst [vmem:[#allocation32_spill] sm:$0xff] %v9869_v57  ;;  %v9872_v37 = vmul.f32 %v8284_v35, %v9767_v29 }
 0x55f   : > { %v8286_v50 = vpop.eup %8285  ;;  %13464 = vst [vmem:[#allocation34_spill] sm:$0xff] %v9875_v54  ;;  %v1609_v23 = vpack.c.bf16 %v9866_v38, %v9875_v54 }
 0x560   : > { %13463 = vst [vmem:[#allocation33_spill] sm:$0xff] %v9872_v37  ;;  %v1608_v58 = vpack.c.bf16 %v9872_v37, %v9869_v57  ;;  %v9882_v21 = vmul.f32 %v8286_v50, %v9755_v2 }
 0x561   : > { %v8288_v51 = vpop.eup %8287 }
 0x562   : > { %v8290_v30 = vpop.eup %8289  ;;  %v1812_v4 = vpop.permute.xlu1 %1811  ;;  %7690 = vmatprep.mubr.bf16.mxu1 %v1608_v58  ;;  %13465 = vst [vmem:[#allocation35_spill] sm:$0xff] %v9882_v21  ;;  %v9885_v29 = vmul.f32 %v8288_v51, %v9770_v31 }
 0x563   : > { %v1818_v17 = vpop.permute.xlu0 %1817  ;;  %7691 = vmatmul.mubr.bf16.gmra.mrb[24].mxu1 %v1609_v23  ;;  %v8292_v60 = vpop.eup %8291  ;;  %v9890_v28 = vmul.f32 %v8290_v30, %v9763_v40 }
 0x564   : > { %13466 = vst [vmem:[#allocation36_spill] sm:$0xff] %v9885_v29  ;;  %v1610_v27 = vpack.c.bf16 %v9885_v29, %v9882_v21  ;;  %v9893_v9 = vmul.f32 %v8292_v60, %v9748_v14 }
 0x565   : > { %13467 = vst [vmem:[#allocation37_spill] sm:$0xff] %v9890_v28 }
 0x566   : > { %v1816_v61 = vpop.permute.xlu1 %1815  ;;  %7694 = vmatprep.mubr.bf16.mxu1 %v1610_v27  ;;  %13468 = vst [vmem:[#allocation38_spill] sm:$0xff] %v9893_v9  ;;  %v1611_v2 = vpack.c.bf16 %v9890_v28, %v9893_v9 }
 0x567   : > { %v2231_v63 = vpop.permute.xlu0 %2230 }
 0x568   : > { %7730 = vmatprep.subr.bf16.mxu0 %v2231_v63 }
 0x569   : > { %7731 = vmatpush3.bf16.msra.mxu0 %v2231_v63 }
 0x56a   : > { %v1820_v31 = vpop.permute.xlu1 %1819 }
 0x56b   : > { %7695 = vmatmul.mubr.bf16.gmra.mrb[28].mxu1 %v1611_v2  ;;  %v2235_v41 = vpop.permute.xlu0 %2234 }
 0x56c   : > { %7714 = vmatprep.mubr.msk.bf16.mxu1 %vm1266_vm0, %v1806_v13 }
 0x56e   : > { %v2233_v10 = vpop.permute.xlu1 %2232 }
 0x56f   : > { %7732 = vmatprep.subr.bf16.mxu0 %v2233_v10  ;;  %v2239_v14 = vpop.permute.xlu0 %2238 }
 0x570   : > { %7733 = vmatpush3.bf16.msra.mxu0 %v2233_v10 }
 0x571   : > { %7734 = vmatprep.subr.bf16.mxu0 %v2235_v41 }
 0x572   : > { %v2237_v40 = vpop.permute.xlu1 %2236 }
 0x573   : > { %7715 = vmatmul.mubr.msk.bf16.vlgmr.msra.gmra.mrb[32].mxu1 %vm1266_vm0, %v1808_v32  ;;  %v2243_v13 = vpop.permute.xlu0 %2242 }
 0x574   : > { %7718 = vmatprep.mubr.msk.bf16.mxu1 %vm1266_vm0, %v1810_v16  ;;  %7735 = vmatpush3.bf16.msra.mxu0 %v2235_v41 }
 0x575   : > { %7736 = vmatprep.subr.bf16.mxu0 %v2237_v40 }
 0x576   : > { %v2241_v24 = vpop.permute.xlu1 %2240 }
 0x577   : > { %v9904_v16 = vpop.permute.xlu0 %2536 }
 0x578   : > { %7737 = vmatpush3.bf16.msra.mxu0 %v2237_v40 }
 0x579   : > { %7738 = vmatprep.subr.bf16.mxu0 %v2239_v14 }
 0x57a   : > { %v2245_v35 = vpop.permute.xlu1 %2244 }
 0x57b   : > { %7719 = vmatmul.mubr.msk.bf16.gmra.mrb[36].mxu1 %vm1266_vm0, %v1812_v4 }
 0x57c   : > { %7722 = vmatprep.mubr.msk.bf16.mxu1 %vm1266_vm0, %v1814_v47  ;;  %7739 = vmatpush3.bf16.msra.mxu0 %v2239_v14 }
 0x57d   : > { %7740 = vmatprep.subr.bf16.mxu0 %v2241_v24 }
 0x580   : > { %7741 = vmatpush3.bf16.msra.mxu0 %v2241_v24 }
 0x581   : > { %7742 = vmatprep.subr.bf16.mxu0 %v2243_v13 }
 0x583   : > { %7723 = vmatmul.mubr.msk.bf16.gmra.mrb[40].mxu1 %vm1266_vm0, %v1816_v61 }
 0x584   : > { %7726 = vmatprep.mubr.msk.bf16.mxu1 %vm1266_vm0, %v1818_v17  ;;  %7743 = vmatpush3.bf16.msra.mxu0 %v2243_v13 }
 0x585   : > { %7744 = vmatprep.subr.bf16.mxu0 %v2245_v35 }
 0x588   : > { %7745 = vmatpush3.bf16.msra.mxu0 %v2245_v35 }
 0x589   : > { %7954 = vmatprep.subr.msk.bf16.mxu0 %vm1266_vm0, %v9904_v16 }
 0x58b   : > { %7727 = vmatmul.mubr.msk.bf16.gmra.mrb[44].mxu1 %vm1266_vm0, %v1820_v31 }
 0x5ed   : > { %v7684_v32 = vpop.f32.mrb[16].mxu1 }
 0x5ee   : > { %1711 = vst.msk [vmem:[#allocation3 + $0x10] sm:$0xff] %vm1266_vm0, %v7684_v32  ;;  %v1646_v47 = vpop.f32.mrb[17].mxu1 }
 0x5ef   : > { %1709 = vst.msk [vmem:[#allocation3] sm:$0xff] %vm1266_vm0, %v1646_v47  ;;  %v7685_v50 = vpop.f32.mrb[18].mxu1 }
 0x5f0   : > { %1712 = vst.msk [vmem:[#allocation3 + $0x18] sm:$0xff] %vm1266_vm0, %v7685_v50  ;;  %v1649_v58 = vpop.f32.mrb[19].mxu1 }
 0x5f1   : > { %1710 = vst.msk [vmem:[#allocation3 + $0x8] sm:$0xff] %vm1266_vm0, %v1649_v58 }
 0x625   : > { %v7688_v51 = vpop.f32.mrb[20].mxu1 }
 0x626   : > { %1715 = vst.msk [vmem:[#allocation3 + $0x30] sm:$0xff] %vm1266_vm0, %v7688_v51  ;;  %v1662_v23 = vpop.f32.mrb[21].mxu1 }
 0x627   : > { %1713 = vst.msk [vmem:[#allocation3 + $0x20] sm:$0xff] %vm1266_vm0, %v1662_v23  ;;  %v7689_v30 = vpop.f32.mrb[22].mxu1 }
 0x628   : > { %1716 = vst.msk [vmem:[#allocation3 + $0x38] sm:$0xff] %vm1266_vm0, %v7689_v30  ;;  %v1665_v4 = vpop.f32.mrb[23].mxu1 }
 0x629   : > { %1714 = vst.msk [vmem:[#allocation3 + $0x28] sm:$0xff] %vm1266_vm0, %v1665_v4 }
 0x636   : > { %v7692_v17 = vpop.f32.mrb[24].mxu1 }
 0x637   : > { %1719 = vst.msk [vmem:[#allocation3 + $0x50] sm:$0xff] %vm1266_vm0, %v7692_v17  ;;  %v1678_v60 = vpop.f32.mrb[25].mxu1 }
 0x638   : > { %1717 = vst.msk [vmem:[#allocation3 + $0x40] sm:$0xff] %vm1266_vm0, %v1678_v60  ;;  %v7693_v27 = vpop.f32.mrb[26].mxu1 }
 0x639   : > { %1720 = vst.msk [vmem:[#allocation3 + $0x58] sm:$0xff] %vm1266_vm0, %v7693_v27  ;;  %v1681_v61 = vpop.f32.mrb[27].mxu1 }
 0x63a   : > { %1718 = vst.msk [vmem:[#allocation3 + $0x48] sm:$0xff] %vm1266_vm0, %v1681_v61 }
 0x63e   : > { %v7696_v63 = vpop.f32.mrb[28].mxu1 }
 0x63f   : > { %1723 = vst.msk [vmem:[#allocation3 + $0x70] sm:$0xff] %vm1266_vm0, %v7696_v63  ;;  %v1694_v2 = vpop.f32.mrb[29].mxu1 }
 0x640   : > { %1721 = vst.msk [vmem:[#allocation3 + $0x60] sm:$0xff] %vm1266_vm0, %v1694_v2  ;;  %v7697_v31 = vpop.f32.mrb[30].mxu1 }
 0x641   : > { %1724 = vst.msk [vmem:[#allocation3 + $0x78] sm:$0xff] %vm1266_vm0, %v7697_v31  ;;  %v1697_v10 = vpop.f32.mrb[31].mxu1 }
 0x642   : > { %1722 = vst.msk [vmem:[#allocation3 + $0x68] sm:$0xff] %vm1266_vm0, %v1697_v10 }
 0x646   : > { %v7716_v41 = vpop.f32.mrb[32].mxu1 }
 0x647   : > { %v1992_v40 = vmul.f32 0.17677669, %v7716_v41  ;;  %v1927_v14 = vpop.f32.mrb[33].mxu1 }
 0x648   : > { %v7717_v24 = vpop.f32.mrb[34].mxu1  ;;  %v1990_v32 = vmul.f32 0.17677669, %v1927_v14 }
 0x649   : > { %2010 = vmax.xlane.f32.xlu0 %v1992_v40  ;;  %v1930_v13 = vpop.f32.mrb[35].mxu1  ;;  %v1993_v50 = vmul.f32 0.17677669, %v7717_v24 }
 0x64a   : > { %v1991_v35 = vmul.f32 0.17677669, %v1930_v13 }
 0x64c   : > { %2008 = vmax.xlane.f32.xlu1 %v1991_v35 }
 0x64d   : > { %2006 = vmax.xlane.f32.xlu0 %v1990_v32 }
 0x64e   : > { %v7720_v47 = vpop.f32.mrb[36].mxu1 }
 0x64f   : > { %v1943_v58 = vpop.f32.mrb[37].mxu1  ;;  %v9927_v4 = vmul.f32 0.17677669, %v7720_v47 }
 0x650   : > { %v7721_v51 = vpop.f32.mrb[38].mxu1  ;;  %v9933_v27 = vmul.f32 0.17677669, %v1943_v58 }
 0x651   : > { %v9925_v23 = vmul.f32 0.17677669, %v7721_v51  ;;  %2012 = vmax.xlane.f32.xlu0 %v1993_v50  ;;  %v1946_v30 = vpop.f32.mrb[39].mxu1 }
 0x652   : > { %v9930_v17 = vmul.f32 0.17677669, %v1946_v30 }
 0x653   : > { %2020 = vmax.xlane.f32.xlu1 %v9925_v23 }
 0x655   : > { %2018 = vmax.xlane.f32.xlu0 %v9927_v4 }
 0x656   : > { %v7724_v60 = vpop.f32.mrb[40].mxu1 }
 0x657   : > { %2016 = vmax.xlane.f32.xlu1 %v9930_v17  ;;  %v1959_v61 = vpop.f32.mrb[41].mxu1  ;;  %v9939_v10 = vmul.f32 0.17677669, %v7724_v60 }
 0x658   : > { %v7725_v63 = vpop.f32.mrb[42].mxu1  ;;  %v9945_v24 = vmul.f32 0.17677669, %v1959_v61 }
 0x659   : > { %v9936_v2 = vmul.f32 0.17677669, %v7725_v63  ;;  %2014 = vmax.xlane.f32.xlu0 %v9933_v27  ;;  %v1962_v31 = vpop.f32.mrb[43].mxu1  ;;  %v9965_v63 = vpop.permute.xlu1 %2538 }
 0x65a   : > { %v9942_v41 = vmul.f32 0.17677669, %v1962_v31 }
 0x65b   : > { %2028 = vmax.xlane.f32.xlu1 %v9936_v2 }
 0x65d   : > { %2026 = vmax.xlane.f32.xlu0 %v9939_v10 }
 0x65e   : > { %v7728_v14 = vpop.f32.mrb[44].mxu1 }
 0x65f   : > { %2024 = vmax.xlane.f32.xlu1 %v9942_v41  ;;  %v1975_v13 = vpop.f32.mrb[45].mxu1  ;;  %v9949_v51 = vmul.f32 0.17677669, %v7728_v14 }
 0x660   : > { %v7729_v47 = vpop.f32.mrb[46].mxu1  ;;  %v9952_v30 = vmul.f32 0.17677669, %v1975_v13 }
 0x661   : > { %2022 = vmax.xlane.f32.xlu0 %v9945_v24  ;;  %v1978_v58 = vpop.f32.mrb[47].mxu1  ;;  %v9959_v60 = vmul.f32 0.17677669, %v7729_v47 }
 0x662   : > { %v9962_v61 = vmul.f32 0.17677669, %v1978_v58 }
 0x665   : > { %2034 = vmax.xlane.f32.xlu0 %v9949_v51 }
 0x669   : > { %2030 = vmax.xlane.f32.xlu0 %v9952_v30 }
 0x670   : > { %2542 = vrot.lane.b32.xlu1 %v9599_v3, %s9053_s3 }
 0x67f   : > { %2540 = vrot.lane.b32.xlu0 %v9583_v49, %s9053_s3 }
 0x694   : > { %2036 = vmax.xlane.f32.xlu1 %v9959_v60 }
 0x698   : > { %2032 = vmax.xlane.f32.xlu1 %v9962_v61 }
 0x6d6   : > { %v2011_v31 = vpop.xlane.xlu0 %2010 }
 0x6d7   : > { %v2040_v14 = vsub.f32 %v1992_v40, %v2011_v31 }
 0x6d9   : > { %v2058_v13 = vmul.f32 1.442695, %v2040_v14  ;;  %v2009_v46 = vpop.xlane.xlu1 %2008 }
 0x6da   : > { %v2039_v29 = vsub.f32 %v1991_v35, %v2009_v46  ;;  %v2007_v37 = vpop.xlane.xlu0 %2006 }
 0x6db   : > { %8293 = vpow2.f32 %v2058_v13  ;;  %v2038_v28 = vsub.f32 %v1990_v32, %v2007_v37 }
 0x6dc   : > { %v2056_v38 = vmul.f32 1.442695, %v2039_v29 }
 0x6dd   : > { %v2054_v21 = vmul.f32 1.442695, %v2038_v28 }
 0x6de   : > { %8295 = vpow2.f32 %v2056_v38  ;;  %v2013_v47 = vpop.xlane.xlu0 %2012 }
 0x6df   : > { %8297 = vpow2.f32 %v2054_v21  ;;  %v2041_v57 = vsub.f32 %v1993_v50, %v2013_v47 }
 0x6e0   : > { %v2021_v37 = vpop.xlane.xlu1 %2020 }
 0x6e1   : > { %v2060_v58 = vmul.f32 1.442695, %v2041_v57  ;;  %v2045_v47 = vsub.f32 %v9925_v23, %v2021_v37 }
 0x6e2   : > { %v2019_v38 = vpop.xlane.xlu0 %2018 }
 0x6e3   : > { %8299 = vpow2.f32 %v2060_v58  ;;  %v2044_v29 = vsub.f32 %v9927_v4, %v2019_v38  ;;  %v2068_v42 = vmul.f32 1.442695, %v2045_v47 }
 0x6e4   : > { %v2017_v28 = vpop.xlane.xlu1 %2016 }
 0x6e5   : > { %v9967_v9 = vpop.eup %8293  ;;  %v2066_v32 = vmul.f32 1.442695, %v2044_v29  ;;  %v2043_v31 = vsub.f32 %v9930_v17, %v2017_v28 }
 0x6e6   : > { %2090 = vadd.xlane.f32.xlu1 %v9967_v9  ;;  %v2015_v57 = vpop.xlane.xlu0 %2014 }
 0x6e7   : > { %v2042_v50 = vsub.f32 %v9933_v27, %v2015_v57  ;;  %8301 = vpow2.f32 %v2066_v32  ;;  %v2064_v56 = vmul.f32 1.442695, %v2043_v31 }
 0x6e8   : > { %v9970_v54 = vpop.eup %8295  ;;  %v2029_v14 = vpop.xlane.xlu1 %2028 }
 0x6e9   : > { %v9972_v40 = vpop.eup %8297  ;;  %2088 = vadd.xlane.f32.xlu0 %v9970_v54  ;;  %v2062_v58 = vmul.f32 1.442695, %v2042_v50  ;;  %v2049_v23 = vsub.f32 %v9936_v2, %v2029_v14 }
 0x6ea   : > { %2086 = vadd.xlane.f32.xlu1 %v9972_v40  ;;  %v2027_v21 = vpop.xlane.xlu0 %2026 }
 0x6eb   : > { %v2048_v44 = vsub.f32 %v9939_v10, %v2027_v21  ;;  %8303 = vpow2.f32 %v2062_v58 }
 0x6ec   : > { %v2025_v45 = vpop.xlane.xlu1 %2024  ;;  %8305 = vpow2.f32 %v2064_v56 }
 0x6ed   : > { %v9976_v46 = vpop.eup %8299  ;;  %v2074_v38 = vmul.f32 1.442695, %v2048_v44  ;;  %8307 = vpow2.f32 %v2068_v42  ;;  %v2076_v44 = vmul.f32 1.442695, %v2049_v23 }
 0x6ee   : > { %2092 = vadd.xlane.f32.xlu1 %v9976_v46  ;;  %v2023_v35 = vpop.xlane.xlu0 %2022 }
 0x6ef   : > { %v2046_v27 = vsub.f32 %v9945_v24, %v2023_v35  ;;  %8309 = vpow2.f32 %v2074_v38  ;;  %v2047_v24 = vsub.f32 %v9942_v41, %v2025_v45 }
 0x6f0   : > { %v9994_v10 = vpop.permute.xlu1 %2542 }
 0x6f1   : > { %v2070_v37 = vmul.f32 1.442695, %v2046_v27  ;;  %v9992_v28 = vpop.eup %8301  ;;  %v2072_v21 = vmul.f32 1.442695, %v2047_v24 }
 0x6f2   : > { %v2035_v13 = vpop.xlane.xlu0 %2034 }
 0x6f3   : > { %v2052_v4 = vsub.f32 %v9949_v51, %v2035_v13 }
 0x6f5   : > { %v2082_v17 = vmul.f32 1.442695, %v2052_v4  ;;  %v9998_v42 = vpop.eup %8303 }
 0x6f6   : > { %v2031_v57 = vpop.xlane.xlu0 %2030 }
 0x6f7   : > { %v2050_v29 = vsub.f32 %v9952_v30, %v2031_v57  ;;  %8311 = vpow2.f32 %v2082_v17  ;;  %v10000_v30 = vpop.eup %8305 }
 0x6f8   : > { %8313 = vpow2.f32 %v2070_v37  ;;  %v10005_v32 = vpop.eup %8307 }
 0x6f9   : > { %v2078_v56 = vmul.f32 1.442695, %v2050_v29  ;;  %v10007_v45 = vpop.eup %8309 }
 0x6fa   : > { %v2541_v38 = vpop.permute.xlu0 %2540 }
 0x6fb   : > { %8315 = vpow2.f32 %v2078_v56 }
 0x6fc   : > { %8317 = vpow2.f32 %v2076_v44 }
 0x6ff   : > { %2544 = vrot.lane.b32.xlu0 %v9615_v59, %s9053_s3  ;;  %2546 = vrot.lane.b32.xlu1 %v9625_v22, %s9053_s3 }
 0x701   : > { %v10012_v31 = vpop.eup %8311 }
 0x702   : > { %v10014_v14 = vpop.eup %8313 }
 0x705   : > { %v10018_v13 = vpop.eup %8315 }
 0x706   : > { %v10020_v47 = vpop.eup %8317 }
 0x71e   : > { %2098 = vadd.xlane.f32.xlu0 %v9992_v28 }
 0x721   : > { %v2037_v51 = vpop.xlane.xlu1 %2036 }
 0x722   : > { %v2053_v2 = vsub.f32 %v9959_v60, %v2037_v51  ;;  %2094 = vadd.xlane.f32.xlu0 %v9998_v42 }
 0x723   : > { %2096 = vadd.xlane.f32.xlu1 %v10000_v30 }
 0x724   : > { %v2084_v35 = vmul.f32 1.442695, %v2053_v2 }
 0x725   : > { %v2033_v50 = vpop.xlane.xlu1 %2032 }
 0x726   : > { %8319 = vpow2.f32 %v2084_v35  ;;  %v2051_v41 = vsub.f32 %v9962_v61, %v2033_v50  ;;  %2100 = vadd.xlane.f32.xlu0 %v10005_v32 }
 0x727   : > { %2106 = vadd.xlane.f32.xlu1 %v10007_v45  ;;  %8321 = vpow2.f32 %v2072_v21 }
 0x728   : > { %v2080_v60 = vmul.f32 1.442695, %v2051_v41 }
 0x72a   : > { %2114 = vadd.xlane.f32.xlu0 %v10012_v31  ;;  %8323 = vpow2.f32 %v2080_v60 }
 0x72b   : > { %2102 = vadd.xlane.f32.xlu1 %v10014_v14 }
 0x72e   : > { %2110 = vadd.xlane.f32.xlu0 %v10018_v13 }
 0x72f   : > { %2108 = vadd.xlane.f32.xlu1 %v10020_v47 }
 0x730   : > { %v10024_v61 = vpop.eup %8319 }
 0x731   : > { %v10026_v58 = vpop.eup %8321 }
 0x732   : > { %2116 = vadd.xlane.f32.xlu0 %v10024_v61 }
 0x733   : > { %2104 = vadd.xlane.f32.xlu1 %v10026_v58 }
 0x734   : > { %v10030_v4 = vpop.eup %8323 }
 0x737   : > { %2112 = vadd.xlane.f32.xlu1 %v10030_v4 }
 0x748   : > { %2550 = vrot.lane.b32.xlu1 %v9641_v48, %s9053_s3  ;;  %2548 = vrot.lane.b32.xlu0 %v9633_v7, %s9053_s3 }
 0x74c   : > { %2514 = vrot.lane.b32.xlu1 %v9562_v18, %s9053_s3  ;;  %2512 = vrot.lane.b32.xlu0 %v9545_v33, %s9053_s3 }
 0x750   : > { %2518 = vrot.lane.b32.xlu1 %v9596_v43, %s9053_s3  ;;  %2516 = vrot.lane.b32.xlu0 %v9580_v34, %s9053_s3 }
 0x754   : > { %2522 = vrot.lane.b32.xlu1 %v9623_v62, %s9053_s3  ;;  %2520 = vrot.lane.b32.xlu0 %v9612_v55, %s9053_s3 }
 0x758   : > { %2526 = vrot.lane.b32.xlu1 %v9639_v20, %s9053_s3  ;;  %2524 = vrot.lane.b32.xlu0 %v9631_v5, %s9053_s3 }
 0x75c   : > { %2939 = vrot.lane.b32.xlu1 %v9557_v6, %s9053_s3  ;;  %2937 = vrot.lane.b32.xlu0 %v9559_v8, %s9053_s3 }
 0x760   : > { %2943 = vrot.lane.b32.xlu1 %v9574_v26, %s9053_s3  ;;  %2941 = vrot.lane.b32.xlu0 %v9577_v12, %s9053_s3 }
 0x764   : > { %2947 = vrot.lane.b32.xlu1 %v9590_v15, %s9053_s3  ;;  %2945 = vrot.lane.b32.xlu0 %v9593_v39, %s9053_s3 }
 0x768   : > { %2951 = vrot.lane.b32.xlu1 %v9606_v25, %s9053_s3  ;;  %2949 = vrot.lane.b32.xlu0 %v9609_v11, %s9053_s3 }
 0x76c   : > { %3245 = vrot.lane.b32.xlu1 %v9565_v19, %s9054_s23  ;;  %3243 = vrot.lane.b32.xlu0 %v9547_v0, %s9054_s23 }
 0x773   : > { %v2091_v27 = vpop.xlane.xlu1 %2090 }
 0x776   : > { %v2089_v57 = vpop.xlane.xlu0 %2088 }
 0x777   : > { %8325 = vrcp.f32 %v2089_v57  ;;  %v2087_v17 = vpop.xlane.xlu1 %2086 }
 0x778   : > { %8327 = vrcp.f32 %v2087_v17 }
 0x779   : > { %8329 = vrcp.f32 %v2091_v27 }
 0x77b   : > { %v2093_v29 = vpop.xlane.xlu1 %2092 }
 0x77c   : > { %8331 = vrcp.f32 %v2093_v29 }
 0x781   : > { %v8326_v23 = vpop.eup %8325 }
 0x782   : > { %v8328_v37 = vpop.eup %8327  ;;  %v10074_v56 = vmul.f32 %v8326_v23, %v9970_v54  ;;  %v2577_v54 = vsel %vm1266_vm0, %v9904_v16, 0  ;;  %v2545_v16 = vpop.permute.xlu0 %2544 }
 0x783   : > { %v10077_v44 = vmul.f32 %v8328_v37, %v9972_v40  ;;  %v8330_v19 = vpop.eup %8329  ;;  %v2580_v40 = vsel %vm1266_vm0, %v9965_v63, 0  ;;  %v2589_v35 = vsel %vm1266_vm0, %v2545_v16, 0 }
 0x784   : > { %v10082_v51 = vmul.f32 %v8330_v19, %v9967_v9  ;;  %v2583_v9 = vsel %vm1266_vm0, %v2541_v38, 0 }
 0x785   : > { %v2214_v0 = vpack.c.bf16 %v10074_v56, %v10077_v44 }
 0x786   : > { %v8332_v24 = vpop.eup %8331 }
 0x787   : > { %v10085_v2 = vmul.f32 %v8332_v24, %v9976_v46  ;;  %7746 = vmatprep.mubr.bf16.mxu0 %v2214_v0  ;;  %v2586_v46 = vsel %vm1266_vm0, %v9994_v10, 0 }
 0x789   : > { %v2215_v21 = vpack.c.bf16 %v10085_v2, %v10082_v51 }
 0x78b   : > { %7747 = vmatmul.mubr.bf16.vlgmr.msra.gmra.mrb[48].mxu0 %v2215_v21 }
 0x78c   : > { %7763 = vmatpush3.bf16.xpose.msra.mxu0 %v2577_v54 }
 0x78d   : > { %7955 = vmatprep.subr.msk.bf16.mxu0 %vm1266_vm0, %v9965_v63  ;;  %v2547_v63 = vpop.permute.xlu1 %2546 }
 0x794   : > { %7765 = vmatpush3.bf16.xpose.msra.mxu0 %v2580_v40 }
 0x795   : > { %7956 = vmatprep.subr.msk.bf16.mxu0 %vm1266_vm0, %v2541_v38  ;;  %v2592_v38 = vsel %vm1266_vm0, %v2547_v63, 0 }
 0x79c   : > { %7767 = vmatpush3.bf16.xpose.msra.mxu0 %v2583_v9 }
 0x79d   : > { %7957 = vmatprep.subr.msk.bf16.mxu0 %vm1266_vm0, %v9994_v10 }
 0x7a4   : > { %7769 = vmatpush3.bf16.xpose.msra.mxu0 %v2586_v46 }
 0x7a5   : > { %7958 = vmatprep.subr.msk.bf16.mxu0 %vm1266_vm0, %v2545_v16 }
 0x7ab   : > { %v2099_v50 = vpop.xlane.xlu0 %2098 }
 0x7ac   : > { %7771 = vmatpush3.bf16.xpose.msra.mxu0 %v2589_v35 }
 0x7ad   : > { %7959 = vmatprep.subr.msk.bf16.mxu0 %vm1266_vm0, %v2547_v63 }
 0x7af   : > { %v2095_v41 = vpop.xlane.xlu0 %2094 }
 0x7b0   : > { %8333 = vrcp.f32 %v2095_v41  ;;  %v2097_v60 = vpop.xlane.xlu1 %2096 }
 0x7b1   : > { %8335 = vrcp.f32 %v2097_v60 }
 0x7b2   : > { %8337 = vrcp.f32 %v2099_v50 }
 0x7b3   : > { %v2101_v27 = vpop.xlane.xlu0 %2100 }
 0x7b4   : > { %7773 = vmatpush3.bf16.xpose.msra.mxu0 %v2592_v38  ;;  %8339 = vrcp.f32 %v2101_v27  ;;  %v2107_v10 = vpop.xlane.xlu1 %2106 }
 0x7b7   : > { %v2115_v57 = vpop.xlane.xlu0 %2114 }
 0x7b8   : > { %v2103_v17 = vpop.xlane.xlu1 %2102 }
 0x7ba   : > { %v8334_v29 = vpop.eup %8333 }
 0x7bb   : > { %v8336_v23 = vpop.eup %8335  ;;  %v2111_v37 = vpop.xlane.xlu0 %2110  ;;  %v10106_v19 = vmul.f32 %v8334_v29, %v9998_v42 }
 0x7bc   : > { %v8338_v0 = vpop.eup %8337  ;;  %v2109_v24 = vpop.xlane.xlu1 %2108  ;;  %v10109_v21 = vmul.f32 %v8336_v23, %v10000_v30 }
 0x7bd   : > { %8341 = vrcp.f32 %v2109_v24  ;;  %v10114_v46 = vmul.f32 %v8338_v0, %v9992_v28 }
 0x7be   : > { %v8340_v54 = vpop.eup %8339  ;;  %v2216_v40 = vpack.c.bf16 %v10109_v21, %v10106_v19  ;;  %8343 = vrcp.f32 %v2103_v17 }
 0x7bf   : > { %v2117_v9 = vpop.xlane.xlu0 %2116  ;;  %v10117_v16 = vmul.f32 %v8340_v54, %v10005_v32  ;;  %8345 = vrcp.f32 %v2107_v10 }
 0x7c0   : > { %v2105_v42 = vpop.xlane.xlu1 %2104  ;;  %7750 = vmatprep.mubr.bf16.mxu0 %v2216_v40 }
 0x7c1   : > { %8347 = vrcp.f32 %v2105_v42  ;;  %v2217_v30 = vpack.c.bf16 %v10117_v16, %v10114_v46 }
 0x7c2   : > { %8349 = vrcp.f32 %v2111_v37 }
 0x7c3   : > { %7751 = vmatmul.mubr.bf16.gmra.mrb[52].mxu0 %v2217_v30  ;;  %v2549_v35 = vpop.permute.xlu0 %2548 }
 0x7c4   : > { %v2113_v50 = vpop.xlane.xlu1 %2112  ;;  %7960 = vmatprep.subr.msk.bf16.mxu0 %vm1266_vm0, %v2549_v35  ;;  %v2595_v63 = vsel %vm1266_vm0, %v2549_v35, 0 }
 0x7c5   : > { %8351 = vrcp.f32 %v2113_v50  ;;  %7775 = vmatpush3.bf16.xpose.msra.mxu0 %v2595_v63 }
 0x7c6   : > { %8353 = vrcp.f32 %v2117_v9 }
 0x7c7   : > { %v2513_v28 = vpop.permute.xlu0 %2512  ;;  %v8342_v32 = vpop.eup %8341  ;;  %8355 = vrcp.f32 %v2115_v57 }
 0x7c8   : > { %v2551_v41 = vpop.permute.xlu1 %2550  ;;  %v8344_v60 = vpop.eup %8343  ;;  %v10125_v17 = vmul.f32 %v8342_v32, %v10020_v47 }
 0x7c9   : > { %7961 = vmatprep.subr.msk.bf16.mxu0 %vm1266_vm0, %v2551_v41  ;;  %v8346_v38 = vpop.eup %8345  ;;  %v2598_v23 = vsel %vm1266_vm0, %v2551_v41, 0  ;;  %v10129_v37 = vmul.f32 %v8344_v60, %v10014_v14 }
 0x7ca   : > { %13469 = vst [vmem:[#allocation39_spill] sm:$0xff] %v10125_v17  ;;  %v10135_v24 = vmul.f32 %v8346_v38, %v10007_v45 }
 0x7cb   : > { %v8348_v27 = vpop.eup %8347  ;;  %v2517_v10 = vpop.permute.xlu0 %2516  ;;  %13470 = vst [vmem:[#allocation40_spill] sm:$0xff] %v10129_v37 }
 0x7cc   : > { %v2515_v29 = vpop.permute.xlu1 %2514  ;;  %v10132_v0 = vmul.f32 %v8348_v27, %v10026_v58  ;;  %v8350_v57 = vpop.eup %8349  ;;  %v2219_v9 = vpack.c.bf16 %v10125_v17, %v10135_v24 }
 0x7cd   : > { %7777 = vmatpush3.bf16.xpose.msra.mxu0 %v2598_v23  ;;  %v10142_v14 = vmul.f32 %v8350_v57, %v10018_v13 }
 0x7ce   : > { %13471 = vst [vmem:[#allocation41_spill] sm:$0xff] %v10132_v0  ;;  %v2218_v54 = vpack.c.bf16 %v10132_v0, %v10129_v37 }
 0x7cf   : > { %v8352_v40 = vpop.eup %8351  ;;  %v2521_v47 = vpop.permute.xlu0 %2520  ;;  %13472 = vst [vmem:[#allocation42_spill] sm:$0xff] %v10142_v14 }
 0x7d0   : > { %v8354_v42 = vpop.eup %8353  ;;  %v2519_v30 = vpop.permute.xlu1 %2518  ;;  %7754 = vmatprep.mubr.bf16.mxu0 %v2218_v54  ;;  %v10145_v58 = vmul.f32 %v8352_v40, %v10030_v4 }
 0x7d1   : > { %7755 = vmatmul.mubr.bf16.gmra.mrb[56].mxu0 %v2219_v9  ;;  %v8356_v45 = vpop.eup %8355  ;;  %v10150_v63 = vmul.f32 %v8354_v42, %v10024_v61 }
 0x7d2   : > { %13473 = vst [vmem:[#allocation43_spill] sm:$0xff] %v10145_v58  ;;  %v2220_v35 = vpack.c.bf16 %v10145_v58, %v10142_v14  ;;  %v10153_v41 = vmul.f32 %v8356_v45, %v10012_v31 }
 0x7d3   : > { %v2525_v50 = vpop.permute.xlu0 %2524  ;;  %13474 = vst [vmem:[#allocation44_spill] sm:$0xff] %v10150_v63 }
 0x7d4   : > { %v2523_v32 = vpop.permute.xlu1 %2522  ;;  %7758 = vmatprep.mubr.bf16.mxu0 %v2220_v35  ;;  %v2221_v13 = vpack.c.bf16 %v10150_v63, %v10153_v41 }
 0x7d7   : > { %v2938_v60 = vpop.permute.xlu0 %2937 }
 0x7d8   : > { %v2527_v4 = vpop.permute.xlu1 %2526  ;;  %7794 = vmatprep.subr.bf16.mxu1 %v2938_v60 }
 0x7d9   : > { %7759 = vmatmul.mubr.bf16.gmra.mrb[60].mxu0 %v2221_v13  ;;  %7795 = vmatpush3.bf16.msra.mxu1 %v2938_v60 }
 0x7da   : > { %7778 = vmatprep.mubr.msk.bf16.mxu0 %vm1266_vm0, %v2513_v28 }
 0x7db   : > { %v2942_v27 = vpop.permute.xlu0 %2941 }
 0x7dc   : > { %v2940_v38 = vpop.permute.xlu1 %2939 }
 0x7dd   : > { %7796 = vmatprep.subr.bf16.mxu1 %v2940_v38 }
 0x7de   : > { %7797 = vmatpush3.bf16.msra.mxu1 %v2940_v38 }
 0x7df   : > { %7798 = vmatprep.subr.bf16.mxu1 %v2942_v27  ;;  %v2946_v31 = vpop.permute.xlu0 %2945 }
 0x7e0   : > { %v2944_v61 = vpop.permute.xlu1 %2943 }
 0x7e1   : > { %7779 = vmatmul.mubr.msk.bf16.vlgmr.msra.gmra.mrb[64].mxu0 %vm1266_vm0, %v2515_v29 }
 0x7e2   : > { %7782 = vmatprep.mubr.msk.bf16.mxu0 %vm1266_vm0, %v2517_v10  ;;  %7799 = vmatpush3.bf16.msra.mxu1 %v2942_v27 }
 0x7e3   : > { %7800 = vmatprep.subr.bf16.mxu1 %v2944_v61  ;;  %v2950_v28 = vpop.permute.xlu0 %2949 }
 0x7e4   : > { %v2948_v23 = vpop.permute.xlu1 %2947 }
 0x7e6   : > { %7801 = vmatpush3.bf16.msra.mxu1 %v2944_v61 }
 0x7e7   : > { %7802 = vmatprep.subr.bf16.mxu1 %v2946_v31  ;;  %v10164_v10 = vpop.permute.xlu0 %3243 }
 0x7e8   : > { %v2952_v29 = vpop.permute.xlu1 %2951 }
 0x7e9   : > { %7783 = vmatmul.mubr.msk.bf16.gmra.mrb[68].mxu0 %vm1266_vm0, %v2519_v30 }
 0x7ea   : > { %7786 = vmatprep.mubr.msk.bf16.mxu0 %vm1266_vm0, %v2521_v47  ;;  %7803 = vmatpush3.bf16.msra.mxu1 %v2946_v31 }
 0x7eb   : > { %7804 = vmatprep.subr.bf16.mxu1 %v2948_v23 }
 0x7ee   : > { %7805 = vmatpush3.bf16.msra.mxu1 %v2948_v23 }
 0x7ef   : > { %7806 = vmatprep.subr.bf16.mxu1 %v2950_v28 }
 0x7f1   : > { %7787 = vmatmul.mubr.msk.bf16.gmra.mrb[72].mxu0 %vm1266_vm0, %v2523_v32 }
 0x7f2   : > { %7790 = vmatprep.mubr.msk.bf16.mxu0 %vm1266_vm0, %v2525_v50  ;;  %7807 = vmatpush3.bf16.msra.mxu1 %v2950_v28 }
 0x7f3   : > { %7808 = vmatprep.subr.bf16.mxu1 %v2952_v29 }
 0x7f6   : > { %7809 = vmatpush3.bf16.msra.mxu1 %v2952_v29 }
 0x7f7   : > { %7962 = vmatprep.subr.msk.bf16.mxu1 %vm1266_vm0, %v10164_v10 }
 0x7f9   : > { %7791 = vmatmul.mubr.msk.bf16.gmra.mrb[76].mxu0 %vm1266_vm0, %v2527_v4 }
 0x85e   : > { %v10169_v57 = vpop.f32.mrb[48].mxu0 }
 0x85f   : > { %13475 = vst [vmem:[#allocation45_spill] sm:$0xff] %v10169_v57  ;;  %v10171_v54 = vpop.f32.mrb[49].mxu0 }
 0x860   : > { %13476 = vst [vmem:[#allocation46_spill] sm:$0xff] %v10171_v54  ;;  %v10173_v40 = vpop.f32.mrb[50].mxu0 }
 0x861   : > { %13477 = vst [vmem:[#allocation47_spill] sm:$0xff] %v10173_v40  ;;  %v10175_v47 = vpop.f32.mrb[51].mxu0 }
 0x862   : > { %13478 = vst [vmem:[#allocation48_spill] sm:$0xff] %v10175_v47 }
 0x896   : > { %v10177_v9 = vpop.f32.mrb[52].mxu0 }
 0x897   : > { %13479 = vst [vmem:[#allocation49_spill] sm:$0xff] %v10177_v9  ;;  %v10179_v42 = vpop.f32.mrb[53].mxu0 }
 0x898   : > { %13480 = vst [vmem:[#allocation50_spill] sm:$0xff] %v10179_v42  ;;  %v10181_v30 = vpop.f32.mrb[54].mxu0 }
 0x899   : > { %13481 = vst [vmem:[#allocation51_spill] sm:$0xff] %v10181_v30  ;;  %v10183_v45 = vpop.f32.mrb[55].mxu0 }
 0x89a   : > { %13482 = vst [vmem:[#allocation52_spill] sm:$0xff] %v10183_v45 }
 0x8a4   : > { %v10185_v35 = vpop.f32.mrb[56].mxu0 }
 0x8a5   : > { %13483 = vst [vmem:[#allocation53_spill] sm:$0xff] %v10185_v35  ;;  %v10187_v50 = vpop.f32.mrb[57].mxu0 }
 0x8a6   : > { %13484 = vst [vmem:[#allocation54_spill] sm:$0xff] %v10187_v50  ;;  %v10189_v32 = vpop.f32.mrb[58].mxu0 }
 0x8a7   : > { %13485 = vst [vmem:[#allocation55_spill] sm:$0xff] %v10189_v32  ;;  %v10191_v60 = vpop.f32.mrb[59].mxu0 }
 0x8a8   : > { %13486 = vst [vmem:[#allocation56_spill] sm:$0xff] %v10191_v60 }
 0x8ac   : > { %v10193_v13 = vpop.f32.mrb[60].mxu0 }
 0x8ad   : > { %13487 = vst [vmem:[#allocation57_spill] sm:$0xff] %v10193_v13  ;;  %v10195_v4 = vpop.f32.mrb[61].mxu0 }
 0x8ae   : > { %13488 = vst [vmem:[#allocation58_spill] sm:$0xff] %v10195_v4  ;;  %v10197_v38 = vpop.f32.mrb[62].mxu0 }
 0x8af   : > { %13489 = vst [vmem:[#allocation59_spill] sm:$0xff] %v10197_v38  ;;  %v10199_v27 = vpop.f32.mrb[63].mxu0 }
 0x8b0   : > { %13490 = vst [vmem:[#allocation60_spill] sm:$0xff] %v10199_v27 }
 0x8b4   : > { %v7780_v61 = vpop.f32.mrb[64].mxu0 }
 0x8b5   : > { %v2699_v31 = vmul.f32 0.17677669, %v7780_v61  ;;  %v2634_v23 = vpop.f32.mrb[65].mxu0 }
 0x8b6   : > { %v7781_v28 = vpop.f32.mrb[66].mxu0  ;;  %v2697_v50 = vmul.f32 0.17677669, %v2634_v23 }
 0x8b7   : > { %2717 = vmax.xlane.f32.xlu0 %v2699_v31  ;;  %v2637_v29 = vpop.f32.mrb[67].mxu0  ;;  %v2700_v60 = vmul.f32 0.17677669, %v7781_v28 }
 0x8b8   : > { %v2698_v35 = vmul.f32 0.17677669, %v2637_v29 }
 0x8ba   : > { %2715 = vmax.xlane.f32.xlu1 %v2698_v35 }
 0x8bb   : > { %2713 = vmax.xlane.f32.xlu0 %v2697_v50 }
 0x8bc   : > { %v7784_v32 = vpop.f32.mrb[68].mxu0 }
 0x8bd   : > { %v2650_v30 = vpop.f32.mrb[69].mxu0  ;;  %v10203_v4 = vmul.f32 0.17677669, %v7784_v32 }
 0x8be   : > { %v7785_v13 = vpop.f32.mrb[70].mxu0  ;;  %v10209_v23 = vmul.f32 0.17677669, %v2650_v30 }
 0x8bf   : > { %v10201_v9 = vmul.f32 0.17677669, %v7785_v13  ;;  %2719 = vmax.xlane.f32.xlu0 %v2700_v60  ;;  %v2653_v38 = vpop.f32.mrb[71].mxu0 }
 0x8c0   : > { %v10206_v61 = vmul.f32 0.17677669, %v2653_v38 }
 0x8c1   : > { %2727 = vmax.xlane.f32.xlu1 %v10201_v9 }
 0x8c3   : > { %2725 = vmax.xlane.f32.xlu0 %v10203_v4 }
 0x8c4   : > { %v7788_v29 = vpop.f32.mrb[72].mxu0 }
 0x8c5   : > { %2723 = vmax.xlane.f32.xlu1 %v10206_v61  ;;  %v2666_v28 = vpop.f32.mrb[73].mxu0  ;;  %v10215_v32 = vmul.f32 0.17677669, %v7788_v29 }
 0x8c6   : > { %v7789_v27 = vpop.f32.mrb[74].mxu0  ;;  %v10221_v30 = vmul.f32 0.17677669, %v2666_v28 }
 0x8c7   : > { %v10212_v45 = vmul.f32 0.17677669, %v7789_v27  ;;  %2721 = vmax.xlane.f32.xlu0 %v10209_v23  ;;  %v2669_v13 = vpop.f32.mrb[75].mxu0 }
 0x8c8   : > { %v10218_v38 = vmul.f32 0.17677669, %v2669_v13 }
 0x8c9   : > { %2735 = vmax.xlane.f32.xlu1 %v10212_v45 }
 0x8cb   : > { %2733 = vmax.xlane.f32.xlu0 %v10215_v32 }
 0x8cc   : > { %v7792_v42 = vpop.f32.mrb[76].mxu0 }
 0x8cd   : > { %2731 = vmax.xlane.f32.xlu1 %v10218_v38  ;;  %v2682_v40 = vpop.f32.mrb[77].mxu0  ;;  %v10225_v57 = vmul.f32 0.17677669, %v7792_v42  ;;  %v10241_v42 = vpop.permute.xlu1 %3245 }
 0x8ce   : > { %v7793_v54 = vpop.f32.mrb[78].mxu0  ;;  %v10228_v29 = vmul.f32 0.17677669, %v2682_v40 }
 0x8cf   : > { %2729 = vmax.xlane.f32.xlu0 %v10221_v30  ;;  %v2685_v27 = vpop.f32.mrb[79].mxu0  ;;  %v10235_v28 = vmul.f32 0.17677669, %v7793_v54 }
 0x8d0   : > { %v10238_v13 = vmul.f32 0.17677669, %v2685_v27 }
 0x8d3   : > { %2741 = vmax.xlane.f32.xlu0 %v10225_v57 }
 0x8d7   : > { %2737 = vmax.xlane.f32.xlu0 %v10228_v29 }
 0x8de   : > { %3249 = vrot.lane.b32.xlu1 %v9599_v3, %s9054_s23 }
 0x8ed   : > { %3247 = vrot.lane.b32.xlu0 %v9583_v49, %s9054_s23 }
 0x902   : > { %2743 = vmax.xlane.f32.xlu1 %v10235_v28 }
 0x906   : > { %2739 = vmax.xlane.f32.xlu1 %v10238_v13 }
 0x944   : > { %v2718_v40 = vpop.xlane.xlu0 %2717 }
 0x945   : > { %v2747_v47 = vsub.f32 %v2699_v31, %v2718_v40 }
 0x947   : > { %v2765_v11 = vmul.f32 1.442695, %v2747_v47  ;;  %v2716_v25 = vpop.xlane.xlu1 %2715 }
 0x948   : > { %v2746_v39 = vsub.f32 %v2698_v35, %v2716_v25  ;;  %v2714_v15 = vpop.xlane.xlu0 %2713 }
 0x949   : > { %8357 = vpow2.f32 %v2765_v11  ;;  %v2745_v3 = vsub.f32 %v2697_v50, %v2714_v15 }
 0x94a   : > { %v2763_v58 = vmul.f32 1.442695, %v2746_v39 }
 0x94b   : > { %v2761_v49 = vmul.f32 1.442695, %v2745_v3 }
 0x94c   : > { %8359 = vpow2.f32 %v2763_v58  ;;  %v2720_v54 = vpop.xlane.xlu0 %2719 }
 0x94d   : > { %8361 = vpow2.f32 %v2761_v49  ;;  %v2748_v0 = vsub.f32 %v2700_v60, %v2720_v54 }
 0x94e   : > { %v2728_v11 = vpop.xlane.xlu1 %2727 }
 0x94f   : > { %v2767_v27 = vmul.f32 1.442695, %v2748_v0  ;;  %v2752_v54 = vsub.f32 %v10201_v9, %v2728_v11 }
 0x950   : > { %v2726_v39 = vpop.xlane.xlu0 %2725 }
 0x951   : > { %8363 = vpow2.f32 %v2767_v27  ;;  %v2751_v58 = vsub.f32 %v10203_v4, %v2726_v39  ;;  %v2775_v14 = vmul.f32 1.442695, %v2752_v54 }
 0x952   : > { %v2724_v35 = vpop.xlane.xlu1 %2723 }
 0x953   : > { %v10243_v63 = vpop.eup %8357  ;;  %v2773_v60 = vmul.f32 1.442695, %v2751_v58  ;;  %v2750_v40 = vsub.f32 %v10206_v61, %v2724_v35 }
 0x954   : > { %2797 = vadd.xlane.f32.xlu1 %v10243_v63  ;;  %v2722_v25 = vpop.xlane.xlu0 %2721 }
 0x955   : > { %v2749_v31 = vsub.f32 %v10209_v23, %v2722_v25  ;;  %8365 = vpow2.f32 %v2773_v60  ;;  %v2771_v27 = vmul.f32 1.442695, %v2750_v40 }
 0x956   : > { %v10246_v17 = vpop.eup %8359  ;;  %v2736_v3 = vpop.xlane.xlu1 %2735 }
 0x957   : > { %v10248_v47 = vpop.eup %8361  ;;  %2795 = vadd.xlane.f32.xlu0 %v10246_v17  ;;  %v2756_v9 = vsub.f32 %v10212_v45, %v2736_v3 }
 0x958   : > { %2793 = vadd.xlane.f32.xlu1 %v10248_v47  ;;  %v2734_v0 = vpop.xlane.xlu0 %2733 }
 0x95a   : > { %v2732_v37 = vpop.xlane.xlu1 %2731 }
 0x95b   : > { %v10252_v15 = vpop.eup %8363 }
 0x95c   : > { %2799 = vadd.xlane.f32.xlu1 %v10252_v15  ;;  %v2730_v50 = vpop.xlane.xlu0 %2729 }
 0x95d   : > { %v2753_v23 = vsub.f32 %v10221_v30, %v2730_v50  ;;  %v2754_v30 = vsub.f32 %v10218_v38, %v2732_v37 }
 0x95f   : > { %v2777_v11 = vmul.f32 1.442695, %v2753_v23  ;;  %v10268_v35 = vpop.eup %8365  ;;  %v2779_v60 = vmul.f32 1.442695, %v2754_v30 }
 0x960   : > { %v2742_v49 = vpop.xlane.xlu0 %2741 }
 0x961   : > { %v2759_v4 = vsub.f32 %v10225_v57, %v2742_v49 }
 0x963   : > { %v2789_v61 = vmul.f32 1.442695, %v2759_v4 }
 0x964   : > { %v2738_v25 = vpop.xlane.xlu0 %2737 }
 0x965   : > { %v2757_v58 = vsub.f32 %v10228_v29, %v2738_v25 }
 0x967   : > { %v2785_v57 = vmul.f32 1.442695, %v2757_v58 }
 0x96d   : > { %3251 = vrot.lane.b32.xlu0 %v9615_v59, %s9054_s23  ;;  %3253 = vrot.lane.b32.xlu1 %v9625_v22, %s9054_s23  ;;  %v2769_v59 = vmul.f32 1.442695, %v2749_v31  ;;  %v2755_v22 = vsub.f32 %v10215_v32, %v2734_v0  ;;  %v10270_v32 = vpop.permute.xlu1 %3249  ;;  %v2783_v0 = vmul.f32 1.442695, %v2756_v9 }
 0x96f   : > { %8367 = vpow2.f32 %v2769_v59  ;;  %v2781_v39 = vmul.f32 1.442695, %v2755_v22 }
 0x970   : > { %8369 = vpow2.f32 %v2771_v27 }
 0x971   : > { %8371 = vpow2.f32 %v2775_v14 }
 0x972   : > { %8373 = vpow2.f32 %v2781_v39 }
 0x973   : > { %8375 = vpow2.f32 %v2789_v61 }
 0x974   : > { %8377 = vpow2.f32 %v2777_v11 }
 0x975   : > { %8379 = vpow2.f32 %v2785_v57 }
 0x976   : > { %8381 = vpow2.f32 %v2783_v0  ;;  %v13491_v0 = vld [vmem:[#allocation29_spill] sm:$0xff] }
 0x977   : > { %v2188_v30 = vadd.f32 %v10114_v46, %v13491_v0  ;;  %v13502_v0 = vld [vmem:[#allocation39_spill] sm:$0xff] }
 0x979   : > { %v10274_v14 = vpop.eup %8367 }
 0x97a   : > { %v10276_v29 = vpop.eup %8369 }
 0x97b   : > { %v10281_v40 = vpop.eup %8371 }
 0x97c   : > { %v10283_v37 = vpop.eup %8373 }
 0x97d   : > { %v10288_v49 = vpop.eup %8375 }
 0x97e   : > { %v10290_v54 = vpop.eup %8377 }
 0x97f   : > { %v10294_v59 = vpop.eup %8379 }
 0x980   : > { %v10296_v27 = vpop.eup %8381 }
 0x98c   : > { %2805 = vadd.xlane.f32.xlu0 %v10268_v35 }
 0x98f   : > { %v2744_v50 = vpop.xlane.xlu1 %2743 }
 0x990   : > { %v2760_v45 = vsub.f32 %v10235_v28, %v2744_v50  ;;  %2801 = vadd.xlane.f32.xlu0 %v10274_v14 }
 0x991   : > { %2803 = vadd.xlane.f32.xlu1 %v10276_v29 }
 0x992   : > { %v2791_v31 = vmul.f32 1.442695, %v2760_v45 }
 0x993   : > { %v2740_v3 = vpop.xlane.xlu1 %2739 }
 0x994   : > { %8383 = vpow2.f32 %v2791_v31  ;;  %v2758_v38 = vsub.f32 %v10238_v13, %v2740_v3  ;;  %2807 = vadd.xlane.f32.xlu0 %v10281_v40 }
 0x995   : > { %2813 = vadd.xlane.f32.xlu1 %v10283_v37  ;;  %8385 = vpow2.f32 %v2779_v60 }
 0x996   : > { %v2787_v28 = vmul.f32 1.442695, %v2758_v38 }
 0x998   : > { %2821 = vadd.xlane.f32.xlu0 %v10288_v49  ;;  %8387 = vpow2.f32 %v2787_v28  ;;  %v13492_v28 = vld [vmem:[#allocation27_spill] sm:$0xff] }
 0x999   : > { %2809 = vadd.xlane.f32.xlu1 %v10290_v54 }
 0x99c   : > { %2817 = vadd.xlane.f32.xlu0 %v10294_v59 }
 0x99d   : > { %2815 = vadd.xlane.f32.xlu1 %v10296_v27 }
 0x99e   : > { %v10300_v13 = vpop.eup %8383 }
 0x99f   : > { %v10302_v22 = vpop.eup %8385 }
 0x9a0   : > { %2823 = vadd.xlane.f32.xlu0 %v10300_v13 }
 0x9a1   : > { %2811 = vadd.xlane.f32.xlu1 %v10302_v22 }
 0x9a2   : > { %v10306_v4 = vpop.eup %8387 }
 0x9a5   : > { %2819 = vadd.xlane.f32.xlu1 %v10306_v4 }
 0x9b6   : > { %3257 = vrot.lane.b32.xlu1 %v9641_v48, %s9054_s23  ;;  %3255 = vrot.lane.b32.xlu0 %v9633_v7, %s9054_s23  ;;  %v2182_v48 = vadd.f32 %v10077_v44, %v9817_v53  ;;  %v3284_v53 = vsel %vm1266_vm0, %v10164_v10, 0  ;;  %v3287_v44 = vsel %vm1266_vm0, %v10241_v42, 0 }
 0x9ba   : > { %3221 = vrot.lane.b32.xlu1 %v9562_v18, %s9054_s23  ;;  %3219 = vrot.lane.b32.xlu0 %v9545_v33, %s9054_s23  ;;  %v3248_v33 = vpop.permute.xlu0 %3247 }
 0x9be   : > { %3225 = vrot.lane.b32.xlu1 %v9596_v43, %s9054_s23  ;;  %3223 = vrot.lane.b32.xlu0 %v9580_v34, %s9054_s23 }
 0x9c2   : > { %3229 = vrot.lane.b32.xlu1 %v9623_v62, %s9054_s23  ;;  %3227 = vrot.lane.b32.xlu0 %v9612_v55, %s9054_s23 }
 0x9c6   : > { %3233 = vrot.lane.b32.xlu1 %v9639_v20, %s9054_s23  ;;  %3231 = vrot.lane.b32.xlu0 %v9631_v5, %s9054_s23 }
 0x9ca   : > { %3646 = vrot.lane.b32.xlu1 %v9557_v6, %s9054_s23  ;;  %3644 = vrot.lane.b32.xlu0 %v9559_v8, %s9054_s23  ;;  %v2184_v6 = vadd.f32 %v10082_v51, %v9823_v52 }
 0x9ce   : > { %3648 = vrot.lane.b32.xlu0 %v9577_v12, %s9054_s23 }
 0x9d2   : > { %3650 = vrot.lane.b32.xlu0 %v9574_v26, %s9054_s23  ;;  %v2183_v26 = vadd.f32 %v10074_v56, %v9820_v1 }
 0x9e1   : > { %v2798_v18 = vpop.xlane.xlu1 %2797 }
 0x9e2   : > { %8389 = vrcp.f32 %v2798_v18 }
 0x9e4   : > { %v2796_v34 = vpop.xlane.xlu0 %2795 }
 0x9e5   : > { %8391 = vrcp.f32 %v2796_v34  ;;  %v2794_v43 = vpop.xlane.xlu1 %2793 }
 0x9e6   : > { %8393 = vrcp.f32 %v2794_v43  ;;  %v13493_v43 = vld [vmem:[#allocation28_spill] sm:$0xff] }
 0x9e9   : > { %v2800_v55 = vpop.xlane.xlu1 %2799 }
 0x9ea   : > { %8395 = vrcp.f32 %v2800_v55  ;;  %v2187_v55 = vadd.f32 %v10109_v21, %v13493_v43  ;;  %v13505_v43 = vld [vmem:[#allocation33_spill] sm:$0xff] }
 0x9ec   : > { %v8390_v62 = vpop.eup %8389 }
 0x9ed   : > { %v2859_v8 = vmul.f32 %v8390_v62, %v10243_v63  ;;  %v2185_v63 = vadd.f32 %v10085_v2, %v9814_v36  ;;  %v3290_v36 = vsel %vm1266_vm0, %v3248_v33, 0  ;;  %v3293_v2 = vsel %vm1266_vm0, %v10270_v32, 0 }
 0x9ef   : > { %v8392_v5 = vpop.eup %8391  ;;  %v10340_v12 = vadd.f32 %v2859_v8, %v2184_v6 }
 0x9f0   : > { %v8394_v7 = vpop.eup %8393  ;;  %v2858_v20 = vmul.f32 %v8392_v5, %v10246_v17  ;;  %v3252_v17 = vpop.permute.xlu0 %3251 }
 0x9f1   : > { %v2857_v39 = vmul.f32 %v8394_v7, %v10248_v47  ;;  %v3296_v10 = vsel %vm1266_vm0, %v3252_v17, 0 }
 0x9f2   : > { %v10348_v23 = vadd.f32 %v2858_v20, %v2183_v26  ;;  %v13494_v26 = vld [vmem:[#allocation30_spill] sm:$0xff] }
 0x9f3   : > { %v10350_v25 = vadd.f32 %v2857_v39, %v2182_v48  ;;  %v2921_v52 = vpack.c.bf16 %v2858_v20, %v2857_v39  ;;  %v13495_v48 = vld [vmem:[#allocation34_spill] sm:$0xff] }
 0x9f4   : > { %v8396_v51 = vpop.eup %8395  ;;  %v2192_v21 = vadd.f32 %v10135_v24, %v13495_v48  ;;  %v13507_v48 = vld [vmem:[#allocation36_spill] sm:$0xff] }
 0x9f5   : > { %v2860_v61 = vmul.f32 %v8396_v51, %v10252_v15  ;;  %7810 = vmatprep.mubr.bf16.mxu1 %v2921_v52 }
 0x9f7   : > { %v10355_v1 = vadd.f32 %v2860_v61, %v2185_v63  ;;  %v2922_v56 = vpack.c.bf16 %v2860_v61, %v2859_v8 }
 0x9f9   : > { %7811 = vmatmul.mubr.bf16.vlgmr.msra.gmra.mrb[48].mxu1 %v2922_v56 }
 0x9fa   : > { %7827 = vmatpush3.bf16.xpose.msra.mxu1 %v3284_v53 }
 0x9fb   : > { %7963 = vmatprep.subr.msk.bf16.mxu1 %vm1266_vm0, %v10241_v42  ;;  %v3254_v42 = vpop.permute.xlu1 %3253 }
 0x9fc   : > { %v3299_v9 = vsel %vm1266_vm0, %v3254_v42, 0 }
 0xa02   : > { %7829 = vmatpush3.bf16.xpose.msra.mxu1 %v3287_v44  ;;  %v13497_v44 = vld [vmem:[#allocation32_spill] sm:$0xff] }
 0xa03   : > { %7964 = vmatprep.subr.msk.bf16.mxu1 %vm1266_vm0, %v3248_v33  ;;  %v2186_v33 = vadd.f32 %v10106_v19, %v13492_v28  ;;  %v2189_v19 = vadd.f32 %v10117_v16, %v13494_v26  ;;  %v13496_v16 = vld [vmem:[#allocation38_spill] sm:$0xff]  ;;  %v13503_v28 = vld [vmem:[#allocation37_spill] sm:$0xff] }
 0xa04   : > { %v2196_v53 = vadd.f32 %v10153_v41, %v13496_v16 }
 0xa0a   : > { %7831 = vmatpush3.bf16.xpose.msra.mxu1 %v3290_v36  ;;  %v13498_v36 = vld [vmem:[#allocation40_spill] sm:$0xff] }
 0xa0b   : > { %7965 = vmatprep.subr.msk.bf16.mxu1 %vm1266_vm0, %v10270_v32 }
 0xa12   : > { %7833 = vmatpush3.bf16.xpose.msra.mxu1 %v3293_v2  ;;  %v2190_v2 = vadd.f32 %v13498_v36, %v13497_v44 }
 0xa13   : > { %7966 = vmatprep.subr.msk.bf16.mxu1 %vm1266_vm0, %v3252_v17 }
 0xa19   : > { %v2806_v47 = vpop.xlane.xlu0 %2805 }
 0xa1a   : > { %7835 = vmatpush3.bf16.xpose.msra.mxu1 %v3296_v10  ;;  %8397 = vrcp.f32 %v2806_v47 }
 0xa1b   : > { %7967 = vmatprep.subr.msk.bf16.mxu1 %vm1266_vm0, %v3254_v42 }
 0xa1d   : > { %v2802_v15 = vpop.xlane.xlu0 %2801 }
 0xa1e   : > { %8399 = vrcp.f32 %v2802_v15  ;;  %v2804_v58 = vpop.xlane.xlu1 %2803 }
 0xa1f   : > { %8401 = vrcp.f32 %v2804_v58  ;;  %v13499_v58 = vld [vmem:[#allocation35_spill] sm:$0xff] }
 0xa21   : > { %v2808_v11 = vpop.xlane.xlu0 %2807 }
 0xa22   : > { %7837 = vmatpush3.bf16.xpose.msra.mxu1 %v3299_v9  ;;  %8403 = vrcp.f32 %v2808_v11  ;;  %v2814_v32 = vpop.xlane.xlu1 %2813 }
 0xa23   : > { %8405 = vrcp.f32 %v2814_v32 }
 0xa24   : > { %v8398_v57 = vpop.eup %8397 }
 0xa25   : > { %v2822_v50 = vpop.xlane.xlu0 %2821  ;;  %v2863_v45 = vmul.f32 %v8398_v57, %v10268_v35  ;;  %v13501_v57 = vld [vmem:[#allocation31_spill] sm:$0xff] }
 0xa26   : > { %8407 = vrcp.f32 %v2822_v50  ;;  %v2810_v60 = vpop.xlane.xlu1 %2809 }
 0xa27   : > { %8409 = vrcp.f32 %v2810_v60  ;;  %v10376_v31 = vadd.f32 %v2863_v45, %v2188_v30  ;;  %v2193_v30 = vadd.f32 %v13502_v0, %v13501_v57 }
 0xa28   : > { %v8400_v3 = vpop.eup %8399 }
 0xa29   : > { %v8402_v38 = vpop.eup %8401  ;;  %v2818_v18 = vpop.xlane.xlu0 %2817  ;;  %v2861_v34 = vmul.f32 %v8400_v3, %v10274_v14 }
 0xa2a   : > { %8411 = vrcp.f32 %v2818_v18  ;;  %v2816_v46 = vpop.xlane.xlu1 %2815  ;;  %v2862_v35 = vmul.f32 %v8402_v38, %v10276_v29 }
 0xa2b   : > { %8413 = vrcp.f32 %v2816_v46  ;;  %v10384_v62 = vadd.f32 %v2861_v34, %v2186_v33  ;;  %v13504_v33 = vld [vmem:[#allocation44_spill] sm:$0xff] }
 0xa2c   : > { %v8404_v6 = vpop.eup %8403  ;;  %v10386_v8 = vadd.f32 %v2862_v35, %v2187_v55  ;;  %v2923_v5 = vpack.c.bf16 %v2862_v35, %v2861_v34  ;;  %v2197_v18 = vadd.f32 %v13504_v33, %v13503_v28  ;;  %v13506_v55 = vld [vmem:[#allocation41_spill] sm:$0xff] }
 0xa2d   : > { %v8406_v7 = vpop.eup %8405  ;;  %v2824_v20 = vpop.xlane.xlu0 %2823  ;;  %v2864_v14 = vmul.f32 %v8404_v6, %v10281_v40  ;;  %v2191_v46 = vadd.f32 %v13506_v55, %v13505_v43 }
 0xa2e   : > { %8415 = vrcp.f32 %v2824_v20  ;;  %v2812_v39 = vpop.xlane.xlu1 %2811  ;;  %7814 = vmatprep.mubr.bf16.mxu1 %v2923_v5  ;;  %v2867_v29 = vmul.f32 %v8406_v7, %v10283_v37 }
 0xa2f   : > { %8417 = vrcp.f32 %v2812_v39  ;;  %v10394_v52 = vadd.f32 %v2864_v14, %v2189_v19  ;;  %v2924_v51 = vpack.c.bf16 %v2864_v14, %v2863_v45 }
 0xa30   : > { %v8408_v63 = vpop.eup %8407  ;;  %v10396_v61 = vadd.f32 %v2867_v29, %v2192_v21  ;;  %v13508_v21 = vld [vmem:[#allocation43_spill] sm:$0xff] }
 0xa31   : > { %v8410_v56 = vpop.eup %8409  ;;  %7815 = vmatmul.mubr.bf16.gmra.mrb[52].mxu1 %v2924_v51  ;;  %v3256_v40 = vpop.permute.xlu0 %3255  ;;  %v2871_v24 = vmul.f32 %v8408_v63, %v10288_v49  ;;  %v13500_v49 = vld [vmem:[#allocation42_spill] sm:$0xff] }
 0xa32   : > { %v2820_v17 = vpop.xlane.xlu1 %2819  ;;  %7968 = vmatprep.subr.msk.bf16.mxu1 %vm1266_vm0, %v3256_v40  ;;  %v3302_v37 = vsel %vm1266_vm0, %v3256_v40, 0  ;;  %v2865_v10 = vmul.f32 %v8410_v56, %v10290_v54  ;;  %v2194_v9 = vadd.f32 %v13500_v49, %v13499_v58 }
 0xa33   : > { %8419 = vrcp.f32 %v2820_v17  ;;  %7839 = vmatpush3.bf16.xpose.msra.mxu1 %v3302_v37  ;;  %v10406_v47 = vadd.f32 %v2871_v24, %v2196_v53 }
 0xa34   : > { %v8412_v42 = vpop.eup %8411  ;;  %v10408_v41 = vadd.f32 %v2865_v10, %v2190_v2 }
 0xa35   : > { %v8414_v15 = vpop.eup %8413  ;;  %v3220_v11 = vpop.permute.xlu0 %3219  ;;  %v2869_v32 = vmul.f32 %v8412_v42, %v10294_v59 }
 0xa36   : > { %v3258_v50 = vpop.permute.xlu1 %3257  ;;  %v2868_v54 = vmul.f32 %v8414_v15, %v10296_v27 }
 0xa37   : > { %7969 = vmatprep.subr.msk.bf16.mxu1 %vm1266_vm0, %v3258_v50  ;;  %v10417_v45 = vadd.f32 %v2869_v32, %v2194_v9  ;;  %v3305_v27 = vsel %vm1266_vm0, %v3258_v50, 0 }
 0xa38   : > { %v8416_v60 = vpop.eup %8415  ;;  %v10419_v3 = vadd.f32 %v2868_v54, %v2193_v30  ;;  %v2926_v14 = vpack.c.bf16 %v2868_v54, %v2867_v29 }
 0xa39   : > { %v8418_v38 = vpop.eup %8417  ;;  %v3224_v34 = vpop.permute.xlu0 %3223  ;;  %v2872_v59 = vmul.f32 %v8416_v60, %v10300_v13  ;;  %v2195_v13 = vadd.f32 %v13508_v21, %v13507_v48 }
 0xa3a   : > { %v3222_v35 = vpop.permute.xlu1 %3221  ;;  %v2866_v6 = vmul.f32 %v8418_v38, %v10302_v22 }
 0xa3b   : > { %7841 = vmatpush3.bf16.xpose.msra.mxu1 %v3305_v27  ;;  %v10428_v5 = vadd.f32 %v2872_v59, %v2197_v18  ;;  %v2928_v40 = vpack.c.bf16 %v2872_v59, %v2871_v24  ;;  %v13509_v24 = vmov 0  }
 0xa3c   : > { %v10430_v7 = vadd.f32 %v2866_v6, %v2191_v46  ;;  %v2925_v26 = vpack.c.bf16 %v2866_v6, %v2865_v10 }
 0xa3d   : > { %v8420_v19 = vpop.eup %8419  ;;  %v3228_v20 = vpop.permute.xlu0 %3227 }
 0xa3e   : > { %v3226_v39 = vpop.permute.xlu1 %3225  ;;  %7818 = vmatprep.mubr.bf16.mxu1 %v2925_v26  ;;  %v2870_v51 = vmul.f32 %v8420_v19, %v10306_v4 }
 0xa3f   : > { %7819 = vmatmul.mubr.bf16.gmra.mrb[56].mxu1 %v2926_v14 }
 0xa40   : > { %v10435_v63 = vadd.f32 %v2870_v51, %v2195_v13  ;;  %v2927_v22 = vpack.c.bf16 %v2870_v51, %v2869_v32 }
 0xa41   : > { %v3232_v56 = vpop.permute.xlu0 %3231 }
 0xa42   : > { %v3230_v16 = vpop.permute.xlu1 %3229  ;;  %7822 = vmatprep.mubr.bf16.mxu1 %v2927_v22 }
 0xa45   : > { %v3645_v53 = vpop.permute.xlu0 %3644 }
 0xa46   : > { %v3234_v44 = vpop.permute.xlu1 %3233  ;;  %7858 = vmatprep.subr.bf16.mxu0 %v3645_v53 }
 0xa47   : > { %7823 = vmatmul.mubr.bf16.gmra.mrb[60].mxu1 %v2928_v40  ;;  %7859 = vmatpush3.bf16.msra.mxu0 %v3645_v53 }
 0xa48   : > { %7842 = vmatprep.mubr.msk.bf16.mxu1 %vm1266_vm0, %v3220_v11 }
 0xa49   : > { %v3649_v29 = vpop.permute.xlu0 %3648 }
 0xa4a   : > { %v3647_v36 = vpop.permute.xlu1 %3646 }
 0xa4b   : > { %7860 = vmatprep.subr.bf16.mxu0 %v3647_v36 }
 0xa4c   : > { %7861 = vmatpush3.bf16.msra.mxu0 %v3647_v36 }
 0xa4d   : > { %7862 = vmatprep.subr.bf16.mxu0 %v3649_v29  ;;  %v3651_v4 = vpop.permute.xlu0 %3650 }
 0xa4f   : > { %7843 = vmatmul.mubr.msk.bf16.vlgmr.msra.gmra.mrb[64].mxu1 %vm1266_vm0, %v3222_v35 }
 0xa50   : > { %7846 = vmatprep.mubr.msk.bf16.mxu1 %vm1266_vm0, %v3224_v34  ;;  %7863 = vmatpush3.bf16.msra.mxu0 %v3649_v29 }
 0xa51   : > { %7864 = vmatprep.subr.bf16.mxu0 %v3651_v4 }
 0xa54   : > { %7865 = vmatpush3.bf16.msra.mxu0 %v3651_v4  ;;  %v13512_v4 = vld [vmem:[#allocation23_spill] sm:$0xff] }
 0xa57   : > { %7847 = vmatmul.mubr.msk.bf16.gmra.mrb[68].mxu1 %vm1266_vm0, %v3226_v39 }
 0xa58   : > { %7850 = vmatprep.mubr.msk.bf16.mxu1 %vm1266_vm0, %v3228_v20 }
 0xa5f   : > { %7851 = vmatmul.mubr.msk.bf16.gmra.mrb[72].mxu1 %vm1266_vm0, %v3230_v16 }
 0xa60   : > { %7854 = vmatprep.mubr.msk.bf16.mxu1 %vm1266_vm0, %v3232_v56 }
 0xa67   : > { %7855 = vmatmul.mubr.msk.bf16.gmra.mrb[76].mxu1 %vm1266_vm0, %v3234_v44 }
 0xa68   : > { %4594 = vmatprep.mubr.bf16.mxu1 %v13509_v24 }
 0xacc   : > { %v10446_v2 = vpop.f32.mrb[48].mxu1 }
 0xacd   : > { %v10448_v17 = vpop.f32.mrb[49].mxu1 }
 0xace   : > { %v10450_v37 = vpop.f32.mrb[50].mxu1 }
 0xacf   : > { %v10452_v10 = vpop.f32.mrb[51].mxu1 }
 0xb04   : > { %v10454_v42 = vpop.f32.mrb[52].mxu1 }
 0xb05   : > { %v10456_v15 = vpop.f32.mrb[53].mxu1 }
 0xb06   : > { %v10458_v58 = vpop.f32.mrb[54].mxu1 }
 0xb07   : > { %v10460_v49 = vpop.f32.mrb[55].mxu1 }
 0xb12   : > { %v10462_v9 = vpop.f32.mrb[56].mxu1 }
 0xb13   : > { %v10464_v11 = vpop.f32.mrb[57].mxu1 }
 0xb14   : > { %v10466_v32 = vpop.f32.mrb[58].mxu1 }
 0xb15   : > { %v10468_v57 = vpop.f32.mrb[59].mxu1 }
 0xb1a   : > { %v10470_v0 = vpop.f32.mrb[60].mxu1 }
 0xb1b   : > { %13510 = vst [vmem:[#allocation29_spill] sm:$0xff] %v10470_v0  ;;  %v10472_v30 = vpop.f32.mrb[61].mxu1 }
 0xb1c   : > { %v10474_v50 = vpop.f32.mrb[62].mxu1 }
 0xb1d   : > { %13511 = vst [vmem:[#allocation27_spill] sm:$0xff] %v10474_v50  ;;  %v10476_v54 = vpop.f32.mrb[63].mxu1 }
 0xb22   : > { %v7844_v60 = vpop.f32.mrb[64].mxu1 }
 0xb23   : > { %v3406_v38 = vmul.f32 0.17677669, %v7844_v60  ;;  %v3341_v28 = vpop.f32.mrb[65].mxu1  ;;  %v13513_v60 = vld [vmem:[#allocation24_spill] sm:$0xff] }
 0xb24   : > { %v7845_v33 = vpop.f32.mrb[66].mxu1  ;;  %v3404_v59 = vmul.f32 0.17677669, %v3341_v28 }
 0xb25   : > { %3424 = vmax.xlane.f32.xlu0 %v3406_v38  ;;  %v3344_v18 = vpop.f32.mrb[67].mxu1  ;;  %v3407_v55 = vmul.f32 0.17677669, %v7845_v33 }
 0xb26   : > { %v3405_v34 = vmul.f32 0.17677669, %v3344_v18 }
 0xb28   : > { %3422 = vmax.xlane.f32.xlu1 %v3405_v34 }
 0xb29   : > { %3420 = vmax.xlane.f32.xlu0 %v3404_v59 }
 0xb2a   : > { %v7848_v43 = vpop.f32.mrb[68].mxu1 }
 0xb2b   : > { %v3357_v46 = vpop.f32.mrb[69].mxu1  ;;  %v3410_v26 = vmul.f32 0.17677669, %v7848_v43 }
 0xb2c   : > { %v7849_v35 = vpop.f32.mrb[70].mxu1  ;;  %v3408_v14 = vmul.f32 0.17677669, %v3357_v46 }
 0xb2d   : > { %v3411_v27 = vmul.f32 0.17677669, %v7849_v35  ;;  %3426 = vmax.xlane.f32.xlu0 %v3407_v55  ;;  %v3360_v6 = vpop.f32.mrb[71].mxu1 }
 0xb2e   : > { %v10478_v19 = vmul.f32 0.17677669, %v3360_v6 }
 0xb2f   : > { %3434 = vmax.xlane.f32.xlu1 %v3411_v27 }
 0xb31   : > { %3432 = vmax.xlane.f32.xlu0 %v3410_v26 }
 0xb32   : > { %v7852_v20 = vpop.f32.mrb[72].mxu1 }
 0xb33   : > { %3430 = vmax.xlane.f32.xlu1 %v10478_v19  ;;  %v3373_v48 = vpop.f32.mrb[73].mxu1  ;;  %v10483_v51 = vmul.f32 0.17677669, %v7852_v20 }
 0xb34   : > { %v7853_v21 = vpop.f32.mrb[74].mxu1  ;;  %v10489_v16 = vmul.f32 0.17677669, %v3373_v48 }
 0xb35   : > { %v10481_v13 = vmul.f32 0.17677669, %v7853_v21  ;;  %3428 = vmax.xlane.f32.xlu0 %v3408_v14  ;;  %v3376_v39 = vpop.f32.mrb[75].mxu1 }
 0xb36   : > { %v10486_v22 = vmul.f32 0.17677669, %v3376_v39 }
 0xb37   : > { %3442 = vmax.xlane.f32.xlu1 %v10481_v13 }
 0xb39   : > { %3440 = vmax.xlane.f32.xlu0 %v10483_v51 }
 0xb3a   : > { %v7856_v56 = vpop.f32.mrb[76].mxu1 }
 0xb3b   : > { %3438 = vmax.xlane.f32.xlu1 %v10486_v22  ;;  %v3389_v53 = vpop.f32.mrb[77].mxu1  ;;  %v10493_v29 = vmul.f32 0.17677669, %v7856_v56 }
 0xb3c   : > { %v7857_v40 = vpop.f32.mrb[78].mxu1  ;;  %v10496_v36 = vmul.f32 0.17677669, %v3389_v53 }
 0xb3d   : > { %3436 = vmax.xlane.f32.xlu0 %v10489_v16  ;;  %v3392_v44 = vpop.f32.mrb[79].mxu1  ;;  %v10503_v28 = vmul.f32 0.17677669, %v7857_v40 }
 0xb3e   : > { %v10506_v33 = vmul.f32 0.17677669, %v3392_v44 }
 0xb41   : > { %3448 = vmax.xlane.f32.xlu0 %v10493_v29 }
 0xb45   : > { %3444 = vmax.xlane.f32.xlu0 %v10496_v36 }
 0xb4c   : > { %3654 = vrot.lane.b32.xlu1 %v13512_v4, %s9054_s23 }
 0xb5b   : > { %3652 = vrot.lane.b32.xlu0 %v13513_v60, %s9054_s23 }
 0xb70   : > { %3450 = vmax.xlane.f32.xlu1 %v10503_v28 }
 0xb74   : > { %3446 = vmax.xlane.f32.xlu1 %v10506_v33 }
 0xbb2   : > { %v3425_v18 = vpop.xlane.xlu0 %3424 }
 0xbb3   : > { %v3454_v43 = vsub.f32 %v3406_v38, %v3425_v18 }
 0xbb5   : > { %v3472_v46 = vmul.f32 1.442695, %v3454_v43  ;;  %v3423_v6 = vpop.xlane.xlu1 %3422 }
 0xbb6   : > { %v3421_v35 = vpop.xlane.xlu0 %3420  ;;  %v3453_v21 = vsub.f32 %v3405_v34, %v3423_v6 }
 0xbb7   : > { %8421 = vpow2.f32 %v3472_v46  ;;  %v3452_v20 = vsub.f32 %v3404_v59, %v3421_v35 }
 0xbb8   : > { %v3470_v4 = vmul.f32 1.442695, %v3453_v21 }
 0xbb9   : > { %v3468_v48 = vmul.f32 1.442695, %v3452_v20 }
 0xbba   : > { %v3427_v39 = vpop.xlane.xlu0 %3426 }
 0xbbb   : > { %8423 = vpow2.f32 %v3468_v48  ;;  %v3455_v56 = vsub.f32 %v3407_v55, %v3427_v39 }
 0xbbc   : > { %v3435_v53 = vpop.xlane.xlu1 %3434 }
 0xbbd   : > { %v3474_v40 = vmul.f32 1.442695, %v3455_v56  ;;  %v3459_v60 = vsub.f32 %v3411_v27, %v3435_v53 }
 0xbbe   : > { %v3433_v44 = vpop.xlane.xlu0 %3432 }
 0xbbf   : > { %8425 = vpow2.f32 %v3474_v40  ;;  %v3458_v24 = vsub.f32 %v3410_v26, %v3433_v44  ;;  %v3482_v18 = vmul.f32 1.442695, %v3459_v60  ;;  %v13515_v60 = vld [vmem:[#allocation26_spill] sm:$0xff] }
 0xbc0   : > { %v3431_v50 = vpop.xlane.xlu1 %3430  ;;  %8427 = vpow2.f32 %v3470_v4  ;;  %v13514_v4 = vld [vmem:[#allocation25_spill] sm:$0xff] }
 0xbc1   : > { %v10509_v0 = vpop.eup %8421  ;;  %v3480_v38 = vmul.f32 1.442695, %v3458_v24  ;;  %v3457_v34 = vsub.f32 %v10478_v19, %v3431_v50 }
 0xbc2   : > { %3504 = vadd.xlane.f32.xlu1 %v10509_v0  ;;  %v3429_v59 = vpop.xlane.xlu0 %3428 }
 0xbc3   : > { %8429 = vpow2.f32 %v3480_v38  ;;  %v3456_v55 = vsub.f32 %v3408_v14, %v3429_v59  ;;  %v3478_v26 = vmul.f32 1.442695, %v3457_v34 }
 0xbc4   : > { %8431 = vpow2.f32 %v3482_v18  ;;  %v3443_v20 = vpop.xlane.xlu1 %3442 }
 0xbc5   : > { %v10513_v43 = vpop.eup %8423  ;;  %v3476_v46 = vmul.f32 1.442695, %v3456_v55  ;;  %v3463_v38 = vsub.f32 %v10481_v13, %v3443_v20 }
 0xbc6   : > { %3500 = vadd.xlane.f32.xlu1 %v10513_v43  ;;  %v3441_v27 = vpop.xlane.xlu0 %3440 }
 0xbc7   : > { %8433 = vpow2.f32 %v3476_v46  ;;  %v3490_v34 = vmul.f32 1.442695, %v3463_v38  ;;  %v3462_v55 = vsub.f32 %v10483_v51, %v3441_v27  ;;  %v13517_v38 = vld [vmem:[#allocation45_spill] sm:$0xff] }
 0xbc8   : > { %8435 = vpow2.f32 %v3478_v26  ;;  %v3439_v21 = vpop.xlane.xlu1 %3438 }
 0xbc9   : > { %v10516_v35 = vpop.eup %8425  ;;  %v3461_v18 = vsub.f32 %v10486_v22, %v3439_v21 }
 0xbca   : > { %3506 = vadd.xlane.f32.xlu1 %v10516_v35  ;;  %v3437_v24 = vpop.xlane.xlu0 %3436  ;;  %v10519_v6 = vpop.eup %8427 }
 0xbcb   : > { %v3460_v44 = vsub.f32 %v10489_v16, %v3437_v24  ;;  %v3486_v46 = vmul.f32 1.442695, %v3461_v18  ;;  %v13518_v18 = vld [vmem:[#allocation46_spill] sm:$0xff] }
 0xbcc   : > { %v3655_v40 = vpop.permute.xlu1 %3654 }
 0xbcd   : > { %v10521_v50 = vpop.eup %8429  ;;  %v3484_v59 = vmul.f32 1.442695, %v3460_v44  ;;  %v13516_v44 = vld [vmem:[#allocation48_spill] sm:$0xff] }
 0xbce   : > { %3502 = vadd.xlane.f32.xlu1 %v10519_v6  ;;  %3512 = vadd.xlane.f32.xlu0 %v10521_v50  ;;  %v3449_v19 = vpop.xlane.xlu0 %3448  ;;  %v10525_v14 = vpop.eup %8431 }
 0xbcf   : > { %8437 = vpow2.f32 %v3484_v59  ;;  %v3466_v13 = vsub.f32 %v10493_v29, %v3449_v19  ;;  %v13519_v59 = vld [vmem:[#allocation47_spill] sm:$0xff] }
 0xbd0   : > { %8439 = vpow2.f32 %v3490_v34  ;;  %v13520_v34 = vld [vmem:[#allocation50_spill] sm:$0xff] }
 0xbd1   : > { %v10527_v48 = vpop.eup %8433  ;;  %8441 = vpow2.f32 %v3486_v46  ;;  %v3496_v27 = vmul.f32 1.442695, %v3466_v13  ;;  %v13522_v46 = vld [vmem:[#allocation49_spill] sm:$0xff] }
 0xbd2   : > { %3514 = vadd.xlane.f32.xlu0 %v10525_v14  ;;  %3508 = vadd.xlane.f32.xlu1 %v10527_v48  ;;  %v3445_v39 = vpop.xlane.xlu0 %3444  ;;  %v10531_v56 = vpop.eup %8435 }
 0xbd6   : > { %3510 = vadd.xlane.f32.xlu0 %v10531_v56  ;;  %v3653_v53 = vpop.permute.xlu0 %3652 }
 0xbd7   : > { %7866 = vmatprep.subr.bf16.mxu0 %v3653_v53 }
 0xbd8   : > { %7867 = vmatpush3.bf16.msra.mxu0 %v3653_v53  ;;  %v3488_v53 = vmul.f32 1.442695, %v3462_v55  ;;  %v13521_v55 = vld [vmem:[#allocation52_spill] sm:$0xff] }
 0xbd9   : > { %7868 = vmatprep.subr.bf16.mxu0 %v3655_v40  ;;  %v10546_v20 = vpop.eup %8437 }
 0xbda   : > { %8443 = vpow2.f32 %v3488_v53  ;;  %v10549_v21 = vpop.eup %8439 }
 0xbdc   : > { %7869 = vmatpush3.bf16.msra.mxu0 %v3655_v40  ;;  %v3464_v40 = vsub.f32 %v10496_v36, %v3445_v39  ;;  %v10551_v36 = vpop.eup %8441 }
 0xbde   : > { %v3492_v22 = vmul.f32 1.442695, %v3464_v40 }
 0xbe3   : > { %3658 = vrot.lane.b32.xlu1 %v13514_v4, %s9054_s23 }
 0xbe4   : > { %v10555_v29 = vpop.eup %8443 }
 0xbec   : > { %3656 = vrot.lane.b32.xlu0 %v13515_v60, %s9054_s23 }
 0xbfd   : > { %v3451_v26 = vpop.xlane.xlu1 %3450 }
 0xbfe   : > { %v3467_v60 = vsub.f32 %v10503_v28, %v3451_v26 }
 0xc00   : > { %v3498_v51 = vmul.f32 1.442695, %v3467_v60 }
 0xc01   : > { %v3447_v4 = vpop.xlane.xlu1 %3446 }
 0xc02   : > { %v3465_v16 = vsub.f32 %v10506_v33, %v3447_v4 }
 0xc04   : > { %v3494_v24 = vmul.f32 1.442695, %v3465_v16 }
 0xc06   : > { %8445 = vpow2.f32 %v3494_v24 }
 0xc07   : > { %3516 = vadd.xlane.f32.xlu1 %v10546_v20  ;;  %8447 = vpow2.f32 %v3492_v22 }
 0xc08   : > { %8449 = vpow2.f32 %v3498_v51 }
 0xc09   : > { %8451 = vpow2.f32 %v3496_v27 }
 0xc0b   : > { %3518 = vadd.xlane.f32.xlu0 %v10551_v36  ;;  %3522 = vadd.xlane.f32.xlu1 %v10549_v21 }
 0xc0f   : > { %3520 = vadd.xlane.f32.xlu0 %v10555_v29 }
 0xc10   : > { %v10558_v28 = vpop.eup %8445 }
 0xc11   : > { %3526 = vadd.xlane.f32.xlu1 %v10558_v28  ;;  %v10561_v33 = vpop.eup %8447 }
 0xc12   : > { %v10564_v19 = vpop.eup %8449 }
 0xc13   : > { %3524 = vadd.xlane.f32.xlu0 %v10561_v33  ;;  %v10567_v39 = vpop.eup %8451 }
 0xc15   : > { %3530 = vadd.xlane.f32.xlu1 %v10564_v19 }
 0xc17   : > { %3528 = vadd.xlane.f32.xlu0 %v10567_v39 }
 0xc26   : > { %2369 = vrot.lane.b32.xlu1 %v13516_v44, %s9054_s23 }
 0xc2a   : > { %2371 = vrot.lane.b32.xlu1 %v13517_v38, %s9054_s23 }
 0xc2d   : > { %2367 = vrot.lane.b32.xlu0 %v13518_v18, %s9054_s23 }
 0xc2e   : > { %2373 = vrot.lane.b32.xlu1 %v13519_v59, %s9054_s23 }
 0xc31   : > { %3074 = vrot.lane.b32.xlu0 %v10448_v17, %s9053_s3  ;;  %v13523_v17 = vld [vmem:[#allocation51_spill] sm:$0xff] }
 0xc32   : > { %3076 = vrot.lane.b32.xlu1 %v10452_v10, %s9053_s3 }
 0xc35   : > { %3078 = vrot.lane.b32.xlu0 %v10446_v2, %s9053_s3  ;;  %v13524_v2 = vld [vmem:[#allocation54_spill] sm:$0xff] }
 0xc36   : > { %3080 = vrot.lane.b32.xlu1 %v10450_v37, %s9053_s3  ;;  %v13525_v37 = vld [vmem:[#allocation56_spill] sm:$0xff] }
 0xc39   : > { %2375 = vrot.lane.b32.xlu0 %v13520_v34, %s9054_s23 }
 0xc3a   : > { %2377 = vrot.lane.b32.xlu1 %v13521_v55, %s9054_s23 }
 0xc3d   : > { %2379 = vrot.lane.b32.xlu0 %v13522_v46, %s9054_s23 }
 0xc3e   : > { %2381 = vrot.lane.b32.xlu1 %v13523_v17, %s9054_s23 }
 0xc41   : > { %3082 = vrot.lane.b32.xlu0 %v10456_v15, %s9053_s3 }
 0xc42   : > { %3084 = vrot.lane.b32.xlu1 %v10460_v49, %s9053_s3 }
 0xc45   : > { %3086 = vrot.lane.b32.xlu0 %v10454_v42, %s9053_s3 }
 0xc46   : > { %3088 = vrot.lane.b32.xlu1 %v10458_v58, %s9053_s3 }
 0xc49   : > { %2383 = vrot.lane.b32.xlu0 %v13524_v2, %s9054_s23 }
 0xc4a   : > { %2385 = vrot.lane.b32.xlu1 %v13525_v37, %s9054_s23 }
 0xc4f   : > { %v3505_v10 = vpop.xlane.xlu1 %3504 }
 0xc50   : > { %8453 = vrcp.f32 %v3505_v10 }
 0xc53   : > { %v3501_v26 = vpop.xlane.xlu1 %3500 }
 0xc54   : > { %8455 = vrcp.f32 %v3501_v26 }
 0xc57   : > { %v3507_v15 = vpop.xlane.xlu1 %3506 }
 0xc58   : > { %8457 = vrcp.f32 %v3507_v15 }
 0xc5a   : > { %v8454_v49 = vpop.eup %8453 }
 0xc5b   : > { %v3566_v53 = vmul.f32 %v8454_v49, %v10509_v0  ;;  %v3503_v42 = vpop.xlane.xlu1 %3502  ;;  %v3513_v40 = vpop.xlane.xlu0 %3512 }
 0xc5c   : > { %8459 = vrcp.f32 %v3503_v42 }
 0xc5d   : > { %v3598_v58 = vadd.f32 %v3566_v53, %v10340_v12  ;;  %8461 = vrcp.f32 %v3513_v40 }
 0xc5e   : > { %v8456_v4 = vpop.eup %8455 }
 0xc5f   : > { %v3864_v60 = vmul.f32 0.25, %v3598_v58  ;;  %v3509_v16 = vpop.xlane.xlu1 %3508  ;;  %v3515_v13 = vpop.xlane.xlu0 %3514  ;;  %v3564_v22 = vmul.f32 %v8456_v4, %v10513_v43 }
 0xc60   : > { %8463 = vrcp.f32 %v3509_v16 }
 0xc61   : > { %3880 = vst [vmem:[%s10610_s18 + $0x10] sm:$0xff] %v3864_v60  ;;  %8465 = vrcp.f32 %v3515_v13  ;;  %v3596_v0 = vadd.f32 %v3564_v22, %v10350_v25 }
 0xc62   : > { %v8458_v24 = vpop.eup %8457 }
 0xc63   : > { %v3567_v12 = vmul.f32 %v8458_v24, %v10516_v35  ;;  %v3511_v51 = vpop.xlane.xlu0 %3510  ;;  %v3862_v27 = vmul.f32 0.25, %v3596_v0  ;;  %v3659_v25 = vpop.permute.xlu1 %3658 }
 0xc64   : > { %8467 = vrcp.f32 %v3511_v51 }
 0xc65   : > { %v3599_v44 = vadd.f32 %v3567_v12, %v10355_v1  ;;  %3878 = vst [vmem:[%s10610_s18] sm:$0xff] %v3862_v27  ;;  %v3629_v15 = vpack.c.bf16 %v3567_v12, %v3566_v53 }
 0xc66   : > { %v8460_v43 = vpop.eup %8459 }
 0xc67   : > { %v8462_v38 = vpop.eup %8461  ;;  %v3865_v18 = vmul.f32 0.25, %v3599_v44  ;;  %v3657_v59 = vpop.permute.xlu0 %3656  ;;  %v3565_v34 = vmul.f32 %v8460_v43, %v10519_v6 }
 0xc68   : > { %7870 = vmatprep.subr.bf16.mxu0 %v3657_v59  ;;  %v3570_v55 = vmul.f32 %v8462_v38, %v10521_v50 }
 0xc69   : > { %3881 = vst [vmem:[%s10610_s18 + $0x18] sm:$0xff] %v3865_v18  ;;  %7871 = vmatpush3.bf16.msra.mxu0 %v3657_v59  ;;  %v3597_v35 = vadd.f32 %v3565_v34, %v10348_v23  ;;  %v3628_v46 = vpack.c.bf16 %v3565_v34, %v3564_v22 }
 0xc6a   : > { %v8464_v17 = vpop.eup %8463  ;;  %7872 = vmatprep.subr.bf16.mxu0 %v3659_v25  ;;  %v3602_v1 = vadd.f32 %v3570_v55, %v10376_v31 }
 0xc6b   : > { %v8466_v2 = vpop.eup %8465  ;;  %7874 = vmatprep.mubr.bf16.mxu0 %v3628_v46  ;;  %v3863_v37 = vmul.f32 0.25, %v3597_v35  ;;  %v3568_v6 = vmul.f32 %v8464_v17, %v10527_v48 }
 0xc6c   : > { %v3571_v10 = vmul.f32 %v8466_v2, %v10525_v14  ;;  %v3868_v50 = vmul.f32 0.25, %v3602_v1 }
 0xc6d   : > { %3879 = vst [vmem:[%s10610_s18 + $0x8] sm:$0xff] %v3863_v37  ;;  %7873 = vmatpush3.bf16.msra.mxu0 %v3659_v25  ;;  %v3600_v23 = vadd.f32 %v3568_v6, %v10384_v62 }
 0xc6e   : > { %v8468_v26 = vpop.eup %8467  ;;  %v3603_v49 = vadd.f32 %v3571_v10, %v10394_v52  ;;  %3884 = vst [vmem:[%s10610_s18 + $0x30] sm:$0xff] %v3868_v50  ;;  %v3631_v4 = vpack.c.bf16 %v3571_v10, %v3570_v55 }
 0xc6f   : > { %v3569_v31 = vmul.f32 %v8468_v26, %v10531_v56  ;;  %v3866_v42 = vmul.f32 0.25, %v3600_v23 }
 0xc70   : > { %7875 = vmatmul.mubr.bf16.vlgmr.msra.gmra.mrb[80].mxu0 %v3629_v15  ;;  %v3869_v48 = vmul.f32 0.25, %v3603_v49 }
 0xc71   : > { %v3601_v40 = vadd.f32 %v3569_v31, %v10386_v8  ;;  %v3630_v14 = vpack.c.bf16 %v3569_v31, %v3568_v6  ;;  %3882 = vst [vmem:[%s10610_s18 + $0x20] sm:$0xff] %v3866_v42 }
 0xc72   : > { %3885 = vst [vmem:[%s10610_s18 + $0x38] sm:$0xff] %v3869_v48 }
 0xc73   : > { %7878 = vmatprep.mubr.bf16.mxu0 %v3630_v14  ;;  %v3867_v58 = vmul.f32 0.25, %v3601_v40 }
 0xc75   : > { %3883 = vst [vmem:[%s10610_s18 + $0x28] sm:$0xff] %v3867_v58 }
 0xc78   : > { %7879 = vmatmul.mubr.bf16.gmra.mrb[84].mxu0 %v3631_v4 }
 0xc94   : > { %v3517_v62 = vpop.xlane.xlu1 %3516 }
 0xc95   : > { %8469 = vrcp.f32 %v3517_v62 }
 0xc98   : > { %v3523_v53 = vpop.xlane.xlu1 %3522  ;;  %v3519_v52 = vpop.xlane.xlu0 %3518 }
 0xc99   : > { %8471 = vrcp.f32 %v3523_v53 }
 0xc9a   : > { %8473 = vrcp.f32 %v3519_v52 }
 0xc9c   : > { %v3521_v56 = vpop.xlane.xlu0 %3520 }
 0xc9d   : > { %8475 = vrcp.f32 %v3521_v56 }
 0xc9e   : > { %v3527_v60 = vpop.xlane.xlu1 %3526 }
 0xc9f   : > { %v8470_v16 = vpop.eup %8469  ;;  %8477 = vrcp.f32 %v3527_v60  ;;  %v8109_v60 = vld [vmem:[#allocation9] sm:$0xff]  }
 0xca0   : > { %v3525_v8 = vpop.xlane.xlu0 %3524  ;;  %v3572_v13 = vmul.f32 %v8470_v16, %v10546_v20  ;;  %v8110_v16 = vld [vmem:[#allocation9 + $0x8] sm:$0xff]   ;;  %7890 = vmatprep.subr.bf16.mxu0 %v8109_v60 }
 0xca1   : > { %8479 = vrcp.f32 %v3525_v8  ;;  %7891 = vmatpush3.bf16.msra.mxu0 %v8109_v60  ;;  %v8111_v8 = vld [vmem:[#allocation9 + $0x10] sm:$0xff]  }
 0xca2   : > { %v3531_v22 = vpop.xlane.xlu1 %3530  ;;  %v3604_v0 = vadd.f32 %v3572_v13, %v10408_v41  ;;  %7892 = vmatprep.subr.bf16.mxu0 %v8110_v16 }
 0xca3   : > { %v8472_v24 = vpop.eup %8471  ;;  %8481 = vrcp.f32 %v3531_v22  ;;  %v8113_v22 = vld [vmem:[#allocation9 + $0x20] sm:$0xff]  }
 0xca4   : > { %v8474_v12 = vpop.eup %8473  ;;  %v3529_v51 = vpop.xlane.xlu0 %3528  ;;  %v3870_v27 = vmul.f32 0.25, %v3604_v0  ;;  %v3575_v44 = vmul.f32 %v8472_v24, %v10549_v21  ;;  %v8114_v0 = vld [vmem:[#allocation9 + $0x28] sm:$0xff]   ;;  %v8115_v24 = vld [vmem:[#allocation9 + $0x30] sm:$0xff]  }
 0xca5   : > { %8483 = vrcp.f32 %v3529_v51  ;;  %v3573_v43 = vmul.f32 %v8474_v12, %v10551_v36  ;;  %7893 = vmatpush3.bf16.msra.mxu0 %v8110_v16  ;;  %v8116_v51 = vld [vmem:[#allocation9 + $0x38] sm:$0xff]  }
 0xca6   : > { %v2370_v38 = vpop.permute.xlu1 %2369  ;;  %3886 = vst [vmem:[%s10610_s18 + $0x40] sm:$0xff] %v3870_v27  ;;  %v3607_v20 = vadd.f32 %v3575_v44, %v10419_v3  ;;  %7894 = vmatprep.subr.bf16.mxu0 %v8111_v8 }
 0xca7   : > { %v8476_v18 = vpop.eup %8475  ;;  %2417 = vst.msk [vmem:[#allocation3 + $0x8] sm:$0xff] %vm2415_vm1, %v2370_v38  ;;  %v3605_v41 = vadd.f32 %v3573_v43, %v10430_v7  ;;  %v3632_v59 = vpack.c.bf16 %v3573_v43, %v3572_v13  ;;  %v8112_v13 = vld [vmem:[#allocation9 + $0x18] sm:$0xff]  }
 0xca8   : > { %v2368_v34 = vpop.permute.xlu0 %2367  ;;  %v3574_v55 = vmul.f32 %v8476_v18, %v10555_v29  ;;  %v3873_v25 = vmul.f32 0.25, %v3607_v20  ;;  %v13526_v20 = vld [vmem:[#allocation53_spill] sm:$0xff] }
 0xca9   : > { %v8478_v21 = vpop.eup %8477  ;;  %7882 = vmatprep.mubr.bf16.mxu0 %v3632_v59  ;;  %v3871_v35 = vmul.f32 0.25, %v3605_v41  ;;  %2416 = vst.msk [vmem:[#allocation3] sm:$0xff] %vm2415_vm1, %v2368_v34  ;;  %7895 = vmatpush3.bf16.msra.mxu0 %v8111_v8  ;;  %v13527_v59 = vld [vmem:[#allocation55_spill] sm:$0xff] }
 0xcaa   : > { %v2372_v36 = vpop.permute.xlu1 %2371  ;;  %v3606_v3 = vadd.f32 %v3574_v55, %v10396_v61  ;;  %v3633_v46 = vpack.c.bf16 %v3575_v44, %v3574_v55  ;;  %3889 = vst [vmem:[%s10610_s18 + $0x58] sm:$0xff] %v3873_v25  ;;  %v3577_v7 = vmul.f32 %v8478_v21, %v10558_v28  ;;  %7896 = vmatprep.subr.bf16.mxu0 %v8112_v13  ;;  %v13528_v55 = vld [vmem:[#allocation58_spill] sm:$0xff] }
 0xcab   : > { %v8480_v17 = vpop.eup %8479  ;;  %3887 = vst [vmem:[%s10610_s18 + $0x48] sm:$0xff] %v3871_v35  ;;  %2418 = vst.msk [vmem:[#allocation3 + $0x10] sm:$0xff] %vm2415_vm1, %v2372_v36 }
 0xcac   : > { %7883 = vmatmul.mubr.bf16.gmra.mrb[88].mxu0 %v3633_v46  ;;  %v3872_v29 = vmul.f32 0.25, %v3606_v3  ;;  %v3075_v1 = vpop.permute.xlu0 %3074  ;;  %v3576_v2 = vmul.f32 %v8480_v17, %v10561_v33  ;;  %v3609_v37 = vadd.f32 %v3577_v7, %v10435_v63  ;;  %v13531_v46 = vld [vmem:[#allocation59_spill] sm:$0xff]  ;;  %v13532_v17 = vld [vmem:[#allocation29_spill] sm:$0xff] }
 0xcad   : > { %v8482_v6 = vpop.eup %8481  ;;  %3123 = vst.msk [vmem:[#allocation3] sm:$0xff] %vm3122_vm2, %v3075_v1  ;;  %7897 = vmatpush3.bf16.msra.mxu0 %v8112_v13 }
 0xcae   : > { %3888 = vst [vmem:[%s10610_s18 + $0x50] sm:$0xff] %v3872_v29  ;;  %v2374_v61 = vpop.permute.xlu1 %2373  ;;  %v3608_v28 = vadd.f32 %v3576_v2, %v10417_v45  ;;  %v3634_v10 = vpack.c.bf16 %v3577_v7, %v3576_v2  ;;  %v3875_v50 = vmul.f32 0.25, %v3609_v37  ;;  %v3579_v23 = vmul.f32 %v8482_v6, %v10564_v19  ;;  %7898 = vmatprep.subr.bf16.mxu0 %v8113_v22  ;;  %v13533_v29 = vld [vmem:[#allocation27_spill] sm:$0xff] }
 0xcaf   : > { %v8484_v26 = vpop.eup %8483  ;;  %2419 = vst.msk [vmem:[#allocation3 + $0x18] sm:$0xff] %vm2415_vm1, %v2374_v61 }
 0xcb0   : > { %7886 = vmatprep.mubr.bf16.mxu0 %v3634_v10  ;;  %v3874_v33 = vmul.f32 0.25, %v3608_v28  ;;  %3891 = vst [vmem:[%s10610_s18 + $0x68] sm:$0xff] %v3875_v50  ;;  %v3079_v63 = vpop.permute.xlu0 %3078  ;;  %v3578_v15 = vmul.f32 %v8484_v26, %v10567_v39  ;;  %v3611_v49 = vadd.f32 %v3579_v23, %v10428_v5 }
 0xcb1   : > { %3125 = vst.msk [vmem:[#allocation3 + $0x10] sm:$0xff] %vm3122_vm2, %v3079_v63  ;;  %7899 = vmatpush3.bf16.msra.mxu0 %v8113_v22 }
 0xcb2   : > { %3890 = vst [vmem:[%s10610_s18 + $0x60] sm:$0xff] %v3874_v33  ;;  %v3077_v45 = vpop.permute.xlu1 %3076  ;;  %v3610_v31 = vadd.f32 %v3578_v15, %v10406_v47  ;;  %v3635_v19 = vpack.c.bf16 %v3579_v23, %v3578_v15  ;;  %v3877_v42 = vmul.f32 0.25, %v3611_v49  ;;  %7900 = vmatprep.subr.bf16.mxu0 %v8114_v0 }
 0xcb3   : > { %3124 = vst.msk [vmem:[#allocation3 + $0x8] sm:$0xff] %vm3122_vm2, %v3077_v45 }
 0xcb4   : > { %7887 = vmatmul.mubr.bf16.gmra.mrb[92].mxu0 %v3635_v19  ;;  %v3876_v48 = vmul.f32 0.25, %v3610_v31  ;;  %3893 = vst [vmem:[%s10610_s18 + $0x78] sm:$0xff] %v3877_v42  ;;  %v2376_v40 = vpop.permute.xlu0 %2375 }
 0xcb5   : > { %2420 = vst.msk [vmem:[#allocation3 + $0x20] sm:$0xff] %vm2415_vm1, %v2376_v40  ;;  %7901 = vmatpush3.bf16.msra.mxu0 %v8114_v0 }
 0xcb6   : > { %3892 = vst [vmem:[%s10610_s18 + $0x70] sm:$0xff] %v3876_v48  ;;  %v3081_v39 = vpop.permute.xlu1 %3080  ;;  %7902 = vmatprep.subr.bf16.mxu0 %v8115_v24 }
 0xcb7   : > { %3126 = vst.msk [vmem:[#allocation3 + $0x18] sm:$0xff] %vm3122_vm2, %v3081_v39 }
 0xcb8   : > { %v2380_v5 = vpop.permute.xlu0 %2379 }
 0xcb9   : > { %2422 = vst.msk [vmem:[#allocation3 + $0x30] sm:$0xff] %vm2415_vm1, %v2380_v5  ;;  %7903 = vmatpush3.bf16.msra.mxu0 %v8115_v24 }
 0xcba   : > { %v2378_v14 = vpop.permute.xlu1 %2377  ;;  %7904 = vmatprep.subr.bf16.mxu0 %v8116_v51 }
 0xcbb   : > { %2421 = vst.msk [vmem:[#allocation3 + $0x28] sm:$0xff] %vm2415_vm1, %v2378_v14 }
 0xcbc   : > { %v3083_v47 = vpop.permute.xlu0 %3082 }
 0xcbd   : > { %3127 = vst.msk [vmem:[#allocation3 + $0x20] sm:$0xff] %vm3122_vm2, %v3083_v47  ;;  %7905 = vmatpush3.bf16.msra.mxu0 %v8116_v51 }
 0xcbe   : > { %v2382_v58 = vpop.permute.xlu1 %2381 }
 0xcbf   : > { %2423 = vst.msk [vmem:[#allocation3 + $0x38] sm:$0xff] %vm2415_vm1, %v2382_v58 }
 0xcc0   : > { %v3087_v4 = vpop.permute.xlu0 %3086 }
 0xcc1   : > { %3129 = vst.msk [vmem:[#allocation3 + $0x30] sm:$0xff] %vm3122_vm2, %v3087_v4 }
 0xcc2   : > { %v3085_v62 = vpop.permute.xlu1 %3084 }
 0xcc3   : > { %3128 = vst.msk [vmem:[#allocation3 + $0x28] sm:$0xff] %vm3122_vm2, %v3085_v62 }
 0xcc4   : > { %v2384_v53 = vpop.permute.xlu0 %2383 }
 0xcc5   : > { %2424 = vst.msk [vmem:[#allocation3 + $0x40] sm:$0xff] %vm2415_vm1, %v2384_v53 }
 0xcc6   : > { %v3089_v52 = vpop.permute.xlu1 %3088 }
 0xcc7   : > { %3130 = vst.msk [vmem:[#allocation3 + $0x38] sm:$0xff] %vm3122_vm2, %v3089_v52 }
 0xcca   : > { %v2386_v56 = vpop.permute.xlu1 %2385 }
 0xccb   : > { %2425 = vst.msk [vmem:[#allocation3 + $0x48] sm:$0xff] %vm2415_vm1, %v2386_v56 }
 0xd43   : > { %v7876_v12 = vpop.f32.mrb[80].mxu0 }
 0xd44   : > { %3785 = vrot.lane.b32.xlu0 %v7876_v12, %s9052_s25  ;;  %v3702_v27 = vpop.f32.mrb[81].mxu0 }
 0xd45   : > { %v7877_v44 = vpop.f32.mrb[82].mxu0 }
 0xd46   : > { %3787 = vrot.lane.b32.xlu1 %v7877_v44, %s9052_s25  ;;  %v3705_v43 = vpop.f32.mrb[83].mxu0 }
 0xd48   : > { %3781 = vrot.lane.b32.xlu0 %v3702_v27, %s9052_s25 }
 0xd4a   : > { %3783 = vrot.lane.b32.xlu1 %v3705_v43, %s9052_s25 }
 0xd4b   : > { %v7880_v38 = vpop.f32.mrb[84].mxu0 }
 0xd4c   : > { %2387 = vrot.lane.b32.xlu0 %v13526_v20, %s9054_s23  ;;  %v3718_v18 = vpop.f32.mrb[85].mxu0 }
 0xd4d   : > { %v7881_v41 = vpop.f32.mrb[86].mxu0 }
 0xd4e   : > { %2389 = vrot.lane.b32.xlu1 %v13527_v59, %s9054_s23  ;;  %v3721_v34 = vpop.f32.mrb[87].mxu0 }
 0xd50   : > { %3090 = vrot.lane.b32.xlu0 %v10464_v11, %s9053_s3  ;;  %v13529_v11 = vld [vmem:[#allocation60_spill] sm:$0xff] }
 0xd52   : > { %3092 = vrot.lane.b32.xlu1 %v10468_v57, %s9053_s3 }
 0xd54   : > { %3793 = vrot.lane.b32.xlu0 %v7880_v38, %s9052_s25 }
 0xd56   : > { %3795 = vrot.lane.b32.xlu1 %v7881_v41, %s9052_s25 }
 0xd58   : > { %3789 = vrot.lane.b32.xlu0 %v3718_v18, %s9052_s25 }
 0xd5a   : > { %3791 = vrot.lane.b32.xlu1 %v3721_v34, %s9052_s25 }
 0xd5c   : > { %3094 = vrot.lane.b32.xlu0 %v10462_v9, %s9053_s3 }
 0xd5e   : > { %3096 = vrot.lane.b32.xlu1 %v10466_v32, %s9053_s3  ;;  %v13530_v32 = vld [vmem:[#allocation57_spill] sm:$0xff] }
 0xd60   : > { %2391 = vrot.lane.b32.xlu0 %v13528_v55, %s9054_s23 }
 0xd62   : > { %2393 = vrot.lane.b32.xlu1 %v13529_v11, %s9054_s23 }
 0xd7f   : > { %v7884_v57 = vpop.f32.mrb[88].mxu0 }
 0xd80   : > { %3801 = vrot.lane.b32.xlu0 %v7884_v57, %s9052_s25  ;;  %v3734_v25 = vpop.f32.mrb[89].mxu0 }
 0xd81   : > { %v7885_v21 = vpop.f32.mrb[90].mxu0 }
 0xd82   : > { %3803 = vrot.lane.b32.xlu1 %v7885_v21, %s9052_s25  ;;  %v3737_v35 = vpop.f32.mrb[91].mxu0  ;;  %v13534_v21 = vmov 0  }
 0xd84   : > { %3797 = vrot.lane.b32.xlu0 %v3734_v25, %s9052_s25 }
 0xd86   : > { %3799 = vrot.lane.b32.xlu1 %v3737_v35, %s9052_s25  ;;  %v10753_v35 = vld [vmem:[%s13366_s5] ss:$0 sm:$0xff] }
 0xd87   : > { %v7888_v9 = vpop.f32.mrb[92].mxu0 }
 0xd88   : > { %2395 = vrot.lane.b32.xlu0 %v13530_v32, %s9054_s23  ;;  %v3750_v36 = vpop.f32.mrb[93].mxu0 }
 0xd89   : > { %v7889_v3 = vpop.f32.mrb[94].mxu0 }
 0xd8a   : > { %2397 = vrot.lane.b32.xlu1 %v13531_v46, %s9054_s23  ;;  %v3753_v7 = vpop.f32.mrb[95].mxu0  ;;  %s13721_s23 = sld [smem:[#allocation78_spill]] }
 0xd8c   : > { %3098 = vrot.lane.b32.xlu0 %v10472_v30, %s9053_s3 }
 0xd8e   : > { %3100 = vrot.lane.b32.xlu1 %v10476_v54, %s9053_s3 }
 0xd90   : > { %3102 = vrot.lane.b32.xlu0 %v13532_v17, %s9053_s3  ;;  %v4087_v17 = vld [vmem:[%s9345_s17 + $0x8] sm:$0xff] }
 0xd92   : > { %3104 = vrot.lane.b32.xlu1 %v13533_v29, %s9053_s3 }
 0xd94   : > { %3805 = vrot.lane.b32.xlu0 %v3750_v36, %s9052_s25  ;;  %v4086_v36 = vld [vmem:[%s9345_s17] sm:$0xff] }
 0xd96   : > { %3807 = vrot.lane.b32.xlu1 %v3753_v7, %s9052_s25 }
 0xd98   : > { %3809 = vrot.lane.b32.xlu0 %v7888_v9, %s9052_s25 }
 0xd9a   : > { %3811 = vrot.lane.b32.xlu1 %v7889_v3, %s9052_s25 }
 0xdb6   : > { %v3786_v1 = vpop.permute.xlu0 %3785 }
 0xdb7   : > { %3832 = vst.msk [vmem:[#allocation3 + $0x10] sm:$0xff] %vm3829_vm3, %v3786_v1 }
 0xdb8   : > { %v3788_v30 = vpop.permute.xlu1 %3787 }
 0xdb9   : > { %3833 = vst.msk [vmem:[#allocation3 + $0x18] sm:$0xff] %vm3829_vm3, %v3788_v30 }
 0xdba   : > { %v3782_v54 = vpop.permute.xlu0 %3781 }
 0xdbb   : > { %3830 = vst.msk [vmem:[#allocation3] sm:$0xff] %vm3829_vm3, %v3782_v54  ;;  %v4088_v54 = vld [vmem:[%s9345_s17 + $0x10] sm:$0xff] }
 0xdbc   : > { %v3784_v2 = vpop.permute.xlu1 %3783 }
 0xdbd   : > { %3831 = vst.msk [vmem:[#allocation3 + $0x8] sm:$0xff] %vm3829_vm3, %v3784_v2 }
 0xdbe   : > { %v2388_v37 = vpop.permute.xlu0 %2387  ;;  %v3896_v33 = vld [vmem:[#allocation3 + $0x10] sm:$0xff] }
 0xdbf   : > { %2426 = vst.msk [vmem:[#allocation3 + $0x50] sm:$0xff] %vm2415_vm1, %v2388_v37 }
 0xdc0   : > { %v2390_v6 = vpop.permute.xlu1 %2389  ;;  %v3897_v28 = vld [vmem:[#allocation3 + $0x18] sm:$0xff] }
 0xdc1   : > { %2427 = vst.msk [vmem:[#allocation3 + $0x58] sm:$0xff] %vm2415_vm1, %v2390_v6  ;;  %v3911_v15 = vpack.c.bf16 %v3897_v28, %v3896_v33 }
 0xdc2   : > { %v3091_v61 = vpop.permute.xlu0 %3090  ;;  %v3894_v50 = vld [vmem:[#allocation3] sm:$0xff] }
 0xdc3   : > { %3131 = vst.msk [vmem:[#allocation3 + $0x40] sm:$0xff] %vm3122_vm2, %v3091_v61  ;;  %v4089_v61 = vld [vmem:[%s9345_s17 + $0x18] sm:$0xff] }
 0xdc4   : > { %v3093_v10 = vpop.permute.xlu1 %3092  ;;  %v3895_v23 = vld [vmem:[#allocation3 + $0x8] sm:$0xff] }
 0xdc5   : > { %3132 = vst.msk [vmem:[#allocation3 + $0x48] sm:$0xff] %vm3122_vm2, %v3093_v10  ;;  %v3910_v26 = vpack.c.bf16 %v3895_v23, %v3894_v50  ;;  %v4090_v23 = vld [vmem:[%s9345_s17 + $0x20] sm:$0xff] }
 0xdc6   : > { %v3794_v63 = vpop.permute.xlu0 %3793 }
 0xdc7   : > { %3836 = vst.msk [vmem:[#allocation3 + $0x30] sm:$0xff] %vm3829_vm3, %v3794_v63  ;;  %7906 = vmatprep.mubr.bf16.mxu0 %v3910_v26 }
 0xdc8   : > { %v3796_v49 = vpop.permute.xlu1 %3795  ;;  %7907 = vmatmul.mubr.bf16.vlgmr.msra.gmra.mrb[96].mxu0 %v3911_v15  ;;  %v4091_v15 = vld [vmem:[%s9345_s17 + $0x28] sm:$0xff] }
 0xdc9   : > { %3837 = vst.msk [vmem:[#allocation3 + $0x38] sm:$0xff] %vm3829_vm3, %v3796_v49 }
 0xdca   : > { %v3790_v45 = vpop.permute.xlu0 %3789 }
 0xdcb   : > { %3834 = vst.msk [vmem:[#allocation3 + $0x20] sm:$0xff] %vm3829_vm3, %v3790_v45 }
 0xdcc   : > { %v3792_v31 = vpop.permute.xlu1 %3791 }
 0xdcd   : > { %3835 = vst.msk [vmem:[#allocation3 + $0x28] sm:$0xff] %vm3829_vm3, %v3792_v31 }
 0xdce   : > { %v3095_v19 = vpop.permute.xlu0 %3094  ;;  %v3900_v58 = vld [vmem:[#allocation3 + $0x30] sm:$0xff] }
 0xdcf   : > { %3133 = vst.msk [vmem:[#allocation3 + $0x50] sm:$0xff] %vm3122_vm2, %v3095_v19  ;;  %v4092_v19 = vld [vmem:[%s9345_s17 + $0x30] sm:$0xff] }
 0xdd0   : > { %v3097_v42 = vpop.permute.xlu1 %3096  ;;  %v3901_v40 = vld [vmem:[#allocation3 + $0x38] sm:$0xff] }
 0xdd1   : > { %3134 = vst.msk [vmem:[#allocation3 + $0x58] sm:$0xff] %vm3122_vm2, %v3097_v42  ;;  %v3913_v4 = vpack.c.bf16 %v3901_v40, %v3900_v58  ;;  %v4093_v40 = vld [vmem:[%s9345_s17 + $0x38] sm:$0xff]  ;;  %v4094_v58 = vld [vmem:[%s9345_s17 + $0x40] sm:$0xff] }
 0xdd2   : > { %v2392_v48 = vpop.permute.xlu0 %2391  ;;  %v3898_v5 = vld [vmem:[#allocation3 + $0x20] sm:$0xff] }
 0xdd3   : > { %2428 = vst.msk [vmem:[#allocation3 + $0x60] sm:$0xff] %vm2415_vm1, %v2392_v48 }
 0xdd4   : > { %v2394_v39 = vpop.permute.xlu1 %2393  ;;  %v3899_v14 = vld [vmem:[#allocation3 + $0x28] sm:$0xff] }
 0xdd5   : > { %2429 = vst.msk [vmem:[#allocation3 + $0x68] sm:$0xff] %vm2415_vm1, %v2394_v39  ;;  %v3912_v47 = vpack.c.bf16 %v3899_v14, %v3898_v5 }
 0xdd7   : > { %7910 = vmatprep.mubr.bf16.mxu0 %v3912_v47 }
 0xdd8   : > { %7911 = vmatmul.mubr.bf16.gmra.mrb[100].mxu0 %v3913_v4 }
 0xdf2   : > { %v3802_v62 = vpop.permute.xlu0 %3801 }
 0xdf3   : > { %3840 = vst.msk [vmem:[#allocation3 + $0x50] sm:$0xff] %vm3829_vm3, %v3802_v62 }
 0xdf4   : > { %v3804_v53 = vpop.permute.xlu1 %3803 }
 0xdf5   : > { %3841 = vst.msk [vmem:[#allocation3 + $0x58] sm:$0xff] %vm3829_vm3, %v3804_v53 }
 0xdf6   : > { %v3798_v52 = vpop.permute.xlu0 %3797 }
 0xdf7   : > { %3838 = vst.msk [vmem:[#allocation3 + $0x40] sm:$0xff] %vm3829_vm3, %v3798_v52  ;;  %v4095_v52 = vld [vmem:[%s9345_s17 + $0x48] sm:$0xff] }
 0xdf8   : > { %v3800_v56 = vpop.permute.xlu1 %3799 }
 0xdf9   : > { %3839 = vst.msk [vmem:[#allocation3 + $0x48] sm:$0xff] %vm3829_vm3, %v3800_v56 }
 0xdfa   : > { %v2396_v60 = vpop.permute.xlu0 %2395  ;;  %v3904_v51 = vld [vmem:[#allocation3 + $0x50] sm:$0xff] }
 0xdfb   : > { %2430 = vst.msk [vmem:[#allocation3 + $0x70] sm:$0xff] %vm2415_vm1, %v2396_v60 }
 0xdfc   : > { %v2398_v16 = vpop.permute.xlu1 %2397  ;;  %v3905_v13 = vld [vmem:[#allocation3 + $0x58] sm:$0xff] }
 0xdfd   : > { %2431 = vst.msk [vmem:[#allocation3 + $0x78] sm:$0xff] %vm2415_vm1, %v2398_v16  ;;  %v3915_v44 = vpack.c.bf16 %v3905_v13, %v3904_v51 }
 0xdfe   : > { %v3099_v8 = vpop.permute.xlu0 %3098  ;;  %v3902_v0 = vld [vmem:[#allocation3 + $0x40] sm:$0xff] }
 0xdff   : > { %3135 = vst.msk [vmem:[#allocation3 + $0x60] sm:$0xff] %vm3122_vm2, %v3099_v8  ;;  %v4096_v8 = vld [vmem:[%s9345_s17 + $0x50] sm:$0xff] }
 0xe00   : > { %v3101_v22 = vpop.permute.xlu1 %3100  ;;  %v3903_v24 = vld [vmem:[#allocation3 + $0x48] sm:$0xff] }
 0xe01   : > { %3136 = vst.msk [vmem:[#allocation3 + $0x68] sm:$0xff] %vm3122_vm2, %v3101_v22  ;;  %v3914_v12 = vpack.c.bf16 %v3903_v24, %v3902_v0  ;;  %v4097_v0 = vld [vmem:[%s9345_s17 + $0x58] sm:$0xff] }
 0xe02   : > { %v3103_v27 = vpop.permute.xlu0 %3102 }
 0xe03   : > { %3137 = vst.msk [vmem:[#allocation3 + $0x70] sm:$0xff] %vm3122_vm2, %v3103_v27  ;;  %7914 = vmatprep.mubr.bf16.mxu0 %v3914_v12 }
 0xe04   : > { %v3105_v43 = vpop.permute.xlu1 %3104  ;;  %7915 = vmatmul.mubr.bf16.gmra.mrb[104].mxu0 %v3915_v44  ;;  %v4098_v44 = vld [vmem:[%s9345_s17 + $0x60] sm:$0xff] }
 0xe05   : > { %3138 = vst.msk [vmem:[#allocation3 + $0x78] sm:$0xff] %vm3122_vm2, %v3105_v43 }
 0xe06   : > { %v3806_v38 = vpop.permute.xlu0 %3805 }
 0xe07   : > { %3842 = vst.msk [vmem:[#allocation3 + $0x60] sm:$0xff] %vm3829_vm3, %v3806_v38 }
 0xe08   : > { %v3808_v20 = vpop.permute.xlu1 %3807 }
 0xe09   : > { %3843 = vst.msk [vmem:[#allocation3 + $0x68] sm:$0xff] %vm3829_vm3, %v3808_v20 }
 0xe0a   : > { %v3810_v18 = vpop.permute.xlu0 %3809 }
 0xe0b   : > { %3844 = vst.msk [vmem:[#allocation3 + $0x70] sm:$0xff] %vm3829_vm3, %v3810_v18  ;;  %v4099_v18 = vld [vmem:[%s9345_s17 + $0x68] sm:$0xff] }
 0xe0c   : > { %v3812_v41 = vpop.permute.xlu1 %3811 }
 0xe0d   : > { %3845 = vst.msk [vmem:[#allocation3 + $0x78] sm:$0xff] %vm3829_vm3, %v3812_v41 }
 0xe0e   : > { %v3906_v59 = vld [vmem:[#allocation3 + $0x60] sm:$0xff] }
 0xe10   : > { %v3907_v34 = vld [vmem:[#allocation3 + $0x68] sm:$0xff] }
 0xe11   : > { %v3916_v55 = vpack.c.bf16 %v3907_v34, %v3906_v59 }
 0xe12   : > { %v3908_v11 = vld [vmem:[#allocation3 + $0x70] sm:$0xff] }
 0xe13   : > { %7918 = vmatprep.mubr.bf16.mxu0 %v3916_v55  ;;  %v4100_v55 = vld [vmem:[%s9345_s17 + $0x70] sm:$0xff] }
 0xe14   : > { %v3909_v57 = vld [vmem:[#allocation3 + $0x78] sm:$0xff] }
 0xe15   : > { %v3917_v25 = vpack.c.bf16 %v3909_v57, %v3908_v11 }
 0xe17   : > { %7919 = vmatmul.mubr.bf16.gmra.mrb[108].mxu0 %v3917_v25  ;;  %v4101_v25 = vld [vmem:[%s9345_s17 + $0x78] sm:$0xff]  ;;  %s13250_s17 = scalar_lea.hbm %s13733_s9, %s7312_s11 }
 0xe18   : > { %4707 = vmatprep.mubr.bf16.mxu0 %v13534_v21 }
 0xe9b   : > { %v7908_v9 = vpop.f32.mrb[96].mxu0 }
 0xe9c   : > { %v4023_v32 = vpop.f32.mrb[97].mxu0  ;;  %v4032_v29 = vadd.f32 %v7908_v9, %v10753_v35 }
 0xe9d   : > { %v4024_v3 = vadd.f32 %v10753_v35, %v4023_v32  ;;  %v7909_v46 = vpop.f32.mrb[98].mxu0 }
 0xe9e   : > { %v4026_v7 = vpop.f32.mrb[99].mxu0  ;;  %v10766_v37 = vadd.f32 %v4088_v54, %v4032_v29  ;;  %v4035_v6 = vadd.f32 %v7909_v46, %v10753_v35  ;;  %v8120_v46 = vld [vmem:[#allocation10 + $0x8] ss:$16 sps:$4 sm:$0xff]   ;;  %v8123_v29 = vld [vmem:[#allocation10 + $0x20] ss:$16 sps:$4 sm:$0xff]  }
 0xe9f   : > { %v10759_v1 = vadd.f32 %v4086_v36, %v4024_v3  ;;  %v4027_v30 = vadd.f32 %v10753_v35, %v4026_v7  ;;  %v8117_v36 = vld [vmem:[#allocation10] ss:$16 sps:$4 sm:$0xff]   ;;  %v8119_v3 = vld [vmem:[#allocation10 + $0x4] ss:$16 sps:$4 sm:$0xff]   ;;  %v8122_v7 = vld [vmem:[#allocation10 + $0xc] ss:$16 sps:$4 sm:$0xff]  }
 0xea0   : > { %13537 = vst [vmem:[#allocation34_spill] sm:$0xff] %v10766_v37  ;;  %v10772_v28 = vadd.f32 %v4089_v61, %v4035_v6  ;;  %4562 = vmatprep.subr.bf16.mxu1 %v8119_v3  ;;  %4675 = vmatprep.subr.bf16.mxu0 %v8122_v7  ;;  %v8143_v3 = vld [vmem:[#allocation10 + $0x84] ss:$16 sps:$4 sm:$0xff]   ;;  %v8141_v7 = vld [vmem:[#allocation10 + $0x80] ss:$16 sps:$4 sm:$0xff]  }
 0xea1   : > { %13535 = vst [vmem:[#allocation28_spill] sm:$0xff] %v10759_v1  ;;  %v10763_v2 = vadd.f32 %v4087_v17, %v4027_v30  ;;  %4118 = vadd.xlane.f32.xlu0 %v10759_v1  ;;  %v8128_v17 = vld [vmem:[#allocation10 + $0x2c] ss:$16 sps:$4 sm:$0xff]   ;;  %4563 = vmatpush1.bf16.msra.mxu1 %v8117_v36  ;;  %v8126_v30 = vld [vmem:[#allocation10 + $0x28] ss:$16 sps:$4 sm:$0xff]  }
 0xea2   : > { %13538 = vst [vmem:[#allocation38_spill] sm:$0xff] %v10772_v28  ;;  %4676 = vmatpush1.bf16.msra.mxu0 %v8120_v46  ;;  %v8138_v36 = vld [vmem:[#allocation10 + $0x68] ss:$16 sps:$4 sm:$0xff]   ;;  %v8146_v46 = vld [vmem:[#allocation10 + $0x8c] ss:$16 sps:$4 sm:$0xff]  }
 0xea3   : > { %13536 = vst [vmem:[#allocation30_spill] sm:$0xff] %v10763_v2  ;;  %4120 = vadd.xlane.f32.xlu1 %v10763_v2  ;;  %4677 = vmatprep.subr.bf16.mxu0 %v8128_v17  ;;  %v8149_v17 = vld [vmem:[#allocation10 + $0xa4] ss:$16 sps:$4 sm:$0xff]  }
 0xea5   : > { %4122 = vadd.xlane.f32.xlu0 %v10766_v37 }
 0xea6   : > { %4678 = vmatpush1.bf16.msra.mxu0 %v8126_v30  ;;  %v8147_v30 = vld [vmem:[#allocation10 + $0xa0] ss:$16 sps:$4 sm:$0xff]  }
 0xea9   : > { %4124 = vadd.xlane.f32.xlu0 %v10772_v28 }
 0xeab   : > { %v7912_v10 = vpop.f32.mrb[100].mxu0 }
 0xeac   : > { %v4039_v50 = vpop.f32.mrb[101].mxu0  ;;  %v4048_v49 = vadd.f32 %v7912_v10, %v10753_v35 }
 0xead   : > { %v4040_v26 = vadd.f32 %v10753_v35, %v4039_v50  ;;  %v7913_v33 = vpop.f32.mrb[102].mxu0 }
 0xeae   : > { %v4042_v63 = vpop.f32.mrb[103].mxu0  ;;  %v4051_v42 = vadd.f32 %v7913_v33, %v10753_v35  ;;  %v10788_v39 = vadd.f32 %v4092_v19, %v4048_v49 }
 0xeaf   : > { %v10779_v45 = vadd.f32 %v4090_v23, %v4040_v26  ;;  %v4043_v31 = vadd.f32 %v10753_v35, %v4042_v63 }
 0xeb0   : > { %13541 = vst [vmem:[#allocation35_spill] sm:$0xff] %v10788_v39  ;;  %v10791_v5 = vadd.f32 %v4093_v40, %v4051_v42 }
 0xeb1   : > { %13539 = vst [vmem:[#allocation32_spill] sm:$0xff] %v10779_v45  ;;  %v10784_v48 = vadd.f32 %v4091_v15, %v4043_v31  ;;  %4126 = vadd.xlane.f32.xlu0 %v10779_v45 }
 0xeb2   : > { %13542 = vst [vmem:[#allocation42_spill] sm:$0xff] %v10791_v5 }
 0xeb3   : > { %13540 = vst [vmem:[#allocation40_spill] sm:$0xff] %v10784_v48  ;;  %4128 = vadd.xlane.f32.xlu1 %v10784_v48 }
 0xeb5   : > { %4130 = vadd.xlane.f32.xlu0 %v10788_v39 }
 0xeb7   : > { %4132 = vadd.xlane.f32.xlu1 %v10791_v5 }
 0xed7   : > { %v7916_v14 = vpop.f32.mrb[104].mxu0 }
 0xed8   : > { %v4055_v47 = vpop.f32.mrb[105].mxu0  ;;  %v4064_v56 = vadd.f32 %v7916_v14, %v10753_v35 }
 0xed9   : > { %v4056_v4 = vadd.f32 %v10753_v35, %v4055_v47  ;;  %v7917_v62 = vpop.f32.mrb[106].mxu0 }
 0xeda   : > { %v4058_v53 = vpop.f32.mrb[107].mxu0  ;;  %v4067_v13 = vadd.f32 %v7917_v62, %v10753_v35  ;;  %v10808_v24 = vadd.f32 %v4096_v8, %v4064_v56 }
 0xedb   : > { %v10799_v60 = vadd.f32 %v4094_v58, %v4056_v4  ;;  %v4059_v16 = vadd.f32 %v10753_v35, %v4058_v53 }
 0xedc   : > { %13545 = vst [vmem:[#allocation37_spill] sm:$0xff] %v10808_v24  ;;  %v10811_v12 = vadd.f32 %v4097_v0, %v4067_v13  ;;  %v8131_v0 = vld [vmem:[#allocation10 + $0x44] ss:$16 sps:$4 sm:$0xff]  }
 0xedd   : > { %13543 = vst [vmem:[#allocation31_spill] sm:$0xff] %v10799_v60  ;;  %v10804_v22 = vadd.f32 %v4095_v52, %v4059_v16  ;;  %4134 = vadd.xlane.f32.xlu0 %v10799_v60 }
 0xede   : > { %13546 = vst [vmem:[#allocation44_spill] sm:$0xff] %v10811_v12 }
 0xedf   : > { %13544 = vst [vmem:[#allocation39_spill] sm:$0xff] %v10804_v22  ;;  %4136 = vadd.xlane.f32.xlu1 %v10804_v22 }
 0xee1   : > { %4138 = vadd.xlane.f32.xlu0 %v10808_v24 }
 0xee3   : > { %4140 = vadd.xlane.f32.xlu1 %v10811_v12 }
 0xeea   : > { %v7920_v51 = vpop.f32.mrb[108].mxu0 }
 0xeeb   : > { %v4071_v27 = vpop.f32.mrb[109].mxu0  ;;  %v4080_v41 = vadd.f32 %v7920_v51, %v10753_v35  ;;  %v8134_v51 = vld [vmem:[#allocation10 + $0x4c] ss:$16 sps:$4 sm:$0xff]  }
 0xeec   : > { %v4072_v43 = vadd.f32 %v10753_v35, %v4071_v27  ;;  %v7921_v38 = vpop.f32.mrb[110].mxu0  ;;  %4679 = vmatprep.subr.bf16.mxu0 %v8134_v51 }
 0xeed   : > { %v4074_v20 = vpop.f32.mrb[111].mxu0  ;;  %v4083_v11 = vadd.f32 %v7921_v38, %v10753_v35  ;;  %v10828_v9 = vadd.f32 %v4100_v55, %v4080_v41  ;;  %v8129_v38 = vld [vmem:[#allocation10 + $0x40] ss:$16 sps:$4 sm:$0xff]   ;;  %v8140_v55 = vld [vmem:[#allocation10 + $0x6c] ss:$16 sps:$4 sm:$0xff]  }
 0xeee   : > { %v10819_v59 = vadd.f32 %v4098_v44, %v4072_v43  ;;  %v4075_v34 = vadd.f32 %v10753_v35, %v4074_v20  ;;  %v8125_v35 = vld [vmem:[#allocation10 + $0x24] ss:$16 sps:$4 sm:$0xff]   ;;  %v8132_v20 = vld [vmem:[#allocation10 + $0x48] ss:$16 sps:$4 sm:$0xff]  }
 0xeef   : > { %13549 = vst [vmem:[#allocation36_spill] sm:$0xff] %v10828_v9  ;;  %v10831_v32 = vadd.f32 %v4101_v25, %v4083_v11  ;;  %4564 = vmatprep.subr.bf16.mxu1 %v8125_v35  ;;  %4680 = vmatpush1.bf16.msra.mxu0 %v8132_v20  ;;  %v8135_v25 = vld [vmem:[#allocation10 + $0x60] ss:$16 sps:$4 sm:$0xff]   ;;  %v8144_v35 = vld [vmem:[#allocation10 + $0x88] ss:$16 sps:$4 sm:$0xff]  }
 0xef0   : > { %13547 = vst [vmem:[#allocation33_spill] sm:$0xff] %v10819_v59  ;;  %v10824_v57 = vadd.f32 %v4099_v18, %v4075_v34  ;;  %4142 = vadd.xlane.f32.xlu0 %v10819_v59  ;;  %4565 = vmatpush1.bf16.msra.mxu1 %v8123_v29  ;;  %v8137_v34 = vld [vmem:[#allocation10 + $0x64] ss:$16 sps:$4 sm:$0xff]   ;;  %v8152_v29 = vld [vmem:[#allocation10 + $0xac] ss:$16 sps:$4 sm:$0xff]  }
 0xef1   : > { %13550 = vst [vmem:[#allocation43_spill] sm:$0xff] %v10831_v32  ;;  %4566 = vmatprep.subr.bf16.mxu1 %v8131_v0  ;;  %4681 = vmatprep.subr.bf16.mxu0 %v8140_v55 }
 0xef2   : > { %13548 = vst [vmem:[#allocation41_spill] sm:$0xff] %v10824_v57  ;;  %4144 = vadd.xlane.f32.xlu1 %v10824_v57 }
 0xef3   : > { %4682 = vmatpush1.bf16.msra.mxu0 %v8138_v36 }
 0xef4   : > { %4146 = vadd.xlane.f32.xlu0 %v10828_v9  ;;  %4567 = vmatpush1.bf16.msra.mxu1 %v8129_v38 }
 0xef5   : > { %4568 = vmatprep.subr.bf16.mxu1 %v8137_v34  ;;  %4683 = vmatprep.subr.bf16.mxu0 %v8146_v46 }
 0xef6   : > { %4148 = vadd.xlane.f32.xlu1 %v10831_v32 }
 0xef7   : > { %4684 = vmatpush1.bf16.msra.mxu0 %v8144_v35 }
 0xef8   : > { %4569 = vmatpush1.bf16.msra.mxu1 %v8135_v25  ;;  %4685 = vmatprep.subr.bf16.mxu0 %v8152_v29 }
 0xef9   : > { %4570 = vmatprep.subr.bf16.mxu1 %v8143_v3 }
 0xefc   : > { %4571 = vmatpush1.bf16.msra.mxu1 %v8141_v7 }
 0xefd   : > { %4572 = vmatprep.subr.bf16.mxu1 %v8149_v17 }
 0xf00   : > { %4573 = vmatpush1.bf16.msra.mxu1 %v8147_v30 }
 0xf2e   : > { %v4119_v54 = vpop.xlane.xlu0 %4118 }
 0xf2f   : > { %v4150_v6 = vmul.f32 0.0078125, %v4119_v54  ;;  %v8150_v54 = vld [vmem:[#allocation10 + $0xa8] ss:$16 sps:$4 sm:$0xff]  }
 0xf30   : > { %v4121_v61 = vpop.xlane.xlu1 %4120  ;;  %4686 = vmatpush1.bf16.msra.mxu0 %v8150_v54 }
 0xf31   : > { %v10836_v10 = vsub.f32 %v10759_v1, %v4150_v6  ;;  %v4151_v50 = vmul.f32 0.0078125, %v4121_v61  ;;  %v8155_v6 = vld [vmem:[#allocation10 + $0xc4] ss:$16 sps:$4 sm:$0xff]   ;;  %v8158_v61 = vld [vmem:[#allocation10 + $0xcc] ss:$16 sps:$4 sm:$0xff]  }
 0xf32   : > { %v4123_v23 = vpop.xlane.xlu0 %4122  ;;  %4574 = vmatprep.subr.bf16.mxu1 %v8155_v6  ;;  %4687 = vmatprep.subr.bf16.mxu0 %v8158_v61 }
 0xf33   : > { %v10839_v26 = vsub.f32 %v10763_v2, %v4151_v50  ;;  %v4152_v33 = vmul.f32 0.0078125, %v4123_v23  ;;  %v4182_v63 = vmul.f32 %v10836_v10, %v10836_v10  ;;  %v8153_v50 = vld [vmem:[#allocation10 + $0xc0] ss:$16 sps:$4 sm:$0xff]   ;;  %v8156_v23 = vld [vmem:[#allocation10 + $0xc8] ss:$16 sps:$4 sm:$0xff]  }
 0xf34   : > { %4575 = vmatpush1.bf16.msra.mxu1 %v8153_v50  ;;  %4688 = vmatpush1.bf16.msra.mxu0 %v8156_v23 }
 0xf35   : > { %v10844_v15 = vsub.f32 %v10766_v37, %v4152_v33  ;;  %4198 = vadd.xlane.f32.xlu0 %v4182_v63  ;;  %v4183_v49 = vmul.f32 %v10839_v26, %v10839_v26  ;;  %v8161_v33 = vld [vmem:[#allocation10 + $0xe4] ss:$16 sps:$4 sm:$0xff]   ;;  %v8164_v63 = vld [vmem:[#allocation10 + $0xec] ss:$16 sps:$4 sm:$0xff]  }
 0xf36   : > { %v4125_v31 = vpop.xlane.xlu0 %4124  ;;  %4576 = vmatprep.subr.bf16.mxu1 %v8161_v33  ;;  %4689 = vmatprep.subr.bf16.mxu0 %v8164_v63 }
 0xf37   : > { %v4153_v19 = vmul.f32 0.0078125, %v4125_v31  ;;  %4200 = vadd.xlane.f32.xlu1 %v4183_v49  ;;  %v4184_v42 = vmul.f32 %v10844_v15, %v10844_v15  ;;  %v8159_v49 = vld [vmem:[#allocation10 + $0xe0] ss:$16 sps:$4 sm:$0xff]   ;;  %v8162_v31 = vld [vmem:[#allocation10 + $0xe8] ss:$16 sps:$4 sm:$0xff]  }
 0xf38   : > { %4577 = vmatpush1.bf16.msra.mxu1 %v8159_v49  ;;  %4690 = vmatpush1.bf16.msra.mxu0 %v8162_v31 }
 0xf39   : > { %v10851_v40 = vsub.f32 %v10772_v28, %v4153_v19  ;;  %4202 = vadd.xlane.f32.xlu0 %v4184_v42  ;;  %v8166_v28 = vld [vmem:[#allocation12] sm:$0xff]  }
 0xf3b   : > { %v4185_v14 = vmul.f32 %v10851_v40, %v10851_v40 }
 0xf3d   : > { %4204 = vadd.xlane.f32.xlu1 %v4185_v14 }
 0xf3e   : > { %v4127_v47 = vpop.xlane.xlu0 %4126 }
 0xf3f   : > { %v4154_v58 = vmul.f32 0.0078125, %v4127_v47 }
 0xf40   : > { %v4129_v4 = vpop.xlane.xlu1 %4128 }
 0xf41   : > { %v10856_v62 = vsub.f32 %v10779_v45, %v4154_v58  ;;  %v4155_v53 = vmul.f32 0.0078125, %v4129_v4 }
 0xf42   : > { %v4131_v52 = vpop.xlane.xlu0 %4130 }
 0xf43   : > { %v10859_v56 = vsub.f32 %v10784_v48, %v4155_v53  ;;  %v4156_v16 = vmul.f32 0.0078125, %v4131_v52  ;;  %v4186_v8 = vmul.f32 %v10856_v62, %v10856_v62 }
 0xf44   : > { %v4133_v13 = vpop.xlane.xlu1 %4132 }
 0xf45   : > { %v10864_v27 = vsub.f32 %v10788_v39, %v4156_v16  ;;  %v4157_v44 = vmul.f32 0.0078125, %v4133_v13  ;;  %4206 = vadd.xlane.f32.xlu0 %v4186_v8  ;;  %v4187_v43 = vmul.f32 %v10859_v56, %v10859_v56 }
 0xf47   : > { %v10869_v18 = vsub.f32 %v10791_v5, %v4157_v44  ;;  %4208 = vadd.xlane.f32.xlu1 %v4187_v43  ;;  %v4188_v41 = vmul.f32 %v10864_v27, %v10864_v27 }
 0xf49   : > { %4210 = vadd.xlane.f32.xlu0 %v4188_v41  ;;  %v4189_v11 = vmul.f32 %v10869_v18, %v10869_v18 }
 0xf4b   : > { %4212 = vadd.xlane.f32.xlu1 %v4189_v11 }
 0xf6a   : > { %v4135_v19 = vpop.xlane.xlu0 %4134 }
 0xf6b   : > { %v4158_v42 = vmul.f32 0.0078125, %v4135_v19 }
 0xf6c   : > { %v4137_v14 = vpop.xlane.xlu1 %4136 }
 0xf6d   : > { %v10876_v47 = vsub.f32 %v10799_v60, %v4158_v42  ;;  %v4159_v58 = vmul.f32 0.0078125, %v4137_v14 }
 0xf6e   : > { %v4139_v4 = vpop.xlane.xlu0 %4138 }
 0xf6f   : > { %v10879_v53 = vsub.f32 %v10804_v22, %v4159_v58  ;;  %v4160_v52 = vmul.f32 0.0078125, %v4139_v4  ;;  %v4190_v16 = vmul.f32 %v10876_v47, %v10876_v47 }
 0xf70   : > { %v4141_v8 = vpop.xlane.xlu1 %4140 }
 0xf71   : > { %v10884_v13 = vsub.f32 %v10808_v24, %v4160_v52  ;;  %v4161_v0 = vmul.f32 0.0078125, %v4141_v8  ;;  %4214 = vadd.xlane.f32.xlu0 %v4190_v16  ;;  %v4191_v51 = vmul.f32 %v10879_v53, %v10879_v53  ;;  %v10918_v16 = vld [vmem:[%s13367_s6] ss:$0 sm:$0xff] }
 0xf73   : > { %v10889_v44 = vsub.f32 %v10811_v12, %v4161_v0  ;;  %4216 = vadd.xlane.f32.xlu1 %v4191_v51  ;;  %v4192_v43 = vmul.f32 %v10884_v13, %v10884_v13 }
 0xf75   : > { %4218 = vadd.xlane.f32.xlu0 %v4192_v43  ;;  %v4193_v38 = vmul.f32 %v10889_v44, %v10889_v44 }
 0xf77   : > { %4220 = vadd.xlane.f32.xlu1 %v4193_v38 }
 0xf7d   : > { %v4143_v20 = vpop.xlane.xlu0 %4142 }
 0xf7e   : > { %v4162_v41 = vmul.f32 0.0078125, %v4143_v20 }
 0xf7f   : > { %v4145_v34 = vpop.xlane.xlu1 %4144 }
 0xf80   : > { %v10896_v55 = vsub.f32 %v10819_v59, %v4162_v41  ;;  %v4163_v11 = vmul.f32 0.0078125, %v4145_v34 }
 0xf81   : > { %v4147_v25 = vpop.xlane.xlu0 %4146 }
 0xf82   : > { %v10899_v36 = vsub.f32 %v10824_v57, %v4163_v11  ;;  %v4164_v3 = vmul.f32 0.0078125, %v4147_v25  ;;  %v4194_v46 = vmul.f32 %v10896_v55, %v10896_v55 }
 0xf83   : > { %v4149_v7 = vpop.xlane.xlu1 %4148 }
 0xf84   : > { %v10904_v35 = vsub.f32 %v10828_v9, %v4164_v3  ;;  %v4165_v17 = vmul.f32 0.0078125, %v4149_v7  ;;  %4222 = vadd.xlane.f32.xlu0 %v4194_v46  ;;  %v4195_v29 = vmul.f32 %v10899_v36, %v10899_v36  ;;  %v10926_v3 = vld [vmem:[%s13368_s7] ss:$0 sm:$0xff] }
 0xf86   : > { %v10909_v30 = vsub.f32 %v10831_v32, %v4165_v17  ;;  %4224 = vadd.xlane.f32.xlu1 %v4195_v29  ;;  %v4196_v54 = vmul.f32 %v10904_v35, %v10904_v35 }
 0xf88   : > { %4226 = vadd.xlane.f32.xlu0 %v4196_v54  ;;  %v4197_v6 = vmul.f32 %v10909_v30, %v10909_v30 }
 0xf8a   : > { %4228 = vadd.xlane.f32.xlu1 %v4197_v6 }
 0xfc2   : > { %v4199_v61 = vpop.xlane.xlu0 %4198 }
 0xfc3   : > { %v4230_v50 = vmul.f32 0.0078125, %v4199_v61 }
 0xfc4   : > { %v4201_v23 = vpop.xlane.xlu1 %4200 }
 0xfc5   : > { %v4246_v33 = vadd.f32 1e-05, %v4230_v50  ;;  %v4231_v63 = vmul.f32 0.0078125, %v4201_v23 }
 0xfc6   : > { %v4203_v49 = vpop.xlane.xlu0 %4202 }
 0xfc7   : > { %8485 = vrsqrt.f32 %v4246_v33  ;;  %v4247_v31 = vadd.f32 1e-05, %v4231_v63  ;;  %v4232_v19 = vmul.f32 0.0078125, %v4203_v49 }
 0xfc9   : > { %8487 = vrsqrt.f32 %v4247_v31  ;;  %v4248_v42 = vadd.f32 1e-05, %v4232_v19 }
 0xfca   : > { %v4205_v14 = vpop.xlane.xlu1 %4204 }
 0xfcb   : > { %8489 = vrsqrt.f32 %v4248_v42  ;;  %v4233_v58 = vmul.f32 0.0078125, %v4205_v14 }
 0xfcd   : > { %v4249_v4 = vadd.f32 1e-05, %v4233_v58 }
 0xfcf   : > { %8491 = vrsqrt.f32 %v4249_v4 }
 0xfd1   : > { %v8486_v52 = vpop.eup %8485 }
 0xfd2   : > { %v4278_v8 = vmul.f32 %v8486_v52, %v10836_v10  ;;  %v4207_v0 = vpop.xlane.xlu0 %4206 }
 0xfd3   : > { %v8488_v51 = vpop.eup %8487  ;;  %v4234_v43 = vmul.f32 0.0078125, %v4207_v0 }
 0xfd4   : > { %v4301_v38 = vmul.f32 %v10918_v16, %v4278_v8  ;;  %v4279_v20 = vmul.f32 %v8488_v51, %v10839_v26  ;;  %v4209_v41 = vpop.xlane.xlu1 %4208 }
 0xfd5   : > { %v8490_v34 = vpop.eup %8489  ;;  %v4250_v11 = vadd.f32 1e-05, %v4234_v43  ;;  %v4235_v25 = vmul.f32 0.0078125, %v4209_v41 }
 0xfd6   : > { %v4302_v46 = vmul.f32 %v10918_v16, %v4279_v20  ;;  %v4211_v7 = vpop.xlane.xlu0 %4210  ;;  %v4324_v54 = vadd.f32 %v10926_v3, %v4301_v38  ;;  %v4280_v6 = vmul.f32 %v8490_v34, %v10844_v15 }
 0xfd7   : > { %8493 = vrsqrt.f32 %v4250_v11  ;;  %v4251_v10 = vadd.f32 1e-05, %v4235_v25  ;;  %v4236_v17 = vmul.f32 0.0078125, %v4211_v7 }
 0xfd8   : > { %v4213_v29 = vpop.xlane.xlu1 %4212  ;;  %v4325_v26 = vadd.f32 %v10926_v3, %v4302_v46  ;;  %v4303_v31 = vmul.f32 %v10918_v16, %v4280_v6 }
 0xfd9   : > { %v8492_v61 = vpop.eup %8491  ;;  %8495 = vrsqrt.f32 %v4251_v10  ;;  %v4252_v50 = vadd.f32 1e-05, %v4236_v17  ;;  %v4237_v23 = vmul.f32 0.0078125, %v4213_v29 }
 0xfda   : > { %v4340_v33 = vpack.c.bf16 %v4325_v26, %v4324_v54  ;;  %v4281_v63 = vmul.f32 %v8492_v61, %v10851_v40  ;;  %v4326_v42 = vadd.f32 %v10926_v3, %v4303_v31 }
 0xfdb   : > { %8497 = vrsqrt.f32 %v4252_v50  ;;  %v4253_v49 = vadd.f32 1e-05, %v4237_v23 }
 0xfdc   : > { %4595 = vmatmul.mubr.bf16.vlgmr.msra.gmra.mrb[80].mxu1 %v4340_v33  ;;  %4708 = vmatmul.mubr.bf16.vlgmr.msra.gmra.mrb[112].mxu0 %v4340_v33  ;;  %v4304_v19 = vmul.f32 %v10918_v16, %v4281_v63 }
 0xfdd   : > { %8499 = vrsqrt.f32 %v4253_v49  ;;  %4604 = vmatprep.mubr.bf16.mxu1 %v13534_v21  ;;  %4717 = vmatprep.mubr.bf16.mxu0 %v13534_v21 }
 0xfde   : > { %v4327_v15 = vadd.f32 %v10926_v3, %v4304_v19 }
 0xfe0   : > { %v4341_v58 = vpack.c.bf16 %v4327_v15, %v4326_v42 }
 0xfe1   : > { %v8494_v14 = vpop.eup %8493 }
 0xfe2   : > { %v4282_v40 = vmul.f32 %v8494_v14, %v10856_v62 }
 0xfe3   : > { %v8496_v4 = vpop.eup %8495 }
 0xfe4   : > { %4605 = vmatmul.mubr.bf16.gmra.mrb[84].mxu1 %v4341_v58  ;;  %4718 = vmatmul.mubr.bf16.gmra.mrb[116].mxu0 %v4341_v58  ;;  %v4283_v52 = vmul.f32 %v8496_v4, %v10859_v56  ;;  %v4305_v8 = vmul.f32 %v10918_v16, %v4282_v40 }
 0xfe5   : > { %v8498_v0 = vpop.eup %8497  ;;  %4614 = vmatprep.mubr.bf16.mxu1 %v13534_v21  ;;  %4727 = vmatprep.mubr.bf16.mxu0 %v13534_v21 }
 0xfe6   : > { %v4306_v51 = vmul.f32 %v10918_v16, %v4283_v52  ;;  %v4328_v38 = vadd.f32 %v10926_v3, %v4305_v8  ;;  %v4284_v62 = vmul.f32 %v8498_v0, %v10864_v27 }
 0xfe7   : > { %v8500_v43 = vpop.eup %8499 }
 0xfe8   : > { %v4329_v20 = vadd.f32 %v10926_v3, %v4306_v51  ;;  %v4285_v41 = vmul.f32 %v8500_v43, %v10869_v18  ;;  %v4307_v11 = vmul.f32 %v10918_v16, %v4284_v62 }
 0xfea   : > { %v4342_v34 = vpack.c.bf16 %v4329_v20, %v4328_v38  ;;  %v4308_v56 = vmul.f32 %v10918_v16, %v4285_v41  ;;  %v4330_v46 = vadd.f32 %v10926_v3, %v4307_v11 }
 0xfec   : > { %4615 = vmatmul.mubr.bf16.gmra.mrb[88].mxu1 %v4342_v34  ;;  %4728 = vmatmul.mubr.bf16.gmra.mrb[120].mxu0 %v4342_v34  ;;  %v4331_v25 = vadd.f32 %v10926_v3, %v4308_v56 }
 0xfed   : > { %4624 = vmatprep.mubr.bf16.mxu1 %v13534_v21  ;;  %4737 = vmatprep.mubr.bf16.mxu0 %v13534_v21 }
 0xfee   : > { %v4343_v7 = vpack.c.bf16 %v4331_v25, %v4330_v46 }
 0xff4   : > { %4625 = vmatmul.mubr.bf16.gmra.mrb[92].mxu1 %v4343_v7  ;;  %4738 = vmatmul.mubr.bf16.gmra.mrb[124].mxu0 %v4343_v7 }
 0xff5   : > { %4634 = vmatprep.mubr.bf16.mxu1 %v13534_v21  ;;  %4747 = vmatprep.mubr.bf16.mxu0 %v13534_v21 }
 0xffe   : > { %v4215_v27 = vpop.xlane.xlu0 %4214 }
 0xfff   : > { %v4238_v18 = vmul.f32 0.0078125, %v4215_v27 }
0x1000   : > { %v4217_v10 = vpop.xlane.xlu1 %4216 }
0x1001   : > { %v4254_v17 = vadd.f32 1e-05, %v4238_v18  ;;  %v4239_v29 = vmul.f32 0.0078125, %v4217_v10 }
0x1002   : > { %v4219_v54 = vpop.xlane.xlu0 %4218 }
0x1003   : > { %8501 = vrsqrt.f32 %v4254_v17  ;;  %v4255_v26 = vadd.f32 1e-05, %v4239_v29  ;;  %v4240_v6 = vmul.f32 0.0078125, %v4219_v54 }
0x1004   : > { %v4221_v61 = vpop.xlane.xlu1 %4220 }
0x1005   : > { %8503 = vrsqrt.f32 %v4255_v26  ;;  %v4256_v50 = vadd.f32 1e-05, %v4240_v6  ;;  %v4241_v23 = vmul.f32 0.0078125, %v4221_v61 }
0x1007   : > { %8505 = vrsqrt.f32 %v4256_v50  ;;  %v4257_v33 = vadd.f32 1e-05, %v4241_v23 }
0x1009   : > { %8507 = vrsqrt.f32 %v4257_v33 }
0x100d   : > { %v8502_v63 = vpop.eup %8501 }
0x100e   : > { %v4286_v49 = vmul.f32 %v8502_v63, %v10876_v47 }
0x100f   : > { %v8504_v31 = vpop.eup %8503 }
0x1010   : > { %v4287_v19 = vmul.f32 %v8504_v31, %v10879_v53  ;;  %v4309_v15 = vmul.f32 %v10918_v16, %v4286_v49 }
0x1011   : > { %v8506_v42 = vpop.eup %8505  ;;  %v4223_v14 = vpop.xlane.xlu0 %4222 }
0x1012   : > { %v4242_v58 = vmul.f32 0.0078125, %v4223_v14  ;;  %v4310_v40 = vmul.f32 %v10918_v16, %v4287_v19  ;;  %v4332_v8 = vadd.f32 %v10926_v3, %v4309_v15  ;;  %v4288_v0 = vmul.f32 %v8506_v42, %v10884_v13 }
0x1013   : > { %v8508_v4 = vpop.eup %8507  ;;  %v4225_v52 = vpop.xlane.xlu1 %4224 }
0x1014   : > { %v4258_v51 = vadd.f32 1e-05, %v4242_v58  ;;  %v4243_v43 = vmul.f32 0.0078125, %v4225_v52  ;;  %v4333_v47 = vadd.f32 %v10926_v3, %v4310_v40  ;;  %v4289_v38 = vmul.f32 %v8508_v4, %v10889_v44  ;;  %v4380_v58 = vld [vmem:[%s13551_s21] sm:$0xf]  ;;  %s9056_s21 = smov [#allocation14]  }
0x1015   : > { %v4227_v53 = vpop.xlane.xlu0 %4226  ;;  %v4311_v13 = vmul.f32 %v10918_v16, %v4288_v0  ;;  %s8934_s25 = sshll.u32 %s9056_s21, 4  ;;  %s8935_s25 = int_to_ptr.vmem [resolvable:$false] %s8934_s25 }
0x1016   : > { %8509 = vrsqrt.f32 %v4258_v51  ;;  %v4259_v20 = vadd.f32 1e-05, %v4243_v43  ;;  %v4244_v62 = vmul.f32 0.0078125, %v4227_v53  ;;  %v4344_v41 = vpack.c.bf16 %v4333_v47, %v4332_v8  ;;  %s8936_s3 = scalar_lea.vmem %s8935_s25, 4096  ;;  %p8937_p12 = scmp.lt.s32.totalorder %s13253_s14, %s8935_s25 }
0x1017   : > { %v4229_v34 = vpop.xlane.xlu1 %4228  ;;  %v4312_v56 = vmul.f32 %v10918_v16, %v4289_v38  ;;  %v4334_v7 = vadd.f32 %v10926_v3, %v4311_v13  ;;  %p8938_p2 = scmp.lt.s32.totalorder %s8936_s3, %s8930_s22 }
0x1018   : > { %8511 = vrsqrt.f32 %v4259_v20  ;;  %v4260_v11 = vadd.f32 1e-05, %v4244_v62  ;;  %v4245_v25 = vmul.f32 0.0078125, %v4229_v34  ;;  %4635 = vmatmul.mubr.bf16.gmra.mrb[96].mxu1 %v4344_v41  ;;  %4748 = vmatmul.mubr.bf16.gmra.mrb[128].mxu0 %v4344_v41 }
0x1019   : > { %4644 = vmatprep.mubr.bf16.mxu1 %v13534_v21  ;;  %4757 = vmatprep.mubr.bf16.mxu0 %v13534_v21  ;;  %v4335_v46 = vadd.f32 %v10926_v3, %v4312_v56  ;;  %p8939_p1 = por %p8938_p2, %p8937_p12 }
0x101a   : > { %8513 = vrsqrt.f32 %v4260_v11  ;;  %v4261_v44 = vadd.f32 1e-05, %v4245_v25 }
0x101b   : > { %v4345_v27 = vpack.c.bf16 %v4335_v46, %v4334_v7  ;;  %p8940_p13 = pnand %p8939_p1, %p8933_p7 }
0x101c   : > { %8515 = vrsqrt.f32 %v4261_v44 }
0x1020   : > { %v8510_v18 = vpop.eup %8509  ;;  %4645 = vmatmul.mubr.bf16.gmra.mrb[100].mxu1 %v4345_v27  ;;  %4758 = vmatmul.mubr.bf16.gmra.mrb[132].mxu0 %v4345_v27 }
0x1021   : > { %4654 = vmatprep.mubr.bf16.mxu1 %v13534_v21  ;;  %4767 = vmatprep.mubr.bf16.mxu0 %v13534_v21  ;;  %v4290_v10 = vmul.f32 %v8510_v18, %v10896_v55 }
0x1022   : > { %v8512_v17 = vpop.eup %8511 }
0x1023   : > { %v4291_v29 = vmul.f32 %v8512_v17, %v10899_v36  ;;  %v4313_v54 = vmul.f32 %v10918_v16, %v4290_v10 }
0x1024   : > { %v8514_v26 = vpop.eup %8513 }
0x1025   : > { %v4314_v6 = vmul.f32 %v10918_v16, %v4291_v29  ;;  %v4336_v50 = vadd.f32 %v10926_v3, %v4313_v54  ;;  %v4292_v33 = vmul.f32 %v8514_v26, %v10904_v35  ;;  %v4382_v35 = vlaneseq }
0x1026   : > { %v8516_v61 = vpop.eup %8515 }
0x1027   : > { %v4337_v23 = vadd.f32 %v10926_v3, %v4314_v6  ;;  %v4293_v63 = vmul.f32 %v8516_v61, %v10909_v30  ;;  %v4315_v36 = vmul.f32 %v10918_v16, %v4292_v33  ;;  %v4383_v30 = vshrl.u32 %v4382_v35, 7 }
0x1029   : > { %v4346_v49 = vpack.c.bf16 %v4337_v23, %v4336_v50  ;;  %v4316_v55 = vmul.f32 %v10918_v16, %v4293_v63  ;;  %v4338_v19 = vadd.f32 %v10926_v3, %v4315_v36  ;;  %v4384_v42 = vsub.s32 0, %v4383_v30 }
0x102a   : > { %v4392_v14 = vsub.s32 2, %v4383_v30  ;;  %v4388_v16 = vsub.s32 1, %v4383_v30  ;;  %v4396_v40 = vsub.s32 3, %v4383_v30  ;;  %v8165_v30 = vld [vmem:[#allocation12 + $0x40] sm:$0xff]  }
0x102b   : > { %4655 = vmatmul.mubr.bf16.gmra.mrb[104].mxu1 %v4346_v49  ;;  %4768 = vmatmul.mubr.bf16.gmra.mrb[136].mxu0 %v4346_v49  ;;  %v4339_v31 = vadd.f32 %v10926_v3, %v4316_v55  ;;  %v10990_v4 = vrot.slane %v4380_v58, %v4384_v42 }
0x102c   : > { %4664 = vmatprep.mubr.bf16.mxu1 %v13534_v21  ;;  %4777 = vmatprep.mubr.bf16.mxu0 %v13534_v21  ;;  %v10992_v21 = vrot.slane %v4380_v58, %v4392_v14  ;;  %v10994_v52 = vrot.slane %v4380_v58, %v4388_v16  ;;  %v10996_v3 = vrot.slane %v4380_v58, %v4396_v40 }
0x102d   : > { %v4347_v15 = vpack.c.bf16 %v4339_v31, %v4338_v19  ;;  %7474 = vmatprep.subr.bf16.mxu1 %v8165_v30 }
0x102e   : > { %7475 = vmatpush3.bf16.msra.mxu1 %v8166_v28 }
0x1033   : > { %4665 = vmatmul.mubr.bf16.gmra.mrb[108].mxu1 %v4347_v15  ;;  %4778 = vmatmul.mubr.bf16.gmra.mrb[140].mxu0 %v4347_v15 }
0x10af   : > { %v4596_v8 = vpop.f32.mrb[80].mxu1  ;;  %v4709_v0 = vpop.f32.mrb[112].mxu0 }
0x10b0   : > { %v4597_v51 = vadd.f32 %v4596_v8, %v10990_v4  ;;  %v11000_v43 = vadd.f32 %v4709_v0, %v10992_v21  ;;  %v4598_v47 = vpop.f32.mrb[81].mxu1  ;;  %v4711_v38 = vpop.f32.mrb[113].mxu0 }
0x10b1   : > { %v11003_v53 = vadd.f32 %v4598_v47, %v10994_v52  ;;  %v11006_v20 = vadd.f32 %v4711_v38, %v10996_v3  ;;  %v4600_v62 = vpop.f32.mrb[82].mxu1  ;;  %v4713_v41 = vpop.f32.mrb[114].mxu0 }
0x10b2   : > { %v11008_v34 = vmul.f32 0.70710677, %v4597_v51  ;;  %v11011_v56 = vmul.f32 0.70710677, %v11000_v43  ;;  %v4602_v7 = vpop.f32.mrb[83].mxu1  ;;  %v4715_v17 = vpop.f32.mrb[115].mxu0  ;;  %v11040_v63 = vadd.f32 %v4600_v62, %v10990_v4  ;;  %v11053_v15 = vadd.f32 %v4713_v41, %v10992_v21 }
0x10b3   : > { %v11014_v11 = vmul.f32 0.70710677, %v11003_v53  ;;  %v11024_v46 = vmul.f32 0.70710677, %v11006_v20  ;;  %v11058_v14 = vadd.f32 %v4602_v7, %v10994_v52  ;;  %v11110_v12 = vmul.f32 0.5, %v11003_v53 }
0x10b4   : > { %v5044_v25 = vand.u32 2147483647, %v11008_v34  ;;  %v11018_v13 = vand.u32 2147483647, %v11011_v56  ;;  %v11050_v19 = vmul.f32 0.70710677, %v11040_v63 }
0x10b5   : > { %v11021_v44 = vand.u32 2147483647, %v11014_v11  ;;  %v11033_v61 = vand.u32 2147483647, %v11024_v46  ;;  %v11064_v40 = vmul.f32 0.70710677, %v11053_v15 }
0x10b6   : > { %v5108_v27 = vmul.f32 0.3275911, %v5044_v25  ;;  %v5110_v18 = vmul.f32 0.3275911, %v11018_v13  ;;  %v11061_v58 = vand.u32 2147483647, %v11050_v19 }
0x10b7   : > { %v5109_v10 = vmul.f32 0.3275911, %v11021_v44  ;;  %v11028_v26 = vpop.f32.mrb[84].mxu1  ;;  %v11030_v6 = vpop.f32.mrb[116].mxu0  ;;  %v5111_v36 = vmul.f32 0.3275911, %v11033_v61 }
0x10b8   : > { %v5172_v29 = vadd.f32 1.0, %v5108_v27  ;;  %v5174_v54 = vadd.f32 1.0, %v5110_v18  ;;  %v11035_v50 = vpop.f32.mrb[85].mxu1  ;;  %v11037_v23 = vpop.f32.mrb[117].mxu0  ;;  %v5876_v16 = vsub.f32 0.0, %v5044_v25  ;;  %v11082_v18 = vadd.f32 %v4715_v17, %v10996_v3 }
0x10b9   : > { %v5173_v33 = vadd.f32 1.0, %v5109_v10  ;;  %v11042_v49 = vpop.f32.mrb[86].mxu1  ;;  %v11044_v55 = vpop.f32.mrb[118].mxu0  ;;  %v5175_v42 = vadd.f32 1.0, %v5111_v36  ;;  %v5112_v0 = vmul.f32 0.3275911, %v11061_v58 }
0x10ba   : > { %8517 = vrcp.f32 %v5172_v29  ;;  %v11047_v31 = vpop.f32.mrb[87].mxu1  ;;  %v11055_v35 = vpop.f32.mrb[119].mxu0  ;;  %v11074_v62 = vand.u32 2147483647, %v11064_v40  ;;  %v11077_v41 = vmul.f32 0.70710677, %v11058_v14 }
0x10bb   : > { %8519 = vrcp.f32 %v5174_v54  ;;  %13552 = vst [vmem:[#allocation23_spill] sm:$0xff] %v11055_v35  ;;  %v5176_v27 = vadd.f32 1.0, %v5112_v0  ;;  %v5940_v54 = vmul.f32 %v5876_v16, %v5044_v25  ;;  %v5878_v32 = vsub.f32 0.0, %v11018_v13 }
0x10bc   : > { %8521 = vrcp.f32 %v5173_v33  ;;  %v5114_v33 = vmul.f32 0.3275911, %v11074_v62  ;;  %v11090_v36 = vand.u32 2147483647, %v11077_v41  ;;  %v11105_v16 = vmul.f32 0.5, %v11000_v43 }
0x10bd   : > { %8523 = vrcp.f32 %v5175_v42  ;;  %v11094_v42 = vmul.f32 0.5, %v4597_v51  ;;  %v11116_v24 = vmul.f32 0.70710677, %v11082_v18  ;;  %v6004_v60 = vmul.f32 1.442695, %v5940_v54  ;;  %v11133_v54 = vld [vmem:[#allocation12 + $0xc0] sm:$0xff]  }
0x10be   : > { %8525 = vrcp.f32 %v5176_v27  ;;  %v5178_v57 = vadd.f32 1.0, %v5114_v33  ;;  %v5113_v59 = vmul.f32 0.3275911, %v11090_v36  ;;  %v11113_v27 = vmul.f32 0.5, %v11006_v20  ;;  %13564 = vst [vmem:[#allocation54_spill] sm:$0xff] %v11133_v54  ;;  %7538 = vmatprep.subr.bf16.mxu0 %v11133_v54 }
0x10bf   : > { %v11066_v8 = vpop.f32.mrb[88].mxu1  ;;  %v11069_v47 = vpop.f32.mrb[120].mxu0  ;;  %vm4916_vm4 = vcmp.ge.f32.partialorder %v11008_v34, 0.0  ;;  %v5942_v53 = vmul.f32 %v5878_v32, %v11018_v13  ;;  %v11125_v48 = vand.u32 2147483647, %v11116_v24  ;;  %vm4918_vm5 = vcmp.ge.f32.partialorder %v11011_v56, 0.0 }
0x10c0   : > { %13553 = vst [vmem:[#allocation24_spill] sm:$0xff] %v11066_v8  ;;  %13554 = vst [vmem:[#allocation25_spill] sm:$0xff] %v11069_v47  ;;  %v11071_v38 = vpop.f32.mrb[89].mxu1  ;;  %v11079_v7 = vpop.f32.mrb[121].mxu0  ;;  %8527 = vrcp.f32 %v5178_v57  ;;  %v5177_v5 = vadd.f32 1.0, %v5113_v59  ;;  %v5877_v57 = vsub.f32 0.0, %v11021_v44 }
0x10c1   : > { %13555 = vst [vmem:[#allocation26_spill] sm:$0xff] %v11071_v38  ;;  %13556 = vst [vmem:[#allocation48_spill] sm:$0xff] %v11079_v7  ;;  %v11084_v10 = vpop.f32.mrb[90].mxu1  ;;  %v11086_v29 = vpop.f32.mrb[122].mxu0  ;;  %v5880_v32 = vsub.f32 0.0, %v11061_v58  ;;  %v11188_v47 = vmul.f32 0.5, %v11040_v63 }
0x10c2   : > { %13557 = vst [vmem:[#allocation45_spill] sm:$0xff] %v11084_v10  ;;  %13558 = vst [vmem:[#allocation46_spill] sm:$0xff] %v11086_v29  ;;  %v11097_v0 = vpop.f32.mrb[91].mxu1  ;;  %v11099_v17 = vpop.f32.mrb[123].mxu0  ;;  %8529 = vrcp.f32 %v5177_v5  ;;  %v5115_v13 = vmul.f32 0.3275911, %v11125_v48 }
0x10c3   : > { %13559 = vst [vmem:[#allocation47_spill] sm:$0xff] %v11097_v0  ;;  %13560 = vst [vmem:[#allocation50_spill] sm:$0xff] %v11099_v17  ;;  %8531 = vpow2.f32 %v6004_v60  ;;  %v5882_v5 = vsub.f32 0.0, %v11074_v62  ;;  %v13422_v29 = vmov -1.0   ;;  %vm4920_vm6 = vcmp.ge.f32.partialorder %v11050_v19, 0.0 }
0x10c4   : > { %v11092_v30 = vpop.eup %8517  ;;  %13561 = vst [vmem:[#allocation52_spill] sm:$0xff] %v11113_v27  ;;  %v11155_v60 = vsel %vm4916_vm4, 1.0, %v13422_v29  ;;  %vm4917_vm7 = vcmp.ge.f32.partialorder %v11014_v11, 0.0  ;;  %vm4922_vm8 = vcmp.ge.f32.partialorder %v11064_v40, 0.0  ;;  %vm4919_vm9 = vcmp.ge.f32.partialorder %v11024_v46, 0.0 }
0x10c5   : > { %v11101_v9 = vpop.eup %8519  ;;  %v5300_v25 = vmul.f32 1.0614054, %v11092_v30  ;;  %vm4921_vm10 = vcmp.ge.f32.partialorder %v11077_v41, 0.0  ;;  %vm4923_vm11 = vcmp.ge.f32.partialorder %v11116_v24, 0.0  ;;  %v8175_v41 = vld [vmem:[#allocation12 + $0x10] sm:$0xff]  }
0x10c6   : > { %v5302_v51 = vmul.f32 1.0614054, %v11101_v9  ;;  %v11120_v33 = vpop.eup %8521 }
0x10c7   : > { %v5364_v22 = vadd.f32 -1.4531521, %v5300_v25  ;;  %v11118_v43 = vpop.f32.mrb[92].mxu1  ;;  %v11127_v20 = vpop.f32.mrb[124].mxu0  ;;  %v5301_v59 = vmul.f32 1.0614054, %v11120_v33 }
0x10c8   : > { %13562 = vst [vmem:[#allocation49_spill] sm:$0xff] %v11118_v43  ;;  %v5366_v39 = vadd.f32 -1.4531521, %v5302_v51  ;;  %13563 = vst [vmem:[#allocation51_spill] sm:$0xff] %v11127_v20  ;;  %v11135_v25 = vpop.eup %8523  ;;  %v6008_v20 = vmul.f32 1.442695, %v5942_v53  ;;  %v5944_v53 = vmul.f32 %v5880_v32, %v11061_v58 }
0x10c9   : > { %v5428_v45 = vmul.f32 %v11092_v30, %v5364_v22  ;;  %v5365_v22 = vadd.f32 -1.4531521, %v5301_v59  ;;  %v5303_v2 = vmul.f32 1.0614054, %v11135_v25  ;;  %v5179_v43 = vadd.f32 1.0, %v5115_v13  ;;  %v11142_v17 = vpop.f32.mrb[93].mxu1  ;;  %v11150_v59 = vpop.eup %8525 }
0x10ca   : > { %v5430_v51 = vmul.f32 %v11101_v9, %v5366_v39  ;;  %13565 = vst [vmem:[#allocation56_spill] sm:$0xff] %v11142_v17  ;;  %v11165_v13 = vsel %vm4918_vm5, 1.0, %v13422_v29  ;;  %v5941_v17 = vmul.f32 %v5877_v57, %v11021_v44  ;;  %v11170_v58 = vpop.eup %8527 }
0x10cb   : > { %v5492_v37 = vadd.f32 1.4214138, %v5428_v45  ;;  %v5367_v0 = vadd.f32 -1.4531521, %v5303_v2  ;;  %v11148_v45 = vadd.f32 %v11028_v26, %v10990_v4  ;;  %8533 = vrcp.f32 %v5179_v43 }
0x10cc   : > { %v5494_v1 = vadd.f32 1.4214138, %v5430_v51  ;;  %v5304_v26 = vmul.f32 1.0614054, %v11150_v59  ;;  %8535 = vpow2.f32 %v6008_v20  ;;  %v5306_v20 = vmul.f32 1.0614054, %v11170_v58  ;;  %v11181_v10 = vpop.eup %8529 }
0x10cd   : > { %v5556_v39 = vmul.f32 %v11092_v30, %v5492_v37  ;;  %v5429_v37 = vmul.f32 %v11120_v33, %v5365_v22  ;;  %v5431_v51 = vmul.f32 %v11135_v25, %v5367_v0  ;;  %v5946_v0 = vmul.f32 %v5882_v5, %v11074_v62 }
0x10ce   : > { %v5558_v28 = vmul.f32 %v11101_v9, %v5494_v1  ;;  %v11168_v1 = vpop.f32.mrb[125].mxu0  ;;  %v5368_v32 = vadd.f32 -1.4531521, %v5304_v26  ;;  %v11175_v22 = vmul.f32 0.70710677, %v11148_v45  ;;  %v11332_v24 = vmul.f32 0.5, %v11148_v45 }
0x10cf   : > { %v5620_v2 = vadd.f32 -0.28449672, %v5556_v39  ;;  %13566 = vst [vmem:[#allocation53_spill] sm:$0xff] %v11168_v1  ;;  %v5879_v39 = vsub.f32 0.0, %v11033_v61  ;;  %v5493_v57 = vadd.f32 1.4214138, %v5429_v37 }
0x10d0   : > { %v5622_v34 = vadd.f32 -0.28449672, %v5558_v28  ;;  %v6012_v28 = vmul.f32 1.442695, %v5944_v53  ;;  %v5495_v29 = vadd.f32 1.4214138, %v5431_v51  ;;  %v5432_v1 = vmul.f32 %v11150_v59, %v5368_v32  ;;  %v8532_v53 = vpop.eup %8531 }
0x10d1   : > { %v5684_v43 = vmul.f32 %v11092_v30, %v5620_v2  ;;  %v6006_v26 = vmul.f32 1.442695, %v5941_v17  ;;  %v5370_v62 = vadd.f32 -1.4531521, %v5306_v20  ;;  %v6016_v38 = vmul.f32 1.442695, %v5946_v0 }
0x10d2   : > { %v5686_v56 = vmul.f32 %v11101_v9, %v5622_v34  ;;  %v5496_v7 = vadd.f32 1.4214138, %v5432_v1  ;;  %v11185_v34 = vand.u32 2147483647, %v11175_v22  ;;  %8537 = vpow2.f32 %v6012_v28  ;;  %v8168_v32 = vld [vmem:[#allocation12 + $0x80] sm:$0xff]  }
0x10d3   : > { %v5748_v44 = vadd.f32 0.2548296, %v5684_v43  ;;  %v5434_v37 = vmul.f32 %v11170_v58, %v5370_v62  ;;  %v5305_v51 = vmul.f32 1.0614054, %v11181_v10  ;;  %v5557_v43 = vmul.f32 %v11120_v33, %v5493_v57  ;;  %7539 = vmatpush3.bf16.msra.mxu0 %v8168_v32 }
0x10d4   : > { %v5750_v2 = vadd.f32 0.2548296, %v5686_v56  ;;  %v5559_v17 = vmul.f32 %v11135_v25, %v5495_v29  ;;  %v5560_v1 = vmul.f32 %v11150_v59, %v5496_v7  ;;  %8539 = vpow2.f32 %v6016_v38 }
0x10d5   : > { %v5812_v5 = vmul.f32 %v11092_v30, %v5748_v44  ;;  %v5943_v30 = vmul.f32 %v5879_v39, %v11033_v61  ;;  %v11196_v0 = vpop.eup %8533  ;;  %v5498_v20 = vadd.f32 1.4214138, %v5434_v37  ;;  %v5369_v28 = vadd.f32 -1.4531521, %v5305_v51 }
0x10d6   : > { %v5814_v63 = vmul.f32 %v11101_v9, %v5750_v2  ;;  %v5624_v44 = vadd.f32 -0.28449672, %v5560_v1  ;;  %v5116_v57 = vmul.f32 0.3275911, %v11185_v34  ;;  %v8536_v29 = vpop.eup %8535  ;;  %v5881_v39 = vsub.f32 0.0, %v11090_v36 }
0x10d7   : > { %v6132_v56 = vmul.f32 %v8532_v53, %v5812_v5  ;;  %v5562_v61 = vmul.f32 %v11170_v58, %v5498_v20  ;;  %v5433_v7 = vmul.f32 %v11181_v10, %v5369_v28  ;;  %v5307_v62 = vmul.f32 1.0614054, %v11196_v0  ;;  %v11205_v5 = vpop.f32.mrb[94].mxu1 }
0x10d8   : > { %v5621_v9 = vadd.f32 -0.28449672, %v5557_v43  ;;  %v5623_v2 = vadd.f32 -0.28449672, %v5559_v17  ;;  %v6010_v53 = vmul.f32 1.442695, %v5943_v30  ;;  %v5688_v37 = vmul.f32 %v11150_v59, %v5624_v44 }
0x10d9   : > { %v6196_v38 = vsub.f32 1.0, %v6132_v56  ;;  %v6134_v51 = vmul.f32 %v8536_v29, %v5814_v63  ;;  %v5626_v1 = vadd.f32 -0.28449672, %v5562_v61  ;;  %v5371_v32 = vadd.f32 -1.4531521, %v5307_v62  ;;  %v11212_v17 = vpop.f32.mrb[126].mxu0 }
0x10da   : > { %8541 = vpow2.f32 %v6006_v26  ;;  %v5752_v54 = vadd.f32 0.2548296, %v5688_v37  ;;  %v5497_v20 = vadd.f32 1.4214138, %v5433_v7  ;;  %v5180_v8 = vadd.f32 1.0, %v5116_v57 }
0x10db   : > { %v5690_v28 = vmul.f32 %v11170_v58, %v5626_v1  ;;  %v5945_v27 = vmul.f32 %v5881_v39, %v11090_v36  ;;  %v5435_v35 = vmul.f32 %v11196_v0, %v5371_v32  ;;  %v5883_v43 = vsub.f32 0.0, %v11125_v48 }
0x10dc   : > { %v5685_v30 = vmul.f32 %v11120_v33, %v5621_v9  ;;  %v5687_v56 = vmul.f32 %v11135_v25, %v5623_v2  ;;  %8543 = vpow2.f32 %v6010_v53  ;;  %v5816_v26 = vmul.f32 %v11150_v59, %v5752_v54  ;;  %v8538_v63 = vpop.eup %8537 }
0x10dd   : > { %v6260_v44 = vmul.f32 %v6196_v38, %v11155_v60  ;;  %v6198_v57 = vsub.f32 1.0, %v6134_v51  ;;  %v5754_v29 = vadd.f32 0.2548296, %v5690_v28  ;;  %v5499_v61 = vadd.f32 1.4214138, %v5435_v35 }
0x10de   : > { %v6136_v36 = vmul.f32 %v8538_v63, %v5816_v26  ;;  %v5561_v7 = vmul.f32 %v11181_v10, %v5497_v20  ;;  %8545 = vrcp.f32 %v5180_v8  ;;  %v11221_v39 = vadd.f32 %v11030_v6, %v10992_v21  ;;  %v8540_v2 = vpop.eup %8539 }
0x10df   : > { %v13567_v62 = vmov -1.0   ;;  %v5818_v54 = vmul.f32 %v11170_v58, %v5754_v29  ;;  %v6014_v59 = vmul.f32 1.442695, %v5945_v27  ;;  %v5947_v60 = vmul.f32 %v5883_v43, %v11125_v48  ;;  %v11239_v58 = vpop.f32.mrb[95].mxu1 }
0x10e0   : > { %v4984_v9 = vsel %vm4920_vm6, 1.0, %v13567_v62  ;;  %v5749_v35 = vadd.f32 0.2548296, %v5685_v30  ;;  %v5751_v53 = vadd.f32 0.2548296, %v5687_v56  ;;  %v6200_v37 = vsub.f32 1.0, %v6136_v36 }
0x10e1   : > { %v6324_v8 = vadd.f32 1.0, %v6260_v44  ;;  %v6262_v6 = vmul.f32 %v6198_v57, %v11165_v13  ;;  %v6138_v38 = vmul.f32 %v8540_v2, %v5818_v54  ;;  %v5563_v19 = vmul.f32 %v11196_v0, %v5499_v61  ;;  %v11258_v36 = vpop.f32.mrb[127].mxu0 }
0x10e2   : > { %v6264_v51 = vmul.f32 %v6200_v37, %v4984_v9  ;;  %v5625_v1 = vadd.f32 -0.28449672, %v5561_v7  ;;  %v11233_v27 = vmul.f32 0.70710677, %v11221_v39  ;;  %v11237_v48 = vadd.f32 %v11035_v50, %v10994_v52 }
0x10e3   : > { %v4986_v32 = vsel %vm4922_vm8, 1.0, %v13567_v62  ;;  %v6202_v40 = vsub.f32 1.0, %v6138_v38  ;;  %8547 = vpow2.f32 %v6014_v59  ;;  %v6018_v20 = vmul.f32 1.442695, %v5947_v60 }
0x10e4   : > { %v8542_v13 = vpop.eup %8541  ;;  %v5813_v28 = vmul.f32 %v11120_v33, %v5749_v35  ;;  %v5815_v43 = vmul.f32 %v11135_v25, %v5751_v53  ;;  %v6328_v30 = vadd.f32 1.0, %v6264_v51  ;;  %v11245_v56 = vand.u32 2147483647, %v11233_v27 }
0x10e5   : > { %v11248_v26 = vmul.f32 %v6324_v8, %v11094_v42  ;;  %v6326_v50 = vadd.f32 1.0, %v6262_v6  ;;  %v6266_v63 = vmul.f32 %v6202_v40, %v4986_v32  ;;  %v5627_v44 = vadd.f32 -0.28449672, %v5563_v19  ;;  %v8170_v32 = vld [vmem:[#allocation12 + $0xc8] sm:$0xff]  }
0x10e6   : > { %v8544_v57 = vpop.eup %8543  ;;  %v11251_v29 = vmul.f32 %v6328_v30, %v11188_v47  ;;  %v5689_v61 = vmul.f32 %v11181_v10, %v5625_v1  ;;  %v5118_v33 = vmul.f32 0.3275911, %v11245_v56  ;;  %v11256_v25 = vmul.f32 0.70710677, %v11237_v48  ;;  %v8169_v1 = vld [vmem:[#allocation12 + $0x48] sm:$0xff]   ;;  %7540 = vmatprep.subr.bf16.mxu0 %v8170_v32 }
0x10e7   : > { %13568 = vst [vmem:[#allocation55_spill] sm:$0xff] %v11248_v26  ;;  %v4794_v42 = vmul.f32 0.5, %v11053_v15  ;;  %v6330_v7 = vadd.f32 1.0, %v6266_v63  ;;  %8549 = vpow2.f32 %v6018_v20  ;;  %v6133_v54 = vmul.f32 %v8542_v13, %v5813_v28  ;;  %v8171_v20 = vld [vmem:[#allocation12 + $0x8] sm:$0xff]   ;;  %7476 = vmatprep.subr.bf16.mxu1 %v8169_v1 }
0x10e8   : > { %13569 = vst [vmem:[#allocation58_spill] sm:$0xff] %v11251_v29  ;;  %v11262_v9 = vpop.eup %8545  ;;  %v6135_v47 = vmul.f32 %v8544_v57, %v5815_v43  ;;  %v5182_v60 = vadd.f32 1.0, %v5118_v33  ;;  %v11267_v2 = vmul.f32 %v6326_v50, %v11105_v16  ;;  %v5691_v53 = vmul.f32 %v11196_v0, %v5627_v44  ;;  %v8172_v13 = vld [vmem:[#allocation12 + $0x88] sm:$0xff]   ;;  %7477 = vmatpush3.bf16.msra.mxu1 %v8171_v20 }
0x10e9   : > { %v11269_v35 = vmul.f32 %v6330_v7, %v4794_v42  ;;  %v5308_v37 = vmul.f32 1.0614054, %v11262_v9  ;;  %v5753_v15 = vadd.f32 0.2548296, %v5689_v61  ;;  %v11274_v8 = vand.u32 2147483647, %v11256_v25  ;;  %7541 = vmatpush3.bf16.msra.mxu0 %v8172_v13 }
0x10ea   : > { %13570 = vst [vmem:[#allocation60_spill] sm:$0xff] %v11267_v2  ;;  %8551 = vrcp.f32 %v5182_v60  ;;  %v11278_v6 = vadd.f32 %v11037_v23, %v10996_v3  ;;  %v4981_v16 = vsel %vm4917_vm7, 1.0, %v13567_v62  ;;  %v4983_v38 = vsel %vm4919_vm9, 1.0, %v13567_v62  ;;  %v8173_v7 = vld [vmem:[#allocation12 + $0x50] sm:$0xff]  }
0x10eb   : > { %13571 = vst [vmem:[#allocation57_spill] sm:$0xff] %v11269_v35  ;;  %v5372_v51 = vadd.f32 -1.4531521, %v5308_v37  ;;  %v6197_v40 = vsub.f32 1.0, %v6133_v54  ;;  %v5117_v23 = vmul.f32 0.3275911, %v11274_v8  ;;  %v5817_v30 = vmul.f32 %v11181_v10, %v5753_v15  ;;  %7478 = vmatprep.subr.bf16.mxu1 %v8173_v7 }
0x10ec   : > { %v6199_v11 = vsub.f32 1.0, %v6135_v47  ;;  %v5755_v43 = vadd.f32 0.2548296, %v5691_v53  ;;  %v11292_v46 = vmul.f32 0.70710677, %v11278_v6  ;;  %v11297_v63 = vadd.f32 %v11042_v49, %v10990_v4  ;;  %v8174_v54 = vld [vmem:[#allocation12 + $0xd0] sm:$0xff]   ;;  %7479 = vmatpush3.bf16.msra.mxu1 %v8175_v41 }
0x10ed   : > { %v8548_v28 = vpop.eup %8547  ;;  %v5181_v50 = vadd.f32 1.0, %v5117_v23  ;;  %v11301_v44 = vadd.f32 %v11044_v55, %v10992_v21  ;;  %v11304_v57 = vmul.f32 0.5, %v11058_v14  ;;  %v5436_v61 = vmul.f32 %v11262_v9, %v5372_v51  ;;  %v8176_v37 = vld [vmem:[#allocation12 + $0x90] sm:$0xff]   ;;  %7542 = vmatprep.subr.bf16.mxu0 %v8174_v54 }
0x10ee   : > { %v5884_v33 = vsub.f32 0.0, %v11185_v34  ;;  %v11309_v10 = vand.u32 2147483647, %v11292_v46  ;;  %v6261_v42 = vmul.f32 %v6197_v40, %v4981_v16  ;;  %v4985_v49 = vsel %vm4921_vm10, 1.0, %v13567_v62  ;;  %7543 = vmatpush3.bf16.msra.mxu0 %v8176_v37  ;;  %v8177_v40 = vld [vmem:[#allocation12 + $0x58] sm:$0xff]   ;;  %v8181_v37 = vld [vmem:[#allocation12 + $0x60] sm:$0xff]  }
0x10ef   : > { %v11315_v55 = vmul.f32 0.5, %v11082_v18  ;;  %8553 = vrcp.f32 %v5181_v50  ;;  %v11320_v47 = vsel %vm4923_vm11, 1.0, %v13567_v62  ;;  %v5819_v60 = vmul.f32 %v11196_v0, %v5755_v43  ;;  %7480 = vmatprep.subr.bf16.mxu1 %v8177_v40 }
0x10f0   : > { %vm4924_vm12 = vcmp.ge.f32.partialorder %v11175_v22, 0.0  ;;  %v5119_v53 = vmul.f32 0.3275911, %v11309_v10  ;;  %v6263_v15 = vmul.f32 %v6199_v11, %v4983_v38  ;;  %v6137_v18 = vmul.f32 %v8548_v28, %v5817_v30  ;;  %v8178_v38 = vld [vmem:[#allocation12 + $0xd8] sm:$0xff]  }
0x10f1   : > { %v8550_v14 = vpop.eup %8549  ;;  %v11326_v16 = vmul.f32 0.70710677, %v11297_v63  ;;  %v11329_v51 = vmul.f32 0.70710677, %v11301_v44  ;;  %v5500_v0 = vadd.f32 1.4214138, %v5436_v61  ;;  %v5948_v1 = vmul.f32 %v5884_v33, %v11185_v34  ;;  %7544 = vmatprep.subr.bf16.mxu0 %v8178_v38 }
0x10f2   : > { %v5183_v32 = vadd.f32 1.0, %v5119_v53  ;;  %v6325_v20 = vadd.f32 1.0, %v6261_v42  ;;  %v11340_v13 = vsel %vm4924_vm12, 1.0, %v13567_v62  ;;  %v6139_v34 = vmul.f32 %v8550_v14, %v5819_v60  ;;  %v8179_v30 = vld [vmem:[#allocation12 + $0x18] sm:$0xff]   ;;  %v8184_v38 = vld [vmem:[#allocation12 + $0xa0] sm:$0xff]  }
0x10f3   : > { %v11343_v28 = vand.u32 2147483647, %v11326_v16  ;;  %v11346_v45 = vand.u32 2147483647, %v11329_v51  ;;  %v11351_v43 = vadd.f32 %v11047_v31, %v10994_v52  ;;  %v8180_v22 = vld [vmem:[#allocation12 + $0x98] sm:$0xff]   ;;  %v6327_v50 = vadd.f32 1.0, %v6263_v15  ;;  %7481 = vmatpush3.bf16.msra.mxu1 %v8179_v30 }
0x10f4   : > { %v11335_v23 = vpop.eup %8551  ;;  %8555 = vrcp.f32 %v5183_v32  ;;  %v6201_v61 = vsub.f32 1.0, %v6137_v18  ;;  %v5886_v33 = vsub.f32 0.0, %v11245_v56  ;;  %v5564_v7 = vmul.f32 %v11262_v9, %v5500_v0  ;;  %7545 = vmatpush3.bf16.msra.mxu0 %v8180_v22  ;;  %v8182_v15 = vld [vmem:[#allocation12 + $0xe0] sm:$0xff]   ;;  %7482 = vmatprep.subr.bf16.mxu1 %v8181_v37 }
0x10f5   : > { %v5310_v11 = vmul.f32 1.0614054, %v11335_v23  ;;  %v5120_v42 = vmul.f32 0.3275911, %v11343_v28  ;;  %v6020_v54 = vmul.f32 1.442695, %v5948_v1  ;;  %v11358_v31 = vmul.f32 %v6325_v20, %v11110_v12  ;;  %7546 = vmatprep.subr.bf16.mxu0 %v8182_v15 }
0x10f6   : > { %v5122_v60 = vmul.f32 0.3275911, %v11346_v45  ;;  %v11361_v53 = vmul.f32 0.5, %v11221_v39  ;;  %vm4926_vm13 = vcmp.ge.f32.partialorder %v11233_v27, 0.0  ;;  %v8183_v18 = vld [vmem:[#allocation12 + $0x20] sm:$0xff]   ;;  %v6203_v32 = vsub.f32 1.0, %v6139_v34 }
0x10f7   : > { %v5374_v14 = vadd.f32 -1.4531521, %v5310_v11  ;;  %v5184_v41 = vadd.f32 1.0, %v5120_v42  ;;  %v11366_v40 = vmul.f32 0.70710677, %v11351_v43  ;;  %v6265_v12 = vmul.f32 %v6201_v61, %v4985_v49  ;;  %v13572_v22 = vld [vmem:[#allocation23_spill] sm:$0xff]  ;;  %7483 = vmatpush3.bf16.msra.mxu1 %v8183_v18 }
0x10f8   : > { %v5186_v1 = vadd.f32 1.0, %v5122_v60  ;;  %v5950_v39 = vmul.f32 %v5886_v33, %v11245_v56  ;;  %v5885_v20 = vsub.f32 0.0, %v11274_v8  ;;  %v5628_v30 = vadd.f32 -0.28449672, %v5564_v7  ;;  %7547 = vmatpush3.bf16.msra.mxu0 %v8184_v38  ;;  %v8186_v60 = vld [vmem:[#allocation12 + $0xe8] sm:$0xff]   ;;  %v8189_v27 = vld [vmem:[#allocation12 + $0x70] sm:$0xff]  }
0x10f9   : > { %v5438_v0 = vmul.f32 %v11335_v23, %v5374_v14  ;;  %v11368_v11 = vpop.eup %8553  ;;  %8557 = vrcp.f32 %v5184_v41  ;;  %v11375_v42 = vadd.f32 %v13572_v22, %v10996_v3  ;;  %v8185_v14 = vld [vmem:[#allocation12 + $0x68] sm:$0xff]   ;;  %v11381_v33 = vmul.f32 0.5, %v11237_v48  ;;  %7548 = vmatprep.subr.bf16.mxu0 %v8186_v60  ;;  %v8190_v22 = vld [vmem:[#allocation12 + $0xf0] sm:$0xff]  }
0x10fa   : > { %v5309_v34 = vmul.f32 1.0614054, %v11368_v11  ;;  %8559 = vrcp.f32 %v5186_v1  ;;  %v13573_v49 = vld [vmem:[#allocation52_spill] sm:$0xff]  ;;  %v11384_v7 = vand.u32 2147483647, %v11366_v40  ;;  %v6267_v37 = vmul.f32 %v6203_v32, %v11320_v47  ;;  %7484 = vmatprep.subr.bf16.mxu1 %v8185_v14  ;;  %v8192_v14 = vld [vmem:[#allocation12 + $0xb0] sm:$0xff]  }
0x10fb   : > { %v11378_v61 = vmul.f32 %v6327_v50, %v13573_v49  ;;  %v5502_v56 = vadd.f32 1.4214138, %v5438_v0  ;;  %v8187_v41 = vld [vmem:[#allocation12 + $0x28] sm:$0xff]   ;;  %8561 = vpow2.f32 %v6020_v54  ;;  %vm4925_vm14 = vcmp.ge.f32.partialorder %v11256_v25, 0.0 }
0x10fc   : > { %v5373_v15 = vadd.f32 -1.4531521, %v5309_v34  ;;  %v8188_v18 = vld [vmem:[#allocation12 + $0xa8] sm:$0xff]   ;;  %v11391_v50 = vsel %vm4926_vm13, 1.0, %v13567_v62  ;;  %v6024_v48 = vmul.f32 1.442695, %v5950_v39  ;;  %v5949_v0 = vmul.f32 %v5885_v20, %v11274_v8  ;;  %7485 = vmatpush3.bf16.msra.mxu1 %v8187_v41 }
0x10fd   : > { %13574 = vst [vmem:[#allocation59_spill] sm:$0xff] %v11378_v61  ;;  %v5121_v1 = vmul.f32 0.3275911, %v11384_v7  ;;  %v6329_v47 = vadd.f32 1.0, %v6265_v12  ;;  %v5692_v54 = vmul.f32 %v11262_v9, %v5628_v30  ;;  %v11400_v34 = vmul.f32 0.70710677, %v11375_v42  ;;  %7549 = vmatpush3.bf16.msra.mxu0 %v8188_v18  ;;  %7486 = vmatprep.subr.bf16.mxu1 %v8189_v27 }
0x10fe   : > { %v11395_v38 = vpop.eup %8555  ;;  %v5437_v32 = vmul.f32 %v11368_v11, %v5373_v15  ;;  %v5566_v39 = vmul.f32 %v11335_v23, %v5502_v56  ;;  %v11406_v8 = vsel %vm4925_vm14, 1.0, %v13567_v62  ;;  %v8191_v30 = vld [vmem:[#allocation12 + $0x30] sm:$0xff]   ;;  %v11409_v60 = vadd.f32 1.0, %v6267_v37  ;;  %7550 = vmatprep.subr.bf16.mxu0 %v8190_v22  ;;  %v13575_v25 = vld [vmem:[#allocation24_spill] sm:$0xff]  ;;  %v8194_v27 = vld [vmem:[#allocation12 + $0xf8] sm:$0xff]  }
0x10ff   : > { %v5311_v12 = vmul.f32 1.0614054, %v11395_v38  ;;  %v5185_v20 = vadd.f32 1.0, %v5121_v1  ;;  %v11412_v41 = vmul.f32 0.5, %v11278_v6  ;;  %vm4927_vm15 = vcmp.ge.f32.partialorder %v11292_v46, 0.0  ;;  %v8193_v6 = vld [vmem:[#allocation12 + $0x78] sm:$0xff]  }
0x1100   : > { %v5501_v49 = vadd.f32 1.4214138, %v5437_v32  ;;  %v6022_v56 = vmul.f32 1.442695, %v5949_v0  ;;  %v11417_v18 = vadd.f32 %v13575_v25, %v10990_v4  ;;  %v11420_v1 = vmul.f32 %v6329_v47, %v11304_v57  ;;  %7487 = vmatpush3.bf16.msra.mxu1 %v8191_v30 }
0x1101   : > { %v5375_v15 = vadd.f32 -1.4531521, %v5311_v12  ;;  %8563 = vrcp.f32 %v5185_v20  ;;  %v5756_v37 = vadd.f32 0.2548296, %v5692_v54  ;;  %v11423_v32 = vand.u32 2147483647, %v11400_v34  ;;  %7551 = vmatpush3.bf16.msra.mxu0 %v8192_v14  ;;  %7488 = vmatprep.subr.bf16.mxu1 %v8193_v6 }
0x1102   : > { %13576 = vst [vmem:[#allocation29_spill] sm:$0xff] %v11420_v1  ;;  %8565 = vpow2.f32 %v6024_v48  ;;  %v5630_v0 = vadd.f32 -0.28449672, %v5566_v39  ;;  %v11430_v12 = vsel %vm4927_vm15, 1.0, %v13567_v62  ;;  %v11434_v47 = vmul.f32 0.5, %v11297_v63  ;;  %v8195_v48 = vld [vmem:[#allocation12 + $0x38] sm:$0xff]   ;;  %7552 = vmatprep.subr.bf16.mxu0 %v8194_v27 }
0x1103   : > { %v11425_v22 = vpop.eup %8557  ;;  %v5439_v57 = vmul.f32 %v11395_v38, %v5375_v15  ;;  %v8196_v54 = vld [vmem:[#allocation12 + $0xb8] sm:$0xff]   ;;  %v5565_v30 = vmul.f32 %v11368_v11, %v5501_v49  ;;  %v5887_v14 = vsub.f32 0.0, %v11309_v10  ;;  %v5123_v25 = vmul.f32 0.3275911, %v11423_v32 }
0x1104   : > { %v11436_v20 = vpop.eup %8559  ;;  %v5312_v39 = vmul.f32 1.0614054, %v11425_v22  ;;  %8567 = vpow2.f32 %v6022_v56  ;;  %v11444_v63 = vmul.f32 0.70710677, %v11417_v18  ;;  %v5820_v59 = vmul.f32 %v11262_v9, %v5756_v37  ;;  %7489 = vmatpush3.bf16.msra.mxu1 %v8195_v48 }
0x1105   : > { %v5503_v46 = vadd.f32 1.4214138, %v5439_v57  ;;  %v5314_v15 = vmul.f32 1.0614054, %v11436_v20  ;;  %v8562_v19 = vpop.eup %8561  ;;  %v5888_v49 = vsub.f32 0.0, %v11343_v28  ;;  %v5187_v35 = vadd.f32 1.0, %v5123_v25  ;;  %7553 = vmatpush3.bf16.msra.mxu0 %v8196_v54 }
0x1106   : > { %v5376_v2 = vadd.f32 -1.4531521, %v5312_v39  ;;  %v5694_v26 = vmul.f32 %v11335_v23, %v5630_v0  ;;  %v11450_v6 = vmul.f32 0.5, %v11301_v44  ;;  %v5890_v27 = vsub.f32 0.0, %v11346_v45  ;;  %v13577_v57 = vld [vmem:[#allocation54_spill] sm:$0xff] }
0x1107   : > { %v5378_v56 = vadd.f32 -1.4531521, %v5314_v15  ;;  %7922 = vmatprep.subr.bf16.mxu1 %v13577_v57  ;;  %v5629_v29 = vadd.f32 -0.28449672, %v5565_v30  ;;  %v5951_v61 = vmul.f32 %v5887_v14, %v11309_v10  ;;  %8569 = vrcp.f32 %v5187_v35 }
0x1108   : > { %v5440_v9 = vmul.f32 %v11425_v22, %v5376_v2  ;;  %v5567_v37 = vmul.f32 %v11395_v38, %v5503_v46  ;;  %vm4928_vm0 = vcmp.ge.f32.partialorder %v11326_v16, 0.0  ;;  %v11460_v44 = vand.u32 2147483647, %v11444_v63 }
0x1109   : > { %v5442_v0 = vmul.f32 %v11436_v20, %v5378_v56  ;;  %v6140_v48 = vmul.f32 %v8562_v19, %v5820_v59  ;;  %v5952_v39 = vmul.f32 %v5888_v49, %v11343_v28  ;;  %vm4930_vm1 = vcmp.ge.f32.partialorder %v11329_v51, 0.0  ;;  %v11471_v19 = vpop.f32.mrb[96].mxu1  ;;  %v11473_v28 = vpop.f32.mrb[128].mxu0 }
0x110a   : > { %v5504_v54 = vadd.f32 1.4214138, %v5440_v9  ;;  %v5758_v10 = vadd.f32 0.2548296, %v5694_v26  ;;  %v5954_v35 = vmul.f32 %v5890_v27, %v11346_v45  ;;  %v5124_v14 = vmul.f32 0.3275911, %v11460_v44 }
0x110b   : > { %v11464_v30 = vpop.eup %8563  ;;  %v5506_v2 = vadd.f32 1.4214138, %v5442_v0  ;;  %v5693_v46 = vmul.f32 %v11368_v11, %v5629_v29  ;;  %v6026_v15 = vmul.f32 1.442695, %v5951_v61  ;;  %13578 = vst [vmem:[#allocation27_spill] sm:$0xff] %v11471_v19  ;;  %13579 = vst [vmem:[#allocation23_spill] sm:$0xff] %v11473_v28 }
0x110c   : > { %v8566_v25 = vpop.eup %8565  ;;  %v5568_v56 = vmul.f32 %v11425_v22, %v5504_v54  ;;  %v5313_v59 = vmul.f32 1.0614054, %v11464_v30  ;;  %v5631_v49 = vadd.f32 -0.28449672, %v5567_v37  ;;  %v11478_v26 = vsel %vm4928_vm0, 1.0, %v13567_v62  ;;  %v11481_v57 = vpop.f32.mrb[97].mxu1 }
0x110d   : > { %v5570_v45 = vmul.f32 %v11436_v20, %v5506_v2  ;;  %v5188_v27 = vadd.f32 1.0, %v5124_v14  ;;  %13580 = vst [vmem:[#allocation52_spill] sm:$0xff] %v11481_v57  ;;  %v11483_v29 = vpop.f32.mrb[129].mxu0  ;;  %v6204_v61 = vsub.f32 1.0, %v6140_v48  ;;  %v6028_v9 = vmul.f32 1.442695, %v5952_v39 }
0x110e   : > { %13581 = vst [vmem:[#allocation24_spill] sm:$0xff] %v11483_v29  ;;  %v5377_v0 = vadd.f32 -1.4531521, %v5313_v59  ;;  %v13582_v54 = vld [vmem:[#allocation25_spill] sm:$0xff]  ;;  %v11489_v37 = vpop.f32.mrb[98].mxu1  ;;  %v8568_v28 = vpop.eup %8567  ;;  %v5822_v16 = vmul.f32 %v11335_v23, %v5758_v10  ;;  %v5889_v2 = vsub.f32 0.0, %v11384_v7 }
0x110f   : > { %v11487_v19 = vadd.f32 %v13582_v54, %v10992_v21  ;;  %13583 = vst [vmem:[#allocation54_spill] sm:$0xff] %v11489_v37  ;;  %v6032_v1 = vmul.f32 1.442695, %v5954_v35  ;;  %8571 = vrcp.f32 %v5188_v27  ;;  %v5757_v14 = vadd.f32 0.2548296, %v5693_v46  ;;  %v11499_v59 = vpop.f32.mrb[130].mxu0 }
0x1110   : > { %v5632_v57 = vadd.f32 -0.28449672, %v5568_v56  ;;  %v11496_v48 = vsel %vm4930_vm1, 1.0, %v13567_v62  ;;  %v5441_v39 = vmul.f32 %v11464_v30, %v5377_v0  ;;  %13584 = vst [vmem:[#allocation25_spill] sm:$0xff] %v11499_v59  ;;  %v5695_v54 = vmul.f32 %v11395_v38, %v5631_v49 }
0x1111   : > { %8573 = vpow2.f32 %v6026_v15  ;;  %v5634_v37 = vadd.f32 -0.28449672, %v5570_v45  ;;  %vm4929_vm2 = vcmp.ge.f32.partialorder %v11366_v40, 0.0  ;;  %v11503_v23 = vpop.eup %8569  ;;  %v6268_v10 = vmul.f32 %v6204_v61, %v11340_v13 }
0x1112   : > { %v11507_v35 = vmul.f32 0.5, %v11351_v43  ;;  %v5505_v51 = vadd.f32 1.4214138, %v5441_v39  ;;  %v11510_v46 = vmul.f32 0.70710677, %v11487_v19  ;;  %v6142_v56 = vmul.f32 %v8566_v25, %v5822_v16 }
0x1113   : > { %8575 = vpow2.f32 %v6028_v9  ;;  %v5953_v27 = vmul.f32 %v5889_v2, %v11384_v7  ;;  %v5315_v15 = vmul.f32 1.0614054, %v11503_v23  ;;  %v5821_v49 = vmul.f32 %v11368_v11, %v5757_v14  ;;  %v13585_v11 = vld [vmem:[#allocation26_spill] sm:$0xff] }
0x1114   : > { %v5696_v40 = vmul.f32 %v11425_v22, %v5632_v57  ;;  %8577 = vpow2.f32 %v6032_v1  ;;  %v11517_v13 = vsel %vm4929_vm2, 1.0, %v13567_v62  ;;  %v5759_v43 = vadd.f32 0.2548296, %v5695_v54 }
0x1115   : > { %v5698_v45 = vmul.f32 %v11436_v20, %v5634_v37  ;;  %v5569_v61 = vmul.f32 %v11464_v30, %v5505_v51  ;;  %v5379_v0 = vadd.f32 -1.4531521, %v5315_v15  ;;  %v6332_v25 = vadd.f32 1.0, %v6268_v10  ;;  %v11537_v10 = vpop.f32.mrb[99].mxu1 }
0x1116   : > { %vm4931_vm3 = vcmp.ge.f32.partialorder %v11400_v34, 0.0  ;;  %v11523_v7 = vand.u32 2147483647, %v11510_v46  ;;  %v11527_v9 = vadd.f32 %v13585_v11, %v10994_v52  ;;  %v6206_v1 = vsub.f32 1.0, %v6142_v56  ;;  %13587 = vst [vmem:[#allocation61_spill] sm:$0xff] %v11537_v10  ;;  %v13589_v34 = vld [vmem:[#allocation48_spill] sm:$0xff] }
0x1117   : > { %v6030_v57 = vmul.f32 1.442695, %v5953_v27  ;;  %v5443_v16 = vmul.f32 %v11503_v23, %v5379_v0  ;;  %v5891_v2 = vsub.f32 0.0, %v11423_v32  ;;  %v11533_v37 = vmul.f32 %v11409_v60, %v11315_v55 }
0x1118   : > { %v5760_v14 = vadd.f32 0.2548296, %v5696_v40  ;;  %v5892_v39 = vsub.f32 0.0, %v11460_v44  ;;  %v5126_v54 = vmul.f32 0.3275911, %v11523_v7  ;;  %v6141_v15 = vmul.f32 %v8568_v28, %v5821_v49 }
0x1119   : > { %13586 = vst [vmem:[#allocation26_spill] sm:$0xff] %v11533_v37  ;;  %v11539_v51 = vpop.eup %8571  ;;  %v5823_v56 = vmul.f32 %v11395_v38, %v5759_v43  ;;  %v5762_v27 = vadd.f32 0.2548296, %v5698_v45  ;;  %v5633_v0 = vadd.f32 -0.28449672, %v5569_v61  ;;  %v11543_v11 = vmul.f32 0.5, %v11375_v42 }
0x111a   : > { %v5316_v55 = vmul.f32 1.0614054, %v11539_v51  ;;  %v5190_v60 = vadd.f32 1.0, %v5126_v54  ;;  %v11547_v40 = vmul.f32 0.70710677, %v11527_v9  ;;  %v6270_v29 = vmul.f32 %v6206_v1, %v11391_v50  ;;  %v11556_v43 = vpop.f32.mrb[131].mxu0 }
0x111b   : > { %v8574_v59 = vpop.eup %8573  ;;  %v11553_v28 = vsel %vm4931_vm3, 1.0, %v13567_v62  ;;  %v5507_v38 = vadd.f32 1.4214138, %v5443_v16  ;;  %v5955_v49 = vmul.f32 %v5891_v2, %v11423_v32  ;;  %v5824_v42 = vmul.f32 %v11425_v22, %v5760_v14 }
0x111c   : > { %v5380_v45 = vadd.f32 -1.4531521, %v5316_v55  ;;  %v5956_v61 = vmul.f32 %v5892_v39, %v11460_v44  ;;  %8579 = vrcp.f32 %v5190_v60  ;;  %v11561_v10 = vmul.f32 %v6332_v25, %v11332_v24 }
0x111d   : > { %v8576_v54 = vpop.eup %8575  ;;  %v6205_v50 = vsub.f32 1.0, %v6141_v15  ;;  %v6143_v1 = vmul.f32 %v8574_v59, %v5823_v56  ;;  %v11565_v37 = vadd.f32 %v13589_v34, %v10996_v3  ;;  %v5826_v32 = vmul.f32 %v11436_v20, %v5762_v27 }
0x111e   : > { %13588 = vst [vmem:[#allocation62_spill] sm:$0xff] %v11561_v10  ;;  %v8578_v16 = vpop.eup %8577  ;;  %v5697_v2 = vmul.f32 %v11464_v30, %v5633_v0  ;;  %v5444_v22 = vmul.f32 %v11539_v51, %v5380_v45  ;;  %v11571_v44 = vand.u32 2147483647, %v11547_v40  ;;  %8581 = vpow2.f32 %v6030_v57 }
0x111f   : > { %v5571_v24 = vmul.f32 %v11503_v23, %v5507_v38  ;;  %v6034_v25 = vmul.f32 1.442695, %v5955_v49  ;;  %vm4932_vm4 = vcmp.ge.f32.partialorder %v11444_v63, 0.0  ;;  %v6334_v59 = vadd.f32 1.0, %v6270_v29  ;;  %v13590_v38 = vld [vmem:[#allocation45_spill] sm:$0xff] }
0x1120   : > { %v6144_v14 = vmul.f32 %v8576_v54, %v5824_v42  ;;  %v6036_v39 = vmul.f32 1.442695, %v5956_v61  ;;  %v5125_v15 = vmul.f32 0.3275911, %v11571_v44  ;;  %v6269_v20 = vmul.f32 %v6205_v50, %v11406_v8 }
0x1121   : > { %v6207_v56 = vsub.f32 1.0, %v6143_v1  ;;  %v5508_v27 = vadd.f32 1.4214138, %v5444_v22  ;;  %v11578_v0 = vmul.f32 0.70710677, %v11565_v37  ;;  %v6146_v55 = vmul.f32 %v8578_v16, %v5826_v32 }
0x1122   : > { %v5761_v60 = vadd.f32 0.2548296, %v5697_v2  ;;  %v5189_v57 = vadd.f32 1.0, %v5125_v15  ;;  %v11582_v49 = vadd.f32 %v13590_v38, %v10990_v4  ;;  %v5635_v45 = vadd.f32 -0.28449672, %v5571_v24 }
0x1123   : > { %8583 = vpow2.f32 %v6034_v25  ;;  %v11585_v29 = vmul.f32 0.5, %v11417_v18  ;;  %v11588_v42 = vand.u32 2147483647, %v11578_v0  ;;  %v11591_v8 = vmul.f32 %v6334_v59, %v11361_v53  ;;  %v13592_v25 = vld [vmem:[#allocation46_spill] sm:$0xff] }
0x1124   : > { %v6208_v61 = vsub.f32 1.0, %v6144_v14  ;;  %v11596_v54 = vsel %vm4932_vm4, 1.0, %v13567_v62  ;;  %8585 = vrcp.f32 %v5189_v57  ;;  %v6333_v50 = vadd.f32 1.0, %v6269_v20 }
0x1125   : > { %13591 = vst [vmem:[#allocation48_spill] sm:$0xff] %v11591_v8  ;;  %v5572_v1 = vmul.f32 %v11539_v51, %v5508_v27  ;;  %8587 = vpow2.f32 %v6036_v39  ;;  %v5127_v18 = vmul.f32 0.3275911, %v11588_v42  ;;  %v6271_v16 = vmul.f32 %v6207_v56, %v11430_v12 }
0x1126   : > { %v11600_v34 = vpop.eup %8579  ;;  %v6210_v32 = vsub.f32 1.0, %v6146_v55  ;;  %v5825_v53 = vmul.f32 %v11464_v30, %v5761_v60  ;;  %v11605_v2 = vmul.f32 0.70710677, %v11582_v49  ;;  %v5699_v63 = vmul.f32 %v11503_v23, %v5635_v45 }
0x1127   : > { %v5318_v22 = vmul.f32 1.0614054, %v11600_v34  ;;  %v5191_v24 = vadd.f32 1.0, %v5127_v18  ;;  %v11611_v59 = vadd.f32 %v13592_v25, %v10992_v21  ;;  %v6272_v14 = vmul.f32 %v6208_v61, %v11478_v26 }
0x1128   : > { %vm4934_vm5 = vcmp.ge.f32.partialorder %v11510_v46, 0.0  ;;  %v5894_v12 = vsub.f32 0.0, %v11523_v7  ;;  %v11617_v30 = vand.u32 2147483647, %v11605_v2  ;;  %v8582_v39 = vpop.eup %8581  ;;  %v11620_v15 = vmul.f32 %v6333_v50, %v11381_v33  ;;  %v13594_v50 = vld [vmem:[#allocation47_spill] sm:$0xff] }
0x1129   : > { %v5636_v20 = vadd.f32 -0.28449672, %v5572_v1  ;;  %v11623_v56 = vmul.f32 0.5, %v11487_v19  ;;  %8589 = vrcp.f32 %v5191_v24  ;;  %v6335_v27 = vadd.f32 1.0, %v6271_v16 }
0x112a   : > { %13593 = vst [vmem:[#allocation45_spill] sm:$0xff] %v11620_v15  ;;  %v6274_v55 = vmul.f32 %v6210_v32, %v11496_v48  ;;  %v5382_v26 = vadd.f32 -1.4531521, %v5318_v22  ;;  %v5128_v46 = vmul.f32 0.3275911, %v11617_v30  ;;  %v6145_v60 = vmul.f32 %v8582_v39, %v5825_v53 }
0x112b   : > { %v5763_v57 = vadd.f32 0.2548296, %v5699_v63  ;;  %v11628_v38 = vsel %vm4934_vm5, 1.0, %v13567_v62  ;;  %v11631_v45 = vmul.f32 0.70710677, %v11611_v59  ;;  %v6336_v33 = vadd.f32 1.0, %v6272_v14 }
0x112c   : > { %v5958_v61 = vmul.f32 %v5894_v12, %v11523_v7  ;;  %v5192_v19 = vadd.f32 1.0, %v5128_v46  ;;  %v11636_v1 = vadd.f32 %v13594_v50, %v10994_v52  ;;  %v5700_v18 = vmul.f32 %v11539_v51, %v5636_v20 }
0x112d   : > { %v8584_v48 = vpop.eup %8583  ;;  %v11640_v16 = vmul.f32 0.5, %v11527_v9  ;;  %vm4933_vm6 = vcmp.ge.f32.partialorder %v11547_v40, 0.0  ;;  %v11644_v32 = vand.u32 2147483647, %v11631_v45  ;;  %v11649_v7 = vmul.f32 %v6335_v27, %v11412_v41 }
0x112e   : > { %v11646_v53 = vpop.eup %8585  ;;  %v6338_v63 = vadd.f32 1.0, %v6274_v55  ;;  %v5446_v22 = vmul.f32 %v11600_v34, %v5382_v26  ;;  %8591 = vrcp.f32 %v5192_v19  ;;  %v6209_v25 = vsub.f32 1.0, %v6145_v60 }
0x112f   : > { %13595 = vst [vmem:[#allocation46_spill] sm:$0xff] %v11649_v7  ;;  %v8588_v24 = vpop.eup %8587  ;;  %v5827_v14 = vmul.f32 %v11503_v23, %v5763_v57  ;;  %v5317_v9 = vmul.f32 1.0614054, %v11646_v53  ;;  %v5130_v40 = vmul.f32 0.3275911, %v11644_v32  ;;  %v11656_v12 = vmul.f32 %v6336_v33, %v11434_v47  ;;  %v13598_v47 = vld [vmem:[#allocation50_spill] sm:$0xff] }
0x1130   : > { %v6040_v39 = vmul.f32 1.442695, %v5958_v61  ;;  %v11659_v20 = vsel %vm4933_vm6, 1.0, %v13567_v62  ;;  %v11662_v41 = vmul.f32 0.70710677, %v11636_v1  ;;  %v5893_v26 = vsub.f32 0.0, %v11571_v44 }
0x1131   : > { %13596 = vst [vmem:[#allocation47_spill] sm:$0xff] %v11656_v12  ;;  %v5764_v27 = vadd.f32 0.2548296, %v5700_v18  ;;  %v5381_v55 = vadd.f32 -1.4531521, %v5317_v9  ;;  %v5194_v46 = vadd.f32 1.0, %v5130_v40  ;;  %v11666_v23 = vmul.f32 %v6338_v63, %v11450_v6 }
0x1132   : > { %v5510_v60 = vadd.f32 1.4214138, %v5446_v22  ;;  %v11669_v57 = vand.u32 2147483647, %v11662_v41  ;;  %v11673_v33 = vadd.f32 %v13598_v47, %v10996_v3  ;;  %v6273_v19 = vmul.f32 %v6209_v25, %v11517_v13  ;;  %v11679_v9 = vpop.f32.mrb[100].mxu1  ;;  %v11681_v6 = vpop.f32.mrb[132].mxu0 }
0x1133   : > { %13597 = vst [vmem:[#allocation63_spill] sm:$0xff] %v11666_v23  ;;  %v11675_v61 = vpop.eup %8589  ;;  %v6147_v50 = vmul.f32 %v8584_v48, %v5827_v14  ;;  %v5445_v18 = vmul.f32 %v11646_v53, %v5381_v55  ;;  %8593 = vrcp.f32 %v5194_v46  ;;  %13599 = vst [vmem:[#allocation50_spill] sm:$0xff] %v11679_v9  ;;  %v5895_v22 = vsub.f32 0.0, %v11588_v42  ;;  %v11686_v47 = vpop.f32.mrb[101].mxu1 }
0x1134   : > { %13600 = vst [vmem:[#allocation64_spill] sm:$0xff] %v11681_v6  ;;  %8595 = vpow2.f32 %v6040_v39  ;;  %v5319_v63 = vmul.f32 1.0614054, %v11675_v61  ;;  %v5129_v40 = vmul.f32 0.3275911, %v11669_v57  ;;  %13601 = vst [vmem:[#allocation65_spill] sm:$0xff] %v11686_v47  ;;  %v5828_v23 = vmul.f32 %v11539_v51, %v5764_v27 }
0x1135   : > { %v5509_v13 = vadd.f32 1.4214138, %v5445_v18  ;;  %v5957_v48 = vmul.f32 %v5893_v26, %v11571_v44  ;;  %v11691_v25 = vmul.f32 0.5, %v11565_v37  ;;  %v5574_v14 = vmul.f32 %v11600_v34, %v5510_v60 }
0x1136   : > { %v5383_v55 = vadd.f32 -1.4531521, %v5319_v63  ;;  %v5193_v39 = vadd.f32 1.0, %v5129_v40  ;;  %v11695_v46 = vmul.f32 0.70710677, %v11673_v33  ;;  %v6337_v6 = vadd.f32 1.0, %v6273_v19 }
0x1137   : > { %v6211_v9 = vsub.f32 1.0, %v6147_v50  ;;  %vm4935_vm7 = vcmp.ge.f32.partialorder %v11578_v0, 0.0  ;;  %v11699_v47 = vmul.f32 0.5, %v11582_v49  ;;  %v5573_v44 = vmul.f32 %v11646_v53, %v5509_v13  ;;  %v13602_v50 = vld [vmem:[#allocation49_spill] sm:$0xff] }
0x1138   : > { %v11701_v51 = vpop.eup %8591  ;;  %v5959_v37 = vmul.f32 %v5895_v22, %v11588_v42  ;;  %8597 = vrcp.f32 %v5193_v39  ;;  %v11706_v27 = vand.u32 2147483647, %v11695_v46  ;;  %v5447_v26 = vmul.f32 %v11675_v61, %v5383_v55  ;;  %v11725_v39 = vpop.f32.mrb[133].mxu0 }
0x1139   : > { %v5320_v60 = vmul.f32 1.0614054, %v11701_v51  ;;  %v5896_v19 = vsub.f32 0.0, %v11617_v30  ;;  %v11713_v49 = vadd.f32 %v13602_v50, %v10990_v4  ;;  %v6148_v18 = vmul.f32 %v8588_v24, %v5828_v23  ;;  %13604 = vst [vmem:[#allocation66_spill] sm:$0xff] %v11725_v39 }
0x113a   : > { %v5638_v63 = vadd.f32 -0.28449672, %v5574_v14  ;;  %v6038_v40 = vmul.f32 1.442695, %v5957_v48  ;;  %v5131_v13 = vmul.f32 0.3275911, %v11706_v27  ;;  %v11717_v42 = vmul.f32 %v6337_v6, %v11507_v35 }
0x113b   : > { %v11722_v22 = vsel %vm4935_vm7, 1.0, %v13567_v62  ;;  %vm4936_vm8 = vcmp.ge.f32.partialorder %v11605_v2, 0.0  ;;  %v5384_v55 = vadd.f32 -1.4531521, %v5320_v60  ;;  %v6275_v50 = vmul.f32 %v6211_v9, %v11553_v28  ;;  %v11752_v2 = vpop.f32.mrb[102].mxu1 }
0x113c   : > { %13603 = vst [vmem:[#allocation49_spill] sm:$0xff] %v11717_v42  ;;  %v5637_v24 = vadd.f32 -0.28449672, %v5573_v44  ;;  %v6042_v23 = vmul.f32 1.442695, %v5959_v37  ;;  %v5195_v48 = vadd.f32 1.0, %v5131_v13  ;;  %v5960_v6 = vmul.f32 %v5896_v19, %v11617_v30 }
0x113d   : > { %v11728_v14 = vpop.eup %8593  ;;  %v5511_v8 = vadd.f32 1.4214138, %v5447_v26  ;;  %v5448_v35 = vmul.f32 %v11701_v51, %v5384_v55  ;;  %v11733_v0 = vmul.f32 0.70710677, %v11713_v49  ;;  %v6212_v10 = vsub.f32 1.0, %v6148_v18  ;;  %13605 = vst [vmem:[#allocation67_spill] sm:$0xff] %v11752_v2 }
0x113e   : > { %v8596_v12 = vpop.eup %8595  ;;  %v5702_v60 = vmul.f32 %v11600_v34, %v5638_v63  ;;  %v5322_v39 = vmul.f32 1.0614054, %v11728_v14  ;;  %8599 = vrcp.f32 %v5195_v48  ;;  %v11740_v28 = vsel %vm4936_vm8, 1.0, %v13567_v62 }
0x113f   : > { %8601 = vpow2.f32 %v6038_v40  ;;  %v5512_v9 = vadd.f32 1.4214138, %v5448_v35  ;;  %v11743_v44 = vmul.f32 0.5, %v11611_v59  ;;  %v6339_v30 = vadd.f32 1.0, %v6275_v50 }
0x1140   : > { %v5701_v37 = vmul.f32 %v11646_v53, %v5637_v24  ;;  %vm4938_vm9 = vcmp.ge.f32.partialorder %v11631_v45, 0.0  ;;  %v5386_v26 = vadd.f32 -1.4531521, %v5322_v39  ;;  %v5575_v19 = vmul.f32 %v11675_v61, %v5511_v8  ;;  %v13606_v24 = vld [vmem:[#allocation51_spill] sm:$0xff] }
0x1141   : > { %v6044_v18 = vmul.f32 1.442695, %v5960_v6  ;;  %v5898_v63 = vsub.f32 0.0, %v11644_v32  ;;  %v11750_v40 = vand.u32 2147483647, %v11733_v0  ;;  %v6276_v59 = vmul.f32 %v6212_v10, %v11596_v54 }
0x1142   : > { %v11754_v13 = vpop.eup %8597  ;;  %v5766_v55 = vadd.f32 0.2548296, %v5702_v60  ;;  %8603 = vpow2.f32 %v6042_v23  ;;  %v5450_v50 = vmul.f32 %v11728_v14, %v5386_v26  ;;  %v5576_v45 = vmul.f32 %v11701_v51, %v5512_v9 }
0x1143   : > { %v11760_v8 = vsel %vm4938_vm9, 1.0, %v13567_v62  ;;  %v5321_v39 = vmul.f32 1.0614054, %v11754_v13  ;;  %v11765_v48 = vadd.f32 %v13606_v24, %v10992_v21  ;;  %v11768_v35 = vmul.f32 %v6339_v30, %v11543_v11 }
0x1144   : > { %v5765_v6 = vadd.f32 0.2548296, %v5701_v37  ;;  %v5514_v10 = vadd.f32 1.4214138, %v5450_v50  ;;  %v5132_v54 = vmul.f32 0.3275911, %v11750_v40  ;;  %8605 = vpow2.f32 %v6044_v18 }
0x1145   : > { %v5639_v23 = vadd.f32 -0.28449672, %v5575_v19  ;;  %v5962_v60 = vmul.f32 %v5898_v63, %v11644_v32  ;;  %v5385_v9 = vadd.f32 -1.4531521, %v5321_v39  ;;  %v6340_v26 = vadd.f32 1.0, %v6276_v59  ;;  %v11779_v37 = vpop.f32.mrb[134].mxu0 }
0x1146   : > { %v5830_v2 = vmul.f32 %v11600_v34, %v5766_v55  ;;  %v5897_v7 = vsub.f32 0.0, %v11669_v57  ;;  %v5196_v42 = vadd.f32 1.0, %v5132_v54  ;;  %v5640_v24 = vadd.f32 -0.28449672, %v5576_v45  ;;  %v13607_v34 = vld [vmem:[#allocation56_spill] sm:$0xff] }
0x1147   : > { %v5578_v15 = vmul.f32 %v11728_v14, %v5514_v10  ;;  %v5449_v11 = vmul.f32 %v11754_v13, %v5385_v9  ;;  %v11777_v30 = vmul.f32 0.70710677, %v11765_v48  ;;  %v5829_v32 = vmul.f32 %v11646_v53, %v5765_v6 }
0x1148   : > { %v11781_v19 = vpop.eup %8599  ;;  %v11785_v18 = vmul.f32 0.5, %v11636_v1  ;;  %8607 = vrcp.f32 %v5196_v42  ;;  %v11789_v63 = vadd.f32 %v13607_v34, %v10994_v52  ;;  %v5703_v55 = vmul.f32 %v11675_v61, %v5639_v23 }
0x1149   : > { %v8602_v59 = vpop.eup %8601  ;;  %vm4937_vm10 = vcmp.ge.f32.partialorder %v11662_v41, 0.0  ;;  %v5513_v50 = vadd.f32 1.4214138, %v5449_v11  ;;  %v5323_v45 = vmul.f32 1.0614054, %v11781_v19  ;;  %v11795_v39 = vmul.f32 %v6340_v26, %v11585_v29  ;;  %v11813_v26 = vpop.f32.mrb[103].mxu1 }
0x114a   : > { %v6150_v53 = vmul.f32 %v8596_v12, %v5830_v2  ;;  %v6048_v6 = vmul.f32 1.442695, %v5962_v60  ;;  %v5961_v1 = vmul.f32 %v5897_v7, %v11669_v57  ;;  %v5704_v42 = vmul.f32 %v11701_v51, %v5640_v24  ;;  %13609 = vst [vmem:[#allocation56_spill] sm:$0xff] %v11813_v26  ;;  %v13610_v26 = vld [vmem:[#allocation53_spill] sm:$0xff] }
0x114b   : > { %13608 = vst [vmem:[#allocation51_spill] sm:$0xff] %v11795_v39  ;;  %v5642_v10 = vadd.f32 -0.28449672, %v5578_v15  ;;  %v5387_v54 = vadd.f32 -1.4531521, %v5323_v45  ;;  %v6149_v34 = vmul.f32 %v8602_v59, %v5829_v32  ;;  %v11803_v41 = vsel %vm4937_vm10, 1.0, %v13567_v62 }
0x114c   : > { %v11800_v9 = vand.u32 2147483647, %v11777_v30  ;;  %v8604_v23 = vpop.eup %8603  ;;  %v5899_v11 = vsub.f32 0.0, %v11706_v27  ;;  %v11807_v29 = vmul.f32 0.70710677, %v11789_v63  ;;  %v5577_v7 = vmul.f32 %v11754_v13, %v5513_v50 }
0x114d   : > { %v5767_v12 = vadd.f32 0.2548296, %v5703_v55  ;;  %v5451_v57 = vmul.f32 %v11781_v19, %v5387_v54  ;;  %v6214_v2 = vsub.f32 1.0, %v6150_v53  ;;  %8609 = vpow2.f32 %v6048_v6 }
0x114e   : > { %v5134_v15 = vmul.f32 0.3275911, %v11800_v9  ;;  %v6046_v60 = vmul.f32 1.442695, %v5961_v1  ;;  %vm4939_vm11 = vcmp.ge.f32.partialorder %v11695_v46, 0.0  ;;  %v8606_v24 = vpop.eup %8605  ;;  %v5706_v59 = vmul.f32 %v11728_v14, %v5642_v10 }
0x114f   : > { %v5768_v32 = vadd.f32 0.2548296, %v5704_v42  ;;  %v5515_v45 = vadd.f32 1.4214138, %v5451_v57  ;;  %v6213_v55 = vsub.f32 1.0, %v6149_v34  ;;  %v11817_v50 = vmul.f32 0.5, %v11673_v33 }
0x1150   : > { %v5198_v39 = vadd.f32 1.0, %v5134_v15  ;;  %v5963_v54 = vmul.f32 %v5899_v11, %v11706_v27  ;;  %v11821_v53 = vand.u32 2147483647, %v11807_v29  ;;  %v5831_v6 = vmul.f32 %v11675_v61, %v5767_v12  ;;  %v11835_v12 = vpop.f32.mrb[135].mxu0 }
0x1151   : > { %v5641_v46 = vadd.f32 -0.28449672, %v5577_v7  ;;  %v11825_v1 = vsel %vm4939_vm11, 1.0, %v13567_v62  ;;  %v6278_v10 = vmul.f32 %v6214_v2, %v11628_v38  ;;  %v5900_v33 = vsub.f32 0.0, %v11750_v40 }
0x1152   : > { %8611 = vrcp.f32 %v5198_v39  ;;  %v11827_v42 = vpop.eup %8607  ;;  %v5133_v34 = vmul.f32 0.3275911, %v11821_v53  ;;  %v5832_v27 = vmul.f32 %v11701_v51, %v5768_v32  ;;  %v5770_v11 = vadd.f32 0.2548296, %v5706_v59 }
0x1153   : > { %8613 = vpow2.f32 %v6046_v60  ;;  %v5579_v57 = vmul.f32 %v11781_v19, %v5515_v45  ;;  %v5324_v61 = vmul.f32 1.0614054, %v11827_v42  ;;  %v6277_v39 = vmul.f32 %v6213_v55, %v11659_v20 }
0x1154   : > { %v6050_v7 = vmul.f32 1.442695, %v5963_v54  ;;  %vm4940_vm12 = vcmp.ge.f32.partialorder %v11733_v0, 0.0  ;;  %v5197_v38 = vadd.f32 1.0, %v5133_v34  ;;  %v6151_v15 = vmul.f32 %v8604_v23, %v5831_v6 }
0x1155   : > { %v5705_v2 = vmul.f32 %v11754_v13, %v5641_v46  ;;  %v5388_v60 = vadd.f32 -1.4531521, %v5324_v61  ;;  %v11842_v51 = vadd.f32 %v13610_v26, %v10996_v3  ;;  %v6342_v32 = vadd.f32 1.0, %v6278_v10 }
0x1156   : > { %v5964_v59 = vmul.f32 %v5900_v33, %v11750_v40  ;;  %8615 = vrcp.f32 %v5197_v38  ;;  %v11847_v45 = vadd.f32 %v11205_v5, %v10990_v4  ;;  %v6152_v20 = vmul.f32 %v8606_v24, %v5832_v27 }
0x1157   : > { %v5834_v55 = vmul.f32 %v11728_v14, %v5770_v11  ;;  %v5643_v54 = vadd.f32 -0.28449672, %v5579_v57  ;;  %v11851_v23 = vmul.f32 0.5, %v11713_v49  ;;  %v8610_v6 = vpop.eup %8609  ;;  %v6341_v46 = vadd.f32 1.0, %v6277_v39 }
0x1158   : > { %8617 = vpow2.f32 %v6050_v7  ;;  %v11856_v26 = vsel %vm4940_vm12, 1.0, %v13567_v62  ;;  %v11859_v40 = vmul.f32 0.70710677, %v11842_v51  ;;  %v6215_v5 = vsub.f32 1.0, %v6151_v15 }
0x1159   : > { %v5769_v10 = vadd.f32 0.2548296, %v5705_v2  ;;  %v5452_v24 = vmul.f32 %v11827_v42, %v5388_v60  ;;  %v11863_v14 = vmul.f32 0.5, %v11765_v48  ;;  %v11866_v49 = vmul.f32 %v6342_v32, %v11623_v56 }
0x115a   : > { %v6052_v33 = vmul.f32 1.442695, %v5964_v59  ;;  %v11869_v34 = vand.u32 2147483647, %v11859_v40  ;;  %v11872_v0 = vmul.f32 0.70710677, %v11847_v45  ;;  %v6154_v57 = vmul.f32 %v8610_v6, %v5834_v55 }
0x115b   : > { %13611 = vst [vmem:[#allocation53_spill] sm:$0xff] %v11866_v49  ;;  %v6216_v11 = vsub.f32 1.0, %v6152_v20  ;;  %v5707_v61 = vmul.f32 %v11781_v19, %v5643_v54  ;;  %vm4942_vm13 = vcmp.ge.f32.partialorder %v11777_v30, 0.0  ;;  %v11879_v39 = vmul.f32 %v6341_v46, %v11640_v16 }
0x115c   : > { %v11874_v27 = vpop.eup %8611  ;;  %v5135_v7 = vmul.f32 0.3275911, %v11869_v34  ;;  %v11885_v38 = vadd.f32 %v11212_v17, %v10992_v21  ;;  %v6279_v15 = vmul.f32 %v6215_v5, %v11722_v22  ;;  %v5833_v2 = vmul.f32 %v11754_v13, %v5769_v10 }
0x115d   : > { %v8614_v48 = vpop.eup %8613  ;;  %13612 = vst [vmem:[#allocation68_spill] sm:$0xff] %v11879_v39  ;;  %v5326_v56 = vmul.f32 1.0614054, %v11874_v27  ;;  %v5516_v60 = vadd.f32 1.4214138, %v5452_v24  ;;  %v5902_v32 = vsub.f32 0.0, %v11800_v9  ;;  %8619 = vpow2.f32 %v6052_v33 }
0x115e   : > { %v5199_v20 = vadd.f32 1.0, %v5135_v7  ;;  %v11891_v16 = vand.u32 2147483647, %v11872_v0  ;;  %v6280_v55 = vmul.f32 %v6216_v11, %v11740_v28  ;;  %v6218_v54 = vsub.f32 1.0, %v6154_v57  ;;  %v8779_v39 = vld [vmem:[#allocation12 + $0x98] sm:$0xff]  }
0x115f   : > { %v5390_v59 = vadd.f32 -1.4531521, %v5326_v56  ;;  %v5771_v6 = vadd.f32 0.2548296, %v5707_v61  ;;  %v5901_v17 = vsub.f32 0.0, %v11821_v53  ;;  %v6153_v10 = vmul.f32 %v8614_v48, %v5833_v2 }
0x1160   : > { %v11895_v46 = vpop.eup %8615  ;;  %8621 = vrcp.f32 %v5199_v20  ;;  %v5136_v13 = vmul.f32 0.3275911, %v11891_v16  ;;  %v11900_v5 = vmul.f32 0.70710677, %v11885_v38  ;;  %v5580_v24 = vmul.f32 %v11827_v42, %v5516_v60 }
0x1161   : > { %v5454_v22 = vmul.f32 %v11874_v27, %v5390_v59  ;;  %v11906_v28 = vsel %vm4942_vm13, 1.0, %v13567_v62  ;;  %v5966_v33 = vmul.f32 %v5902_v32, %v11800_v9  ;;  %v6343_v57 = vadd.f32 1.0, %v6279_v15 }
0x1162   : > { %v8618_v11 = vpop.eup %8617  ;;  %v5325_v56 = vmul.f32 1.0614054, %v11895_v46  ;;  %v5200_v7 = vadd.f32 1.0, %v5136_v13  ;;  %v6282_v59 = vmul.f32 %v6218_v54, %v11760_v8  ;;  %vm4941_vm14 = vcmp.ge.f32.partialorder %v11807_v29, 0.0 }
0x1163   : > { %v5518_v61 = vadd.f32 1.4214138, %v5454_v22  ;;  %v5965_v48 = vmul.f32 %v5901_v17, %v11821_v53  ;;  %v11915_v2 = vadd.f32 %v11239_v58, %v10994_v52  ;;  %v6344_v30 = vadd.f32 1.0, %v6280_v55 }
0x1164   : > { %v5835_v60 = vmul.f32 %v11781_v19, %v5771_v6  ;;  %8623 = vrcp.f32 %v5200_v7  ;;  %v11919_v9 = vand.u32 2147483647, %v11900_v5  ;;  %v6217_v15 = vsub.f32 1.0, %v6153_v10 }
0x1165   : > { %v5644_v32 = vadd.f32 -0.28449672, %v5580_v24  ;;  %v6056_v20 = vmul.f32 1.442695, %v5966_v33  ;;  %v11922_v8 = vmul.f32 0.5, %v11789_v63  ;;  %v11925_v54 = vmul.f32 %v6343_v57, %v11691_v25 }
0x1166   : > { %v5582_v53 = vmul.f32 %v11874_v27, %v5518_v61  ;;  %v5389_v58 = vadd.f32 -1.4531521, %v5325_v56  ;;  %v5138_v55 = vmul.f32 0.3275911, %v11919_v9  ;;  %v6346_v17 = vadd.f32 1.0, %v6282_v59 }
0x1167   : > { %13613 = vst [vmem:[#allocation69_spill] sm:$0xff] %v11925_v54  ;;  %v11932_v19 = vsel %vm4941_vm14, 1.0, %v13567_v62  ;;  %v6054_v6 = vmul.f32 1.442695, %v5965_v48  ;;  %v11935_v22 = vmul.f32 0.70710677, %v11915_v2  ;;  %v11937_v63 = vpop.eup %8619  ;;  %v11940_v25 = vmul.f32 %v6344_v30, %v11699_v47 }
0x1168   : > { %v6155_v13 = vmul.f32 %v8618_v11, %v5835_v60  ;;  %v5202_v10 = vadd.f32 1.0, %v5138_v55  ;;  %v11944_v24 = vadd.f32 %v11258_v36, %v10996_v3  ;;  %v6281_v33 = vmul.f32 %v6217_v15, %v11803_v41 }
0x1169   : > { %13614 = vst [vmem:[#allocation70_spill] sm:$0xff] %v11940_v25  ;;  %v5708_v29 = vmul.f32 %v11827_v42, %v5644_v32  ;;  %8625 = vpow2.f32 %v6056_v20  ;;  %v11949_v57 = vand.u32 2147483647, %v11935_v22  ;;  %v5646_v56 = vadd.f32 -0.28449672, %v5582_v53 }
0x116a   : > { %v11951_v61 = vpop.eup %8621  ;;  %v5453_v47 = vmul.f32 %v11895_v46, %v5389_v58  ;;  %v11955_v11 = vmul.f32 0.5, %v11842_v51  ;;  %8627 = vrcp.f32 %v5202_v10  ;;  %v11958_v36 = vmul.f32 %v6346_v17, %v11743_v44 }
0x116b   : > { %8629 = vpow2.f32 %v6054_v6  ;;  %v5327_v41 = vmul.f32 1.0614054, %v11951_v61  ;;  %v5903_v7 = vsub.f32 0.0, %v11869_v34  ;;  %v6219_v59 = vsub.f32 1.0, %v6155_v13 }
0x116c   : > { %13615 = vst [vmem:[#allocation71_spill] sm:$0xff] %v11958_v36  ;;  %v11963_v48 = vmul.f32 0.5, %v11847_v45  ;;  %v5137_v30 = vmul.f32 0.3275911, %v11949_v57  ;;  %v11967_v60 = vmul.f32 0.70710677, %v11944_v24  ;;  %v5710_v20 = vmul.f32 %v11874_v27, %v5646_v56 }
0x116d   : > { %v6345_v51 = vadd.f32 1.0, %v6281_v33  ;;  %v5772_v15 = vadd.f32 0.2548296, %v5708_v29  ;;  %vm4943_vm15 = vcmp.ge.f32.partialorder %v11859_v40, 0.0  ;;  %v5391_v44 = vadd.f32 -1.4531521, %v5327_v41 }
0x116e   : > { %v11970_v32 = vpop.eup %8623  ;;  %v5517_v53 = vadd.f32 1.4214138, %v5453_v47  ;;  %v5201_v58 = vadd.f32 1.0, %v5137_v30  ;;  %v11974_v55 = vand.u32 2147483647, %v11967_v60  ;;  %v5967_v17 = vmul.f32 %v5903_v7, %v11869_v34  ;;  %v11985_v29 = vpop.f32.mrb[104].mxu1 }
0x116f   : > { %v5455_v45 = vmul.f32 %v11951_v61, %v5391_v44  ;;  %v5328_v6 = vmul.f32 1.0614054, %v11970_v32  ;;  %v5904_v13 = vsub.f32 0.0, %v11891_v16  ;;  %v6283_v40 = vmul.f32 %v6219_v59, %v11825_v1  ;;  %13616 = vst [vmem:[#allocation72_spill] sm:$0xff] %v11985_v29  ;;  %v11987_v56 = vpop.f32.mrb[136].mxu0  ;;  %v11991_v7 = vpop.f32.mrb[105].mxu1 }
0x1170   : > { %v11982_v10 = vsel %vm4943_vm15, 1.0, %v13567_v62  ;;  %8631 = vrcp.f32 %v5201_v58  ;;  %v5139_v33 = vmul.f32 0.3275911, %v11974_v55  ;;  %13617 = vst [vmem:[#allocation73_spill] sm:$0xff] %v11987_v56  ;;  %v5836_v47 = vmul.f32 %v11827_v42, %v5772_v15  ;;  %13618 = vst [vmem:[#allocation74_spill] sm:$0xff] %v11991_v7  ;;  %v13619_v44 = vld [vmem:[#allocation29_spill] sm:$0xff] }
0x1171   : > { %v5519_v41 = vadd.f32 1.4214138, %v5455_v45  ;;  %vm4944_vm0 = vcmp.ge.f32.partialorder %v11872_v0, 0.0  ;;  %v5392_v34 = vadd.f32 -1.4531521, %v5328_v6  ;;  %v5581_v1 = vmul.f32 %v11895_v46, %v5517_v53  ;;  %v13620_v42 = vld [vmem:[#allocation59_spill] sm:$0xff] }
0x1172   : > { %v5774_v30 = vadd.f32 0.2548296, %v5710_v20  ;;  %v5203_v59 = vadd.f32 1.0, %v5139_v33  ;;  %v6453_v58 = vpack.c.bf16 %v13619_v44, %v11358_v31  ;;  %v6058_v49 = vmul.f32 1.442695, %v5967_v17  ;;  %v13621_v15 = vld [vmem:[#allocation26_spill] sm:$0xff] }
0x1173   : > { %v8626_v36 = vpop.eup %8625  ;;  %v5456_v29 = vmul.f32 %v11970_v32, %v5392_v34  ;;  %v5968_v56 = vmul.f32 %v5904_v13, %v11891_v16  ;;  %v6455_v45 = vpack.c.bf16 %v13621_v15, %v13620_v42  ;;  %v12000_v25 = vpop.f32.mrb[137].mxu0  ;;  %v12005_v20 = vmul.f32 %v6345_v51, %v11785_v18  ;;  %v13624_v31 = vld [vmem:[#allocation27_spill] sm:$0xff]  ;;  %v13625_v44 = vld [vmem:[#allocation58_spill] sm:$0xff]  ;;  %v8777_v7 = vld [vmem:[#allocation12 + $0x90] sm:$0xff]  }
0x1174   : > { %13622 = vst [vmem:[#allocation29_spill] sm:$0xff] %v12000_v25  ;;  %v12002_v6 = vpop.eup %8627  ;;  %v6347_v53 = vadd.f32 1.0, %v6283_v40  ;;  %8633 = vrcp.f32 %v5203_v59  ;;  %6779 = vmatprep.mubr.bf16.mxu1 %v6453_v58  ;;  %v12009_v17 = vadd.f32 %v13624_v31, %v10990_v4  ;;  %v6156_v16 = vmul.f32 %v11937_v63, %v5836_v47  ;;  %v13626_v42 = vld [vmem:[#allocation55_spill] sm:$0xff]  ;;  %v13630_v47 = vld [vmem:[#allocation60_spill] sm:$0xff] }
0x1175   : > { %13623 = vst [vmem:[#allocation59_spill] sm:$0xff] %v12005_v20  ;;  %v12011_v33 = vpop.eup %8629  ;;  %v5583_v13 = vmul.f32 %v11951_v61, %v5519_v41  ;;  %v5520_v34 = vadd.f32 1.4214138, %v5456_v29  ;;  %6876 = vmatprep.mubr.bf16.mxu0 %v6455_v45  ;;  %v13627_v15 = vpack.c.bf16 %v13625_v44, %v13626_v42  ;;  %v13628_v18 = vld [vmem:[#allocation23_spill] sm:$0xff]  ;;  %v5838_v40 = vmul.f32 %v11874_v27, %v5774_v30  ;;  %v13629_v29 = vld [vmem:[#allocation57_spill] sm:$0xff]  ;;  %v8774_v30 = vld [vmem:[#allocation12 + $0xc8] sm:$0xff]  }
0x1176   : > { %v12020_v51 = vadd.f32 %v13628_v18, %v10992_v21  ;;  %v5645_v59 = vadd.f32 -0.28449672, %v5581_v1  ;;  %v12026_v58 = vsel %vm4944_vm0, 1.0, %v13567_v62  ;;  %v5330_v63 = vmul.f32 1.0614054, %v12002_v6  ;;  %v8773_v45 = vld [vmem:[#allocation12 + $0x80] sm:$0xff]  }
0x1177   : > { %6780 = vmatmul.mubr.bf16.vlgmr.msra.gmra.mrb[112].mxu1 %v13627_v15  ;;  %v13631_v41 = vpack.c.bf16 %v13629_v29, %v13630_v47  ;;  %8635 = vpow2.f32 %v6058_v49  ;;  %v6060_v31 = vmul.f32 1.442695, %v5968_v56  ;;  %v12033_v44 = vmul.f32 0.5, %v11885_v38  ;;  %v12085_v20 = vpop.f32.mrb[106].mxu1 }
0x1178   : > { %7930 = vmatpush3.bf16.msra.mxu1 %v8773_v45  ;;  %v12036_v27 = vmul.f32 0.70710677, %v12009_v17  ;;  %v12039_v0 = vmul.f32 %v6347_v53, %v11817_v50  ;;  %vm4946_vm1 = vcmp.ge.f32.partialorder %v11900_v5, 0.0  ;;  %v5394_v1 = vadd.f32 -1.4531521, %v5330_v63  ;;  %v8775_v5 = vld [vmem:[#allocation12 + $0x88] sm:$0xff]  }
0x1179   : > { %6877 = vmatmul.mubr.bf16.vlgmr.msra.gmra.mrb[144].mxu0 %v13631_v41  ;;  %7923 = vmatprep.subr.bf16.mxu1 %v8774_v30  ;;  %v5906_v42 = vsub.f32 0.0, %v11919_v9  ;;  %v6220_v15 = vsub.f32 1.0, %v6156_v16  ;;  %v5647_v18 = vadd.f32 -0.28449672, %v5583_v13  ;;  %v5584_v49 = vmul.f32 %v11970_v32, %v5520_v34  ;;  %v8776_v63 = vld [vmem:[#allocation12 + $0xd0] sm:$0xff]   ;;  %13634 = vst [vmem:[#allocation27_spill] sm:$0xff] %v12085_v20 }
0x117a   : > { %13632 = vst [vmem:[#allocation26_spill] sm:$0xff] %v12039_v0  ;;  %v12045_v38 = vmul.f32 0.70710677, %v12020_v51  ;;  %v12047_v56 = vpop.eup %8631  ;;  %v6158_v29 = vmul.f32 %v8626_v36, %v5838_v40  ;;  %v5709_v47 = vmul.f32 %v11895_v46, %v5645_v59  ;;  %v5458_v50 = vmul.f32 %v12002_v6, %v5394_v1 }
0x117b   : > { %v12052_v53 = vand.u32 2147483647, %v12036_v27  ;;  %8637 = vpow2.f32 %v6060_v31  ;;  %v12055_v16 = vsel %vm4946_vm1, 1.0, %v13567_v62  ;;  %v12058_v13 = vmul.f32 0.5, %v11915_v2 }
0x117c   : > { %7931 = vmatpush3.bf16.msra.mxu1 %v8775_v5  ;;  %v5329_v34 = vmul.f32 1.0614054, %v12047_v56  ;;  %v5522_v36 = vadd.f32 1.4214138, %v5458_v50  ;;  %v5970_v40 = vmul.f32 %v5906_v42, %v11919_v9  ;;  %v5905_v59 = vsub.f32 0.0, %v11949_v57 }
0x117d   : > { %7924 = vmatprep.subr.bf16.mxu1 %v8776_v63  ;;  %v5140_v41 = vmul.f32 0.3275911, %v12052_v53  ;;  %v5711_v45 = vmul.f32 %v11951_v61, %v5647_v18  ;;  %v5648_v31 = vadd.f32 -0.28449672, %v5584_v49  ;;  %v12066_v1 = vand.u32 2147483647, %v12045_v38 }
0x117e   : > { %v5393_v30 = vadd.f32 -1.4531521, %v5329_v34  ;;  %v12068_v2 = vpop.eup %8633  ;;  %v6284_v5 = vmul.f32 %v6220_v15, %v11856_v26  ;;  %v6222_v25 = vsub.f32 1.0, %v6158_v29  ;;  %v5773_v63 = vadd.f32 0.2548296, %v5709_v47  ;;  %v8778_v34 = vld [vmem:[#allocation12 + $0xd8] sm:$0xff]  }
0x117f   : > { %v5204_v50 = vadd.f32 1.0, %v5140_v41  ;;  %v5586_v9 = vmul.f32 %v12002_v6, %v5522_v36  ;;  %v5331_v18 = vmul.f32 1.0614054, %v12068_v2  ;;  %v5907_v49 = vsub.f32 0.0, %v11974_v55 }
0x1180   : > { %7932 = vmatpush3.bf16.msra.mxu1 %v8777_v7  ;;  %v5457_v42 = vmul.f32 %v12047_v56, %v5393_v30  ;;  %v6064_v0 = vmul.f32 1.442695, %v5970_v40  ;;  %vm4945_vm2 = vcmp.ge.f32.partialorder %v11935_v22, 0.0  ;;  %v5142_v26 = vmul.f32 0.3275911, %v12066_v1  ;;  %v12105_v22 = vpop.f32.mrb[107].mxu1 }
0x1181   : > { %7925 = vmatprep.subr.bf16.mxu1 %v8778_v34  ;;  %8639 = vrcp.f32 %v5204_v50  ;;  %v8636_v15 = vpop.eup %8635  ;;  %v5775_v29 = vadd.f32 0.2548296, %v5711_v45  ;;  %v5712_v7 = vmul.f32 %v11970_v32, %v5648_v31  ;;  %v5969_v47 = vmul.f32 %v5905_v59, %v11949_v57  ;;  %v13633_v34 = vld [vmem:[#allocation52_spill] sm:$0xff]  ;;  %v12087_v50 = vpop.f32.mrb[138].mxu0  ;;  %13636 = vst [vmem:[#allocation55_spill] sm:$0xff] %v12105_v22 }
0x1182   : > { %v5395_v36 = vadd.f32 -1.4531521, %v5331_v18  ;;  %v6286_v41 = vmul.f32 %v6222_v25, %v11906_v28  ;;  %v5837_v30 = vmul.f32 %v11895_v46, %v5773_v63  ;;  %v5206_v54 = vadd.f32 1.0, %v5142_v26  ;;  %13635 = vst [vmem:[#allocation58_spill] sm:$0xff] %v12087_v50  ;;  %v8780_v28 = vld [vmem:[#allocation12 + $0xe0] sm:$0xff]  }
0x1183   : > { %v12083_v40 = vadd.f32 %v13633_v34, %v10994_v52  ;;  %v5650_v45 = vadd.f32 -0.28449672, %v5586_v9  ;;  %v5521_v31 = vadd.f32 1.4214138, %v5457_v42  ;;  %v5971_v59 = vmul.f32 %v5907_v49, %v11974_v55 }
0x1184   : > { %7933 = vmatpush3.bf16.msra.mxu1 %v8779_v39  ;;  %v5459_v57 = vmul.f32 %v12068_v2, %v5395_v36  ;;  %v6348_v46 = vadd.f32 1.0, %v6284_v5  ;;  %v12094_v25 = vsel %vm4945_vm2, 1.0, %v13567_v62  ;;  %v12097_v63 = vmul.f32 0.5, %v11944_v24  ;;  %v8781_v36 = vld [vmem:[#allocation12 + $0xa0] sm:$0xff]  }
0x1185   : > { %7926 = vmatprep.subr.bf16.mxu1 %v8780_v28  ;;  %8641 = vrcp.f32 %v5206_v54  ;;  %v8638_v18 = vpop.eup %8637  ;;  %v5839_v39 = vmul.f32 %v11951_v61, %v5775_v29  ;;  %v5776_v9 = vadd.f32 0.2548296, %v5712_v7  ;;  %vm4947_vm3 = vcmp.ge.f32.partialorder %v11967_v60, 0.0  ;;  %v8782_v29 = vld [vmem:[#allocation12 + $0xe8] sm:$0xff]  }
0x1186   : > { %v5523_v42 = vadd.f32 1.4214138, %v5459_v57  ;;  %v6350_v55 = vadd.f32 1.0, %v6286_v41  ;;  %v6157_v49 = vmul.f32 %v12011_v33, %v5837_v30  ;;  %v6062_v5 = vmul.f32 1.442695, %v5969_v47  ;;  %v13638_v41 = vld [vmem:[#allocation24_spill] sm:$0xff] }
0x1187   : > { %v12103_v26 = vmul.f32 0.70710677, %v12083_v40  ;;  %v5714_v54 = vmul.f32 %v12002_v6, %v5650_v45  ;;  %8643 = vpow2.f32 %v6064_v0  ;;  %v5585_v24 = vmul.f32 %v12047_v56, %v5521_v31 }
0x1188   : > { %7934 = vmatpush3.bf16.msra.mxu1 %v8781_v36  ;;  %v6066_v61 = vmul.f32 1.442695, %v5971_v59  ;;  %v12110_v7 = vmul.f32 %v6348_v46, %v11851_v23  ;;  %v5587_v33 = vmul.f32 %v12068_v2, %v5523_v42  ;;  %v12118_v30 = vadd.f32 %v13638_v41, %v10996_v3  ;;  %v12133_v46 = vpop.f32.mrb[139].mxu0 }
0x1189   : > { %7927 = vmatprep.subr.bf16.mxu1 %v8782_v29  ;;  %v12114_v47 = vand.u32 2147483647, %v12103_v26  ;;  %v6159_v34 = vmul.f32 %v8636_v15, %v5839_v39  ;;  %v5840_v0 = vmul.f32 %v11970_v32, %v5776_v9  ;;  %v12124_v45 = vsel %vm4947_vm3, 1.0, %v13567_v62  ;;  %13640 = vst [vmem:[#allocation60_spill] sm:$0xff] %v12133_v46  ;;  %v8783_v15 = vld [vmem:[#allocation12 + $0xa8] sm:$0xff]   ;;  %v8784_v9 = vld [vmem:[#allocation12 + $0xf0] sm:$0xff]  }
0x118a   : > { %13637 = vst [vmem:[#allocation23_spill] sm:$0xff] %v12110_v7  ;;  %v5908_v23 = vsub.f32 0.0, %v12052_v53  ;;  %v12130_v57 = vmul.f32 %v6350_v55, %v11863_v14  ;;  %v6221_v59 = vsub.f32 1.0, %v6157_v49  ;;  %8645 = vpow2.f32 %v6062_v5  ;;  %v13641_v55 = vld [vmem:[#allocation54_spill] sm:$0xff] }
0x118b   : > { %v12127_v31 = vpop.eup %8639  ;;  %v5141_v28 = vmul.f32 0.3275911, %v12114_v47  ;;  %v5778_v32 = vadd.f32 0.2548296, %v5714_v54  ;;  %v5649_v39 = vadd.f32 -0.28449672, %v5585_v24  ;;  %8647 = vpow2.f32 %v6066_v61 }
0x118c   : > { %13639 = vst [vmem:[#allocation57_spill] sm:$0xff] %v12130_v57  ;;  %7935 = vmatpush3.bf16.msra.mxu1 %v8783_v15  ;;  %v5332_v60 = vmul.f32 1.0614054, %v12127_v31  ;;  %v5651_v42 = vadd.f32 -0.28449672, %v5587_v33  ;;  %v12141_v49 = vadd.f32 %v13641_v55, %v10990_v4  ;;  %v6223_v5 = vsub.f32 1.0, %v6159_v34 }
0x118d   : > { %7928 = vmatprep.subr.bf16.mxu1 %v8784_v9  ;;  %v5205_v36 = vadd.f32 1.0, %v5141_v28  ;;  %v12137_v14 = vmul.f32 0.70710677, %v12118_v30  ;;  %v6160_v29 = vmul.f32 %v8638_v18, %v5840_v0  ;;  %v5972_v54 = vmul.f32 %v5908_v23, %v12052_v53  ;;  %v8785_v28 = vld [vmem:[#allocation12 + $0xb0] sm:$0xff]   ;;  %v8786_v34 = vld [vmem:[#allocation12 + $0xf8] sm:$0xff]  }
0x118e   : > { %v5396_v41 = vadd.f32 -1.4531521, %v5332_v60  ;;  %v6285_v61 = vmul.f32 %v6221_v59, %v11932_v19  ;;  %v12148_v15 = vmul.f32 0.5, %v12009_v17  ;;  %v12151_v33 = vmul.f32 0.5, %v12020_v51  ;;  %v8787_v55 = vld [vmem:[#allocation12 + $0xb8] sm:$0xff]  }
0x118f   : > { %v12144_v24 = vpop.eup %8641  ;;  %8649 = vrcp.f32 %v5205_v36  ;;  %v5842_v9 = vmul.f32 %v12002_v6, %v5778_v32  ;;  %v5713_v18 = vmul.f32 %v12047_v56, %v5649_v39  ;;  %vm4948_vm4 = vcmp.ge.f32.partialorder %v12036_v27, 0.0 }
0x1190   : > { %7936 = vmatpush3.bf16.msra.mxu1 %v8785_v28  ;;  %v5334_v53 = vmul.f32 1.0614054, %v12144_v24  ;;  %v5715_v19 = vmul.f32 %v12068_v2, %v5651_v42  ;;  %v5910_v17 = vsub.f32 0.0, %v12066_v1  ;;  %v12160_v51 = vand.u32 2147483647, %v12137_v14 }
0x1191   : > { %7929 = vmatprep.subr.bf16.mxu1 %v8786_v34  ;;  %v12163_v0 = vmul.f32 0.70710677, %v12141_v49  ;;  %v8644_v23 = vpop.eup %8643  ;;  %v6287_v6 = vmul.f32 %v6223_v5, %v11982_v10  ;;  %v6224_v59 = vsub.f32 1.0, %v6160_v29  ;;  %v5460_v27 = vmul.f32 %v12127_v31, %v5396_v41 }
0x1192   : > { %v6068_v32 = vmul.f32 1.442695, %v5972_v54  ;;  %v6349_v39 = vadd.f32 1.0, %v6285_v61  ;;  %v12168_v60 = vsel %vm4948_vm4, 1.0, %v13567_v62  ;;  %v5143_v42 = vmul.f32 0.3275911, %v12160_v51 }
0x1193   : > { %v12172_v36 = vand.u32 2147483647, %v12163_v0  ;;  %v6162_v28 = vmul.f32 %v8644_v23, %v5842_v9  ;;  %v5777_v34 = vadd.f32 0.2548296, %v5713_v18  ;;  %vm4950_vm5 = vcmp.ge.f32.partialorder %v12045_v38, 0.0 }
0x1194   : > { %7937 = vmatpush3.bf16.msra.mxu1 %v8787_v55  ;;  %v5398_v10 = vadd.f32 -1.4531521, %v5334_v53  ;;  %v8646_v5 = vpop.eup %8645  ;;  %v5779_v29 = vadd.f32 0.2548296, %v5715_v19  ;;  %v5974_v41 = vmul.f32 %v5910_v17, %v12066_v1  ;;  %v5207_v54 = vadd.f32 1.0, %v5143_v42  ;;  %v13642_v19 = vld [vmem:[#allocation25_spill] sm:$0xff] }
0x1195   : > { %v5144_v61 = vmul.f32 0.3275911, %v12172_v36  ;;  %v8648_v46 = vpop.eup %8647  ;;  %v6351_v22 = vadd.f32 1.0, %v6287_v6  ;;  %v6288_v50 = vmul.f32 %v6224_v59, %v12026_v58  ;;  %v5524_v20 = vadd.f32 1.4214138, %v5460_v27  ;;  %v12190_v58 = vpop.f32.mrb[108].mxu1 }
0x1196   : > { %8651 = vpow2.f32 %v6068_v32  ;;  %v12179_v55 = vmul.f32 %v6349_v39, %v11922_v8  ;;  %v12182_v9 = vsel %vm4950_vm5, 1.0, %v13567_v62  ;;  %v6226_v18 = vsub.f32 1.0, %v6162_v28  ;;  %13643 = vst [vmem:[#allocation52_spill] sm:$0xff] %v12190_v58  ;;  %v13644_v27 = vld [vmem:[#allocation61_spill] sm:$0xff] }
0x1197   : > { %8653 = vrcp.f32 %v5207_v54  ;;  %v5208_v38 = vadd.f32 1.0, %v5144_v61  ;;  %v5841_v1 = vmul.f32 %v12047_v56, %v5777_v34  ;;  %v5462_v53 = vmul.f32 %v12144_v24, %v5398_v10  ;;  %v12212_v34 = vpop.f32.mrb[140].mxu0 }
0x1198   : > { %v12188_v17 = vadd.f32 %v13642_v19, %v10992_v21  ;;  %v5843_v8 = vmul.f32 %v12068_v2, %v5779_v29  ;;  %v6072_v6 = vmul.f32 1.442695, %v5974_v41  ;;  %v12196_v59 = vmul.f32 0.5, %v12083_v40  ;;  %13646 = vst [vmem:[#allocation54_spill] sm:$0xff] %v12212_v34 }
0x1199   : > { %v12192_v23 = vpop.eup %8649  ;;  %v12200_v32 = vadd.f32 %v13644_v27, %v10994_v52  ;;  %v12203_v56 = vmul.f32 %v6351_v22, %v11955_v11  ;;  %v6352_v39 = vadd.f32 1.0, %v6288_v50  ;;  %v5588_v42 = vmul.f32 %v12127_v31, %v5524_v20 }
0x119a   : > { %v5333_v28 = vmul.f32 1.0614054, %v12192_v23  ;;  %vm4949_vm6 = vcmp.ge.f32.partialorder %v12103_v26, 0.0  ;;  %v5909_v2 = vsub.f32 0.0, %v12114_v47  ;;  %8655 = vrcp.f32 %v5208_v38 }
0x119b   : > { %13645 = vst [vmem:[#allocation24_spill] sm:$0xff] %v12203_v56  ;;  %v12210_v40 = vmul.f32 0.70710677, %v12188_v17  ;;  %v6290_v10 = vmul.f32 %v6226_v18, %v12055_v16  ;;  %v6161_v29 = vmul.f32 %v8646_v5, %v5841_v1  ;;  %v5526_v11 = vadd.f32 1.4214138, %v5462_v53 }
0x119c   : > { %v5397_v22 = vadd.f32 -1.4531521, %v5333_v28  ;;  %v6163_v50 = vmul.f32 %v8648_v46, %v5843_v8  ;;  %8657 = vpow2.f32 %v6072_v6  ;;  %v12219_v41 = vmul.f32 0.70710677, %v12200_v32 }
0x119d   : > { %v12216_v20 = vand.u32 2147483647, %v12210_v40  ;;  %v12222_v54 = vmul.f32 %v6352_v39, %v11963_v48  ;;  %v5652_v61 = vadd.f32 -0.28449672, %v5588_v42  ;;  %v5911_v19 = vsub.f32 0.0, %v12160_v51 }
0x119e   : > { %v5461_v38 = vmul.f32 %v12192_v23, %v5397_v22  ;;  %v12229_v16 = vsel %vm4949_vm6, 1.0, %v13567_v62  ;;  %v5973_v46 = vmul.f32 %v5909_v2, %v12114_v47  ;;  %v12234_v18 = vand.u32 2147483647, %v12219_v41 }
0x119f   : > { %13647 = vst [vmem:[#allocation25_spill] sm:$0xff] %v12222_v54  ;;  %v5146_v5 = vmul.f32 0.3275911, %v12216_v20  ;;  %v6354_v48 = vadd.f32 1.0, %v6290_v10  ;;  %v6225_v53 = vsub.f32 1.0, %v6161_v29  ;;  %v5590_v8 = vmul.f32 %v12144_v24, %v5526_v11  ;;  %v13654_v54 = vld [vmem:[#allocation62_spill] sm:$0xff] }
0x11a0   : > { %v12236_v1 = vpop.eup %8651  ;;  %vm4951_vm7 = vcmp.ge.f32.partialorder %v12137_v14, 0.0  ;;  %v6227_v26 = vsub.f32 1.0, %v6163_v50  ;;  %v5145_v39 = vmul.f32 0.3275911, %v12234_v18  ;;  %v12245_v47 = vadd.f32 %v11556_v43, %v10996_v3  ;;  %v12256_v50 = vpop.f32.mrb[109].mxu1 }
0x11a1   : > { %v12240_v6 = vpop.eup %8653  ;;  %v5210_v27 = vadd.f32 1.0, %v5146_v5  ;;  %v5716_v42 = vmul.f32 %v12127_v31, %v5652_v61  ;;  %v5525_v28 = vadd.f32 1.4214138, %v5461_v38  ;;  %v5975_v10 = vmul.f32 %v5911_v19, %v12160_v51  ;;  %13648 = vst [vmem:[#allocation61_spill] sm:$0xff] %v12256_v50 }
0x11a2   : > { %v5335_v2 = vmul.f32 1.0614054, %v12240_v6  ;;  %v12251_v29 = vmul.f32 0.5, %v12118_v30  ;;  %v12254_v11 = vmul.f32 0.5, %v12141_v49  ;;  %v5209_v22 = vadd.f32 1.0, %v5145_v39 }
0x11a3   : > { %8659 = vrcp.f32 %v5210_v27  ;;  %v6289_v43 = vmul.f32 %v6225_v53, %v12094_v25  ;;  %v5654_v5 = vadd.f32 -0.28449672, %v5590_v8  ;;  %v6070_v34 = vmul.f32 1.442695, %v5973_v46 }
0x11a4   : > { %v5399_v61 = vadd.f32 -1.4531521, %v5335_v2  ;;  %v12259_v38 = vpop.eup %8655  ;;  %v12262_v58 = vmul.f32 %v6354_v48, %v12033_v44  ;;  %v6291_v30 = vmul.f32 %v6227_v26, %v12124_v45  ;;  %v12268_v49 = vsel %vm4951_vm7, 1.0, %v13567_v62 }
0x11a5   : > { %v12271_v51 = vmul.f32 0.70710677, %v12245_v47  ;;  %v5780_v19 = vadd.f32 0.2548296, %v5716_v42  ;;  %v5589_v25 = vmul.f32 %v12192_v23, %v5525_v28  ;;  %v6074_v46 = vmul.f32 1.442695, %v5975_v10 }
0x11a6   : > { %13649 = vst [vmem:[#allocation75_spill] sm:$0xff] %v12262_v58  ;;  %vm4952_vm8 = vcmp.ge.f32.partialorder %v12163_v0, 0.0  ;;  %v12275_v53 = vpop.eup %8657  ;;  %v5336_v44 = vmul.f32 1.0614054, %v12259_v38  ;;  %v5912_v45 = vsub.f32 0.0, %v12172_v36  ;;  %8661 = vrcp.f32 %v5209_v22  ;;  %v13650_v10 = vld [vmem:[#allocation45_spill] sm:$0xff] }
0x11a7   : > { %v12280_v14 = vand.u32 2147483647, %v12271_v51  ;;  %v6353_v48 = vadd.f32 1.0, %v6289_v43  ;;  %v5718_v8 = vmul.f32 %v12144_v24, %v5654_v5  ;;  %8663 = vpow2.f32 %v6070_v34  ;;  %v13651_v22 = vld [vmem:[#allocation49_spill] sm:$0xff]  ;;  %v12291_v43 = vpop.f32.mrb[141].mxu0 }
0x11a8   : > { %v5463_v26 = vmul.f32 %v12240_v6, %v5399_v61  ;;  %v6355_v27 = vadd.f32 1.0, %v6291_v30  ;;  %v12285_v39 = vsel %vm4952_vm8, 1.0, %v13567_v62  ;;  %v5400_v0 = vadd.f32 -1.4531521, %v5336_v44  ;;  %13652 = vst [vmem:[#allocation45_spill] sm:$0xff] %v12291_v43  ;;  %v13653_v30 = vld [vmem:[#allocation46_spill] sm:$0xff] }
0x11a9   : > { %v5147_v42 = vmul.f32 0.3275911, %v12280_v14  ;;  %v5844_v28 = vmul.f32 %v12127_v31, %v5780_v19  ;;  %v5653_v2 = vadd.f32 -0.28449672, %v5589_v25  ;;  %8665 = vpow2.f32 %v6074_v46  ;;  %v13655_v31 = vld [vmem:[#allocation47_spill] sm:$0xff]  ;;  %v13656_v25 = vld [vmem:[#allocation48_spill] sm:$0xff] }
0x11aa   : > { %v6457_v50 = vpack.c.bf16 %v13651_v22, %v13650_v10  ;;  %v5464_v34 = vmul.f32 %v12259_v38, %v5400_v0  ;;  %v5976_v5 = vmul.f32 %v5912_v45, %v12172_v36  ;;  %v6459_v58 = vpack.c.bf16 %v11768_v35, %v13653_v30  ;;  %v13657_v46 = vld [vmem:[#allocation63_spill] sm:$0xff]  ;;  %v13658_v36 = vld [vmem:[#allocation50_spill] sm:$0xff] }
0x11ab   : > { %v5211_v61 = vadd.f32 1.0, %v5147_v42  ;;  %v5782_v44 = vadd.f32 0.2548296, %v5718_v8  ;;  %v5527_v57 = vadd.f32 1.4214138, %v5463_v26  ;;  %v6456_v19 = vpack.c.bf16 %v13655_v31, %v13654_v54 }
0x11ac   : > { %6787 = vmatprep.mubr.bf16.mxu1 %v6457_v50  ;;  %v6458_v7 = vpack.c.bf16 %v13657_v46, %v13656_v25  ;;  %v12304_v22 = vmul.f32 %v6353_v48, %v12058_v13  ;;  %v5528_v0 = vadd.f32 1.4214138, %v5464_v34  ;;  %6884 = vmatprep.mubr.bf16.mxu0 %v6459_v58  ;;  %v12308_v35 = vadd.f32 %v13658_v36, %v10990_v4  ;;  %v13660_v34 = vld [vmem:[#allocation64_spill] sm:$0xff] }
0x11ad   : > { %v12301_v10 = vpop.eup %8659  ;;  %8667 = vrcp.f32 %v5211_v61  ;;  %v12311_v50 = vmul.f32 %v6355_v27, %v12097_v63  ;;  %v6164_v54 = vmul.f32 %v12236_v1, %v5844_v28  ;;  %v5717_v45 = vmul.f32 %v12192_v23, %v5653_v2  ;;  %6788 = vmatmul.mubr.bf16.gmra.mrb[116].mxu1 %v6456_v19 }
0x11ae   : > { %v5338_v8 = vmul.f32 1.0614054, %v12301_v10  ;;  %6885 = vmatmul.mubr.bf16.gmra.mrb[148].mxu0 %v6458_v7  ;;  %v6076_v13 = vmul.f32 1.442695, %v5976_v5  ;;  %vm4954_vm9 = vcmp.ge.f32.partialorder %v12210_v40, 0.0  ;;  %v5914_v58 = vsub.f32 0.0, %v12216_v20 }
0x11af   : > { %13659 = vst [vmem:[#allocation49_spill] sm:$0xff] %v12311_v50  ;;  %v12319_v48 = vmul.f32 0.70710677, %v12308_v35  ;;  %v5846_v26 = vmul.f32 %v12144_v24, %v5782_v44  ;;  %v5591_v63 = vmul.f32 %v12240_v6, %v5527_v57  ;;  %v5592_v1 = vmul.f32 %v12259_v38, %v5528_v0  ;;  %v12339_v24 = vpop.f32.mrb[110].mxu1 }
0x11b0   : > { %v5402_v27 = vadd.f32 -1.4531521, %v5338_v8  ;;  %v12324_v42 = vpop.eup %8661  ;;  %v12327_v28 = vmul.f32 0.5, %v12188_v17  ;;  %v12330_v7 = vmul.f32 0.5, %v12200_v32  ;;  %v12337_v5 = vadd.f32 %v13660_v34, %v10992_v21  ;;  %13661 = vst [vmem:[#allocation46_spill] sm:$0xff] %v12339_v24  ;;  %v12357_v34 = vpop.f32.mrb[142].mxu0 }
0x11b1   : > { %v12333_v2 = vand.u32 2147483647, %v12319_v48  ;;  %v8664_v57 = vpop.eup %8663  ;;  %v6228_v61 = vsub.f32 1.0, %v6164_v54  ;;  %v5781_v30 = vadd.f32 0.2548296, %v5717_v45  ;;  %v12346_v32 = vsel %vm4954_vm9, 1.0, %v13567_v62 }
0x11b2   : > { %v5466_v44 = vmul.f32 %v12301_v10, %v5402_v27  ;;  %v5337_v17 = vmul.f32 1.0614054, %v12324_v42  ;;  %v5978_v31 = vmul.f32 %v5914_v58, %v12216_v20  ;;  %v5913_v19 = vsub.f32 0.0, %v12234_v18  ;;  %13662 = vst [vmem:[#allocation62_spill] sm:$0xff] %v12357_v34  ;;  %v12394_v50 = vpop.f32.mrb[111].mxu1 }
0x11b3   : > { %v5148_v25 = vmul.f32 0.3275911, %v12333_v2  ;;  %v12351_v46 = vpop.eup %8665  ;;  %v6166_v0 = vmul.f32 %v12275_v53, %v5846_v26  ;;  %v5655_v36 = vadd.f32 -0.28449672, %v5591_v63  ;;  %v5656_v54 = vadd.f32 -0.28449672, %v5592_v1 }
0x11b4   : > { %v5401_v45 = vadd.f32 -1.4531521, %v5337_v17  ;;  %8669 = vpow2.f32 %v6076_v13  ;;  %v5530_v8 = vadd.f32 1.4214138, %v5466_v44  ;;  %v12355_v40 = vmul.f32 0.70710677, %v12337_v5 }
0x11b5   : > { %v5212_v27 = vadd.f32 1.0, %v5148_v25  ;;  %v6292_v20 = vmul.f32 %v6228_v61, %v12168_v60  ;;  %v5845_v58 = vmul.f32 %v12192_v23, %v5781_v30  ;;  %vm4953_vm10 = vcmp.ge.f32.partialorder %v12219_v41, 0.0  ;;  %v13663_v63 = vld [vmem:[#allocation65_spill] sm:$0xff] }
0x11b6   : > { %v5465_v24 = vmul.f32 %v12324_v42, %v5401_v45  ;;  %v6080_v26 = vmul.f32 1.442695, %v5978_v31  ;;  %v5977_v13 = vmul.f32 %v5913_v19, %v12234_v18  ;;  %v12368_v1 = vadd.f32 %v13663_v63, %v10994_v52 }
0x11b7   : > { %v12363_v53 = vpop.eup %8667  ;;  %8671 = vrcp.f32 %v5212_v27  ;;  %v6230_v44 = vsub.f32 1.0, %v6166_v0  ;;  %v5719_v17 = vmul.f32 %v12240_v6, %v5655_v36  ;;  %v5720_v41 = vmul.f32 %v12259_v38, %v5656_v54 }
0x11b8   : > { %v5529_v60 = vadd.f32 1.4214138, %v5465_v24  ;;  %v5339_v23 = vmul.f32 1.0614054, %v12363_v53  ;;  %v5594_v61 = vmul.f32 %v12301_v10, %v5530_v8  ;;  %v12375_v30 = vsel %vm4953_vm10, 1.0, %v13567_v62 }
0x11b9   : > { %v12378_v18 = vand.u32 2147483647, %v12355_v40  ;;  %v6356_v31 = vadd.f32 1.0, %v6292_v20  ;;  %v6165_v19 = vmul.f32 %v8664_v57, %v5845_v58  ;;  %8673 = vpow2.f32 %v6080_v26 }
0x11ba   : > { %v5593_v25 = vmul.f32 %v12324_v42, %v5529_v60  ;;  %v5403_v0 = vadd.f32 -1.4531521, %v5339_v23  ;;  %v5915_v24 = vsub.f32 0.0, %v12280_v14  ;;  %v12384_v54 = vmul.f32 0.70710677, %v12368_v1 }
0x11bb   : > { %v5150_v36 = vmul.f32 0.3275911, %v12378_v18  ;;  %v6294_v45 = vmul.f32 %v6230_v44, %v12182_v9  ;;  %v5783_v8 = vadd.f32 0.2548296, %v5719_v17  ;;  %v6078_v27 = vmul.f32 1.442695, %v5977_v13 }
0x11bc   : > { %v5467_v63 = vmul.f32 %v12363_v53, %v5403_v0  ;;  %v5784_v34 = vadd.f32 0.2548296, %v5720_v41  ;;  %v5658_v20 = vadd.f32 -0.28449672, %v5594_v61  ;;  %v12389_v57 = vmul.f32 0.5, %v12245_v47  ;;  %v13665_v17 = vld [vmem:[#allocation66_spill] sm:$0xff] }
0x11bd   : > { %v5214_v58 = vadd.f32 1.0, %v5150_v36  ;;  %v12392_v26 = vmul.f32 %v6356_v31, %v12148_v15  ;;  %v6229_v60 = vsub.f32 1.0, %v6165_v19  ;;  %v5657_v23 = vadd.f32 -0.28449672, %v5593_v25  ;;  %v12407_v61 = vpop.f32.mrb[143].mxu0 }
0x11be   : > { %v5531_v43 = vadd.f32 1.4214138, %v5467_v63  ;;  %v8670_v56 = vpop.eup %8669  ;;  %vm4955_vm11 = vcmp.ge.f32.partialorder %v12271_v51, 0.0  ;;  %v5979_v9 = vmul.f32 %v5915_v24, %v12280_v14  ;;  %v12399_v13 = vand.u32 2147483647, %v12384_v54 }
0x11bf   : > { %13664 = vst [vmem:[#allocation47_spill] sm:$0xff] %v12392_v26  ;;  %8675 = vrcp.f32 %v5214_v58  ;;  %v6358_v47 = vadd.f32 1.0, %v6294_v45  ;;  %v5847_v44 = vmul.f32 %v12240_v6, %v5783_v8  ;;  %v5916_v15 = vsub.f32 0.0, %v12333_v2 }
0x11c0   : > { %v12405_v41 = vadd.f32 %v13665_v17, %v10996_v3  ;;  %v5848_v19 = vmul.f32 %v12259_v38, %v5784_v34  ;;  %v5722_v14 = vmul.f32 %v12301_v10, %v5658_v20  ;;  %8677 = vpow2.f32 %v6078_v27 }
0x11c1   : > { %v12409_v31 = vpop.eup %8671  ;;  %v5149_v25 = vmul.f32 0.3275911, %v12399_v13  ;;  %v6293_v0 = vmul.f32 %v6229_v60, %v12229_v16  ;;  %v5721_v6 = vmul.f32 %v12324_v42, %v5657_v23  ;;  %v5595_v24 = vmul.f32 %v12363_v53, %v5531_v43 }
0x11c2   : > { %v5340_v36 = vmul.f32 1.0614054, %v12409_v31  ;;  %v12421_v45 = vsel %vm4955_vm11, 1.0, %v13567_v62  ;;  %v6082_v8 = vmul.f32 1.442695, %v5979_v9  ;;  %v6167_v27 = vmul.f32 %v12351_v46, %v5847_v44 }
0x11c3   : > { %v5213_v38 = vadd.f32 1.0, %v5149_v25  ;;  %v12424_v34 = vmul.f32 0.70710677, %v12405_v41  ;;  %vm4956_vm12 = vcmp.ge.f32.partialorder %v12319_v48, 0.0  ;;  %v5980_v63 = vmul.f32 %v5916_v15, %v12333_v2  ;;  %v8674_v43 = vpop.eup %8673 }
0x11c4   : > { %v5404_v16 = vadd.f32 -1.4531521, %v5340_v36  ;;  %v6168_v20 = vmul.f32 %v8670_v56, %v5848_v19  ;;  %v5786_v58 = vadd.f32 0.2548296, %v5722_v14  ;;  %v12433_v60 = vmul.f32 %v6358_v47, %v12151_v33 }
0x11c5   : > { %8679 = vrcp.f32 %v5213_v38  ;;  %v12430_v51 = vand.u32 2147483647, %v12424_v34  ;;  %v6357_v23 = vadd.f32 1.0, %v6293_v0  ;;  %v5785_v9 = vadd.f32 0.2548296, %v5721_v6 }
0x11c6   : > { %13666 = vst [vmem:[#allocation48_spill] sm:$0xff] %v12433_v60  ;;  %v5659_v17 = vadd.f32 -0.28449672, %v5595_v24  ;;  %8681 = vpow2.f32 %v6082_v8  ;;  %v12436_v46 = vmul.f32 0.5, %v12308_v35  ;;  %v12439_v44 = vmul.f32 0.5, %v12337_v5  ;;  %v13667_v5 = vld [vmem:[#allocation67_spill] sm:$0xff] }
0x11c7   : > { %v5151_v56 = vmul.f32 0.3275911, %v12430_v51  ;;  %v6231_v2 = vsub.f32 1.0, %v6167_v27  ;;  %v12445_v15 = vsel %vm4956_vm12, 1.0, %v13567_v62  ;;  %v5468_v33 = vmul.f32 %v12409_v31, %v5404_v16 }
0x11c8   : > { %v6084_v47 = vmul.f32 1.442695, %v5980_v63  ;;  %v6232_v14 = vsub.f32 1.0, %v6168_v20  ;;  %v5850_v35 = vmul.f32 %v12301_v10, %v5786_v58  ;;  %v12453_v0 = vadd.f32 %v13667_v5, %v10990_v4 }
0x11c9   : > { %v12448_v19 = vpop.eup %8675  ;;  %v5215_v25 = vadd.f32 1.0, %v5151_v56  ;;  %v12456_v6 = vmul.f32 %v6357_v23, %v12196_v59  ;;  %v5849_v48 = vmul.f32 %v12324_v42, %v5785_v9  ;;  %v5723_v24 = vmul.f32 %v12363_v53, %v5659_v17 }
0x11ca   : > { %v5918_v36 = vsub.f32 0.0, %v12378_v18  ;;  %v8678_v8 = vpop.eup %8677  ;;  %v5342_v38 = vmul.f32 1.0614054, %v12448_v19  ;;  %v12463_v10 = vmul.f32 0.70710677, %v12453_v0  ;;  %v12467_v27 = vadd.f32 %v11779_v37, %v10992_v21 }
0x11cb   : > { %8683 = vrcp.f32 %v5215_v25  ;;  %v6295_v59 = vmul.f32 %v6231_v2, %v12268_v49  ;;  %v5532_v16 = vadd.f32 1.4214138, %v5468_v33  ;;  %vm4958_vm13 = vcmp.ge.f32.partialorder %v12355_v40, 0.0  ;;  %v13668_v33 = vld [vmem:[#allocation56_spill] sm:$0xff] }
0x11cc   : > { %v12472_v42 = vmul.f32 0.5, %v12368_v1  ;;  %v6296_v63 = vmul.f32 %v6232_v14, %v12285_v39  ;;  %v6170_v20 = vmul.f32 %v8674_v43, %v5850_v35  ;;  %8685 = vpow2.f32 %v6084_v47 }
0x11cd   : > { %v12476_v58 = vand.u32 2147483647, %v12463_v10  ;;  %v5787_v23 = vadd.f32 0.2548296, %v5723_v24  ;;  %v5982_v9 = vmul.f32 %v5918_v36, %v12378_v18  ;;  %vm4957_vm14 = vcmp.ge.f32.partialorder %v12384_v54, 0.0 }
0x11ce   : > { %v5917_v37 = vsub.f32 0.0, %v12399_v13  ;;  %v6169_v17 = vmul.f32 %v8678_v8, %v5849_v48  ;;  %v5406_v56 = vadd.f32 -1.4531521, %v5342_v38  ;;  %v12485_v39 = vmul.f32 0.70710677, %v12467_v27 }
0x11cf   : > { %v12481_v49 = vpop.eup %8679  ;;  %v5152_v1 = vmul.f32 0.3275911, %v12476_v58  ;;  %v6359_v43 = vadd.f32 1.0, %v6295_v59  ;;  %v5596_v2 = vmul.f32 %v12409_v31, %v5532_v16  ;;  %v12491_v18 = vsel %vm4958_vm13, 1.0, %v13567_v62 }
0x11d0   : > { %v12495_v47 = vadd.f32 %v13668_v33, %v10994_v52  ;;  %v8682_v14 = vpop.eup %8681  ;;  %v6360_v35 = vadd.f32 1.0, %v6296_v63  ;;  %v6234_v25 = vsub.f32 1.0, %v6170_v20  ;;  %v5341_v5 = vmul.f32 1.0614054, %v12481_v49 }
0x11d1   : > { %v5216_v48 = vadd.f32 1.0, %v5152_v1  ;;  %v5851_v24 = vmul.f32 %v12363_v53, %v5787_v23  ;;  %v6088_v36 = vmul.f32 1.442695, %v5982_v9  ;;  %v12502_v8 = vsel %vm4957_vm14, 1.0, %v13567_v62 }
0x11d2   : > { %v5981_v40 = vmul.f32 %v5917_v37, %v12399_v13  ;;  %v6233_v38 = vsub.f32 1.0, %v6169_v17  ;;  %v5470_v59 = vmul.f32 %v12448_v19, %v5406_v56  ;;  %v12507_v16 = vand.u32 2147483647, %v12485_v39 }
0x11d3   : > { %8687 = vrcp.f32 %v5216_v48  ;;  %v12510_v63 = vmul.f32 %v6359_v43, %v12251_v29  ;;  %v5660_v20 = vadd.f32 -0.28449672, %v5596_v2  ;;  %v5405_v53 = vadd.f32 -1.4531521, %v5341_v5 }
0x11d4   : > { %v12513_v23 = vmul.f32 0.70710677, %v12495_v47  ;;  %v12518_v9 = vmul.f32 %v6360_v35, %v12254_v11  ;;  %v6298_v13 = vmul.f32 %v6234_v25, %v12346_v32  ;;  %v5919_v37 = vsub.f32 0.0, %v12430_v51 }
0x11d5   : > { %v12515_v54 = vpop.eup %8683  ;;  %v5154_v17 = vmul.f32 0.3275911, %v12507_v16  ;;  %v6171_v56 = vmul.f32 %v8682_v14, %v5851_v24  ;;  %8689 = vpow2.f32 %v6088_v36  ;;  %v6086_v29 = vmul.f32 1.442695, %v5981_v40 }
0x11d6   : > { %13669 = vst [vmem:[#allocation63_spill] sm:$0xff] %v12518_v9  ;;  %v5343_v1 = vmul.f32 1.0614054, %v12515_v54  ;;  %v8686_v43 = vpop.eup %8685  ;;  %v6297_v2 = vmul.f32 %v6233_v38, %v12375_v30  ;;  %v5534_v33 = vadd.f32 1.4214138, %v5470_v59  ;;  %v12527_v11 = vadd.f32 %v11835_v12, %v10996_v3 }
0x11d7   : > { %v5218_v5 = vadd.f32 1.0, %v5154_v17  ;;  %v5724_v32 = vmul.f32 %v12409_v31, %v5660_v20  ;;  %v5469_v35 = vmul.f32 %v12481_v49, %v5405_v53  ;;  %v12532_v14 = vand.u32 2147483647, %v12513_v23 }
0x11d8   : > { %v5407_v25 = vadd.f32 -1.4531521, %v5343_v1  ;;  %v6362_v48 = vadd.f32 1.0, %v6298_v13  ;;  %vm4959_vm15 = vcmp.ge.f32.partialorder %v12424_v34, 0.0  ;;  %v5983_v24 = vmul.f32 %v5919_v37, %v12430_v51 }
0x11d9   : > { %8691 = vrcp.f32 %v5218_v5  ;;  %v6235_v30 = vsub.f32 1.0, %v6171_v56  ;;  %v12537_v36 = vmul.f32 0.5, %v12405_v41  ;;  %v5153_v40 = vmul.f32 0.3275911, %v12532_v14 }
0x11da   : > { %v5471_v12 = vmul.f32 %v12515_v54, %v5407_v25  ;;  %v6361_v38 = vadd.f32 1.0, %v6297_v2  ;;  %v5598_v59 = vmul.f32 %v12448_v19, %v5534_v33  ;;  %8693 = vpow2.f32 %v6086_v29 }
0x11db   : > { %v12543_v20 = vmul.f32 0.70710677, %v12527_v11  ;;  %v5788_v53 = vadd.f32 0.2548296, %v5724_v32  ;;  %v5533_v34 = vadd.f32 1.4214138, %v5469_v35  ;;  %v12551_v41 = vmul.f32 %v6362_v48, %v12327_v28 }
0x11dc   : > { %v12546_v51 = vsel %vm4959_vm15, 1.0, %v13567_v62  ;;  %v5217_v13 = vadd.f32 1.0, %v5153_v40  ;;  %v5535_v17 = vadd.f32 1.4214138, %v5471_v12  ;;  %v6090_v56 = vmul.f32 1.442695, %v5983_v24 }
0x11dd   : > { %v12548_v37 = vpop.eup %8687  ;;  %13670 = vst [vmem:[#allocation50_spill] sm:$0xff] %v12551_v41  ;;  %v12554_v1 = vand.u32 2147483647, %v12543_v20  ;;  %v6299_v29 = vmul.f32 %v6235_v30, %v12421_v45  ;;  %v5920_v33 = vsub.f32 0.0, %v12476_v58  ;;  %v12560_v5 = vmul.f32 %v6361_v38, %v12330_v7  ;;  %v13671_v12 = vld [vmem:[#allocation68_spill] sm:$0xff] }
0x11de   : > { %v5344_v2 = vmul.f32 1.0614054, %v12548_v37  ;;  %8695 = vrcp.f32 %v5217_v13  ;;  %v5662_v32 = vadd.f32 -0.28449672, %v5598_v59  ;;  %v12563_v35 = vmul.f32 0.5, %v12453_v0  ;;  %v13672_v0 = vld [vmem:[#allocation59_spill] sm:$0xff] }
0x11df   : > { %vm4960_vm0 = vcmp.ge.f32.partialorder %v12463_v10, 0.0  ;;  %v12566_v28 = vpop.eup %8689  ;;  %v5852_v25 = vmul.f32 %v12409_v31, %v5788_v53  ;;  %v5597_v45 = vmul.f32 %v12481_v49, %v5533_v34  ;;  %v5155_v24 = vmul.f32 0.3275911, %v12554_v1  ;;  %v13677_v10 = vld [vmem:[#allocation53_spill] sm:$0xff] }
0x11e0   : > { %v5408_v48 = vadd.f32 -1.4531521, %v5344_v2  ;;  %v5599_v30 = vmul.f32 %v12515_v54, %v5535_v17  ;;  %8697 = vpow2.f32 %v6090_v56  ;;  %v12573_v7 = vmul.f32 0.5, %v12467_v27  ;;  %v13673_v27 = vld [vmem:[#allocation69_spill] sm:$0xff]  ;;  %v13674_v56 = vld [vmem:[#allocation26_spill] sm:$0xff] }
0x11e1   : > { %v6461_v40 = vpack.c.bf16 %v13672_v0, %v13671_v12  ;;  %v6363_v38 = vadd.f32 1.0, %v6299_v29  ;;  %v5984_v13 = vmul.f32 %v5920_v33, %v12476_v58  ;;  %v5219_v31 = vadd.f32 1.0, %v5155_v24  ;;  %v13675_v12 = vld [vmem:[#allocation51_spill] sm:$0xff]  ;;  %v13676_v29 = vld [vmem:[#allocation70_spill] sm:$0xff] }
0x11e2   : > { %v5472_v59 = vmul.f32 %v12548_v37, %v5408_v48  ;;  %v5726_v34 = vmul.f32 %v12448_v19, %v5662_v32  ;;  %v12585_v17 = vsel %vm4960_vm0, 1.0, %v13567_v62  ;;  %v6463_v2 = vpack.c.bf16 %v13674_v56, %v13673_v27  ;;  %v13678_v24 = vld [vmem:[#allocation71_spill] sm:$0xff]  ;;  %v13679_v27 = vld [vmem:[#allocation72_spill] sm:$0xff] }
0x11e3   : > { %v12579_v53 = vpop.eup %8691  ;;  %6795 = vmatprep.mubr.bf16.mxu1 %v6461_v40  ;;  %v6460_v0 = vpack.c.bf16 %v13676_v29, %v13675_v12  ;;  %v6172_v48 = vmul.f32 %v8686_v43, %v5852_v25  ;;  %v5661_v41 = vadd.f32 -0.28449672, %v5597_v45  ;;  %vm4962_vm1 = vcmp.ge.f32.partialorder %v12485_v39, 0.0 }
0x11e4   : > { %v5346_v58 = vmul.f32 1.0614054, %v12579_v53  ;;  %v12593_v33 = vpop.eup %8693  ;;  %v5663_v32 = vadd.f32 -0.28449672, %v5599_v30  ;;  %8699 = vrcp.f32 %v5219_v31  ;;  %6892 = vmatprep.mubr.bf16.mxu0 %v6463_v2  ;;  %v6462_v40 = vpack.c.bf16 %v13678_v24, %v13677_v10 }
0x11e5   : > { %6796 = vmatmul.mubr.bf16.gmra.mrb[120].mxu1 %v6460_v0  ;;  %v12599_v56 = vadd.f32 %v13679_v27, %v10990_v4  ;;  %v12602_v43 = vmul.f32 %v6363_v38, %v12389_v57  ;;  %v5536_v25 = vadd.f32 1.4214138, %v5472_v59  ;;  %v6092_v39 = vmul.f32 1.442695, %v5984_v13 }
0x11e6   : > { %v5410_v45 = vadd.f32 -1.4531521, %v5346_v58  ;;  %v5790_v12 = vadd.f32 0.2548296, %v5726_v34  ;;  %v12605_v29 = vsel %vm4962_vm1, 1.0, %v13567_v62  ;;  %v5922_v30 = vsub.f32 0.0, %v12507_v16  ;;  %6893 = vmatmul.mubr.bf16.gmra.mrb[152].mxu0 %v6462_v40 }
0x11e7   : > { %v12609_v31 = vmul.f32 0.70710677, %v12599_v56  ;;  %v6236_v0 = vsub.f32 1.0, %v6172_v48  ;;  %v5725_v10 = vmul.f32 %v12481_v49, %v5661_v41  ;;  %v6465_v38 = vpack.c.bf16 %v12304_v22, %v12179_v55  ;;  %v13680_v58 = vld [vmem:[#allocation73_spill] sm:$0xff] }
0x11e8   : > { %v12611_v2 = vpop.eup %8695  ;;  %v5474_v57 = vmul.f32 %v12579_v53, %v5410_v45  ;;  %v5727_v59 = vmul.f32 %v12515_v54, %v5663_v32  ;;  %v12624_v24 = vadd.f32 %v13680_v58, %v10992_v21  ;;  %v5600_v48 = vmul.f32 %v12548_v37, %v5536_v25 }
0x11e9   : > { %v5345_v13 = vmul.f32 1.0614054, %v12611_v2  ;;  %v12620_v34 = vand.u32 2147483647, %v12609_v31  ;;  %8701 = vpow2.f32 %v6092_v39  ;;  %v12628_v40 = vmul.f32 0.5, %v12495_v47  ;;  %6803 = vmatprep.mubr.bf16.mxu1 %v6465_v38 }
0x11ea   : > { %v5538_v41 = vadd.f32 1.4214138, %v5474_v57  ;;  %v8698_v55 = vpop.eup %8697  ;;  %v5854_v22 = vmul.f32 %v12448_v19, %v5790_v12  ;;  %vm4961_vm2 = vcmp.ge.f32.partialorder %v12513_v23, 0.0  ;;  %v6300_v45 = vmul.f32 %v6236_v0, %v12445_v15  ;;  %v13682_v15 = vld [vmem:[#allocation49_spill] sm:$0xff] }
0x11eb   : > { %v5409_v32 = vadd.f32 -1.4531521, %v5345_v13  ;;  %v5156_v27 = vmul.f32 0.3275911, %v12620_v34  ;;  %v5789_v58 = vadd.f32 0.2548296, %v5725_v10  ;;  %v5986_v60 = vmul.f32 %v5922_v30, %v12507_v16 }
0x11ec   : > { %v5921_v25 = vsub.f32 0.0, %v12532_v14  ;;  %v5791_v39 = vadd.f32 0.2548296, %v5727_v59  ;;  %v12638_v38 = vmul.f32 0.70710677, %v12624_v24  ;;  %v5602_v23 = vmul.f32 %v12579_v53, %v5538_v41  ;;  %v13681_v13 = vld [vmem:[#allocation24_spill] sm:$0xff] }
0x11ed   : > { %v5473_v47 = vmul.f32 %v12611_v2, %v5409_v32  ;;  %v5220_v57 = vadd.f32 1.0, %v5156_v27  ;;  %v5664_v19 = vadd.f32 -0.28449672, %v5600_v48  ;;  %v12642_v12 = vsel %vm4961_vm2, 1.0, %v13567_v62 }
0x11ee   : > { %v6467_v0 = vpack.c.bf16 %v13682_v15, %v13681_v13  ;;  %v12646_v10 = vpop.eup %8699  ;;  %v6174_v16 = vmul.f32 %v12566_v28, %v5854_v22  ;;  %v5923_v59 = vsub.f32 0.0, %v12554_v1  ;;  %v5853_v32 = vmul.f32 %v12481_v49, %v5789_v58  ;;  %v13683_v49 = vld [vmem:[#allocation74_spill] sm:$0xff] }
0x11ef   : > { %v5537_v30 = vadd.f32 1.4214138, %v5473_v47  ;;  %8703 = vrcp.f32 %v5220_v57  ;;  %v6096_v27 = vmul.f32 1.442695, %v5986_v60  ;;  %v5985_v48 = vmul.f32 %v5921_v25, %v12532_v14 }
0x11f0   : > { %v5347_v41 = vmul.f32 1.0614054, %v12646_v10  ;;  %6900 = vmatprep.mubr.bf16.mxu0 %v6467_v0  ;;  %v6364_v9 = vadd.f32 1.0, %v6300_v45  ;;  %v5855_v26 = vmul.f32 %v12515_v54, %v5791_v39  ;;  %v12656_v15 = vand.u32 2147483647, %v12638_v38 }
0x11f1   : > { %v5601_v13 = vmul.f32 %v12611_v2, %v5537_v30  ;;  %v5728_v28 = vmul.f32 %v12548_v37, %v5664_v19  ;;  %v5666_v22 = vadd.f32 -0.28449672, %v5602_v23  ;;  %v12661_v60 = vadd.f32 %v13683_v49, %v10994_v52 }
0x11f2   : > { %v5411_v47 = vadd.f32 -1.4531521, %v5347_v41  ;;  %v6238_v14 = vsub.f32 1.0, %v6174_v16  ;;  %vm4963_vm3 = vcmp.ge.f32.partialorder %v12543_v20, 0.0  ;;  %v5987_v45 = vmul.f32 %v5923_v59, %v12554_v1  ;;  %v13684_v16 = vld [vmem:[#allocation29_spill] sm:$0xff] }
0x11f3   : > { %v5158_v54 = vmul.f32 0.3275911, %v12656_v15  ;;  %v8702_v58 = vpop.eup %8701  ;;  %v6173_v25 = vmul.f32 %v12593_v33, %v5853_v32  ;;  %v5665_v39 = vadd.f32 -0.28449672, %v5601_v13  ;;  %v6094_v57 = vmul.f32 1.442695, %v5985_v48 }
0x11f4   : > { %v5475_v19 = vmul.f32 %v12646_v10, %v5411_v47  ;;  %v6175_v23 = vmul.f32 %v8698_v55, %v5855_v26  ;;  %v12669_v30 = vmul.f32 0.70710677, %v12661_v60  ;;  %v12673_v41 = vadd.f32 %v13684_v16, %v10996_v3  ;;  %v13687_v20 = vld [vmem:[#allocation25_spill] sm:$0xff] }
0x11f5   : > { %v5222_v0 = vadd.f32 1.0, %v5158_v54  ;;  %v5792_v49 = vadd.f32 0.2548296, %v5728_v28  ;;  %v5730_v1 = vmul.f32 %v12579_v53, %v5666_v22  ;;  %8705 = vpow2.f32 %v6096_v27 }
0x11f6   : > { %v12677_v59 = vmul.f32 0.5, %v12527_v11  ;;  %v12680_v33 = vmul.f32 %v6364_v9, %v12436_v46  ;;  %v6302_v26 = vmul.f32 %v6238_v14, %v12491_v18  ;;  %v6098_v55 = vmul.f32 1.442695, %v5987_v45  ;;  %v13686_v14 = vld [vmem:[#allocation23_spill] sm:$0xff] }
0x11f7   : > { %8707 = vrcp.f32 %v5222_v0  ;;  %v6237_v32 = vsub.f32 1.0, %v6173_v25  ;;  %v5729_v48 = vmul.f32 %v12611_v2, %v5665_v39  ;;  %v12687_v13 = vsel %vm4963_vm3, 1.0, %v13567_v62 }
0x11f8   : > { %13685 = vst [vmem:[#allocation64_spill] sm:$0xff] %v12680_v33  ;;  %v5539_v28 = vadd.f32 1.4214138, %v5475_v19  ;;  %v6239_v11 = vsub.f32 1.0, %v6175_v23  ;;  %8709 = vpow2.f32 %v6094_v57  ;;  %v12692_v46 = vand.u32 2147483647, %v12669_v30 }
0x11f9   : > { %v12689_v27 = vpop.eup %8703  ;;  %v12695_v18 = vmul.f32 0.70710677, %v12673_v41  ;;  %v5856_v9 = vmul.f32 %v12548_v37, %v5792_v49  ;;  %v5794_v22 = vadd.f32 0.2548296, %v5730_v1  ;;  %v6464_v45 = vpack.c.bf16 %v13687_v20, %v13686_v14  ;;  %v13688_v14 = vld [vmem:[#allocation57_spill] sm:$0xff] }
0x11fa   : > { %v5348_v47 = vmul.f32 1.0614054, %v12689_v27  ;;  %v6366_v54 = vadd.f32 1.0, %v6302_v26  ;;  %8711 = vpow2.f32 %v6098_v55  ;;  %v5924_v25 = vsub.f32 0.0, %v12620_v34 }
0x11fb   : > { %v5157_v39 = vmul.f32 0.3275911, %v12692_v46  ;;  %v6301_v57 = vmul.f32 %v6237_v32, %v12502_v8  ;;  %v5793_v19 = vadd.f32 0.2548296, %v5729_v48  ;;  %v5603_v23 = vmul.f32 %v12646_v10, %v5539_v28  ;;  %6804 = vmatmul.mubr.bf16.gmra.mrb[124].mxu1 %v6464_v45  ;;  %v13689_v8 = vld [vmem:[#allocation75_spill] sm:$0xff] }
0x11fc   : > { %v5412_v0 = vadd.f32 -1.4531521, %v5348_v47  ;;  %v6303_v37 = vmul.f32 %v6239_v11, %v12546_v51  ;;  %vm4964_vm4 = vcmp.ge.f32.partialorder %v12609_v31, 0.0  ;;  %v12708_v49 = vand.u32 2147483647, %v12695_v18 }
0x11fd   : > { %v5221_v16 = vadd.f32 1.0, %v5157_v39  ;;  %v6176_v1 = vmul.f32 %v8702_v58, %v5856_v9  ;;  %v5858_v26 = vmul.f32 %v12579_v53, %v5794_v22  ;;  %v6466_v32 = vpack.c.bf16 %v13689_v8, %v13688_v14  ;;  %v13691_v53 = vld [vmem:[#allocation27_spill] sm:$0xff] }
0x11fe   : > { %v5476_v55 = vmul.f32 %v12689_v27, %v5412_v0  ;;  %v12715_v48 = vmul.f32 %v6366_v54, %v12439_v44  ;;  %v5988_v28 = vmul.f32 %v5924_v25, %v12620_v34  ;;  %v5159_v51 = vmul.f32 0.3275911, %v12708_v49 }
0x11ff   : > { %8713 = vrcp.f32 %v5221_v16  ;;  %v8706_v11 = vpop.eup %8705  ;;  %v5857_v47 = vmul.f32 %v12611_v2, %v5793_v19  ;;  %v5667_v20 = vadd.f32 -0.28449672, %v5603_v23  ;;  %v12721_v58 = vmul.f32 0.5, %v12599_v56  ;;  %6901 = vmatmul.mubr.bf16.gmra.mrb[156].mxu0 %v6466_v32 }
0x1200   : > { %13690 = vst [vmem:[#allocation65_spill] sm:$0xff] %v12715_v48  ;;  %v12725_v9 = vadd.f32 %v13691_v53, %v10990_v4  ;;  %v6365_v44 = vadd.f32 1.0, %v6301_v57  ;;  %v12732_v34 = vsel %vm4964_vm4, 1.0, %v13567_v62  ;;  %v5540_v45 = vadd.f32 1.4214138, %v5476_v55  ;;  %v13692_v57 = vld [vmem:[#allocation58_spill] sm:$0xff] }
0x1201   : > { %v12727_v22 = vpop.eup %8707  ;;  %v5223_v54 = vadd.f32 1.0, %v5159_v51  ;;  %v6367_v2 = vadd.f32 1.0, %v6303_v37  ;;  %v6240_v25 = vsub.f32 1.0, %v6176_v1  ;;  %v6178_v39 = vmul.f32 %v8706_v11, %v5858_v26 }
0x1202   : > { %v5350_v56 = vmul.f32 1.0614054, %v12727_v22  ;;  %v8710_v19 = vpop.eup %8709  ;;  %v6100_v23 = vmul.f32 1.442695, %v5988_v28  ;;  %v12736_v0 = vmul.f32 0.70710677, %v12725_v9  ;;  %v12740_v16 = vadd.f32 %v13692_v57, %v10992_v21 }
0x1203   : > { %8715 = vrcp.f32 %v5223_v54  ;;  %v6177_v31 = vmul.f32 %v8710_v19, %v5857_v47  ;;  %v5731_v14 = vmul.f32 %v12646_v10, %v5667_v20  ;;  %v5926_v37 = vsub.f32 0.0, %v12656_v15 }
0x1204   : > { %v5414_v55 = vadd.f32 -1.4531521, %v5350_v56  ;;  %v8712_v1 = vpop.eup %8711  ;;  %v12745_v26 = vmul.f32 %v6365_v44, %v12472_v42  ;;  %v5604_v8 = vmul.f32 %v12689_v27, %v5540_v45  ;;  %v12749_v32 = vmul.f32 0.5, %v12624_v24 }
0x1205   : > { %v12752_v28 = vand.u32 2147483647, %v12736_v0  ;;  %v12755_v51 = vmul.f32 %v6367_v2, %v12537_v36  ;;  %v6304_v11 = vmul.f32 %v6240_v25, %v12585_v17  ;;  %v6242_v47 = vsub.f32 1.0, %v6178_v39  ;;  %v13694_v39 = vld [vmem:[#allocation55_spill] sm:$0xff] }
0x1206   : > { %vm4966_vm5 = vcmp.ge.f32.partialorder %v12638_v38, 0.0  ;;  %v5478_v20 = vmul.f32 %v12727_v22, %v5414_v55  ;;  %v5925_v42 = vsub.f32 0.0, %v12692_v46  ;;  %v12763_v24 = vmul.f32 0.70710677, %v12740_v16 }
0x1207   : > { %13693 = vst [vmem:[#allocation66_spill] sm:$0xff] %v12755_v51  ;;  %v5160_v53 = vmul.f32 0.3275911, %v12752_v28  ;;  %v6241_v44 = vsub.f32 1.0, %v6177_v31  ;;  %v5795_v45 = vadd.f32 0.2548296, %v5731_v14  ;;  %8717 = vpow2.f32 %v6100_v23 }
0x1208   : > { %v5990_v36 = vmul.f32 %v5926_v37, %v12656_v15  ;;  %v5668_v17 = vadd.f32 -0.28449672, %v5604_v8  ;;  %v12769_v25 = vand.u32 2147483647, %v12763_v24  ;;  %v12773_v56 = vadd.f32 %v13694_v39, %v10994_v52 }
0x1209   : > { %v12766_v54 = vpop.eup %8713  ;;  %v5224_v2 = vadd.f32 1.0, %v5160_v53  ;;  %v6368_v19 = vadd.f32 1.0, %v6304_v11  ;;  %v6306_v57 = vmul.f32 %v6242_v47, %v12605_v29  ;;  %v12779_v23 = vsel %vm4966_vm5, 1.0, %v13567_v62 }
0x120a   : > { %v12782_v15 = vmul.f32 0.5, %v12661_v60  ;;  %v5542_v31 = vadd.f32 1.4214138, %v5478_v20  ;;  %v5989_v14 = vmul.f32 %v5925_v42, %v12692_v46  ;;  %v5162_v55 = vmul.f32 0.3275911, %v12769_v25 }
0x120b   : > { %8719 = vrcp.f32 %v5224_v2  ;;  %v6305_v37 = vmul.f32 %v6241_v44, %v12642_v12  ;;  %v5859_v8 = vmul.f32 %v12646_v10, %v5795_v45  ;;  %v5349_v29 = vmul.f32 1.0614054, %v12766_v54 }
0x120c   : > { %v12790_v11 = vmul.f32 0.5, %v12673_v41  ;;  %v5732_v60 = vmul.f32 %v12689_v27, %v5668_v17  ;;  %v6104_v47 = vmul.f32 1.442695, %v5990_v36  ;;  %v5226_v20 = vadd.f32 1.0, %v5162_v55  ;;  %v13695_v55 = vld [vmem:[#allocation60_spill] sm:$0xff] }
0x120d   : > { %v12792_v38 = vpop.eup %8715  ;;  %v12796_v46 = vmul.f32 0.70710677, %v12773_v56  ;;  %v6370_v42 = vadd.f32 1.0, %v6306_v57  ;;  %vm4965_vm6 = vcmp.ge.f32.partialorder %v12669_v30, 0.0  ;;  %vm4967_vm7 = vcmp.ge.f32.partialorder %v12695_v18, 0.0 }
0x120e   : > { %v5351_v12 = vmul.f32 1.0614054, %v12792_v38  ;;  %v5606_v10 = vmul.f32 %v12727_v22, %v5542_v31  ;;  %v6102_v41 = vmul.f32 1.442695, %v5989_v14  ;;  %8721 = vrcp.f32 %v5226_v20 }
0x120f   : > { %v12803_v53 = vand.u32 2147483647, %v12796_v46  ;;  %v6369_v44 = vadd.f32 1.0, %v6305_v37  ;;  %v6179_v45 = vmul.f32 %v8712_v1, %v5859_v8  ;;  %v5413_v36 = vadd.f32 -1.4531521, %v5349_v29 }
0x1210   : > { %v5927_v17 = vsub.f32 0.0, %v12708_v49  ;;  %v5796_v2 = vadd.f32 0.2548296, %v5732_v60  ;;  %v5415_v39 = vadd.f32 -1.4531521, %v5351_v12  ;;  %v12809_v48 = vadd.f32 %v13695_v55, %v10996_v3 }
0x1211   : > { %v5161_v57 = vmul.f32 0.3275911, %v12803_v53  ;;  %v8718_v33 = vpop.eup %8717  ;;  %v12812_v31 = vmul.f32 %v6368_v19, %v12563_v35  ;;  %8723 = vpow2.f32 %v6104_v47  ;;  %v12817_v1 = vsel %vm4965_vm6, 1.0, %v13567_v62 }
0x1212   : > { %v12822_v14 = vsel %vm4967_vm7, 1.0, %v13567_v62  ;;  %v12825_v37 = vmul.f32 %v6370_v42, %v12573_v7  ;;  %v5670_v8 = vadd.f32 -0.28449672, %v5606_v10  ;;  %8725 = vpow2.f32 %v6102_v41  ;;  %v13699_v10 = vld [vmem:[#allocation52_spill] sm:$0xff] }
0x1213   : > { %13696 = vst [vmem:[#allocation67_spill] sm:$0xff] %v12812_v31  ;;  %v5225_v29 = vadd.f32 1.0, %v5161_v57  ;;  %v12828_v35 = vmul.f32 %v6369_v44, %v12628_v40  ;;  %v6243_v19 = vsub.f32 1.0, %v6179_v45  ;;  %v5477_v60 = vmul.f32 %v12766_v54, %v5413_v36  ;;  %v13700_v31 = vld [vmem:[#allocation54_spill] sm:$0xff] }
0x1214   : > { %13697 = vst [vmem:[#allocation56_spill] sm:$0xff] %v12825_v37  ;;  %v5991_v30 = vmul.f32 %v5927_v17, %v12708_v49  ;;  %v5860_v18 = vmul.f32 %v12689_v27, %v5796_v2  ;;  %v5479_v20 = vmul.f32 %v12792_v38, %v5415_v39  ;;  %v12837_v7 = vmul.f32 0.70710677, %v12809_v48 }
0x1215   : > { %13698 = vst [vmem:[#allocation68_spill] sm:$0xff] %v12828_v35  ;;  %v12832_v47 = vpop.eup %8719  ;;  %8727 = vrcp.f32 %v5225_v29  ;;  %v12840_v42 = vmul.f32 0.5, %v12725_v9  ;;  %v5930_v12 = vsub.f32 0.0, %v12769_v25  ;;  %v12846_v49 = vadd.f32 %v13699_v10, %v10990_v4 }
0x1216   : > { %v5352_v40 = vmul.f32 1.0614054, %v12832_v47  ;;  %v5734_v41 = vmul.f32 %v12727_v22, %v5670_v8  ;;  %vm4968_vm8 = vcmp.ge.f32.partialorder %v12736_v0, 0.0  ;;  %v5928_v27 = vsub.f32 0.0, %v12752_v28 }
0x1217   : > { %v12852_v44 = vand.u32 2147483647, %v12837_v7  ;;  %v6307_v9 = vmul.f32 %v6243_v19, %v12687_v13  ;;  %v5541_v45 = vadd.f32 1.4214138, %v5477_v60  ;;  %v12856_v17 = vmul.f32 0.5, %v12740_v16 }
0x1218   : > { %v5416_v36 = vadd.f32 -1.4531521, %v5352_v40  ;;  %v12858_v2 = vpop.eup %8721  ;;  %v6180_v39 = vmul.f32 %v8718_v33, %v5860_v18  ;;  %v5543_v57 = vadd.f32 1.4214138, %v5479_v20  ;;  %v6106_v55 = vmul.f32 1.442695, %v5991_v30 }
0x1219   : > { %v5163_v8 = vmul.f32 0.3275911, %v12852_v44  ;;  %v12862_v0 = vsel %vm4968_vm8, 1.0, %v13567_v62  ;;  %v5994_v10 = vmul.f32 %v5930_v12, %v12769_v25  ;;  %v12867_v13 = vmul.f32 0.70710677, %v12846_v49 }
0x121a   : > { %v5480_v29 = vmul.f32 %v12832_v47, %v5416_v36  ;;  %v5798_v19 = vadd.f32 0.2548296, %v5734_v41  ;;  %v5992_v16 = vmul.f32 %v5928_v27, %v12752_v28  ;;  %v5354_v60 = vmul.f32 1.0614054, %v12858_v2 }
0x121b   : > { %v5227_v33 = vadd.f32 1.0, %v5163_v8  ;;  %v8724_v18 = vpop.eup %8723  ;;  %v6371_v30 = vadd.f32 1.0, %v6307_v9  ;;  %v5605_v20 = vmul.f32 %v12766_v54, %v5541_v45  ;;  %vm4970_vm9 = vcmp.ge.f32.partialorder %v12763_v24, 0.0 }
0x121c   : > { %v12874_v40 = vmul.f32 0.5, %v12773_v56  ;;  %v12876_v36 = vpop.eup %8725  ;;  %v6244_v25 = vsub.f32 1.0, %v6180_v39  ;;  %v5607_v12 = vmul.f32 %v12792_v38, %v5543_v57  ;;  %v5418_v41 = vadd.f32 -1.4531521, %v5354_v60 }
0x121d   : > { %8729 = vrcp.f32 %v5227_v33  ;;  %v5544_v28 = vadd.f32 1.4214138, %v5480_v29  ;;  %v6112_v27 = vmul.f32 1.442695, %v5994_v10  ;;  %v12880_v8 = vand.u32 2147483647, %v12867_v13 }
0x121e   : > { %8731 = vpow2.f32 %v6106_v55  ;;  %v5862_v45 = vmul.f32 %v12727_v22, %v5798_v19  ;;  %v6108_v37 = vmul.f32 1.442695, %v5992_v16  ;;  %v5482_v56 = vmul.f32 %v12858_v2, %v5418_v41 }
0x121f   : > { %v12882_v9 = vpop.eup %8727  ;;  %v12888_v39 = vadd.f32 %v13700_v31, %v10992_v21  ;;  %v12891_v57 = vmul.f32 %v6371_v30, %v12677_v59  ;;  %v5669_v55 = vadd.f32 -0.28449672, %v5605_v20  ;;  %vm4969_vm10 = vcmp.ge.f32.partialorder %v12796_v46, 0.0 }
0x1220   : > { %v5353_v29 = vmul.f32 1.0614054, %v12882_v9  ;;  %v6308_v10 = vmul.f32 %v6244_v25, %v12732_v34  ;;  %v5671_v60 = vadd.f32 -0.28449672, %v5607_v12  ;;  %v5546_v33 = vadd.f32 1.4214138, %v5482_v56 }
0x1221   : > { %13701 = vst [vmem:[#allocation59_spill] sm:$0xff] %v12888_v39  ;;  %13702 = vst [vmem:[#allocation69_spill] sm:$0xff] %v12891_v57  ;;  %v5164_v22 = vmul.f32 0.3275911, %v12880_v8  ;;  %v5608_v19 = vmul.f32 %v12832_v47, %v5544_v28  ;;  %8733 = vpow2.f32 %v6112_v27  ;;  %v5929_v31 = vsub.f32 0.0, %v12803_v53 }
0x1222   : > { %v5417_v16 = vadd.f32 -1.4531521, %v5353_v29  ;;  %v6182_v41 = vmul.f32 %v8724_v18, %v5862_v45  ;;  %v5610_v59 = vmul.f32 %v12858_v2, %v5546_v33  ;;  %v12901_v20 = vmul.f32 0.70710677, %v12888_v39 }
0x1223   : > { %v5228_v30 = vadd.f32 1.0, %v5164_v22  ;;  %v5733_v57 = vmul.f32 %v12766_v54, %v5669_v55  ;;  %v5034_v34 = vsel %vm4970_vm9, 1.0, %v13567_v62  ;;  %v12910_v25 = vsel %vm4969_vm10, 1.0, %v13567_v62 }
0x1224   : > { %v5481_v12 = vmul.f32 %v12882_v9, %v5417_v16  ;;  %v6372_v18 = vadd.f32 1.0, %v6308_v10  ;;  %v5735_v28 = vmul.f32 %v12792_v38, %v5671_v60  ;;  %v5674_v27 = vadd.f32 -0.28449672, %v5610_v59  ;;  %v13704_v10 = vld [vmem:[#allocation61_spill] sm:$0xff] }
0x1225   : > { %8735 = vrcp.f32 %v5228_v30  ;;  %v5672_v45 = vadd.f32 -0.28449672, %v5608_v19  ;;  %v5993_v55 = vmul.f32 %v5929_v31, %v12803_v53  ;;  %v12916_v29 = vmul.f32 0.5, %v12809_v48 }
0x1226   : > { %v5545_v56 = vadd.f32 1.4214138, %v5481_v12  ;;  %v6246_v33 = vsub.f32 1.0, %v6182_v41  ;;  %v5738_v46 = vmul.f32 %v12858_v2, %v5674_v27  ;;  %v12922_v22 = vand.u32 2147483647, %v12901_v20 }
0x1227   : > { %13703 = vst [vmem:[#allocation26_spill] sm:$0xff] %v12916_v29  ;;  %v12918_v24 = vpop.eup %8729  ;;  %v12926_v60 = vadd.f32 %v13704_v10, %v10994_v52  ;;  %v5797_v19 = vadd.f32 0.2548296, %v5733_v57  ;;  %v5931_v48 = vsub.f32 0.0, %v12852_v44  ;;  %v5799_v31 = vadd.f32 0.2548296, %v5735_v28 }
0x1228   : > { %v8732_v16 = vpop.eup %8731  ;;  %v5609_v59 = vmul.f32 %v12882_v9, %v5545_v56  ;;  %v5355_v53 = vmul.f32 1.0614054, %v12918_v24  ;;  %8737 = vpow2.f32 %v6108_v37  ;;  %v5802_v41 = vadd.f32 0.2548296, %v5738_v46  ;;  %v13705_v10 = vld [vmem:[#allocation45_spill] sm:$0xff] }
0x1229   : > { %v5166_v30 = vmul.f32 0.3275911, %v12922_v22  ;;  %v5736_v12 = vmul.f32 %v12832_v47, %v5672_v45  ;;  %v6110_v27 = vmul.f32 1.442695, %v5993_v55  ;;  %v12935_v51 = vadd.f32 %v13705_v10, %v10996_v3 }
0x122a   : > { %v5419_v39 = vadd.f32 -1.4531521, %v5355_v53  ;;  %v5866_v57 = vmul.f32 %v12858_v2, %v5802_v41  ;;  %v5673_v56 = vadd.f32 -0.28449672, %v5609_v59  ;;  %v12939_v35 = vmul.f32 0.70710677, %v12926_v60 }
0x122b   : > { %v5230_v29 = vadd.f32 1.0, %v5166_v30  ;;  %v8734_v28 = vpop.eup %8733  ;;  %v12942_v37 = vmul.f32 %v6372_v18, %v12721_v58  ;;  %v6310_v46 = vmul.f32 %v6246_v33, %v12779_v23  ;;  %v5861_v45 = vmul.f32 %v12766_v54, %v5797_v19 }
0x122c   : > { %v5483_v55 = vmul.f32 %v12918_v24, %v5419_v39  ;;  %v5863_v53 = vmul.f32 %v12792_v38, %v5799_v31  ;;  %v6186_v10 = vmul.f32 %v8734_v28, %v5866_v57  ;;  %v5995_v2 = vmul.f32 %v5931_v48, %v12852_v44 }
0x122d   : > { %8739 = vrcp.f32 %v5230_v29  ;;  %v5800_v59 = vadd.f32 0.2548296, %v5736_v12  ;;  %vm4971_vm11 = vcmp.ge.f32.partialorder %v12837_v7, 0.0  ;;  %v5737_v23 = vmul.f32 %v12882_v9, %v5673_v56  ;;  %v13706_v56 = vld [vmem:[#allocation46_spill] sm:$0xff] }
0x122e   : > { %8741 = vpow2.f32 %v6110_v27  ;;  %v5547_v41 = vadd.f32 1.4214138, %v5483_v55  ;;  %v6250_v58 = vsub.f32 1.0, %v6186_v10  ;;  %v12954_v54 = vand.u32 2147483647, %v12939_v35 }
0x122f   : > { %v12950_v30 = vpop.eup %8735  ;;  %v12957_v39 = vmul.f32 0.70710677, %v12935_v51  ;;  %v6374_v38 = vadd.f32 1.0, %v6310_v46  ;;  %v6181_v44 = vmul.f32 %v12876_v36, %v5861_v45  ;;  %v6183_v33 = vmul.f32 %v8732_v16, %v5863_v53 }
0x1230   : > { %v5611_v18 = vmul.f32 %v12918_v24, %v5547_v41  ;;  %v5356_v29 = vmul.f32 1.0614054, %v12950_v30  ;;  %v6314_v19 = vmul.f32 %v6250_v58, %v5034_v34  ;;  %v6114_v48 = vmul.f32 1.442695, %v5995_v2 }
0x1231   : > { %v5165_v31 = vmul.f32 0.3275911, %v12954_v54  ;;  %v5864_v12 = vmul.f32 %v12832_v47, %v5800_v59  ;;  %v12966_v28 = vadd.f32 %v13706_v56, %v10990_v4  ;;  %v5801_v36 = vadd.f32 0.2548296, %v5737_v23 }
0x1232   : > { %v5675_v27 = vadd.f32 -0.28449672, %v5611_v18  ;;  %v5420_v57 = vadd.f32 -1.4531521, %v5356_v29  ;;  %v8738_v46 = vpop.eup %8737  ;;  %v6378_v55 = vadd.f32 1.0, %v6314_v19  ;;  %v12972_v34 = vmul.f32 %v6374_v38, %v12749_v32 }
0x1233   : > { %v5229_v45 = vadd.f32 1.0, %v5165_v31  ;;  %v12969_v10 = vand.u32 2147483647, %v12957_v39  ;;  %v6245_v16 = vsub.f32 1.0, %v6181_v44  ;;  %v12975_v53 = vmul.f32 0.5, %v12846_v49  ;;  %v13714_v49 = vld [vmem:[#allocation26_spill] sm:$0xff] }
0x1234   : > { %13707 = vst [vmem:[#allocation51_spill] sm:$0xff] %v12972_v34  ;;  %v5932_v47 = vsub.f32 0.0, %v12880_v8  ;;  %v12979_v2 = vmul.f32 %v6378_v55, %v12856_v17  ;;  %v5484_v4 = vmul.f32 %v12950_v30, %v5420_v57  ;;  %v6247_v41 = vsub.f32 1.0, %v6183_v33 }
0x1235   : > { %8743 = vrcp.f32 %v5229_v45  ;;  %v5167_v59 = vmul.f32 0.3275911, %v12969_v10  ;;  %v6184_v58 = vmul.f32 %v8738_v46, %v5864_v12  ;;  %v5739_v23 = vmul.f32 %v12918_v24, %v5675_v27  ;;  %v13708_v45 = vld [vmem:[#allocation62_spill] sm:$0xff] }
0x1236   : > { %8745 = vpow2.f32 %v6114_v48  ;;  %v5865_v38 = vmul.f32 %v12882_v9, %v5801_v36  ;;  %v12990_v17 = vmul.f32 0.70710677, %v12966_v28  ;;  %v6309_v29 = vmul.f32 %v6245_v16, %v12817_v1 }
0x1237   : > { %v12984_v32 = vpop.eup %8739  ;;  %v5231_v44 = vadd.f32 1.0, %v5167_v59  ;;  %vm4972_vm12 = vcmp.ge.f32.partialorder %v12867_v13, 0.0  ;;  %v5996_v33 = vmul.f32 %v5932_v47, %v12880_v8  ;;  %v12999_v48 = vsel %vm4971_vm11, 1.0, %v13567_v62 }
0x1238   : > { %v8742_v18 = vpop.eup %8741  ;;  %v5358_v19 = vmul.f32 1.0614054, %v12984_v32  ;;  %v5548_v31 = vadd.f32 1.4214138, %v5484_v4  ;;  %v13002_v9 = vand.u32 2147483647, %v12990_v17  ;;  %v6311_v12 = vmul.f32 %v6247_v41, %v12822_v14 }
0x1239   : > { %8747 = vrcp.f32 %v5231_v44  ;;  %v5803_v27 = vadd.f32 0.2548296, %v5739_v23  ;;  %v5934_v13 = vsub.f32 0.0, %v12922_v22  ;;  %v6248_v57 = vsub.f32 1.0, %v6184_v58 }
0x123a   : > { %v5422_v1 = vadd.f32 -1.4531521, %v5358_v19  ;;  %v6185_v8 = vmul.f32 %v8742_v18, %v5865_v38  ;;  %v13007_v56 = vsel %vm4972_vm12, 1.0, %v13567_v62  ;;  %v5168_v7 = vmul.f32 0.3275911, %v13002_v9 }
0x123b   : > { %v6373_v46 = vadd.f32 1.0, %v6309_v29  ;;  %v6116_v55 = vmul.f32 1.442695, %v5996_v33  ;;  %v13013_v16 = vadd.f32 %v13708_v45, %v10992_v21  ;;  %v5612_v14 = vmul.f32 %v12950_v30, %v5548_v31 }
0x123c   : > { %v5486_v36 = vmul.f32 %v12984_v32, %v5422_v1  ;;  %vm4974_vm13 = vcmp.ge.f32.partialorder %v12901_v20, 0.0  ;;  %v5232_v47 = vadd.f32 1.0, %v5168_v7  ;;  %v13019_v4 = vadd.f32 %v12394_v50, %v10994_v52 }
0x123d   : > { %v6375_v59 = vadd.f32 1.0, %v6311_v12  ;;  %v5867_v41 = vmul.f32 %v12918_v24, %v5803_v27  ;;  %v5998_v58 = vmul.f32 %v5934_v13, %v12922_v22  ;;  %v5933_v23 = vsub.f32 0.0, %v12954_v54 }
0x123e   : > { %v6312_v21 = vmul.f32 %v6248_v57, %v12862_v0  ;;  %v6249_v44 = vsub.f32 1.0, %v6185_v8  ;;  %8749 = vrcp.f32 %v5232_v47  ;;  %v13028_v20 = vmul.f32 0.70710677, %v13013_v16 }
0x123f   : > { %v13024_v38 = vpop.eup %8743  ;;  %v13031_v52 = vsel %vm4974_vm13, 1.0, %v13567_v62  ;;  %v5550_v50 = vadd.f32 1.4214138, %v5486_v36  ;;  %v5935_v22 = vsub.f32 0.0, %v12969_v10  ;;  %v13036_v29 = vmul.f32 %v6373_v46, %v12782_v15 }
0x1240   : > { %v8746_v18 = vpop.eup %8745  ;;  %v5357_v24 = vmul.f32 1.0614054, %v13024_v38  ;;  %v5676_v33 = vadd.f32 -0.28449672, %v5612_v14  ;;  %v13039_v0 = vand.u32 2147483647, %v13028_v20  ;;  %v5997_v1 = vmul.f32 %v5933_v23, %v12954_v54 }
0x1241   : > { %v13042_v19 = vmul.f32 0.70710677, %v13019_v4  ;;  %v6187_v31 = vmul.f32 %v8746_v18, %v5867_v41  ;;  %v6120_v12 = vmul.f32 1.442695, %v5998_v58  ;;  %v6376_v57 = vadd.f32 1.0, %v6312_v21 }
0x1242   : > { %v5421_v27 = vadd.f32 -1.4531521, %v5357_v24  ;;  %v6313_v8 = vmul.f32 %v6249_v44, %v12910_v25  ;;  %8751 = vpow2.f32 %v6116_v55  ;;  %v5170_v15 = vmul.f32 0.3275911, %v13039_v0 }
0x1243   : > { %v13045_v13 = vpop.eup %8747  ;;  %v13050_v7 = vmul.f32 %v6375_v59, %v12790_v11  ;;  %v5614_v46 = vmul.f32 %v12984_v32, %v5550_v50  ;;  %v5936_v45 = vsub.f32 0.0, %v13002_v9  ;;  %v5740_v14 = vmul.f32 %v12950_v30, %v5676_v33 }
0x1244   : > { %v5485_v36 = vmul.f32 %v13024_v38, %v5421_v27  ;;  %v5999_v54 = vmul.f32 %v5935_v22, %v12969_v10  ;;  %v5234_v47 = vadd.f32 1.0, %v5170_v15  ;;  %v13058_v41 = vand.u32 2147483647, %v13042_v19 }
0x1245   : > { %v6251_v25 = vsub.f32 1.0, %v6187_v31  ;;  %8753 = vpow2.f32 %v6120_v12  ;;  %v6118_v55 = vmul.f32 1.442695, %v5997_v1  ;;  %v5359_v11 = vmul.f32 1.0614054, %v13045_v13 }
0x1246   : > { %v13062_v59 = vmul.f32 %v6376_v57, %v12840_v42  ;;  %v6377_v58 = vadd.f32 1.0, %v6313_v8  ;;  %8755 = vrcp.f32 %v5234_v47  ;;  %v5169_v23 = vmul.f32 0.3275911, %v13058_v41 }
0x1247   : > { %v5678_v21 = vadd.f32 -0.28449672, %v5614_v46  ;;  %v5549_v44 = vadd.f32 1.4214138, %v5485_v36  ;;  %vm4976_vm14 = vcmp.ge.f32.partialorder %v12990_v17, 0.0  ;;  %v6000_v10 = vmul.f32 %v5936_v45, %v13002_v9 }
0x1248   : > { %v13067_v18 = vpop.eup %8749  ;;  %v5804_v50 = vadd.f32 0.2548296, %v5740_v14  ;;  %v6122_v24 = vmul.f32 1.442695, %v5999_v54  ;;  %v5233_v22 = vadd.f32 1.0, %v5169_v23  ;;  %v13071_v33 = vadd.f32 %v12407_v61, %v10996_v3 }
0x1249   : > { %v6315_v31 = vmul.f32 %v6251_v25, %v12999_v48  ;;  %8757 = vpow2.f32 %v6118_v55  ;;  %v5423_v12 = vadd.f32 -1.4531521, %v5359_v11  ;;  %v5938_v27 = vsub.f32 0.0, %v13039_v0 }
0x124a   : > { %v13073_v42 = vpop.f32.mrb[112].mxu1  ;;  %v13082_v1 = vmul.f32 %v6377_v58, %v12874_v40  ;;  %v13085_v57 = vsel %vm4976_vm14, 1.0, %v13567_v62  ;;  %v5360_v3 = vmul.f32 1.0614054, %v13067_v18  ;;  %8759 = vrcp.f32 %v5233_v22 }
0x124b   : > { %v13079_v9 = vpop.f32.mrb[113].mxu1  ;;  %v5742_v48 = vmul.f32 %v12984_v32, %v5678_v21  ;;  %v5613_v8 = vmul.f32 %v13024_v38, %v5549_v44  ;;  %v6124_v15 = vmul.f32 1.442695, %v6000_v10  ;;  %v13093_v46 = vmul.f32 0.70710677, %v13071_v33 }
0x124c   : > { %v13077_v17 = vpop.f32.mrb[144].mxu0  ;;  %v13095_v36 = vpop.f32.mrb[114].mxu1  ;;  %v5868_v14 = vmul.f32 %v12950_v30, %v5804_v50  ;;  %v5424_v54 = vadd.f32 -1.4531521, %v5360_v3  ;;  %v6469_v47 = vpack.c.bf16 %v12560_v5, %v12456_v6  ;;  %v6471_v25 = vpack.c.bf16 %v12602_v43, %v12510_v63  ;;  %v13709_v6 = vld [vmem:[#allocation47_spill] sm:$0xff] }
0x124d   : > { %v13088_v61 = vpop.f32.mrb[145].mxu0  ;;  %v8752_v45 = vpop.eup %8751  ;;  %v6379_v58 = vadd.f32 1.0, %v6315_v31  ;;  %v5487_v23 = vmul.f32 %v13045_v13, %v5423_v12  ;;  %8761 = vpow2.f32 %v6122_v24  ;;  %v6002_v21 = vmul.f32 %v5938_v27, %v13039_v0  ;;  %v13710_v63 = vld [vmem:[#allocation63_spill] sm:$0xff]  ;;  %v13711_v31 = vld [vmem:[#allocation48_spill] sm:$0xff]  ;;  %v13712_v24 = vld [vmem:[#allocation50_spill] sm:$0xff] }
0x124e   : > { %v13097_v40 = vpop.f32.mrb[146].mxu0  ;;  %v13104_v55 = vpop.f32.mrb[115].mxu1  ;;  %v5488_v44 = vmul.f32 %v13067_v18, %v5424_v54  ;;  %v5937_v30 = vsub.f32 0.0, %v13058_v41  ;;  %v13113_v10 = vand.u32 2147483647, %v13093_v46  ;;  %6811 = vmatprep.mubr.bf16.mxu1 %v6469_v47  ;;  %6908 = vmatprep.mubr.bf16.mxu0 %v6471_v25  ;;  %v6468_v5 = vpack.c.bf16 %v13710_v63, %v13709_v6  ;;  %v13713_v47 = vld [vmem:[#allocation68_spill] sm:$0xff] }
0x124f   : > { %v13106_v11 = vpop.f32.mrb[147].mxu0  ;;  %v8754_v43 = vpop.eup %8753  ;;  %v5806_v50 = vadd.f32 0.2548296, %v5742_v48  ;;  %v5677_v22 = vadd.f32 -0.28449672, %v5613_v8  ;;  %8763 = vpow2.f32 %v6124_v15  ;;  %v6470_v12 = vpack.c.bf16 %v13712_v24, %v13711_v31  ;;  %v13718_v24 = vld [vmem:[#allocation67_spill] sm:$0xff] }
0x1250   : > { %v13119_v0 = vpop.eup %8755  ;;  %v6188_v27 = vmul.f32 %v8752_v45, %v5868_v14  ;;  %v5552_v3 = vadd.f32 1.4214138, %v5488_v44  ;;  %v5171_v54 = vmul.f32 0.3275911, %v13113_v10  ;;  %6812 = vmatmul.mubr.bf16.gmra.mrb[128].mxu1 %v6468_v5  ;;  %v6473_v25 = vpack.c.bf16 %v13713_v47, %v12745_v26  ;;  %v13715_v14 = vld [vmem:[#allocation66_spill] sm:$0xff]  ;;  %v13716_v44 = vld [vmem:[#allocation69_spill] sm:$0xff] }
0x1251   : > { %v13125_v34 = vmul.f32 %v6379_v58, %v13714_v49  ;;  %v5551_v6 = vadd.f32 1.4214138, %v5487_v23  ;;  %v5362_v48 = vmul.f32 1.0614054, %v13119_v0  ;;  %v6128_v8 = vmul.f32 1.442695, %v6002_v21  ;;  %6909 = vmatmul.mubr.bf16.gmra.mrb[160].mxu0 %v6470_v12 }
0x1252   : > { %v5616_v15 = vmul.f32 %v13067_v18, %v5552_v3  ;;  %v6001_v63 = vmul.f32 %v5937_v30, %v13058_v41  ;;  %v5235_v45 = vadd.f32 1.0, %v5171_v54  ;;  %6819 = vmatprep.mubr.bf16.mxu1 %v6473_v25  ;;  %v6475_v5 = vpack.c.bf16 %v13716_v44, %v13715_v14  ;;  %v13717_v23 = vld [vmem:[#allocation64_spill] sm:$0xff]  ;;  %v13719_v41 = vld [vmem:[#allocation65_spill] sm:$0xff] }
0x1253   : > { %v8758_v31 = vpop.eup %8757  ;;  %v5870_v26 = vmul.f32 %v12984_v32, %v5806_v50  ;;  %v5741_v49 = vmul.f32 %v13024_v38, %v5677_v22  ;;  %v5426_v58 = vadd.f32 -1.4531521, %v5362_v48  ;;  %v6472_v47 = vpack.c.bf16 %v13718_v24, %v13717_v23  ;;  %v13720_v30 = vld [vmem:[#allocation56_spill] sm:$0xff] }
0x1254   : > { %v13136_v21 = vpop.eup %8759  ;;  %v6252_v12 = vsub.f32 1.0, %v6188_v27  ;;  %v5680_v3 = vadd.f32 -0.28449672, %v5616_v15  ;;  %8765 = vrcp.f32 %v5235_v45  ;;  %6916 = vmatprep.mubr.bf16.mxu0 %v6475_v5  ;;  %v6474_v54 = vpack.c.bf16 %v13720_v30, %v13719_v41  ;;  %v13151_v15 = vld [vmem:[%s13721_s23] ss:$0 sm:$0xff] }
0x1255   : > { %v5615_v25 = vmul.f32 %v13045_v13, %v5551_v6  ;;  %v5490_v14 = vmul.f32 %v13119_v0, %v5426_v58  ;;  %8767 = vpow2.f32 %v6128_v8  ;;  %v5361_v32 = vmul.f32 1.0614054, %v13136_v21 }
0x1256   : > { %v5744_v50 = vmul.f32 %v13067_v18, %v5680_v3  ;;  %v6126_v22 = vmul.f32 1.442695, %v6001_v63  ;;  %v6477_v48 = vpack.c.bf16 %v13082_v1, %v13036_v29  ;;  %v6476_v27 = vpack.c.bf16 %v13062_v59, %v12942_v37 }
0x1257   : > { %v13153_v6 = vpop.eup %8761  ;;  %v6190_v45 = vmul.f32 %v8754_v43, %v5870_v26  ;;  %v5805_v8 = vadd.f32 0.2548296, %v5741_v49  ;;  %v5554_v44 = vadd.f32 1.4214138, %v5490_v14  ;;  %v5425_v5 = vadd.f32 -1.4531521, %v5361_v32 }
0x1258   : > { %v5808_v58 = vadd.f32 0.2548296, %v5744_v50  ;;  %6820 = vmatmul.mubr.bf16.gmra.mrb[132].mxu1 %v6472_v47  ;;  %v6479_v63 = vpack.c.bf16 %v13125_v34, %v13050_v7  ;;  %v7492_v29 = vadd.f32 %v13079_v9, %v13073_v42  ;;  %v7556_v37 = vadd.f32 %v13088_v61, %v13077_v17 }
0x1259   : > { %v8764_v59 = vpop.eup %8763  ;;  %vm4973_vm15 = vcmp.ge.f32.partialorder %v12939_v35, 0.0  ;;  %v5679_v1 = vadd.f32 -0.28449672, %v5615_v25  ;;  %v5618_v43 = vmul.f32 %v13119_v0, %v5554_v44  ;;  %v5489_v26 = vmul.f32 %v13136_v21, %v5425_v5  ;;  %6917 = vmatmul.mubr.bf16.gmra.mrb[164].mxu0 %v6474_v54  ;;  %6827 = vmatprep.mubr.bf16.mxu1 %v6477_v48 }
0x125a   : > { %v5939_v49 = vsub.f32 0.0, %v13113_v10  ;;  %v5872_v23 = vmul.f32 %v13067_v18, %v5808_v58  ;;  %v6782_v24 = vadd.f32 %v7492_v29, %v13151_v15  ;;  %v7495_v42 = vadd.f32 %v13104_v55, %v13095_v36  ;;  %v13722_v55 = vld [vmem:[#allocation28_spill] sm:$0xff] }
0x125b   : > { %v7559_v17 = vadd.f32 %v13106_v11, %v13097_v40  ;;  %v6316_v9 = vmul.f32 %v6252_v12, %v13007_v56  ;;  %v5869_v61 = vmul.f32 %v13024_v38, %v5805_v8  ;;  %v5682_v47 = vadd.f32 -0.28449672, %v5618_v43 }
0x125c   : > { %v5553_v3 = vadd.f32 1.4214138, %v5489_v26  ;;  %v6192_v41 = vmul.f32 %v8764_v59, %v5872_v23  ;;  %8769 = vpow2.f32 %v6126_v22  ;;  %v6879_v30 = vadd.f32 %v7556_v37, %v6782_v24 }
0x125d   : > { %v6785_v18 = vadd.f32 %v7495_v42, %v13151_v15  ;;  %v6254_v54 = vsub.f32 1.0, %v6190_v45  ;;  %v5743_v25 = vmul.f32 %v13045_v13, %v5679_v1  ;;  %v5746_v14 = vmul.f32 %v13119_v0, %v5682_v47 }
0x125e   : > { %v5617_v36 = vmul.f32 %v13136_v21, %v5553_v3  ;;  %v13177_v40 = vpop.eup %8765  ;;  %v6256_v56 = vsub.f32 1.0, %v6192_v41  ;;  %v6003_v38 = vmul.f32 %v5939_v49, %v13113_v10  ;;  %v6941_v11 = vadd.f32 %v6879_v30, %v13722_v55  ;;  %v13723_v10 = vld [vmem:[#allocation30_spill] sm:$0xff] }
0x125f   : > { %v6882_v12 = vadd.f32 %v7559_v17, %v6785_v18  ;;  %v8768_v32 = vpop.eup %8767  ;;  %v6189_v50 = vmul.f32 %v8758_v31, %v5869_v61  ;;  %v5810_v22 = vadd.f32 0.2548296, %v5746_v14  ;;  %v5363_v45 = vmul.f32 1.0614054, %v13177_v40 }
0x1260   : > { %v5681_v48 = vadd.f32 -0.28449672, %v5617_v36  ;;  %v6380_v8 = vadd.f32 1.0, %v6316_v9  ;;  %v6320_v44 = vmul.f32 %v6256_v56, %v13085_v57  ;;  %vm4978_vm0 = vcmp.ge.f32.partialorder %v13028_v20, 0.0  ;;  %6828 = vmatmul.mubr.bf16.gmra.mrb[136].mxu1 %v6476_v27  ;;  %6957 = vst [vmem:[%s13185_s13] sm:$0xff] %v6941_v11 }
0x1261   : > { %v6942_v5 = vadd.f32 %v6882_v12, %v13723_v10  ;;  %v5807_v58 = vadd.f32 0.2548296, %v5743_v25  ;;  %v5874_v31 = vmul.f32 %v13119_v0, %v5810_v22  ;;  %v5427_v37 = vadd.f32 -1.4531521, %v5363_v45 }
0x1262   : > { %v5745_v29 = vmul.f32 %v13136_v21, %v5681_v48  ;;  %v6318_v59 = vmul.f32 %v6254_v54, %v13031_v52  ;;  %v4848_v57 = vmul.f32 0.5, %v12966_v28  ;;  %v6384_v1 = vadd.f32 1.0, %v6320_v44  ;;  %v13724_v54 = vld [vmem:[#allocation59_spill] sm:$0xff] }
0x1263   : > { %v6130_v43 = vmul.f32 1.442695, %v6003_v38  ;;  %6958 = vst [vmem:[%s13185_s13 + $0x8] sm:$0xff] %v6942_v5  ;;  %v6253_v27 = vsub.f32 1.0, %v6189_v50  ;;  %v6194_v26 = vmul.f32 %v8768_v32, %v5874_v31  ;;  %v5491_v23 = vmul.f32 %v13177_v40, %v5427_v37 }
0x1264   : > { %v5809_v49 = vadd.f32 0.2548296, %v5745_v29  ;;  %v6444_v24 = vmul.f32 %v6380_v8, %v12975_v53  ;;  %v5037_v0 = vsel %vm4973_vm15, 1.0, %v13567_v62  ;;  %v6448_v42 = vmul.f32 %v6384_v1, %v4848_v57 }
0x1265   : > { %v5042_v52 = vsel %vm4978_vm0, 1.0, %v13567_v62  ;;  %v5871_v28 = vmul.f32 %v13045_v13, %v5807_v58  ;;  %v6258_v17 = vsub.f32 1.0, %v6194_v26  ;;  %v5555_v61 = vadd.f32 1.4214138, %v5491_v23 }
0x1266   : > { %v5873_v9 = vmul.f32 %v13136_v21, %v5809_v49  ;;  %v8770_v47 = vpop.eup %8769  ;;  %v6382_v3 = vadd.f32 1.0, %v6318_v59  ;;  %vm4977_vm1 = vcmp.ge.f32.partialorder %v13042_v19, 0.0  ;;  %8771 = vpow2.f32 %v6130_v43 }
0x1267   : > { %v6480_v53 = vpack.c.bf16 %v6448_v42, %v6444_v24  ;;  %v6317_v41 = vmul.f32 %v6253_v27, %v5037_v0  ;;  %v6322_v35 = vmul.f32 %v6258_v17, %v5042_v52  ;;  %v5619_v18 = vmul.f32 %v13177_v40, %v5555_v61  ;;  %v13725_v27 = vld [vmem:[#allocation51_spill] sm:$0xff] }
0x1268   : > { %v6193_v30 = vmul.f32 %v8770_v47, %v5873_v9  ;;  %v4846_v20 = vmul.f32 0.5, %v13724_v54  ;;  %v4850_v25 = vmul.f32 0.5, %v13013_v16  ;;  %v6191_v13 = vmul.f32 %v13153_v6, %v5871_v28  ;;  %v13727_v9 = vld [vmem:[#allocation34_spill] sm:$0xff] }
0x1269   : > { %v6386_v14 = vadd.f32 1.0, %v6322_v35  ;;  %v5683_v36 = vadd.f32 -0.28449672, %v5619_v18  ;;  %v5041_v38 = vsel %vm4977_vm1, 1.0, %v13567_v62  ;;  %v6381_v19 = vadd.f32 1.0, %v6317_v41 }
0x126a   : > { %v6257_v21 = vsub.f32 1.0, %v6193_v30  ;;  %v6446_v56 = vmul.f32 %v6382_v3, %v4846_v20  ;;  %v4845_v32 = vmul.f32 0.5, %v12926_v60  ;;  %vm4975_vm2 = vcmp.ge.f32.partialorder %v12957_v39, 0.0  ;;  %v13728_v3 = vld [vmem:[#allocation38_spill] sm:$0xff] }
0x126b   : > { %v6450_v55 = vmul.f32 %v6386_v14, %v4850_v25  ;;  %v5747_v12 = vmul.f32 %v13177_v40, %v5683_v36  ;;  %v4849_v50 = vmul.f32 0.5, %v13019_v4  ;;  %v6255_v16 = vsub.f32 1.0, %v6191_v13 }
0x126c   : > { %v6321_v11 = vmul.f32 %v6257_v21, %v5041_v38  ;;  %v6445_v45 = vmul.f32 %v6381_v19, %v4845_v32  ;;  %v5039_v5 = vsel %vm4975_vm2, 1.0, %v13567_v62  ;;  %vm4979_vm3 = vcmp.ge.f32.partialorder %v13093_v46, 0.0 }
0x126d   : > { %v5811_v6 = vadd.f32 0.2548296, %v5747_v12  ;;  %v6482_v48 = vpack.c.bf16 %v6450_v55, %v6446_v56  ;;  %v6319_v58 = vmul.f32 %v6255_v16, %v5039_v5  ;;  %v5043_v39 = vsel %vm4979_vm3, 1.0, %v13567_v62 }
0x126e   : > { %v6385_v22 = vadd.f32 1.0, %v6321_v11  ;;  %v4851_v59 = vmul.f32 0.5, %v13071_v33  ;;  %v13726_v26 = vpack.c.bf16 %v12979_v2, %v13725_v27  ;;  %v13729_v11 = vld [vmem:[#allocation32_spill] sm:$0xff] }
0x126f   : > { %v5875_v44 = vmul.f32 %v13177_v40, %v5811_v6  ;;  %v6383_v4 = vadd.f32 1.0, %v6319_v58  ;;  %v4847_v40 = vmul.f32 0.5, %v12935_v51 }
0x1270   : > { %v6449_v8 = vmul.f32 %v6385_v22, %v4849_v50  ;;  %v8772_v10 = vpop.eup %8771  ;;  %v13730_v50 = vld [vmem:[#allocation40_spill] sm:$0xff] }
0x1271   : > { %v6195_v31 = vmul.f32 %v8772_v10, %v5875_v44  ;;  %v6447_v1 = vmul.f32 %v6383_v4, %v4847_v40  ;;  %v13731_v40 = vld [vmem:[#allocation35_spill] sm:$0xff] }
0x1272   : > { %v6481_v60 = vpack.c.bf16 %v6449_v8, %v6445_v45 }
0x1273   : > { %v6259_v29 = vsub.f32 1.0, %v6195_v31 }
0x1274   : > { %6835 = vmatprep.mubr.bf16.mxu1 %v6481_v60 }
0x1275   : > { %6836 = vmatmul.mubr.bf16.gmra.mrb[140].mxu1 %v6480_v53  ;;  %v6323_v37 = vmul.f32 %v6259_v29, %v5043_v39 }
0x1276   : > { %6924 = vmatprep.mubr.bf16.mxu1 %v6479_v63 }
0x1277   : > { %v6387_v57 = vadd.f32 1.0, %v6323_v37 }
0x1279   : > { %v6451_v46 = vmul.f32 %v6387_v57, %v4851_v59 }
0x127b   : > { %v6483_v43 = vpack.c.bf16 %v6451_v46, %v6447_v1  ;;  %v13732_v1 = vld [vmem:[#allocation42_spill] sm:$0xff] }
0x127d   : > { %6925 = vmatmul.mubr.bf16.vlgmr.msra.gmra.mrb[144].mxu1 %v13726_v26 }
0x127e   : > { %6932 = vmatprep.mubr.bf16.mxu1 %v6483_v43 }
0x1280   : > { %v7496_v62 = vpop.f32.mrb[116].mxu1 }
0x1281   : > { %v7560_v49 = vpop.f32.mrb[148].mxu0  ;;  %v7497_v23 = vpop.f32.mrb[117].mxu1 }
0x1282   : > { %v7561_v24 = vpop.f32.mrb[149].mxu0  ;;  %v7498_v34 = vadd.f32 %v7497_v23, %v7496_v62  ;;  %v7499_v51 = vpop.f32.mrb[118].mxu1 }
0x1283   : > { %v7562_v7 = vadd.f32 %v7561_v24, %v7560_v49  ;;  %v7563_v63 = vpop.f32.mrb[150].mxu0  ;;  %v7500_v33 = vpop.f32.mrb[119].mxu1 }
0x1284   : > { %v7564_v0 = vpop.f32.mrb[151].mxu0  ;;  %v6790_v42 = vadd.f32 %v7498_v34, %v13151_v15  ;;  %v7501_v52 = vadd.f32 %v7500_v33, %v7499_v51 }
0x1285   : > { %6933 = vmatmul.mubr.bf16.gmra.mrb[148].mxu1 %v6482_v48  ;;  %v7565_v28 = vadd.f32 %v7564_v0, %v7563_v63 }
0x1286   : > { %v6887_v2 = vadd.f32 %v7562_v7, %v6790_v42  ;;  %v6793_v17 = vadd.f32 %v7501_v52, %v13151_v15 }
0x1288   : > { %v6943_v61 = vadd.f32 %v6887_v2, %v13727_v9  ;;  %v6890_v47 = vadd.f32 %v7565_v28, %v6793_v17 }
0x128a   : > { %6959 = vst [vmem:[%s13185_s13 + $0x10] sm:$0xff] %v6943_v61  ;;  %v6944_v53 = vadd.f32 %v6890_v47, %v13728_v3 }
0x128c   : > { %6960 = vst [vmem:[%s13185_s13 + $0x18] sm:$0xff] %v6944_v53 }
0x12b8   : > { %v7502_v41 = vpop.f32.mrb[120].mxu1 }
0x12b9   : > { %v7503_v35 = vpop.f32.mrb[121].mxu1  ;;  %v7566_v30 = vpop.f32.mrb[152].mxu0 }
0x12ba   : > { %v7504_v18 = vadd.f32 %v7503_v35, %v7502_v41  ;;  %v7505_v54 = vpop.f32.mrb[122].mxu1  ;;  %v7567_v20 = vpop.f32.mrb[153].mxu0 }
0x12bb   : > { %v7506_v25 = vpop.f32.mrb[123].mxu1  ;;  %v7568_v14 = vadd.f32 %v7567_v20, %v7566_v30  ;;  %v7569_v21 = vpop.f32.mrb[154].mxu0 }
0x12bc   : > { %v6798_v13 = vadd.f32 %v7504_v18, %v13151_v15  ;;  %v7507_v36 = vadd.f32 %v7506_v25, %v7505_v54  ;;  %v7570_v56 = vpop.f32.mrb[155].mxu0 }
0x12bd   : > { %v7571_v55 = vadd.f32 %v7570_v56, %v7569_v21 }
0x12be   : > { %v6895_v38 = vadd.f32 %v7568_v14, %v6798_v13  ;;  %v6801_v19 = vadd.f32 %v7507_v36, %v13151_v15 }
0x12c0   : > { %v6945_v12 = vadd.f32 %v6895_v38, %v13729_v11  ;;  %v6898_v32 = vadd.f32 %v7571_v55, %v6801_v19 }
0x12c2   : > { %6961 = vst [vmem:[%s13185_s13 + $0x20] sm:$0xff] %v6945_v12  ;;  %v6946_v16 = vadd.f32 %v6898_v32, %v13730_v50 }
0x12c4   : > { %6962 = vst [vmem:[%s13185_s13 + $0x28] sm:$0xff] %v6946_v16 }
0x12ce   : > { %v7508_v22 = vpop.f32.mrb[124].mxu1 }
0x12cf   : > { %v7509_v6 = vpop.f32.mrb[125].mxu1 }
0x12d0   : > { %v7510_v48 = vadd.f32 %v7509_v6, %v7508_v22  ;;  %v7511_v45 = vpop.f32.mrb[126].mxu1 }
0x12d1   : > { %v7512_v8 = vpop.f32.mrb[127].mxu1 }
0x12d2   : > { %v7572_v44 = vpop.f32.mrb[156].mxu0  ;;  %v6806_v10 = vadd.f32 %v7510_v48, %v13151_v15  ;;  %v7513_v5 = vadd.f32 %v7512_v8, %v7511_v45 }
0x12d3   : > { %v7573_v58 = vpop.f32.mrb[157].mxu0 }
0x12d4   : > { %v7574_v31 = vadd.f32 %v7573_v58, %v7572_v44  ;;  %v7575_v60 = vpop.f32.mrb[158].mxu0  ;;  %v6809_v29 = vadd.f32 %v7513_v5, %v13151_v15 }
0x12d5   : > { %v7576_v39 = vpop.f32.mrb[159].mxu0 }
0x12d6   : > { %v6903_v4 = vadd.f32 %v7574_v31, %v6806_v10  ;;  %v7577_v37 = vadd.f32 %v7576_v39, %v7575_v60 }
0x12d8   : > { %v6947_v59 = vadd.f32 %v6903_v4, %v13731_v40  ;;  %v6906_v57 = vadd.f32 %v7577_v37, %v6809_v29 }
0x12da   : > { %6963 = vst [vmem:[%s13185_s13 + $0x30] sm:$0xff] %v6947_v59  ;;  %v6948_v46 = vadd.f32 %v6906_v57, %v13732_v1 }
0x12dc   : > { %6964 = vst [vmem:[%s13185_s13 + $0x38] sm:$0xff] %v6948_v46 }
0x12dd   : > { %8943 = shalt.err (!%p8940_p13)
}
0x12de   : > { %s8944_s18 = scalar_lea.hbm %s13250_s17, 2048  ;;  %s8948_s19 = scalar_lea.hbm %s13733_s9, 4096 }
0x12df   : > { %p8945_p9 = scmp.ne.s32.totalorder %s13250_s17, %s8944_s18  ;;  %p8949_p4 = scmp.lt.u32.totalorder %s13250_s17, %s13733_s9 }
0x12e0   : > { %p8950_p8 = scmp.lt.u32.totalorder %s8948_s19, %s8944_s18  ;;  %p8952_p3 = scmp.lt.u32.totalorder %s8944_s18, %s13250_s17 }
0x12e1   : > { %p8946_p0 = pnand %p8945_p9, %p9286_p10 }
0x12e2   : > { %p8951_p6 = por %p8950_p8, %p8949_p4 }
0x12e3   : > { %p8947_p11 = pneg %p8946_p0 }
0x12e4   : > { %p8953_p5 = por %p8952_p3, %p8951_p6 }
0x12e6   : > { %p8954_p7 = pnand %p8953_p5, %p8947_p11 }
0x12e8   : > { %8957 = shalt.err (!%p8954_p7)
}
0x12e9   : > { %s9057_s22 = smov 128   ;;  %s9058_s3 = smov 8   ;;  %v13734_v28 = vld [vmem:[#allocation31_spill] sm:$0xff]  ;;  %v13736_v38 = vld [vmem:[#allocation37_spill] sm:$0xff]  ;;  %v13737_v32 = vld [vmem:[#allocation44_spill] sm:$0xff] }
0x12ea   : > { %7989 = dma.vmem_to_hbm [thread:$0]  (%p9286_p10), %s13253_s14, 2048, %s13250_s17, %s6979_s16, %s9057_s22, %s9057_s22, %s9058_s3   ;;  %v13735_v3 = vld [vmem:[#allocation39_spill] sm:$0xff]  ;;  %v13738_v1 = vld [vmem:[#allocation33_spill] sm:$0xff] }
0x12eb   : > { %s6992_s17 = sshll.u32 %s13185_s13, 4  ;;  %s13742_s18 = sld [smem:[#allocation79_spill]]  ;;  %s13313_s17 = int_to_ptr.vmem [resolvable:$true] %s6992_s17 }
0x12ec   : > { %s6974_s12 = scalar_lea.sflag [#allocation6], %s9338_s20  ;;  %s8958_s19 = scalar_lea.vmem %s13313_s17, 2048 }
0x12ed   : > { %p8959_p12 = scmp.ne.s32.totalorder %s13313_s17, %s8958_s19  ;;  %s9059_s21 = smov [#allocation13]  }
0x12ee   : > { %s8962_s25 = sshll.u32 %s9059_s21, 4  ;;  %s8963_s25 = int_to_ptr.vmem [resolvable:$false] %s8962_s25 }
0x12ef   : > { %p8960_p2 = pnand %p8959_p12, %p9286_p10  ;;  %s8964_s29 = scalar_lea.vmem %s8963_s25, 4096 }
0x12f0   : > { %p8965_p13 = scmp.lt.s32.totalorder %s13313_s17, %s8963_s25  ;;  %p8966_p9 = scmp.lt.s32.totalorder %s8964_s29, %s8958_s19 }
0x12f1   : > { %s13311_s23 = scalar_lea.hbm %s13742_s18, %s7312_s11  ;;  %p8961_p1 = pneg %p8960_p2 }
0x12f2   : > { %p8967_p0 = por %p8966_p9, %p8965_p13 }
0x12f4   : > { %p8968_p11 = pnand %p8967_p0, %p8961_p1 }
0x1323   : > { %v7514_v43 = vpop.f32.mrb[128].mxu1 }
0x1324   : > { %v7578_v27 = vpop.f32.mrb[160].mxu0  ;;  %v7515_v26 = vpop.f32.mrb[129].mxu1 }
0x1325   : > { %v7516_v62 = vadd.f32 %v7515_v26, %v7514_v43  ;;  %v7579_v49 = vpop.f32.mrb[161].mxu0  ;;  %v7517_v23 = vpop.f32.mrb[130].mxu1 }
0x1326   : > { %v7580_v24 = vadd.f32 %v7579_v49, %v7578_v27  ;;  %v7581_v34 = vpop.f32.mrb[162].mxu0  ;;  %v7518_v7 = vpop.f32.mrb[131].mxu1  ;;  %v13739_v27 = vld [vmem:[#allocation41_spill] sm:$0xff] }
0x1327   : > { %v6814_v51 = vadd.f32 %v7516_v62, %v13151_v15  ;;  %v7519_v63 = vadd.f32 %v7518_v7, %v7517_v23  ;;  %v7582_v33 = vpop.f32.mrb[163].mxu0 }
0x1328   : > { %v7583_v0 = vadd.f32 %v7582_v33, %v7581_v34 }
0x1329   : > { %v6911_v42 = vadd.f32 %v7580_v24, %v6814_v51  ;;  %v6817_v52 = vadd.f32 %v7519_v63, %v13151_v15 }
0x132b   : > { %v6949_v2 = vadd.f32 %v6911_v42, %v13734_v28  ;;  %v6914_v17 = vadd.f32 %v7583_v0, %v6817_v52  ;;  %v7520_v9 = vpop.f32.mrb[132].mxu1  ;;  %v13740_v0 = vld [vmem:[#allocation36_spill] sm:$0xff]  ;;  %v13741_v28 = vld [vmem:[#allocation43_spill] sm:$0xff] }
0x132c   : > { %v7584_v61 = vpop.f32.mrb[164].mxu0  ;;  %v7521_v47 = vpop.f32.mrb[133].mxu1 }
0x132d   : > { %6965 = vst [vmem:[%s13185_s13 + $0x40] sm:$0xff] %v6949_v2  ;;  %v6950_v53 = vadd.f32 %v6914_v17, %v13735_v3  ;;  %v7522_v41 = vadd.f32 %v7521_v47, %v7520_v9  ;;  %v7585_v35 = vpop.f32.mrb[165].mxu0  ;;  %v7523_v30 = vpop.f32.mrb[134].mxu1 }
0x132e   : > { %v7586_v18 = vadd.f32 %v7585_v35, %v7584_v61  ;;  %v7587_v54 = vpop.f32.mrb[166].mxu0  ;;  %v7524_v20 = vpop.f32.mrb[135].mxu1 }
0x132f   : > { %6966 = vst [vmem:[%s13185_s13 + $0x48] sm:$0xff] %v6950_v53  ;;  %v6822_v25 = vadd.f32 %v7522_v41, %v13151_v15  ;;  %v7525_v13 = vadd.f32 %v7524_v20, %v7523_v30  ;;  %v7588_v14 = vpop.f32.mrb[167].mxu0 }
0x1330   : > { %v7589_v21 = vadd.f32 %v7588_v14, %v7587_v54 }
0x1331   : > { %v6919_v36 = vadd.f32 %v7586_v18, %v6822_v25  ;;  %v6825_v56 = vadd.f32 %v7525_v13, %v13151_v15 }
0x1333   : > { %v6951_v19 = vadd.f32 %v6919_v36, %v13736_v38  ;;  %v6922_v55 = vadd.f32 %v7589_v21, %v6825_v56  ;;  %v7526_v11 = vpop.f32.mrb[136].mxu1 }
0x1334   : > { %v7527_v12 = vpop.f32.mrb[137].mxu1 }
0x1335   : > { %6967 = vst [vmem:[%s13185_s13 + $0x50] sm:$0xff] %v6951_v19  ;;  %v6952_v50 = vadd.f32 %v6922_v55, %v13737_v32  ;;  %v7528_v16 = vadd.f32 %v7527_v12, %v7526_v11  ;;  %v7529_v22 = vpop.f32.mrb[138].mxu1 }
0x1336   : > { %v7530_v6 = vpop.f32.mrb[139].mxu1 }
0x1337   : > { %6968 = vst [vmem:[%s13185_s13 + $0x58] sm:$0xff] %v6952_v50  ;;  %v7531_v48 = vadd.f32 %v7530_v6, %v7529_v22  ;;  %v6830_v29 = vadd.f32 %v7528_v16, %v13151_v15 }
0x1339   : > { %v6833_v40 = vadd.f32 %v7531_v48, %v13151_v15 }
0x1348   : > { %v7532_v45 = vpop.f32.mrb[140].mxu1 }
0x1349   : > { %v7533_v8 = vpop.f32.mrb[141].mxu1 }
0x134a   : > { %v7534_v44 = vadd.f32 %v7533_v8, %v7532_v45  ;;  %v7535_v10 = vpop.f32.mrb[142].mxu1 }
0x134b   : > { %v7536_v5 = vpop.f32.mrb[143].mxu1 }
0x134c   : > { %v7537_v58 = vadd.f32 %v7536_v5, %v7535_v10  ;;  %v6838_v23 = vadd.f32 %v7534_v44, %v13151_v15 }
0x134e   : > { %v6841_v51 = vadd.f32 %v7537_v58, %v13151_v15 }
0x1350   : > { %v7590_v31 = vpop.f32.mrb[144].mxu1 }
0x1351   : > { %v7591_v60 = vpop.f32.mrb[145].mxu1 }
0x1352   : > { %v7592_v39 = vadd.f32 %v7591_v60, %v7590_v31  ;;  %v7593_v4 = vpop.f32.mrb[146].mxu1 }
0x1353   : > { %v7594_v37 = vpop.f32.mrb[147].mxu1 }
0x1354   : > { %v6927_v59 = vadd.f32 %v7592_v39, %v6830_v29  ;;  %v7595_v57 = vadd.f32 %v7594_v37, %v7593_v4 }
0x1356   : > { %v6953_v46 = vadd.f32 %v6927_v59, %v13738_v1  ;;  %v6930_v43 = vadd.f32 %v7595_v57, %v6833_v40 }
0x1358   : > { %6969 = vst [vmem:[%s13185_s13 + $0x60] sm:$0xff] %v6953_v46  ;;  %v6954_v26 = vadd.f32 %v6930_v43, %v13739_v27  ;;  %v7596_v62 = vpop.f32.mrb[148].mxu1 }
0x1359   : > { %v7597_v49 = vpop.f32.mrb[149].mxu1 }
0x135a   : > { %6970 = vst [vmem:[%s13185_s13 + $0x68] sm:$0xff] %v6954_v26  ;;  %v7598_v24 = vadd.f32 %v7597_v49, %v7596_v62  ;;  %v7599_v34 = vpop.f32.mrb[150].mxu1 }
0x135b   : > { %v7600_v7 = vpop.f32.mrb[151].mxu1 }
0x135c   : > { %v6935_v63 = vadd.f32 %v7598_v24, %v6838_v23  ;;  %v7601_v33 = vadd.f32 %v7600_v7, %v7599_v34 }
0x135e   : > { %v6955_v42 = vadd.f32 %v6935_v63, %v13740_v0  ;;  %v6938_v52 = vadd.f32 %v7601_v33, %v6841_v51 }
0x1360   : > { %6971 = vst [vmem:[%s13185_s13 + $0x70] sm:$0xff] %v6955_v42  ;;  %v6956_v2 = vadd.f32 %v6938_v52, %v13741_v28 }
0x1362   : > { %6972 = vst [vmem:[%s13185_s13 + $0x78] sm:$0xff] %v6956_v2 }
0x1363   : > { %8971 = shalt.err (!%p8968_p11)
}
0x1364   : > { %s8972_s13 = scalar_lea.hbm %s13311_s23, 2048  ;;  %s8976_s16 = scalar_lea.hbm %s13742_s18, 4096 }
0x1365   : > { %p8973_p4 = scmp.ne.s32.totalorder %s13311_s23, %s8972_s13  ;;  %p8977_p3 = scmp.lt.u32.totalorder %s13311_s23, %s13742_s18 }
0x1366   : > { %p8978_p5 = scmp.lt.u32.totalorder %s8976_s16, %s8972_s13  ;;  %p8980_p12 = scmp.lt.u32.totalorder %s8972_s13, %s13311_s23 }
0x1367   : > { %p8974_p8 = pnand %p8973_p4, %p9286_p10 }
0x1368   : > { %p8979_p7 = por %p8978_p5, %p8977_p3 }
0x1369   : > { %p8975_p6 = pneg %p8974_p8 }
0x136a   : > { %p8981_p2 = por %p8980_p12, %p8979_p7 }
0x136c   : > { %p8982_p1 = pnand %p8981_p2, %p8975_p6 }
0x136e   : > { %8985 = shalt.err (!%p8982_p1)
}
0x136f   : > { %7988 = dma.vmem_to_hbm [thread:$0]  (%p9286_p10), %s13313_s17, 2048, %s13311_s23, %s6974_s12, %s9057_s22, %s9057_s22, %s9058_s3  }
0x1370 PF: > { %s13743_s19 = sld [smem:[#allocation21_spill]]  ;;  %s13744_s29 = sld [smem:[#allocation22_spill]] }
0x1371   : > { %p13746_p9 = scmp.ge.s32.totalorder %s9036_s28, 2 }
0x1376   : > { %s7023_s11 = sand.u32 1, %s13743_s19   ;;  %p13745_p13 = scmp.ne.s32.totalorder %s13744_s29, 0 }
0x1377   : > { %s7024_s13 = scalar_lea.sflag [#allocation6], %s7023_s11 }
0x1378   : > { %p8010_p0 = pnand %p13746_p9, %p13745_p13 }
0x137a   : > { %9015 = dma.done.wait (!%p8010_p0), %s7024_s13, 2048  }
0x137b   : > { %9017 = vsyncadd (!%p8010_p0), %s7024_s13, 4294965248  ;;  %s7033_s24 = scalar_lea.sflag [#allocation15], %s7023_s11 }
0x137c   : > { %9019 = dma.done.wait (!%p8010_p0), %s7033_s24, 2048  }
0x137d   : > { %9021 = vsyncadd (!%p8010_p0), %s7033_s24, 4294965248  ;;  %p32_p10 = scmp.ge.s32.totalorder %s9276_s15, 4   ;;  %s13747_s25 = smov %s9028_s26 }
0x137e   : > { %s13748_s26 = smov %s9032_s27  ;;  %s13749_s27 = smov %s9292_s30 }
0x137f   : > { %s13750_s28 = smov %s9276_s15  ;;  %34 = sbr.rel (!%p32_p10) target bundleno = 15 (0xf), region = 146 }
0x1386   :  { %7038 = vsyncpa [#allocation5], 1 }
0x1387   :  { %7040 = vsyncpa [#allocation5 + $0x1], 1 }
0x1388   :  { %7041 = vsyncpa [#allocation8], 1 }
0x1389   :  { %7042 = vsyncpa [#allocation11], 1 }
0x138a   :  { %7043 = vsyncpa [#allocation6], 1 }
0x138b   :  { %7045 = vsyncpa [#allocation6 + $0x1], 1 }
0x138c   :  { %7046 = vsyncpa [#allocation15], 1 }
0x138d   :  { %7048 = vsyncpa [#allocation15 + $0x1], 1 }

</bundles_post_ra>
